<compile_context>
chip_gen: v7x
topology: tpu7x:2x2x1
jax: 0.10.0
libtpu: 0.0.40
codegen_flags: <defaults>
</compile_context>

<pallas_src>
import functools
import math

import jax
import jax.numpy as jnp
from jax import lax
from jax.experimental import pallas as pl
from jax.experimental.pallas import tpu as pltpu


def encoder_layer_kernel(x_ref, mask_ref,
                         wq_ref, bq_ref, wk_ref, bk_ref, wv_ref, bv_ref,
                         wo_ref, bo_ref,
                         ln1_g_ref, ln1_b_ref,
                         w1_ref, b1_ref, w2_ref, b2_ref,
                         ln2_g_ref, ln2_b_ref,
                         out_ref,
                         k_scr, vwo_scr, neg_scr,
                         *, n_heads, d_k, d_v, eps, q_tile):
    t = pl.program_id(1)
    cdt = x_ref.dtype          # matmul-operand dtype (bf16 supported); accumulation is f32.
    D = x_ref.shape[-1]

    # ---- Per-batch prologue (t == 0): K, V*Wo and the mask bias for the whole sequence are
    #      computed once and cached in VMEM scratch; later q-tiles of the same batch reuse them.
    @pl.when(t == 0)
    def _():
        xf = x_ref[...]                                                     # [S, D]
        # K kept fused & lane-dense as [S, H*d_k]: one 128-wide store, no per-head
        # 32-lane-padded scratch.
        k = jnp.dot(xf, wk_ref[...], preferred_element_type=jnp.float32) + bk_ref[...]
        k_scr[...] = k.astype(cdt)
        # Fuse V with the output projection: vwo[h] = (x @ Wv_h + bv_h) @ Wo_h -> [H, S, D].
        # Removes the per-tile PV -> concat-heads -> Wo round trip; stores are lane-dense.
        v = jnp.dot(xf, wv_ref[...], preferred_element_type=jnp.float32) + bv_ref[...]
        for h in range(n_heads):
            v_h = v[:, h * d_v:(h + 1) * d_v].astype(cdt)
            vwo_scr[h] = jnp.dot(v_h, wo_ref[h * d_v:(h + 1) * d_v, :],
                                 preferred_element_type=jnp.float32).astype(cdt)
        # Additive mask bias is t-invariant: compute the compare+select once per batch.
        neg_scr[...] = jnp.where(mask_ref[...] == 0,
                                 jnp.float32(-1e10), jnp.float32(0.0))      # [1, S]

    # ---- Current query tile ----
    row0 = pl.multiple_of(t * q_tile, q_tile)
    x_q = x_ref[pl.ds(row0, q_tile), :]                                     # [TQ, D]

    q = jnp.dot(x_q, wq_ref[...], preferred_element_type=jnp.float32) + bq_ref[...]
    # Fold 1/sqrt(d_k) into q: TQ*H*d_k muls instead of H*TQ*S on the score matrix.
    q = (q * jnp.float32(1.0 / math.sqrt(d_k))).astype(cdt)                 # [TQ, H*d_k]

    neg = neg_scr[...]                                                      # [1, S] f32
    o = jnp.zeros((q_tile, D), jnp.float32)                                 # head-summed attn out
    for h in range(n_heads):
        q_h = q[:, h * d_k:(h + 1) * d_k]                                   # [TQ, d_k]
        k_h = k_scr[:, h * d_k:(h + 1) * d_k]                               # [S,  d_k]
        # Scores in f32 (keep f32: the -1e10 bias would saturate bf16).
        s = lax.dot_general(q_h, k_h, (((1,), (1,)), ((), ())),
                            preferred_element_type=jnp.float32)             # [TQ, S] = q @ k^T
        s = s + neg
        m = jnp.max(s, axis=-1, keepdims=True)
        p = jnp.exp(s - m)                                                  # un-normalized probs
        l = jnp.sum(p, axis=-1, keepdims=True)
        o_h = jnp.dot(p.astype(cdt), vwo_scr[h],
                      preferred_element_type=jnp.float32)                   # [TQ, D]
        # Deferred softmax normalization: scale the [TQ, D] result instead of the [TQ, S]
        # probabilities; reciprocal runs on the EUP slot.
        o = o + o_h * pl.reciprocal(l, approx=True)
    attn = o + bo_ref[...]                                                  # [TQ, D]

    # ---- Residual + LayerNorm 1 (dropout == identity in eval mode) ----
    y = x_q.astype(jnp.float32) + attn
    mu = jnp.mean(y, axis=-1, keepdims=True)
    var = jnp.mean((y - mu) ** 2, axis=-1, keepdims=True)
    y = (y - mu) * lax.rsqrt(var + eps) * ln1_g_ref[...] + ln1_b_ref[...]

    # ---- Position-wise feed-forward (same query-row tiling) ----
    h1 = jnp.dot(y.astype(cdt), w1_ref[...], preferred_element_type=jnp.float32) + b1_ref[...]
    h1 = jnp.maximum(h1, 0.0)
    h2 = jnp.dot(h1.astype(cdt), w2_ref[...], preferred_element_type=jnp.float32) + b2_ref[...]

    # ---- Residual + LayerNorm 2 ----
    z = y + h2
    mu2 = jnp.mean(z, axis=-1, keepdims=True)
    var2 = jnp.mean((z - mu2) ** 2, axis=-1, keepdims=True)
    z = (z - mu2) * lax.rsqrt(var2 + eps) * ln2_g_ref[...] + ln2_b_ref[...]

    out_ref[...] = z.astype(out_ref.dtype)


def _default_q_tile(S):
    # MXU-height query tiles: 256 fills the 256-wide v6e/v7x MXU, 128 fills v5e's 128x128 MXU.
    if S % 256 == 0:
        return 256
    if S % 128 == 0:
        return 128
    return S   # small / odd sequences: single tile


def _pick_vmem_limit_bytes():
    # v5e/v6e: 128 MiB physical -> request ~96 MiB so bigger tiles stay resident.
    # v7x: 64 MiB physical -> request ~48 MiB.
    try:
        cap = int(pltpu.get_tpu_info().vmem_capacity_bytes)
    except Exception:
        cap = 64 * 1024 * 1024
    return min(96 * 1024 * 1024, (cap * 3) // 4)


def transformer_encoder_layer(x, mask, params, *, n_heads, d_k, d_v, eps=1e-5, q_tile=None):
    B, S, D = x.shape
    if q_tile is None:
        q_tile = _default_q_tile(S)
    assert S % q_tile == 0, "S must be divisible by q_tile"
    (wq, bq, wk, bk, wv, bv, wo, bo,
     ln1_g, ln1_b, w1, b1, w2, b2, ln2_g, ln2_b) = params

    def full_spec(a):
        # Grid-invariant parameters: fetched once, resident in VMEM.
        nd = a.ndim
        return pl.BlockSpec(a.shape, lambda b, t, _nd=nd: (0,) * _nd)

    kernel = functools.partial(encoder_layer_kernel, n_heads=n_heads, d_k=d_k,
                               d_v=d_v, eps=eps, q_tile=q_tile)

    return pl.pallas_call(
        kernel,
        out_shape=jax.ShapeDtypeStruct((B, S, D), x.dtype),
        grid=(B, S // q_tile),
        in_specs=[
            # Full [S, D] slab per batch; its index map is t-invariant so it is DMA'd once per
            # batch. K / V*Wo are projected from it at t == 0; the query tile is sliced per step.
            pl.BlockSpec((None, S, D), lambda b, t: (b, 0, 0)),
            pl.BlockSpec((None, None, 1, S), lambda b, t: (b, 0, 0, 0)),
            full_spec(wq), full_spec(bq), full_spec(wk), full_spec(bk),
            full_spec(wv), full_spec(bv), full_spec(wo), full_spec(bo),
            full_spec(ln1_g), full_spec(ln1_b),
            full_spec(w1), full_spec(b1), full_spec(w2), full_spec(b2),
            full_spec(ln2_g), full_spec(ln2_b),
        ],
        out_specs=pl.BlockSpec((None, q_tile, D), lambda b, t: (b, t, 0)),
        scratch_shapes=[
            pltpu.VMEM((S, n_heads * d_k), x.dtype),       # K, whole sequence, lane-dense
            pltpu.VMEM((n_heads, S, D), x.dtype),          # V @ Wo per head, lane-dense (D-wide)
            pltpu.VMEM((1, S), jnp.float32),               # additive mask bias
        ],
        compiler_params=pltpu.CompilerParams(
            # Batch axis shards across TensorCores; the q-tile axis MUST stay sequential
            # ("arbitrary") because the K / V*Wo / mask caches are filled at t == 0 and reused
            # by later tiles of the same batch.
            dimension_semantics=("parallel", "arbitrary"),
            vmem_limit_bytes=_pick_vmem_limit_bytes(),
        ),
    )(x, mask, wq, bq, wk, bk, wv, bv, wo, bo,
      ln1_g, ln1_b, w1, b1, w2, b2, ln2_g, ln2_b)


def reference_jax(x, mask, params, *, n_heads, d_k, d_v, eps=1e-5):
    (wq, bq, wk, bk, wv, bv, wo, bo,
     ln1_g, ln1_b, w1, b1, w2, b2, ln2_g, ln2_b) = params
    B, S, D = x.shape
    q = (x @ wq + bq).reshape(B, S, n_heads, d_k).transpose(0, 2, 1, 3)
    k = (x @ wk + bk).reshape(B, S, n_heads, d_k).transpose(0, 2, 1, 3)
    v = (x @ wv + bv).reshape(B, S, n_heads, d_v).transpose(0, 2, 1, 3)
    s = jnp.einsum("bhqd,bhkd->bhqk", q, k) / jnp.sqrt(jnp.float32(d_k))
    s = jnp.where(mask == 0, -1e10, s)
    p = jax.nn.softmax(s, axis=-1)
    o = jnp.einsum("bhqk,bhkd->bhqd", p, v).transpose(0, 2, 1, 3).reshape(B, S, -1)
    attn = o @ wo + bo

    def ln(t, g, b_):
        mu = jnp.mean(t, -1, keepdims=True)
        var = jnp.mean((t - mu) ** 2, -1, keepdims=True)
        return (t - mu) * lax.rsqrt(var + eps) * g + b_

    y = ln(x + attn, ln1_g, ln1_b)
    ff = jnp.maximum(y @ w1 + b1, 0.0) @ w2 + b2
    return ln(y + ff, ln2_g, ln2_b)


if __name__ == "__main__":
    B, S = 2, 256
    d_model, n_heads, d_k, d_v, d_ff = 128, 4, 32, 32, 256
    q_tile = 128  # >= 128 MXU rows per push; 2 q-tiles per batch exercises the KV-cache reuse

    ks = jax.random.split(jax.random.PRNGKey(0), 13)

    def init(k, shape, scale=0.1):
        return (scale * jax.random.normal(k, shape)).astype(jnp.float32)

    # Linear weights stored as [in, out]; biases / LN params as [1, dim].
    wq = init(ks[0], (d_model, d_k * n_heads)); bq = init(ks[1], (1, d_k * n_heads))
    wk = init(ks[2], (d_model, d_k * n_heads)); bk = init(ks[3], (1, d_k * n_heads))
    wv = init(ks[4], (d_model, d_v * n_heads)); bv = init(ks[5], (1, d_v * n_heads))
    wo = init(ks[6], (d_v * n_heads, d_model)); bo = init(ks[7], (1, d_model))
    ln1_g = jnp.ones((1, d_model), jnp.float32); ln1_b = jnp.zeros((1, d_model), jnp.float32)
    w1 = init(ks[8], (d_model, d_ff)); b1 = init(ks[9], (1, d_ff))
    w2 = init(ks[10], (d_ff, d_model)); b2 = init(ks[11], (1, d_model))
    ln2_g = jnp.ones((1, d_model), jnp.float32); ln2_b = jnp.zeros((1, d_model), jnp.float32)

    params = (wq, bq, wk, bk, wv, bv, wo, bo,
              ln1_g, ln1_b, w1, b1, w2, b2, ln2_g, ln2_b)

    x = jax.random.normal(ks[12], (B, S, d_model), jnp.float32)
    valid_len = jnp.array([S, 173], jnp.int32)
    mask = (jnp.arange(S)[None, None, None, :] < valid_len[:, None, None, None]).astype(jnp.int32)

    # f32 run (approx reciprocal in the softmax + default MXU precision -> ~1e-2 tolerance).
    out = transformer_encoder_layer(x, mask, params, n_heads=n_heads, d_k=d_k, d_v=d_v,
                                    q_tile=q_tile)
    out = jax.block_until_ready(out)
    ref = reference_jax(x, mask, params, n_heads=n_heads, d_k=d_k, d_v=d_v)
    assert out.shape == (B, S, d_model)
    assert jnp.allclose(out, ref, atol=1e-2, rtol=1e-2), "f32 mismatch vs JAX reference"

    # bf16 operands / f32 accumulation path (native bf16 MXU); loose check vs f32 reference.
    x_bf16 = x.astype(jnp.bfloat16)
    params_bf16 = tuple(p.astype(jnp.bfloat16) for p in params)
    out_bf16 = transformer_encoder_layer(x_bf16, mask, params_bf16,
                                         n_heads=n_heads, d_k=d_k, d_v=d_v, q_tile=q_tile)
    out_bf16 = jax.block_until_ready(out_bf16)
    assert out_bf16.dtype == jnp.bfloat16
    assert bool(jnp.all(jnp.isfinite(out_bf16.astype(jnp.float32))))
    assert jnp.allclose(out_bf16.astype(jnp.float32), ref, atol=2e-1, rtol=2e-1), \
        "bf16 mismatch vs JAX reference"

    print("KERNEL_OK")
</pallas_src>

<mosaic_0001>
module attributes {stable_mosaic.version = 11 : i64} {
  func.func @encoder_layer_kernel(%arg0: i32, %arg1: i32, %arg2: memref<1x256x128xf32, #tpu.memory_space<vmem>>, %arg3: memref<1x1x1x256xi32, #tpu.memory_space<vmem>>, %arg4: memref<128x128xf32, #tpu.memory_space<vmem>>, %arg5: memref<1x128xf32, #tpu.memory_space<vmem>>, %arg6: memref<128x128xf32, #tpu.memory_space<vmem>>, %arg7: memref<1x128xf32, #tpu.memory_space<vmem>>, %arg8: memref<128x128xf32, #tpu.memory_space<vmem>>, %arg9: memref<1x128xf32, #tpu.memory_space<vmem>>, %arg10: memref<128x128xf32, #tpu.memory_space<vmem>>, %arg11: memref<1x128xf32, #tpu.memory_space<vmem>>, %arg12: memref<1x128xf32, #tpu.memory_space<vmem>>, %arg13: memref<1x128xf32, #tpu.memory_space<vmem>>, %arg14: memref<128x256xf32, #tpu.memory_space<vmem>>, %arg15: memref<1x256xf32, #tpu.memory_space<vmem>>, %arg16: memref<256x128xf32, #tpu.memory_space<vmem>>, %arg17: memref<1x128xf32, #tpu.memory_space<vmem>>, %arg18: memref<1x128xf32, #tpu.memory_space<vmem>>, %arg19: memref<1x128xf32, #tpu.memory_space<vmem>>, %arg20: memref<1x128x128xf32, #tpu.memory_space<vmem>>, %arg21: memref<256x128xf32, #tpu.memory_space<vmem>>, %arg22: memref<4x256x128xf32, #tpu.memory_space<vmem>>, %arg23: memref<1x256xf32, #tpu.memory_space<vmem>>) attributes {dimension_semantics = [#tpu.dimension_semantics<parallel>, #tpu.dimension_semantics<arbitrary>], iteration_bounds = array<i64: 2, 2>, scalar_prefetch = 0 : i64, scratch_operands = 3 : i64, tpu.core_type = #tpu.core_type<tc>, window_params = [{transform_indices = @transform_0, window_bounds = array<i64: 1, 256, 128>}, {transform_indices = @transform_1, window_bounds = array<i64: 1, 1, 1, 256>}, {pipeline_mode = #tpu.pipeline_mode<synchronous>, transform_indices = @transform_2, window_bounds = array<i64: 128, 128>}, {pipeline_mode = #tpu.pipeline_mode<synchronous>, transform_indices = @transform_3, window_bounds = array<i64: 1, 128>}, {pipeline_mode = #tpu.pipeline_mode<synchronous>, transform_indices = @transform_4, window_bounds = array<i64: 128, 128>}, {pipeline_mode = #tpu.pipeline_mode<synchronous>, transform_indices = @transform_5, window_bounds = array<i64: 1, 128>}, {pipeline_mode = #tpu.pipeline_mode<synchronous>, transform_indices = @transform_6, window_bounds = array<i64: 128, 128>}, {pipeline_mode = #tpu.pipeline_mode<synchronous>, transform_indices = @transform_7, window_bounds = array<i64: 1, 128>}, {pipeline_mode = #tpu.pipeline_mode<synchronous>, transform_indices = @transform_8, window_bounds = array<i64: 128, 128>}, {pipeline_mode = #tpu.pipeline_mode<synchronous>, transform_indices = @transform_9, window_bounds = array<i64: 1, 128>}, {pipeline_mode = #tpu.pipeline_mode<synchronous>, transform_indices = @transform_10, window_bounds = array<i64: 1, 128>}, {pipeline_mode = #tpu.pipeline_mode<synchronous>, transform_indices = @transform_11, window_bounds = array<i64: 1, 128>}, {pipeline_mode = #tpu.pipeline_mode<synchronous>, transform_indices = @transform_12, window_bounds = array<i64: 128, 256>}, {pipeline_mode = #tpu.pipeline_mode<synchronous>, transform_indices = @transform_13, window_bounds = array<i64: 1, 256>}, {pipeline_mode = #tpu.pipeline_mode<synchronous>, transform_indices = @transform_14, window_bounds = array<i64: 256, 128>}, {pipeline_mode = #tpu.pipeline_mode<synchronous>, transform_indices = @transform_15, window_bounds = array<i64: 1, 128>}, {pipeline_mode = #tpu.pipeline_mode<synchronous>, transform_indices = @transform_16, window_bounds = array<i64: 1, 128>}, {pipeline_mode = #tpu.pipeline_mode<synchronous>, transform_indices = @transform_17, window_bounds = array<i64: 1, 128>}, {transform_indices = @transform_18, window_bounds = array<i64: 1, 128, 128>}]} {
    %c0_i32 = arith.constant 0 : i32
    %0 = arith.cmpi eq, %arg1, %c0_i32 : i32
    %1 = arith.extui %0 : i1 to i32
    %c0_i32_0 = arith.constant 0 : i32
    %2 = arith.cmpi ne, %1, %c0_i32_0 : i32
    scf.if %2 {
      %c0_74 = arith.constant 0 : index
      %c0_75 = arith.constant 0 : index
      %c0_76 = arith.constant 0 : index
      %161 = vector.load %arg2[%c0_74, %c0_75, %c0_76] : memref<1x256x128xf32, #tpu.memory_space<vmem>>, vector<1x256x128xf32>
      %162 = vector.shape_cast %161 : vector<1x256x128xf32> to vector<256x128xf32>
      %c0_77 = arith.constant 0 : index
      %c0_78 = arith.constant 0 : index
      %163 = vector.load %arg6[%c0_77, %c0_78] : memref<128x128xf32, #tpu.memory_space<vmem>>, vector<128x128xf32>
      %cst_79 = arith.constant dense<0.000000e+00> : vector<256x128xf32>
      %164 = tpu.matmul %162, %163, %cst_79 {dimension_numbers = #tpu.dot_dimension_numbers<[1], [0], [0], [1], [0, 0, 1, 1], [], []>} : vector<256x128xf32>, vector<128x128xf32>, vector<256x128xf32> -> vector<256x128xf32>
      %c0_80 = arith.constant 0 : index
      %c0_81 = arith.constant 0 : index
      %165 = vector.load %arg7[%c0_80, %c0_81] : memref<1x128xf32, #tpu.memory_space<vmem>>, vector<1x128xf32>
      %166 = vector.broadcast %165 : vector<1x128xf32> to vector<256x128xf32>
      %167 = arith.addf %164, %166 : vector<256x128xf32>
      %c0_82 = arith.constant 0 : index
      %c0_83 = arith.constant 0 : index
      %168 = vector.load %arg21[%c0_82, %c0_83] : memref<256x128xf32, #tpu.memory_space<vmem>>, vector<256x128xf32>
      tpu.vector_store %arg21[%c0_82, %c0_83], %167 {strides = array<i32>} : memref<256x128xf32, #tpu.memory_space<vmem>>, vector<256x128xf32>,
      %c0_84 = arith.constant 0 : index
      %c0_85 = arith.constant 0 : index
      %169 = vector.load %arg8[%c0_84, %c0_85] : memref<128x128xf32, #tpu.memory_space<vmem>>, vector<128x128xf32>
      %cst_86 = arith.constant dense<0.000000e+00> : vector<256x128xf32>
      %170 = tpu.matmul %162, %169, %cst_86 {dimension_numbers = #tpu.dot_dimension_numbers<[1], [0], [0], [1], [0, 0, 1, 1], [], []>} : vector<256x128xf32>, vector<128x128xf32>, vector<256x128xf32> -> vector<256x128xf32>
      %c0_87 = arith.constant 0 : index
      %c0_88 = arith.constant 0 : index
      %171 = vector.load %arg9[%c0_87, %c0_88] : memref<1x128xf32, #tpu.memory_space<vmem>>, vector<1x128xf32>
      %172 = vector.broadcast %171 : vector<1x128xf32> to vector<256x128xf32>
      %173 = arith.addf %170, %172 : vector<256x128xf32>
      %174 = vector.extract_strided_slice %173 {offsets = [0, 0], sizes = [256, 32], strides = [1, 1]} : vector<256x128xf32> to vector<256x32xf32>
      %c0_89 = arith.constant 0 : index
      %c0_90 = arith.constant 0 : index
      %175 = vector.load %arg10[%c0_89, %c0_90] : memref<128x128xf32, #tpu.memory_space<vmem>>, vector<32x128xf32>
      %cst_91 = arith.constant dense<0.000000e+00> : vector<256x128xf32>
      %176 = tpu.matmul %174, %175, %cst_91 {dimension_numbers = #tpu.dot_dimension_numbers<[1], [0], [0], [1], [0, 0, 1, 1], [], []>} : vector<256x32xf32>, vector<32x128xf32>, vector<256x128xf32> -> vector<256x128xf32>
      %c0_92 = arith.constant 0 : index
      %c0_93 = arith.constant 0 : index
      %c0_94 = arith.constant 0 : index
      %177 = vector.load %arg22[%c0_92, %c0_93, %c0_94] : memref<4x256x128xf32, #tpu.memory_space<vmem>>, vector<1x256x128xf32>
      %178 = vector.shape_cast %177 : vector<1x256x128xf32> to vector<256x128xf32>
      %179 = vector.shape_cast %176 : vector<256x128xf32> to vector<1x256x128xf32>
      tpu.vector_store %arg22[%c0_92, %c0_93, %c0_94], %179 {strides = array<i32>} : memref<4x256x128xf32, #tpu.memory_space<vmem>>, vector<1x256x128xf32>,
      %180 = vector.extract_strided_slice %173 {offsets = [0, 32], sizes = [256, 32], strides = [1, 1]} : vector<256x128xf32> to vector<256x32xf32>
      %c32_95 = arith.constant 32 : index
      %c0_96 = arith.constant 0 : index
      %181 = vector.load %arg10[%c32_95, %c0_96] : memref<128x128xf32, #tpu.memory_space<vmem>>, vector<32x128xf32>
      %cst_97 = arith.constant dense<0.000000e+00> : vector<256x128xf32>
      %182 = tpu.matmul %180, %181, %cst_97 {dimension_numbers = #tpu.dot_dimension_numbers<[1], [0], [0], [1], [0, 0, 1, 1], [], []>} : vector<256x32xf32>, vector<32x128xf32>, vector<256x128xf32> -> vector<256x128xf32>
      %c1_98 = arith.constant 1 : index
      %c0_99 = arith.constant 0 : index
      %c0_100 = arith.constant 0 : index
      %183 = vector.load %arg22[%c1_98, %c0_99, %c0_100] : memref<4x256x128xf32, #tpu.memory_space<vmem>>, vector<1x256x128xf32>
      %184 = vector.shape_cast %183 : vector<1x256x128xf32> to vector<256x128xf32>
      %185 = vector.shape_cast %182 : vector<256x128xf32> to vector<1x256x128xf32>
      tpu.vector_store %arg22[%c1_98, %c0_99, %c0_100], %185 {strides = array<i32>} : memref<4x256x128xf32, #tpu.memory_space<vmem>>, vector<1x256x128xf32>,
      %186 = vector.extract_strided_slice %173 {offsets = [0, 64], sizes = [256, 32], strides = [1, 1]} : vector<256x128xf32> to vector<256x32xf32>
      %c64_101 = arith.constant 64 : index
      %c0_102 = arith.constant 0 : index
      %187 = vector.load %arg10[%c64_101, %c0_102] : memref<128x128xf32, #tpu.memory_space<vmem>>, vector<32x128xf32>
      %cst_103 = arith.constant dense<0.000000e+00> : vector<256x128xf32>
      %188 = tpu.matmul %186, %187, %cst_103 {dimension_numbers = #tpu.dot_dimension_numbers<[1], [0], [0], [1], [0, 0, 1, 1], [], []>} : vector<256x32xf32>, vector<32x128xf32>, vector<256x128xf32> -> vector<256x128xf32>
      %c2_104 = arith.constant 2 : index
      %c0_105 = arith.constant 0 : index
      %c0_106 = arith.constant 0 : index
      %189 = vector.load %arg22[%c2_104, %c0_105, %c0_106] : memref<4x256x128xf32, #tpu.memory_space<vmem>>, vector<1x256x128xf32>
      %190 = vector.shape_cast %189 : vector<1x256x128xf32> to vector<256x128xf32>
      %191 = vector.shape_cast %188 : vector<256x128xf32> to vector<1x256x128xf32>
      tpu.vector_store %arg22[%c2_104, %c0_105, %c0_106], %191 {strides = array<i32>} : memref<4x256x128xf32, #tpu.memory_space<vmem>>, vector<1x256x128xf32>,
      %192 = vector.extract_strided_slice %173 {offsets = [0, 96], sizes = [256, 32], strides = [1, 1]} : vector<256x128xf32> to vector<256x32xf32>
      %c96_107 = arith.constant 96 : index
      %c0_108 = arith.constant 0 : index
      %193 = vector.load %arg10[%c96_107, %c0_108] : memref<128x128xf32, #tpu.memory_space<vmem>>, vector<32x128xf32>
      %cst_109 = arith.constant dense<0.000000e+00> : vector<256x128xf32>
      %194 = tpu.matmul %192, %193, %cst_109 {dimension_numbers = #tpu.dot_dimension_numbers<[1], [0], [0], [1], [0, 0, 1, 1], [], []>} : vector<256x32xf32>, vector<32x128xf32>, vector<256x128xf32> -> vector<256x128xf32>
      %c3_110 = arith.constant 3 : index
      %c0_111 = arith.constant 0 : index
      %c0_112 = arith.constant 0 : index
      %195 = vector.load %arg22[%c3_110, %c0_111, %c0_112] : memref<4x256x128xf32, #tpu.memory_space<vmem>>, vector<1x256x128xf32>
      %196 = vector.shape_cast %195 : vector<1x256x128xf32> to vector<256x128xf32>
      %197 = vector.shape_cast %194 : vector<256x128xf32> to vector<1x256x128xf32>
      tpu.vector_store %arg22[%c3_110, %c0_111, %c0_112], %197 {strides = array<i32>} : memref<4x256x128xf32, #tpu.memory_space<vmem>>, vector<1x256x128xf32>,
      %c0_113 = arith.constant 0 : index
      %c0_114 = arith.constant 0 : index
      %c0_115 = arith.constant 0 : index
      %c0_116 = arith.constant 0 : index
      %198 = vector.load %arg3[%c0_113, %c0_114, %c0_115, %c0_116] : memref<1x1x1x256xi32, #tpu.memory_space<vmem>>, vector<1x1x1x256xi32>
      %199 = vector.shape_cast %198 : vector<1x1x1x256xi32> to vector<1x256xi32>
      %c0_i32_117 = arith.constant 0 : i32
      %200 = vector.broadcast %c0_i32_117 : i32 to vector<1x256xi32>
      %201 = arith.cmpi eq, %199, %200 : vector<1x256xi32>
      %cst_118 = arith.constant -1.000000e+10 : f32
      %cst_119 = arith.constant 0.000000e+00 : f32
      %202 = vector.broadcast %cst_118 : f32 to vector<1x256xf32>
      %203 = vector.broadcast %cst_119 : f32 to vector<1x256xf32>
      %204 = arith.select %201, %202, %203 : vector<1x256xi1>, vector<1x256xf32>
      %c0_120 = arith.constant 0 : index
      %c0_121 = arith.constant 0 : index
      %205 = vector.load %arg23[%c0_120, %c0_121] : memref<1x256xf32, #tpu.memory_space<vmem>>, vector<1x256xf32>
      tpu.vector_store %arg23[%c0_120, %c0_121], %204 {strides = array<i32>} : memref<1x256xf32, #tpu.memory_space<vmem>>, vector<1x256xf32>,
    } else {
    }
    %c128_i32 = arith.constant 128 : i32
    %3 = arith.muli %arg1, %c128_i32 : i32
    %4 = tpu.assume_multiple %3, 128 : i32
    %c0 = arith.constant 0 : index
    %5 = arith.index_cast %4 : i32 to index
    %c0_1 = arith.constant 0 : index
    %6 = vector.load %arg2[%c0, %5, %c0_1] : memref<1x256x128xf32, #tpu.memory_space<vmem>>, vector<1x128x128xf32>
    %7 = vector.shape_cast %6 : vector<1x128x128xf32> to vector<128x128xf32>
    %c0_2 = arith.constant 0 : index
    %c0_3 = arith.constant 0 : index
    %8 = vector.load %arg4[%c0_2, %c0_3] : memref<128x128xf32, #tpu.memory_space<vmem>>, vector<128x128xf32>
    %cst = arith.constant dense<0.000000e+00> : vector<128x128xf32>
    %9 = tpu.matmul %7, %8, %cst {dimension_numbers = #tpu.dot_dimension_numbers<[1], [0], [0], [1], [0, 0, 1, 1], [], []>} : vector<128x128xf32>, vector<128x128xf32>, vector<128x128xf32> -> vector<128x128xf32>
    %c0_4 = arith.constant 0 : index
    %c0_5 = arith.constant 0 : index
    %10 = vector.load %arg5[%c0_4, %c0_5] : memref<1x128xf32, #tpu.memory_space<vmem>>, vector<1x128xf32>
    %11 = vector.broadcast %10 : vector<1x128xf32> to vector<128x128xf32>
    %12 = arith.addf %9, %11 : vector<128x128xf32>
    %cst_6 = arith.constant 0.176776692 : f32
    %13 = vector.broadcast %cst_6 : f32 to vector<128x128xf32>
    %14 = arith.mulf %12, %13 : vector<128x128xf32>
    %c0_7 = arith.constant 0 : index
    %c0_8 = arith.constant 0 : index
    %15 = vector.load %arg23[%c0_7, %c0_8] : memref<1x256xf32, #tpu.memory_space<vmem>>, vector<1x256xf32>
    %cst_9 = arith.constant 0.000000e+00 : f32
    %16 = vector.broadcast %cst_9 : f32 to vector<128x128xf32>
    %17 = vector.extract_strided_slice %14 {offsets = [0, 0], sizes = [128, 32], strides = [1, 1]} : vector<128x128xf32> to vector<128x32xf32>
    %c0_10 = arith.constant 0 : index
    %c0_11 = arith.constant 0 : index
    %18 = vector.load %arg21[%c0_10, %c0_11] : memref<256x128xf32, #tpu.memory_space<vmem>>, vector<256x32xf32>
    %cst_12 = arith.constant dense<0.000000e+00> : vector<128x256xf32>
    %19 = tpu.matmul %17, %18, %cst_12 {dimension_numbers = #tpu.dot_dimension_numbers<[1], [1], [0], [0], [0, 0, 1, 0], [], []>} : vector<128x32xf32>, vector<256x32xf32>, vector<128x256xf32> -> vector<128x256xf32>
    %20 = vector.broadcast %15 : vector<1x256xf32> to vector<128x256xf32>
    %21 = arith.addf %19, %20 : vector<128x256xf32>
    %cst_13 = arith.constant dense<0xFF800000> : vector<128xf32>
    %22 = vector.multi_reduction <maximumf>, %21, %cst_13 [1] : vector<128x256xf32> to vector<128xf32>
    %23 = vector.shape_cast %22 : vector<128xf32> to vector<128x1xf32>
    %24 = vector.broadcast %23 : vector<128x1xf32> to vector<128x256xf32>
    %25 = arith.subf %21, %24 : vector<128x256xf32>
    %26 = math.exp %25 : vector<128x256xf32>
    %cst_14 = arith.constant dense<0.000000e+00> : vector<128xf32>
    %27 = vector.multi_reduction <add>, %26, %cst_14 [1] : vector<128x256xf32> to vector<128xf32>
    %28 = vector.shape_cast %27 : vector<128xf32> to vector<128x1xf32>
    %c0_15 = arith.constant 0 : index
    %c0_16 = arith.constant 0 : index
    %c0_17 = arith.constant 0 : index
    %29 = vector.load %arg22[%c0_15, %c0_16, %c0_17] : memref<4x256x128xf32, #tpu.memory_space<vmem>>, vector<1x256x128xf32>
    %30 = vector.shape_cast %29 : vector<1x256x128xf32> to vector<256x128xf32>
    %cst_18 = arith.constant dense<0.000000e+00> : vector<128x128xf32>
    %31 = tpu.matmul %26, %30, %cst_18 {dimension_numbers = #tpu.dot_dimension_numbers<[1], [0], [0], [1], [0, 0, 1, 1], [], []>} : vector<128x256xf32>, vector<256x128xf32>, vector<128x128xf32> -> vector<128x128xf32>
    %32 = tpu.reciprocal %28 {approx = true} : vector<128x1xf32> -> vector<128x1xf32>
    %33 = vector.broadcast %32 : vector<128x1xf32> to vector<128x128xf32>
    %34 = arith.mulf %31, %33 : vector<128x128xf32>
    %35 = arith.addf %16, %34 : vector<128x128xf32>
    %36 = vector.extract_strided_slice %14 {offsets = [0, 32], sizes = [128, 32], strides = [1, 1]} : vector<128x128xf32> to vector<128x32xf32>
    %c0_19 = arith.constant 0 : index
    %c32 = arith.constant 32 : index
    %37 = vector.load %arg21[%c0_19, %c32] : memref<256x128xf32, #tpu.memory_space<vmem>>, vector<256x32xf32>
    %cst_20 = arith.constant dense<0.000000e+00> : vector<128x256xf32>
    %38 = tpu.matmul %36, %37, %cst_20 {dimension_numbers = #tpu.dot_dimension_numbers<[1], [1], [0], [0], [0, 0, 1, 0], [], []>} : vector<128x32xf32>, vector<256x32xf32>, vector<128x256xf32> -> vector<128x256xf32>
    %39 = vector.broadcast %15 : vector<1x256xf32> to vector<128x256xf32>
    %40 = arith.addf %38, %39 : vector<128x256xf32>
    %cst_21 = arith.constant dense<0xFF800000> : vector<128xf32>
    %41 = vector.multi_reduction <maximumf>, %40, %cst_21 [1] : vector<128x256xf32> to vector<128xf32>
    %42 = vector.shape_cast %41 : vector<128xf32> to vector<128x1xf32>
    %43 = vector.broadcast %42 : vector<128x1xf32> to vector<128x256xf32>
    %44 = arith.subf %40, %43 : vector<128x256xf32>
    %45 = math.exp %44 : vector<128x256xf32>
    %cst_22 = arith.constant dense<0.000000e+00> : vector<128xf32>
    %46 = vector.multi_reduction <add>, %45, %cst_22 [1] : vector<128x256xf32> to vector<128xf32>
    %47 = vector.shape_cast %46 : vector<128xf32> to vector<128x1xf32>
    %c1 = arith.constant 1 : index
    %c0_23 = arith.constant 0 : index
    %c0_24 = arith.constant 0 : index
    %48 = vector.load %arg22[%c1, %c0_23, %c0_24] : memref<4x256x128xf32, #tpu.memory_space<vmem>>, vector<1x256x128xf32>
    %49 = vector.shape_cast %48 : vector<1x256x128xf32> to vector<256x128xf32>
    %cst_25 = arith.constant dense<0.000000e+00> : vector<128x128xf32>
    %50 = tpu.matmul %45, %49, %cst_25 {dimension_numbers = #tpu.dot_dimension_numbers<[1], [0], [0], [1], [0, 0, 1, 1], [], []>} : vector<128x256xf32>, vector<256x128xf32>, vector<128x128xf32> -> vector<128x128xf32>
    %51 = tpu.reciprocal %47 {approx = true} : vector<128x1xf32> -> vector<128x1xf32>
    %52 = vector.broadcast %51 : vector<128x1xf32> to vector<128x128xf32>
    %53 = arith.mulf %50, %52 : vector<128x128xf32>
    %54 = arith.addf %35, %53 : vector<128x128xf32>
    %55 = vector.extract_strided_slice %14 {offsets = [0, 64], sizes = [128, 32], strides = [1, 1]} : vector<128x128xf32> to vector<128x32xf32>
    %c0_26 = arith.constant 0 : index
    %c64 = arith.constant 64 : index
    %56 = vector.load %arg21[%c0_26, %c64] : memref<256x128xf32, #tpu.memory_space<vmem>>, vector<256x32xf32>
    %cst_27 = arith.constant dense<0.000000e+00> : vector<128x256xf32>
    %57 = tpu.matmul %55, %56, %cst_27 {dimension_numbers = #tpu.dot_dimension_numbers<[1], [1], [0], [0], [0, 0, 1, 0], [], []>} : vector<128x32xf32>, vector<256x32xf32>, vector<128x256xf32> -> vector<128x256xf32>
    %58 = vector.broadcast %15 : vector<1x256xf32> to vector<128x256xf32>
    %59 = arith.addf %57, %58 : vector<128x256xf32>
    %cst_28 = arith.constant dense<0xFF800000> : vector<128xf32>
    %60 = vector.multi_reduction <maximumf>, %59, %cst_28 [1] : vector<128x256xf32> to vector<128xf32>
    %61 = vector.shape_cast %60 : vector<128xf32> to vector<128x1xf32>
    %62 = vector.broadcast %61 : vector<128x1xf32> to vector<128x256xf32>
    %63 = arith.subf %59, %62 : vector<128x256xf32>
    %64 = math.exp %63 : vector<128x256xf32>
    %cst_29 = arith.constant dense<0.000000e+00> : vector<128xf32>
    %65 = vector.multi_reduction <add>, %64, %cst_29 [1] : vector<128x256xf32> to vector<128xf32>
    %66 = vector.shape_cast %65 : vector<128xf32> to vector<128x1xf32>
    %c2 = arith.constant 2 : index
    %c0_30 = arith.constant 0 : index
    %c0_31 = arith.constant 0 : index
    %67 = vector.load %arg22[%c2, %c0_30, %c0_31] : memref<4x256x128xf32, #tpu.memory_space<vmem>>, vector<1x256x128xf32>
    %68 = vector.shape_cast %67 : vector<1x256x128xf32> to vector<256x128xf32>
    %cst_32 = arith.constant dense<0.000000e+00> : vector<128x128xf32>
    %69 = tpu.matmul %64, %68, %cst_32 {dimension_numbers = #tpu.dot_dimension_numbers<[1], [0], [0], [1], [0, 0, 1, 1], [], []>} : vector<128x256xf32>, vector<256x128xf32>, vector<128x128xf32> -> vector<128x128xf32>
    %70 = tpu.reciprocal %66 {approx = true} : vector<128x1xf32> -> vector<128x1xf32>
    %71 = vector.broadcast %70 : vector<128x1xf32> to vector<128x128xf32>
    %72 = arith.mulf %69, %71 : vector<128x128xf32>
    %73 = arith.addf %54, %72 : vector<128x128xf32>
    %74 = vector.extract_strided_slice %14 {offsets = [0, 96], sizes = [128, 32], strides = [1, 1]} : vector<128x128xf32> to vector<128x32xf32>
    %c0_33 = arith.constant 0 : index
    %c96 = arith.constant 96 : index
    %75 = vector.load %arg21[%c0_33, %c96] : memref<256x128xf32, #tpu.memory_space<vmem>>, vector<256x32xf32>
    %cst_34 = arith.constant dense<0.000000e+00> : vector<128x256xf32>
    %76 = tpu.matmul %74, %75, %cst_34 {dimension_numbers = #tpu.dot_dimension_numbers<[1], [1], [0], [0], [0, 0, 1, 0], [], []>} : vector<128x32xf32>, vector<256x32xf32>, vector<128x256xf32> -> vector<128x256xf32>
    %77 = vector.broadcast %15 : vector<1x256xf32> to vector<128x256xf32>
    %78 = arith.addf %76, %77 : vector<128x256xf32>
    %cst_35 = arith.constant dense<0xFF800000> : vector<128xf32>
    %79 = vector.multi_reduction <maximumf>, %78, %cst_35 [1] : vector<128x256xf32> to vector<128xf32>
    %80 = vector.shape_cast %79 : vector<128xf32> to vector<128x1xf32>
    %81 = vector.broadcast %80 : vector<128x1xf32> to vector<128x256xf32>
    %82 = arith.subf %78, %81 : vector<128x256xf32>
    %83 = math.exp %82 : vector<128x256xf32>
    %cst_36 = arith.constant dense<0.000000e+00> : vector<128xf32>
    %84 = vector.multi_reduction <add>, %83, %cst_36 [1] : vector<128x256xf32> to vector<128xf32>
    %85 = vector.shape_cast %84 : vector<128xf32> to vector<128x1xf32>
    %c3 = arith.constant 3 : index
    %c0_37 = arith.constant 0 : index
    %c0_38 = arith.constant 0 : index
    %86 = vector.load %arg22[%c3, %c0_37, %c0_38] : memref<4x256x128xf32, #tpu.memory_space<vmem>>, vector<1x256x128xf32>
    %87 = vector.shape_cast %86 : vector<1x256x128xf32> to vector<256x128xf32>
    %cst_39 = arith.constant dense<0.000000e+00> : vector<128x128xf32>
    %88 = tpu.matmul %83, %87, %cst_39 {dimension_numbers = #tpu.dot_dimension_numbers<[1], [0], [0], [1], [0, 0, 1, 1], [], []>} : vector<128x256xf32>, vector<256x128xf32>, vector<128x128xf32> -> vector<128x128xf32>
    %89 = tpu.reciprocal %85 {approx = true} : vector<128x1xf32> -> vector<128x1xf32>
    %90 = vector.broadcast %89 : vector<128x1xf32> to vector<128x128xf32>
    %91 = arith.mulf %88, %90 : vector<128x128xf32>
    %92 = arith.addf %73, %91 : vector<128x128xf32>
    %c0_40 = arith.constant 0 : index
    %c0_41 = arith.constant 0 : index
    %93 = vector.load %arg11[%c0_40, %c0_41] : memref<1x128xf32, #tpu.memory_space<vmem>>, vector<1x128xf32>
    %94 = vector.broadcast %93 : vector<1x128xf32> to vector<128x128xf32>
    %95 = arith.addf %92, %94 : vector<128x128xf32>
    %96 = arith.addf %7, %95 : vector<128x128xf32>
    %cst_42 = arith.constant dense<0.000000e+00> : vector<128xf32>
    %97 = vector.multi_reduction <add>, %96, %cst_42 [1] : vector<128x128xf32> to vector<128xf32>
    %98 = vector.shape_cast %97 : vector<128xf32> to vector<128x1xf32>
    %cst_43 = arith.constant 1.280000e+02 : f32
    %99 = vector.broadcast %cst_43 : f32 to vector<128x1xf32>
    %100 = arith.divf %98, %99 : vector<128x1xf32>
    %101 = vector.broadcast %100 : vector<128x1xf32> to vector<128x128xf32>
    %102 = arith.subf %96, %101 : vector<128x128xf32>
    %103 = arith.mulf %102, %102 : vector<128x128xf32>
    %cst_44 = arith.constant dense<0.000000e+00> : vector<128xf32>
    %104 = vector.multi_reduction <add>, %103, %cst_44 [1] : vector<128x128xf32> to vector<128xf32>
    %105 = vector.shape_cast %104 : vector<128xf32> to vector<128x1xf32>
    %cst_45 = arith.constant 1.280000e+02 : f32
    %106 = vector.broadcast %cst_45 : f32 to vector<128x1xf32>
    %107 = arith.divf %105, %106 : vector<128x1xf32>
    %108 = vector.broadcast %100 : vector<128x1xf32> to vector<128x128xf32>
    %109 = arith.subf %96, %108 : vector<128x128xf32>
    %cst_46 = arith.constant 9.99999974E-6 : f32
    %110 = vector.broadcast %cst_46 : f32 to vector<128x1xf32>
    %111 = arith.addf %107, %110 : vector<128x1xf32>
    %112 = math.rsqrt %111 : vector<128x1xf32>
    %113 = vector.broadcast %112 : vector<128x1xf32> to vector<128x128xf32>
    %114 = arith.mulf %109, %113 : vector<128x128xf32>
    %c0_47 = arith.constant 0 : index
    %c0_48 = arith.constant 0 : index
    %115 = vector.load %arg12[%c0_47, %c0_48] : memref<1x128xf32, #tpu.memory_space<vmem>>, vector<1x128xf32>
    %116 = vector.broadcast %115 : vector<1x128xf32> to vector<128x128xf32>
    %117 = arith.mulf %114, %116 : vector<128x128xf32>
    %c0_49 = arith.constant 0 : index
    %c0_50 = arith.constant 0 : index
    %118 = vector.load %arg13[%c0_49, %c0_50] : memref<1x128xf32, #tpu.memory_space<vmem>>, vector<1x128xf32>
    %119 = vector.broadcast %118 : vector<1x128xf32> to vector<128x128xf32>
    %120 = arith.addf %117, %119 : vector<128x128xf32>
    %c0_51 = arith.constant 0 : index
    %c0_52 = arith.constant 0 : index
    %121 = vector.load %arg14[%c0_51, %c0_52] : memref<128x256xf32, #tpu.memory_space<vmem>>, vector<128x256xf32>
    %cst_53 = arith.constant dense<0.000000e+00> : vector<128x256xf32>
    %122 = tpu.matmul %120, %121, %cst_53 {dimension_numbers = #tpu.dot_dimension_numbers<[1], [0], [0], [1], [0, 0, 1, 1], [], []>} : vector<128x128xf32>, vector<128x256xf32>, vector<128x256xf32> -> vector<128x256xf32>
    %c0_54 = arith.constant 0 : index
    %c0_55 = arith.constant 0 : index
    %123 = vector.load %arg15[%c0_54, %c0_55] : memref<1x256xf32, #tpu.memory_space<vmem>>, vector<1x256xf32>
    %124 = vector.broadcast %123 : vector<1x256xf32> to vector<128x256xf32>
    %125 = arith.addf %122, %124 : vector<128x256xf32>
    %cst_56 = arith.constant 0.000000e+00 : f32
    %126 = vector.broadcast %cst_56 : f32 to vector<128x256xf32>
    %127 = arith.maximumf %125, %126 : vector<128x256xf32>
    %c0_57 = arith.constant 0 : index
    %c0_58 = arith.constant 0 : index
    %128 = vector.load %arg16[%c0_57, %c0_58] : memref<256x128xf32, #tpu.memory_space<vmem>>, vector<256x128xf32>
    %cst_59 = arith.constant dense<0.000000e+00> : vector<128x128xf32>
    %129 = tpu.matmul %127, %128, %cst_59 {dimension_numbers = #tpu.dot_dimension_numbers<[1], [0], [0], [1], [0, 0, 1, 1], [], []>} : vector<128x256xf32>, vector<256x128xf32>, vector<128x128xf32> -> vector<128x128xf32>
    %c0_60 = arith.constant 0 : index
    %c0_61 = arith.constant 0 : index
    %130 = vector.load %arg17[%c0_60, %c0_61] : memref<1x128xf32, #tpu.memory_space<vmem>>, vector<1x128xf32>
    %131 = vector.broadcast %130 : vector<1x128xf32> to vector<128x128xf32>
    %132 = arith.addf %129, %131 : vector<128x128xf32>
    %133 = arith.addf %120, %132 : vector<128x128xf32>
    %cst_62 = arith.constant dense<0.000000e+00> : vector<128xf32>
    %134 = vector.multi_reduction <add>, %133, %cst_62 [1] : vector<128x128xf32> to vector<128xf32>
    %135 = vector.shape_cast %134 : vector<128xf32> to vector<128x1xf32>
    %cst_63 = arith.constant 1.280000e+02 : f32
    %136 = vector.broadcast %cst_63 : f32 to vector<128x1xf32>
    %137 = arith.divf %135, %136 : vector<128x1xf32>
    %138 = vector.broadcast %137 : vector<128x1xf32> to vector<128x128xf32>
    %139 = arith.subf %133, %138 : vector<128x128xf32>
    %140 = arith.mulf %139, %139 : vector<128x128xf32>
    %cst_64 = arith.constant dense<0.000000e+00> : vector<128xf32>
    %141 = vector.multi_reduction <add>, %140, %cst_64 [1] : vector<128x128xf32> to vector<128xf32>
    %142 = vector.shape_cast %141 : vector<128xf32> to vector<128x1xf32>
    %cst_65 = arith.constant 1.280000e+02 : f32
    %143 = vector.broadcast %cst_65 : f32 to vector<128x1xf32>
    %144 = arith.divf %142, %143 : vector<128x1xf32>
    %145 = vector.broadcast %137 : vector<128x1xf32> to vector<128x128xf32>
    %146 = arith.subf %133, %145 : vector<128x128xf32>
    %cst_66 = arith.constant 9.99999974E-6 : f32
    %147 = vector.broadcast %cst_66 : f32 to vector<128x1xf32>
    %148 = arith.addf %144, %147 : vector<128x1xf32>
    %149 = math.rsqrt %148 : vector<128x1xf32>
    %150 = vector.broadcast %149 : vector<128x1xf32> to vector<128x128xf32>
    %151 = arith.mulf %146, %150 : vector<128x128xf32>
    %c0_67 = arith.constant 0 : index
    %c0_68 = arith.constant 0 : index
    %152 = vector.load %arg18[%c0_67, %c0_68] : memref<1x128xf32, #tpu.memory_space<vmem>>, vector<1x128xf32>
    %153 = vector.broadcast %152 : vector<1x128xf32> to vector<128x128xf32>
    %154 = arith.mulf %151, %153 : vector<128x128xf32>
    %c0_69 = arith.constant 0 : index
    %c0_70 = arith.constant 0 : index
    %155 = vector.load %arg19[%c0_69, %c0_70] : memref<1x128xf32, #tpu.memory_space<vmem>>, vector<1x128xf32>
    %156 = vector.broadcast %155 : vector<1x128xf32> to vector<128x128xf32>
    %157 = arith.addf %154, %156 : vector<128x128xf32>
    %c0_71 = arith.constant 0 : index
    %c0_72 = arith.constant 0 : index
    %c0_73 = arith.constant 0 : index
    %158 = vector.load %arg20[%c0_71, %c0_72, %c0_73] : memref<1x128x128xf32, #tpu.memory_space<vmem>>, vector<1x128x128xf32>
    %159 = vector.shape_cast %158 : vector<1x128x128xf32> to vector<128x128xf32>
    %160 = vector.shape_cast %157 : vector<128x128xf32> to vector<1x128x128xf32>
    tpu.vector_store %arg20[%c0_71, %c0_72, %c0_73], %160 {strides = array<i32>} : memref<1x128x128xf32, #tpu.memory_space<vmem>>, vector<1x128x128xf32>,
    return
  }
  func.func @transform_0(%arg0: i32, %arg1: i32) -> (i32, i32, i32) {
    %c0_i32 = arith.constant 0 : i32
    %c0_i32_0 = arith.constant 0 : i32
    %c0_i32_1 = arith.constant 0 : i32
    return %arg0, %c0_i32, %c0_i32_0 : i32, i32, i32
  }
  func.func @transform_1(%arg0: i32, %arg1: i32) -> (i32, i32, i32, i32) {
    %c0_i32 = arith.constant 0 : i32
    %c0_i32_0 = arith.constant 0 : i32
    %c0_i32_1 = arith.constant 0 : i32
    %c0_i32_2 = arith.constant 0 : i32
    return %arg0, %c0_i32, %c0_i32_0, %c0_i32_1 : i32, i32, i32, i32
  }
  func.func @transform_2(%arg0: i32, %arg1: i32) -> (i32, i32) {
    %c0_i32 = arith.constant 0 : i32
    %c0_i32_0 = arith.constant 0 : i32
    %c0_i32_1 = arith.constant 0 : i32
    return %c0_i32, %c0_i32_0 : i32, i32
  }
  func.func @transform_3(%arg0: i32, %arg1: i32) -> (i32, i32) {
    %c0_i32 = arith.constant 0 : i32
    %c0_i32_0 = arith.constant 0 : i32
    %c0_i32_1 = arith.constant 0 : i32
    return %c0_i32, %c0_i32_0 : i32, i32
  }
  func.func @transform_4(%arg0: i32, %arg1: i32) -> (i32, i32) {
    %c0_i32 = arith.constant 0 : i32
    %c0_i32_0 = arith.constant 0 : i32
    %c0_i32_1 = arith.constant 0 : i32
    return %c0_i32, %c0_i32_0 : i32, i32
  }
  func.func @transform_5(%arg0: i32, %arg1: i32) -> (i32, i32) {
    %c0_i32 = arith.constant 0 : i32
    %c0_i32_0 = arith.constant 0 : i32
    %c0_i32_1 = arith.constant 0 : i32
    return %c0_i32, %c0_i32_0 : i32, i32
  }
  func.func @transform_6(%arg0: i32, %arg1: i32) -> (i32, i32) {
    %c0_i32 = arith.constant 0 : i32
    %c0_i32_0 = arith.constant 0 : i32
    %c0_i32_1 = arith.constant 0 : i32
    return %c0_i32, %c0_i32_0 : i32, i32
  }
  func.func @transform_7(%arg0: i32, %arg1: i32) -> (i32, i32) {
    %c0_i32 = arith.constant 0 : i32
    %c0_i32_0 = arith.constant 0 : i32
    %c0_i32_1 = arith.constant 0 : i32
    return %c0_i32, %c0_i32_0 : i32, i32
  }
  func.func @transform_8(%arg0: i32, %arg1: i32) -> (i32, i32) {
    %c0_i32 = arith.constant 0 : i32
    %c0_i32_0 = arith.constant 0 : i32
    %c0_i32_1 = arith.constant 0 : i32
    return %c0_i32, %c0_i32_0 : i32, i32
  }
  func.func @transform_9(%arg0: i32, %arg1: i32) -> (i32, i32) {
    %c0_i32 = arith.constant 0 : i32
    %c0_i32_0 = arith.constant 0 : i32
    %c0_i32_1 = arith.constant 0 : i32
    return %c0_i32, %c0_i32_0 : i32, i32
  }
  func.func @transform_10(%arg0: i32, %arg1: i32) -> (i32, i32) {
    %c0_i32 = arith.constant 0 : i32
    %c0_i32_0 = arith.constant 0 : i32
    %c0_i32_1 = arith.constant 0 : i32
    return %c0_i32, %c0_i32_0 : i32, i32
  }
  func.func @transform_11(%arg0: i32, %arg1: i32) -> (i32, i32) {
    %c0_i32 = arith.constant 0 : i32
    %c0_i32_0 = arith.constant 0 : i32
    %c0_i32_1 = arith.constant 0 : i32
    return %c0_i32, %c0_i32_0 : i32, i32
  }
  func.func @transform_12(%arg0: i32, %arg1: i32) -> (i32, i32) {
    %c0_i32 = arith.constant 0 : i32
    %c0_i32_0 = arith.constant 0 : i32
    %c0_i32_1 = arith.constant 0 : i32
    return %c0_i32, %c0_i32_0 : i32, i32
  }
  func.func @transform_13(%arg0: i32, %arg1: i32) -> (i32, i32) {
    %c0_i32 = arith.constant 0 : i32
    %c0_i32_0 = arith.constant 0 : i32
    %c0_i32_1 = arith.constant 0 : i32
    return %c0_i32, %c0_i32_0 : i32, i32
  }
  func.func @transform_14(%arg0: i32, %arg1: i32) -> (i32, i32) {
    %c0_i32 = arith.constant 0 : i32
    %c0_i32_0 = arith.constant 0 : i32
    %c0_i32_1 = arith.constant 0 : i32
    return %c0_i32, %c0_i32_0 : i32, i32
  }
  func.func @transform_15(%arg0: i32, %arg1: i32) -> (i32, i32) {
    %c0_i32 = arith.constant 0 : i32
    %c0_i32_0 = arith.constant 0 : i32
    %c0_i32_1 = arith.constant 0 : i32
    return %c0_i32, %c0_i32_0 : i32, i32
  }
  func.func @transform_16(%arg0: i32, %arg1: i32) -> (i32, i32) {
    %c0_i32 = arith.constant 0 : i32
    %c0_i32_0 = arith.constant 0 : i32
    %c0_i32_1 = arith.constant 0 : i32
    return %c0_i32, %c0_i32_0 : i32, i32
  }
  func.func @transform_17(%arg0: i32, %arg1: i32) -> (i32, i32) {
    %c0_i32 = arith.constant 0 : i32
    %c0_i32_0 = arith.constant 0 : i32
    %c0_i32_1 = arith.constant 0 : i32
    return %c0_i32, %c0_i32_0 : i32, i32
  }
  func.func @transform_18(%arg0: i32, %arg1: i32) -> (i32, i32, i32) {
    %c0_i32 = arith.constant 0 : i32
    %c0_i32_0 = arith.constant 0 : i32
    return %arg0, %arg1, %c0_i32 : i32, i32, i32
  }
}

</mosaic_0001>

<bundles_post_ra>
// kernel: tpu_custom_call.1
= control target key start
LH: loop header
LB: loop body
LE: loop exit
PB: predicated region body
PF: predicated region fallthrough
CT: control target
= control target key end

     0   :  { %s14351_s0 = inlined_call_operand.hbm [shape: f32[2,256,128], index: 0, kind: input, shape index: {}]   ;;  %s14352_s1 = inlined_call_operand.hbm [shape: s32[2,1,1,256], index: 1, kind: input, shape index: {}]   ;;  %s14353_s2 = inlined_call_operand.hbm [shape: f32[128,128], index: 2, kind: input, shape index: {}]   ;;  %s14354_s3 = inlined_call_operand.vmem [shape: f32[1,128], index: 3, kind: input, shape index: {}]   ;;  %s14355_s4 = inlined_call_operand.hbm [shape: f32[128,128], index: 4, kind: input, shape index: {}]   ;;  %s14356_s5 = inlined_call_operand.vmem [shape: f32[1,128], index: 5, kind: input, shape index: {}]   ;;  %s14357_s6 = inlined_call_operand.hbm [shape: f32[128,128], index: 6, kind: input, shape index: {}]   ;;  %s14358_s7 = inlined_call_operand.vmem [shape: f32[1,128], index: 7, kind: input, shape index: {}]   ;;  %s14359_s8 = inlined_call_operand.hbm [shape: f32[128,128], index: 8, kind: input, shape index: {}]   ;;  %s14360_s9 = inlined_call_operand.vmem [shape: f32[1,128], index: 9, kind: input, shape index: {}]   ;;  %s14361_s10 = inlined_call_operand.vmem [shape: f32[1,128], index: 10, kind: input, shape index: {}]   ;;  %s14362_s11 = inlined_call_operand.vmem [shape: f32[1,128], index: 11, kind: input, shape index: {}]   ;;  %s14363_s12 = inlined_call_operand.hbm [shape: f32[128,256], index: 12, kind: input, shape index: {}]   ;;  %s14364_s13 = inlined_call_operand.vmem [shape: f32[1,256], index: 13, kind: input, shape index: {}]   ;;  %s14365_s14 = inlined_call_operand.hbm [shape: f32[256,128], index: 14, kind: input, shape index: {}]   ;;  %s14366_s15 = inlined_call_operand.vmem [shape: f32[1,128], index: 15, kind: input, shape index: {}]   ;;  %s14367_s16 = inlined_call_operand.vmem [shape: f32[1,128], index: 16, kind: input, shape index: {}]   ;;  %s14368_s17 = inlined_call_operand.vmem [shape: f32[1,128], index: 17, kind: input, shape index: {}]   ;;  %s14369_s18 = inlined_call_operand.hbm [shape: f32[2,256,128], index: 18, kind: output, shape index: {}]  }
   0x1   :  { %14467 = sst [smem:[#allocation110_spill]] %s14351_s0 }
   0x2   :  { %14468 = sst [smem:[#allocation111_spill]] %s14352_s1 }
   0x3   :  { %14469 = sst [smem:[#allocation112_spill]] %s14353_s2 }
   0x4   :  { %14470 = sst [smem:[#allocation113_spill]] %s14354_s3 }
   0x5   :  { %14471 = sst [smem:[#allocation114_spill]] %s14355_s4 }
   0x6   :  { %14472 = sst [smem:[#allocation115_spill]] %s14356_s5 }
   0x7   :  { %14473 = sst [smem:[#allocation116_spill]] %s14357_s6 }
   0x8   :  { %14474 = sst [smem:[#allocation117_spill]] %s14358_s7 }
   0x9   :  { %14475 = sst [smem:[#allocation118_spill]] %s14359_s8 }
   0xa   :  { %14476 = sst [smem:[#allocation119_spill]] %s14360_s9 }
   0xb   :  { %14477 = sst [smem:[#allocation120_spill]] %s14361_s10 }
   0xc   :  { %14478 = sst [smem:[#allocation121_spill]] %s14362_s11 }
   0xd   :  { %14479 = sst [smem:[#allocation122_spill]] %s14363_s12 }
   0xe   :  { %14480 = sst [smem:[#allocation123_spill]] %s14364_s13 }
   0xf   :  { %14481 = sst [smem:[#allocation124_spill]] %s14365_s14 }
  0x10   :  { %14482 = sst [smem:[#allocation125_spill]] %s14366_s15 }
  0x11   :  { %14483 = sst [smem:[#allocation126_spill]] %s14367_s16 }
  0x12   :  { %14484 = sst [smem:[#allocation127_spill]] %s14368_s17 }
  0x13   :  { %14485 = sst [smem:[#allocation128_spill]] %s14369_s18 }
  0x14   :  { %23 = vsyncpa [#allocation6], 0 }
  0x15   :  { %25 = vsyncpa [#allocation6 + $0x1], 0 }
  0x16   :  { %26 = vsyncpa [#allocation9], 0 }
  0x17   :  { %28 = vsyncpa [#allocation9 + $0x1], 0 }
  0x18   :  { %29 = vsyncpa [#allocation12], 0 }
  0x19   :  { %30 = vsyncpa [#allocation15], 0 }
  0x1a   :  { %31 = vsyncpa [#allocation18], 0 }
  0x1b   :  { %32 = vsyncpa [#allocation7], 0 }
  0x1c   :  { %34 = vsyncpa [#allocation7 + $0x1], 0  ;;  %s10891_s27 = smov 0   ;;  %s10893_s28 = smov 0  }
  0x1d   :  { %s10895_s29 = smov 0   ;;  %s10897_s30 = smov 0  }
  0x1e   :  { %s10899_s0 = smov 0   ;;  %s10901_s19 = smov 0  }
  0x1f   :  { %s10903_s1 = smov 0   ;;  %s10905_s20 = smov 0  }
  0x20   :  { %s10907_s21 = smov 0   ;;  %s10909_s22 = smov 0  }
  0x21   :  { %s10911_s2 = smov 0  }
  0x22 LB: > { %14486 = sst [smem:[#allocation27_spill]] %s10731_s27  ;;  %s10947_s23 = sadd.s32 4294967295, %s10771_s2   ;;  %s10771_s2 = sphi %s10911_s2, %s40_s2   ;;  %s10767_s22 = sphi %s10909_s22, %s14749_s22   ;;  %s10763_s21 = sphi %s10907_s21, %s14748_s21   ;;  %s10759_s20 = sphi %s10905_s20, %s14747_s20   ;;  %s10755_s1 = sphi %s10903_s1, %s14746_s1   ;;  %s10751_s19 = sphi %s10901_s19, %s14745_s19   ;;  %s10747_s0 = sphi %s10899_s0, %s14744_s0   ;;  %s10743_s30 = sphi %s10897_s30, %s14743_s30   ;;  %s10739_s29 = sphi %s10895_s29, %s14742_s29   ;;  %s10735_s28 = sphi %s10893_s28, %s14741_s28   ;;  %s10731_s27 = sphi %s10891_s27, %s14740_s27  }
  0x23   : > { %14487 = sst [smem:[#allocation28_spill]] %s10755_s1  ;;  %p7240_p0 = scmp.ge.s32.totalorder %s10771_s2, 1 }
  0x24   : > { %14488 = sst [smem:[#allocation29_spill]] %s10759_s20  ;;  %p14376_p1 = scmp.eq.s32.totalorder %s10947_s23, 0 }
  0x25   : > { %p473_p3 = scmp.lt.s32.totalorder %s10771_s2, 5  ;;  %s10773_s25 = smov [#allocation10]  }
  0x26   : > { %s485_s26 = sshll.u32 %s10773_s25, 4  ;;  %s10774_s20 = smov [#allocation11]   ;;  %s10957_s26 = int_to_ptr.vmem [resolvable:$true] %s485_s26 }
  0x27   : > { %p10953_p4 = pnand %p7240_p0, %p473_p3  ;;  %s501_s17 = sshll.u32 %s10774_s20, 4  ;;  %s10967_s17 = int_to_ptr.vmem [resolvable:$true] %s501_s17 }
  0x28   : > { %s10775_s16 = smov [#allocation14]   ;;  %s14492_s11 = sld [smem:[#allocation112_spill]] }
  0x29   : > { %s14489_s24 = scalar_select %p10953_p4, 1, 0 }
  0x2a   : > { %p9513_p5 = pneg %p10953_p4  ;;  %s533_s15 = sshll.u32 %s10775_s16, 4  ;;  %s10969_s15 = int_to_ptr.vmem [resolvable:$true] %s533_s15 }
  0x2b   : > { %14490 = sst [smem:[#allocation30_spill]] %s14489_s24 }
  0x2c   : > { %p10963_p6 = pnand %p9513_p5, %p14376_p1 }
  0x2e   : > { %s10401_s10 = scalar_lea.hbm %s14492_s11, 2048  ;;  %p10979_p8 = pneg %p10963_p6 }
  0x2f   : > { %p10402_p7 = scmp.ne.s32.totalorder %s14492_s11, %s10401_s10  ;;  %p10408_p11 = scmp.lt.u32.totalorder %s10401_s10, %s14492_s11 }
  0x31   : > { %p10404_p9 = pnand %p10979_p8, %p10402_p7 }
  0x33   : > { %p10405_p10 = pneg %p10404_p9 }
  0x35   : > { %p10410_p12 = pnand %p10408_p11, %p10405_p10 }
  0x37   : > { %10413 = shalt.err (!%p10410_p12)
}
  0x38   : > { %s10414_s3 = scalar_lea.vmem %s10957_s26, 2048  ;;  %p10422_p5 = scmp.lt.s32.totalorder %s10957_s26, %s10957_s26 }
  0x39   : > { %p10415_p13 = scmp.ne.s32.totalorder %s10957_s26, %s10414_s3  ;;  %p10423_p2 = scmp.lt.s32.totalorder %s10414_s3, %s10414_s3 }
  0x3b   : > { %p10417_p0 = pnand %p10415_p13, %p10979_p8  ;;  %p10424_p7 = por %p10423_p2, %p10422_p5 }
  0x3d   : > { %p10418_p3 = pneg %p10417_p0 }
  0x3f   : > { %p10425_p9 = pnand %p10424_p7, %p10418_p3 }
  0x41   : > { %10428 = shalt.err (!%p10425_p9)
}
  0x42   : > { %s14378_s9 = smov 128   ;;  %s14380_s10 = smov 8  }
  0x43   : > { %9516 = dma.hbm_to_vmem [thread:$0]  (!%p10963_p6), %s14492_s11, 2048, %s10957_s26, [#allocation9], %s14378_s9, %s14378_s9, %s14380_s10  }
  0x44   : > { %s14494_s4 = sld [smem:[#allocation114_spill]] }
  0x4a   : > { %s10429_s3 = scalar_lea.hbm %s14494_s4, 2048 }
  0x4b   : > { %p10430_p2 = scmp.ne.s32.totalorder %s14494_s4, %s10429_s3  ;;  %p10436_p12 = scmp.lt.u32.totalorder %s10429_s3, %s14494_s4 }
  0x4d   : > { %p10432_p10 = pnand %p10430_p2, %p10979_p8 }
  0x4f   : > { %p10433_p11 = pneg %p10432_p10 }
  0x51   : > { %p10438_p13 = pnand %p10436_p12, %p10433_p11 }
  0x53   : > { %10441 = shalt.err (!%p10438_p13)
}
  0x54   : > { %s10442_s26 = scalar_lea.vmem %s10967_s17, 2048  ;;  %p10450_p7 = scmp.lt.s32.totalorder %s10967_s17, %s10967_s17 }
  0x55   : > { %p10443_p0 = scmp.ne.s32.totalorder %s10967_s17, %s10442_s26  ;;  %p10451_p9 = scmp.lt.s32.totalorder %s10442_s26, %s10442_s26 }
  0x57   : > { %p10445_p3 = pnand %p10443_p0, %p10979_p8  ;;  %p10452_p2 = por %p10451_p9, %p10450_p7 }
  0x59   : > { %p10446_p5 = pneg %p10445_p3 }
  0x5b   : > { %p10453_p10 = pnand %p10452_p2, %p10446_p5 }
  0x5d   : > { %10456 = shalt.err (!%p10453_p10)
}
  0x5e   : > { %9519 = dma.hbm_to_vmem [thread:$0]  (!%p10963_p6), %s14494_s4, 2048, %s10967_s17, [#allocation12], %s14378_s9, %s14378_s9, %s14380_s10  }
  0x5f   : > { %s14495_s8 = sld [smem:[#allocation118_spill]] }
  0x65   : > { %s10457_s13 = scalar_lea.hbm %s14495_s8, 2048 }
  0x66   : > { %p10458_p11 = scmp.ne.s32.totalorder %s14495_s8, %s10457_s13  ;;  %p10464_p0 = scmp.lt.u32.totalorder %s10457_s13, %s14495_s8 }
  0x68   : > { %p10460_p12 = pnand %p10458_p11, %p10979_p8 }
  0x6a   : > { %p10461_p13 = pneg %p10460_p12 }
  0x6c   : > { %p10466_p3 = pnand %p10464_p0, %p10461_p13 }
  0x6e   : > { %10469 = shalt.err (!%p10466_p3)
}
  0x6f   : > { %s10470_s17 = scalar_lea.vmem %s10969_s15, 2048  ;;  %p10478_p2 = scmp.lt.s32.totalorder %s10969_s15, %s10969_s15 }
  0x70   : > { %p10471_p5 = scmp.ne.s32.totalorder %s10969_s15, %s10470_s17  ;;  %p10479_p10 = scmp.lt.s32.totalorder %s10470_s17, %s10470_s17 }
  0x72   : > { %p10473_p7 = pnand %p10471_p5, %p10979_p8  ;;  %p10480_p11 = por %p10479_p10, %p10478_p2 }
  0x74   : > { %p10474_p9 = pneg %p10473_p7 }
  0x76   : > { %p10481_p12 = pnand %p10480_p11, %p10474_p9 }
  0x78   : > { %10484 = shalt.err (!%p10481_p12)
}
  0x79   : > { %9525 = dma.hbm_to_vmem [thread:$0]  (!%p10963_p6), %s14495_s8, 2048, %s10969_s15, [#allocation15], %s14378_s9, %s14378_s9, %s14380_s10  }
  0x7a   : > { %s10778_s27 = smov [#allocation13]   ;;  %s10779_s24 = smov [#allocation16]  }
  0x7b   : > { %s517_s1 = sshll.u32 %s10778_s27, 4  ;;  %s555_s13 = sshll.u32 %s10779_s24, 4  ;;  %s518_s1 = int_to_ptr.vmem [resolvable:$true] %s517_s1  ;;  %s11055_s13 = int_to_ptr.vmem [resolvable:$true] %s555_s13 }
  0x7c   : > { %s14496_s6 = sld [smem:[#allocation116_spill]] }
  0x82   : > { %s10485_s20 = scalar_lea.hbm %s14496_s6, 2048 }
  0x83   : > { %p10486_p13 = scmp.ne.s32.totalorder %s14496_s6, %s10485_s20  ;;  %p10492_p5 = scmp.lt.u32.totalorder %s10485_s20, %s14496_s6 }
  0x85   : > { %p10488_p0 = pnand %p10486_p13, %p10979_p8 }
  0x87   : > { %p10489_p3 = pneg %p10488_p0 }
  0x89   : > { %p10494_p7 = pnand %p10492_p5, %p10489_p3 }
  0x8b   : > { %10497 = shalt.err (!%p10494_p7)
}
  0x8c   : > { %s10498_s7 = scalar_lea.vmem %s518_s1, 2048  ;;  %p10506_p11 = scmp.lt.s32.totalorder %s518_s1, %s518_s1 }
  0x8d   : > { %p10499_p9 = scmp.ne.s32.totalorder %s518_s1, %s10498_s7  ;;  %p10507_p12 = scmp.lt.s32.totalorder %s10498_s7, %s10498_s7 }
  0x8f   : > { %p10501_p2 = pnand %p10499_p9, %p10979_p8  ;;  %p10508_p1 = por %p10507_p12, %p10506_p11 }
  0x91   : > { %p10502_p10 = pneg %p10501_p2 }
  0x93   : > { %p10509_p4 = pnand %p10508_p1, %p10502_p10 }
  0x95   : > { %10512 = shalt.err (!%p10509_p4)
}
  0x96   : > { %9522 = dma.hbm_to_vmem [thread:$0]  (!%p10963_p6), %s14496_s6, 2048, %s518_s1, [#allocation12], %s14378_s9, %s14378_s9, %s14380_s10  }
  0x97   : > { %s14497_s12 = sld [smem:[#allocation122_spill]] }
  0x9d   : > { %s10513_s20 = scalar_lea.hbm %s14497_s12, 4096 }
  0x9e   : > { %p10514_p13 = scmp.ne.s32.totalorder %s14497_s12, %s10513_s20  ;;  %p10520_p0 = scmp.lt.u32.totalorder %s10513_s20, %s14497_s12 }
  0xa0   : > { %p10516_p1 = pnand %p10514_p13, %p10979_p8 }
  0xa2   : > { %p10517_p4 = pneg %p10516_p1 }
  0xa4   : > { %p10522_p3 = pnand %p10520_p0, %p10517_p4 }
  0xa6   : > { %10525 = shalt.err (!%p10522_p3)
}
  0xa7   : > { %s10526_s1 = scalar_lea.vmem %s11055_s13, 4096  ;;  %p10534_p2 = scmp.lt.s32.totalorder %s11055_s13, %s11055_s13 }
  0xa8   : > { %p10527_p5 = scmp.ne.s32.totalorder %s11055_s13, %s10526_s1  ;;  %p10535_p10 = scmp.lt.s32.totalorder %s10526_s1, %s10526_s1 }
  0xaa   : > { %p10529_p7 = pnand %p10527_p5, %p10979_p8  ;;  %p10536_p11 = por %p10535_p10, %p10534_p2 }
  0xac   : > { %p10530_p9 = pneg %p10529_p7 }
  0xae   : > { %p10537_p12 = pnand %p10536_p11, %p10530_p9 }
  0xb0   : > { %10540 = shalt.err (!%p10537_p12)
}
  0xb1   : > { %s10780_s7 = smov 256   ;;  %s10781_s27 = smov 16  }
  0xb2   : > { %9528 = dma.hbm_to_vmem [thread:$0]  (!%p10963_p6), %s14497_s12, 4096, %s11055_s13, [#allocation15], %s10780_s7, %s10780_s7, %s10781_s27  }
  0xb3   : > { %s10782_s16 = smov [#allocation17]   ;;  %s14498_s14 = sld [smem:[#allocation124_spill]] }
  0xb4   : > { %s571_s20 = sshll.u32 %s10782_s16, 4  ;;  %s572_s20 = int_to_ptr.vmem [resolvable:$true] %s571_s20 }
  0xb9   : > { %s10541_s26 = scalar_lea.hbm %s14498_s14, 4096 }
  0xba   : > { %p10542_p13 = scmp.ne.s32.totalorder %s14498_s14, %s10541_s26  ;;  %p10548_p0 = scmp.lt.u32.totalorder %s10541_s26, %s14498_s14 }
  0xbc   : > { %p10544_p1 = pnand %p10542_p13, %p10979_p8 }
  0xbe   : > { %p10545_p4 = pneg %p10544_p1 }
  0xc0   : > { %p10550_p3 = pnand %p10548_p0, %p10545_p4 }
  0xc2   : > { %10553 = shalt.err (!%p10550_p3)
}
  0xc3   : > { %s10554_s13 = scalar_lea.vmem %s572_s20, 4096  ;;  %p10562_p2 = scmp.lt.s32.totalorder %s572_s20, %s572_s20 }
  0xc4   : > { %p10555_p5 = scmp.ne.s32.totalorder %s572_s20, %s10554_s13  ;;  %p10563_p10 = scmp.lt.s32.totalorder %s10554_s13, %s10554_s13 }
  0xc6   : > { %p10557_p7 = pnand %p10555_p5, %p10979_p8  ;;  %p10564_p11 = por %p10563_p10, %p10562_p2 }
  0xc8   : > { %p10558_p9 = pneg %p10557_p7 }
  0xca   : > { %p10565_p12 = pnand %p10564_p11, %p10558_p9 }
  0xcc   : > { %10568 = shalt.err (!%p10565_p12)
}
  0xcd   : > { %s14499_s7 = smov 8   ;;  %s14500_s27 = smov 128  }
  0xce   : > { %9531 = dma.hbm_to_vmem [thread:$0]  (!%p10963_p6), %s14498_s14, 4096, %s572_s20, [#allocation18], %s14500_s27, %s14500_s27, %s14499_s7  }
  0xcf   : > { %s7239_s5 = sadd.s32 4294967294, %s10771_s2   ;;  %s49_s18 = sadd.s32 1, %s10763_s21 }
  0xd0   : > { %s14501_s24 = sld [smem:[#allocation27_spill]]  ;;  %s52_s25 = sadd.s32 1, %s10767_s22 }
  0xd1   : > { %p50_p8 = scmp.ge.s32.totalorder %s49_s18, 2  ;;  %s59_s16 = sadd.s32 1, %s10751_s19 }
  0xd2   : > { %p66_p13 = scmp.ne.s32.totalorder %s10751_s19, %s10747_s0  ;;  %p67_p1 = scmp.eq.s32.totalorder %s10771_s2, 0 }
  0xd3   : > { %s14751_s18 = smov (%p50_p8, %s49_s18), 0  ;;  %s14753_s25 = smov (!%p50_p8, %s52_s25), %s10767_s22 }
  0xd4   : > { %14502 = sst [smem:[#allocation31_spill]] %s14751_s18  ;;  %p11132_p4 = por %p67_p1, %p66_p13 }
  0xd5   : > { %p72_p6 = scmp.ne.s32.totalorder %s10747_s0, %s10743_s30  ;;  %p54_p0 = scmp.ge.s32.totalorder %s14753_s25, 2 }
  0xd6   : > { %s445_s3 = ssub.s32 %s10763_s21, %s14751_s18  ;;  %p14504_p3 = scmp.eq.s32.totalorder %s10947_s23, 0 }
  0xd7   : > { %s449_s26 = sadd.s32 1, %s10739_s29  ;;  %s14755_s25 = smov (%p54_p0, %s14753_s25), 0 }
  0xd8   : > { %p11142_p5 = por %p14504_p3, %p72_p6  ;;  %14506 = sst [smem:[#allocation32_spill]] %s14755_s25 }
  0xd9   : > { %p459_p7 = scmp.ne.s32.totalorder %s10739_s29, %s10735_s28  ;;  %p465_p9 = scmp.ne.s32.totalorder %s10735_s28, %s14501_s24 }
  0xda   : > { %s14505_s17 = scalar_select %p11142_p5, 1, 0 }
  0xdb   : > { %s56_s15 = ssub.s32 %s10767_s22, %s14755_s25  ;;  %p466_p2 = scmp.eq.s32.totalorder %s7239_s5, 3 }
  0xdc   : > { %p57_p10 = scmp.eq.s32.totalorder %s56_s15, 0  ;;  %s446_s30 = sor.u32 %s445_s3, %s56_s15 }
  0xdd   : > { %p447_p11 = scmp.eq.s32.totalorder %s446_s30, 0  ;;  %p14507_p12 = scmp.eq.s32.totalorder %s10947_s23, 3 }
  0xde   : > { %s11162_s13 = scalar_select %p57_p10, %s10751_s19, %s59_s16  }
  0xdf   : > { %p11157_p8 = por %p14507_p12, %p459_p7  ;;  %p11167_p13 = por %p466_p2, %p465_p9 }
  0xe0   : > { %s11165_s9 = scalar_select %p447_p11, %s10739_s29, %s449_s26  }
  0xe1   : > { %s14508_s1 = scalar_select %p11157_p8, 1, 0 }
  0xe2   : > { %s14509_s10 = scalar_select %p11167_p13, 1, 0 }
  0xe3   : > { %p9549_p1 = scmp.lt.s32.totalorder %s10771_s2, 4  ;;  %s11173_s24 = sand.u32 1, %s10751_s19  }
  0xe4   : > { %s7601_s5 = sshll.u32 %s10767_s22, 12  ;;  %s7248_s3 = sshll.u32 %s11173_s24, 8 }
  0xe5   : > { %s14510_s4 = sld [smem:[#allocation110_spill]]  ;;  %s598_s16 = scalar_lea.vmem [#allocation5], %s7248_s3 }
  0xe6   : > { %s605_s26 = sshll.u32 %s598_s16, 4  ;;  %p11184_p6 = pnand %p9549_p1, %p11132_p4  ;;  %s11188_s26 = int_to_ptr.vmem [resolvable:$true] %s605_s26 }
  0xe7   : > { %s595_s12 = scalar_lea.sflag [#allocation6], %s11173_s24 }
  0xe8   : > { %p10571_p3 = pneg %p11184_p6 }
  0xeb   : > { %s11180_s6 = scalar_lea.hbm %s14510_s4, %s7601_s5  ;;  %s10574_s3 = scalar_lea.hbm %s14510_s4, 8192 }
  0xec   : > { %s10569_s15 = scalar_lea.hbm %s11180_s6, 4096  ;;  %p10575_p4 = scmp.lt.u32.totalorder %s11180_s6, %s14510_s4 }
  0xed   : > { %p10570_p0 = scmp.ne.s32.totalorder %s11180_s6, %s10569_s15  ;;  %p10576_p2 = scmp.lt.u32.totalorder %s10574_s3, %s10569_s15 }
  0xee   : > { %p10578_p11 = scmp.lt.u32.totalorder %s10569_s15, %s11180_s6 }
  0xef   : > { %p10572_p7 = pnand %p10571_p3, %p10570_p0  ;;  %p10577_p10 = por %p10576_p2, %p10575_p4 }
  0xf1   : > { %p10573_p9 = pneg %p10572_p7  ;;  %p10579_p12 = por %p10578_p11, %p10577_p10 }
  0xf3   : > { %p10580_p1 = pnand %p10579_p12, %p10573_p9 }
  0xf5   : > { %10583 = shalt.err (!%p10580_p1)
}
  0xf6   : > { %s10584_s11 = scalar_lea.vmem %s11188_s26, 4096  ;;  %s10783_s5 = smov [#allocation5]  }
  0xf7   : > { %p10585_p0 = scmp.ne.s32.totalorder %s11188_s26, %s10584_s11  ;;  %s10589_s20 = sshll.u32 %s10783_s5, 4  ;;  %s10590_s20 = int_to_ptr.vmem [resolvable:$false] %s10589_s20 }
  0xf8   : > { %s10591_s30 = scalar_lea.vmem %s10590_s20, 8192  ;;  %p10592_p8 = scmp.lt.s32.totalorder %s11188_s26, %s10590_s20 }
  0xf9   : > { %p10587_p7 = pnand %p10585_p0, %p10571_p3  ;;  %p10593_p4 = scmp.lt.s32.totalorder %s10591_s30, %s10584_s11 }
  0xfb   : > { %p10588_p13 = pneg %p10587_p7  ;;  %p10594_p2 = por %p10593_p4, %p10592_p8 }
  0xfd   : > { %p10595_p10 = pnand %p10594_p2, %p10588_p13 }
  0xff   : > { %10598 = shalt.err (!%p10595_p10)
}
 0x100   : > { %9535 = dma.hbm_to_vmem [thread:$0]  (!%p11184_p6), %s11180_s6, 4096, %s11188_s26, %s595_s12, %s14500_s27, %s14500_s27, %s14499_s7  }
 0x101   : > { %s7251_s15 = sshll.u32 %s11173_s24, 1  ;;  %s7602_s3 = sshll.u32 %s10767_s22, 5 }
 0x102   : > { %s14512_s5 = sld [smem:[#allocation111_spill]]  ;;  %s619_s30 = scalar_lea.vmem [#allocation8], %s7251_s15 }
 0x103   : > { %s627_s4 = sshll.u32 %s619_s30, 4  ;;  %s14513_s14 = sand.u32 1, %s10771_s2   ;;  %s628_s4 = int_to_ptr.vmem [resolvable:$true] %s627_s4 }
 0x104   : > { %s616_s25 = scalar_lea.sflag [#allocation9], %s14513_s14 }
 0x108   : > { %s11227_s20 = scalar_lea.hbm %s14512_s5, %s7602_s3  ;;  %s10604_s7 = scalar_lea.hbm %s14512_s5, 64 }
 0x109   : > { %s10599_s18 = scalar_lea.hbm %s11227_s20, 32  ;;  %p10605_p11 = scmp.lt.u32.totalorder %s11227_s20, %s14512_s5 }
 0x10a   : > { %p10600_p8 = scmp.ne.s32.totalorder %s11227_s20, %s10599_s18  ;;  %p10606_p12 = scmp.lt.u32.totalorder %s10604_s7, %s10599_s18 }
 0x10b   : > { %p10608_p0 = scmp.lt.u32.totalorder %s10599_s18, %s11227_s20 }
 0x10c   : > { %p10602_p13 = pnand %p10600_p8, %p10571_p3  ;;  %p10607_p1 = por %p10606_p12, %p10605_p11 }
 0x10e   : > { %p10603_p9 = pneg %p10602_p13  ;;  %p10609_p7 = por %p10608_p0, %p10607_p1 }
 0x110   : > { %p10610_p4 = pnand %p10609_p7, %p10603_p9 }
 0x112   : > { %10613 = shalt.err (!%p10610_p4)
}
 0x113   : > { %s10614_s14 = scalar_lea.vmem %s628_s4, 32  ;;  %s10784_s26 = smov [#allocation8]  }
 0x114   : > { %p10615_p2 = scmp.ne.s32.totalorder %s628_s4, %s10614_s14  ;;  %s10619_s15 = sshll.u32 %s10784_s26, 4  ;;  %s10620_s15 = int_to_ptr.vmem [resolvable:$false] %s10619_s15 }
 0x115   : > { %s10621_s3 = scalar_lea.vmem %s10620_s15, 64  ;;  %p10622_p13 = scmp.lt.s32.totalorder %s628_s4, %s10620_s15 }
 0x116   : > { %p10617_p10 = pnand %p10615_p2, %p10571_p3  ;;  %p10623_p5 = scmp.lt.s32.totalorder %s10621_s3, %s10614_s14 }
 0x118   : > { %p10618_p8 = pneg %p10617_p10  ;;  %p10624_p11 = por %p10623_p5, %p10622_p13 }
 0x11a   : > { %p10625_p12 = pnand %p10624_p11, %p10618_p8 }
 0x11c   : > { %10628 = shalt.err (!%p10625_p12)
}
 0x11d   : > { %9538 = dma.hbm_to_vmem [thread:$0]  (!%p11184_p6), %s11227_s20, 32, %s628_s4, %s616_s25  }
 0x11e   : > { %s14514_s18 = sld [smem:[#allocation30_spill]] }
 0x124   : > { %p14515_p9 = scmp.ne.s32.totalorder %s14514_s18, 0 }
 0x126   : > { %636 = sbr.rel (%p14515_p9) target bundleno = 3693 (0xe6d), region = 92 }
 0x12d   : > { %s638_s11 = sand.u32 1, %s10747_s0   ;;  %p14516_p3 = scmp.ne.s32.totalorder %s14505_s17, 0 }
 0x12e   : > { %s7255_s16 = sshll.u32 %s638_s11, 8  ;;  %s639_s30 = scalar_lea.sflag [#allocation6], %s638_s11 }
 0x12f   : > { %s11253_s6 = scalar_lea.vmem [#allocation5], %s7255_s16 }
 0x130   : > { %10702 = dma.done.wait (%p14516_p3), %s639_s30, 4096  }
 0x131   : > { %10704 = vsyncadd (%p14516_p3), %s639_s30, 4294963200  ;;  %s647_s8 = sand.u32 1, %s10947_s23   ;;  %s7256_s12 = sshll.u32 %s638_s11, 1 }
 0x132   : > { %s648_s4 = scalar_lea.sflag [#allocation9], %s647_s8  ;;  %s11260_s25 = scalar_lea.vmem [#allocation8], %s7256_s12 }
 0x133   : > { %10706 = dma.done.wait (%p14516_p3), %s648_s4, 32  }
 0x134   : > { %10708 = vsyncadd (%p14516_p3), %s648_s4, 4294967264  ;;  %p14517_p5 = scmp.eq.s32.totalorder %s10947_s23, 0 }
 0x136   : > { %10710 = dma.done.wait (%p14517_p5), [#allocation9], 2048   ;;  %p14518_p6 = pmov %p14517_p5 }
 0x137   : > { %p14519_p1 = pmov %p14517_p5 }
 0x138   : > { %10712 = vsyncadd (%p14518_p6), [#allocation9], 4294965248 }
 0x139   : > { %10714 = dma.done.wait (%p14519_p1), [#allocation12], 4096   ;;  %p14520_p0 = pmov %p14519_p1 }
 0x13b   : > { %10716 = vsyncadd (%p14520_p0), [#allocation12], 4294963200  ;;  %p14521_p7 = pmov %p14520_p0 }
 0x13c   : > { %p14522_p4 = pmov %p14520_p0 }
 0x13d   : > { %10718 = dma.done.wait (%p14521_p7), [#allocation15], 6144  }
 0x13e   : > { %10720 = vsyncadd (%p14522_p4), [#allocation15], 4294961152  ;;  %p14523_p2 = pmov %p14520_p0 }
 0x13f   : > { %p14524_p10 = pmov %p14520_p0 }
 0x140   : > { %10722 = dma.done.wait (%p14523_p2), [#allocation18], 4096  }
 0x141   : > { %10724 = vsyncadd (%p14524_p10), [#allocation18], 4294963200  ;;  %s730_s17 = sand.u32 1, %s10735_s28   ;;  %s14525_s27 = sld [smem:[#allocation28_spill]] }
 0x142   : > { %s7263_s20 = sshll.u32 %s730_s17, 7 }
 0x143   : > { %s11285_s7 = scalar_lea.vmem [#allocation19], %s7263_s20 }
 0x147   : > { %p7264_p8 = scmp.ne.s32.totalorder %s14525_s27, 0 }
 0x148   : > { %v1050_v0 = vld [vmem:[#allocation13] sm:$0xff] (!%p7264_p8)  ;;  %v1051_v1 = vld [vmem:[#allocation13 + $0x8] sm:$0xff] (!%p7264_p8)  ;;  %v1052_v2 = vld [vmem:[#allocation13 + $0x10] sm:$0xff] (!%p7264_p8)  ;;  %s14526_s14 = sld [smem:[#allocation117_spill]] (!%p7264_p8)  ;;  %vm1302_vm0 = vcmask (!%p7264_p8), 261120   ;;  %s10785_s26 = smov (!%p7264_p8), 32  }
 0x149   : > { %737 = sbr.rel (%p7264_p8) target bundleno = 1094 (0x446), region = 128  ;;  %v9003_v3 = vpack.c.bf16 (!%p7264_p8), %v1051_v1, %v1050_v0  ;;  %v1053_v4 = vld [vmem:[#allocation13 + $0x18] sm:$0xff] (!%p7264_p8)  ;;  %v1054_v6 = vld [vmem:[#allocation13 + $0x20] sm:$0xff] (!%p7264_p8)  ;;  %v1055_v7 = vld [vmem:[#allocation13 + $0x28] sm:$0xff] (!%p7264_p8)  ;;  %s10786_s15 = smov (!%p7264_p8), 96  }
 0x14a   : > { %v9007_v5 = vpack.c.bf16 (!%p7264_p8), %v1053_v4, %v1052_v2  ;;  %v9011_v8 = vpack.c.bf16 (!%p7264_p8), %v1055_v7, %v1054_v6  ;;  %v738_v9 = vld [vmem:[%s11253_s6] sm:$0xff] (!%p7264_p8)  ;;  %v1056_v10 = vld [vmem:[#allocation13 + $0x30] sm:$0xff] (!%p7264_p8)  ;;  %v1059_v14 = vld [vmem:[#allocation13 + $0x48] sm:$0xff] (!%p7264_p8)  ;;  %s10787_s3 = smov (!%p7264_p8), 64   ;;  %s14527_s16 = sld [smem:[#allocation115_spill]] (!%p7264_p8) }
 0x14b   : > { %9004 = vmatprep.subr.bf16.mxu1 (!%p7264_p8), %v9003_v3  ;;  %v1057_v11 = vld [vmem:[#allocation13 + $0x38] sm:$0xff] (!%p7264_p8)  ;;  %8643 = vmatprep.mubr.f32.mxu1 (!%p7264_p8), %v738_v9  ;;  %v1058_v13 = vld [vmem:[#allocation13 + $0x40] sm:$0xff] (!%p7264_p8)  ;;  %v1060_v16 = vld [vmem:[#allocation13 + $0x50] sm:$0xff] (!%p7264_p8) }
 0x14c   : > { %9006 = vmatpush3.bf16.msra.mxu1 (!%p7264_p8), %v9003_v3  ;;  %8563 = vmatprep.mubr.f32.mxu0 (!%p7264_p8), %v738_v9  ;;  %v9015_v12 = vpack.c.bf16 (!%p7264_p8), %v1057_v11, %v1056_v10  ;;  %v9019_v15 = vpack.c.bf16 (!%p7264_p8), %v1059_v14, %v1058_v13  ;;  %v1061_v17 = vld [vmem:[#allocation13 + $0x58] sm:$0xff] (!%p7264_p8)  ;;  %v770_v18 = vld [vmem:[#allocation11] sm:$0xff] (!%p7264_p8)  ;;  %v771_v19 = vld [vmem:[#allocation11 + $0x8] sm:$0xff] (!%p7264_p8) }
 0x14d   : > { %9008 = vmatprep.subr.bf16.mxu1 (!%p7264_p8), %v9007_v5  ;;  %v772_v20 = vld [vmem:[#allocation11 + $0x10] sm:$0xff] (!%p7264_p8)  ;;  %v9023_v21 = vpack.c.bf16 (!%p7264_p8), %v1061_v17, %v1060_v16  ;;  %v1062_v22 = vld [vmem:[#allocation13 + $0x60] sm:$0xff] (!%p7264_p8)  ;;  %v8971_v23 = vpack.c.bf16 (!%p7264_p8), %v771_v19, %v770_v18  ;;  %v773_v24 = vld [vmem:[#allocation11 + $0x18] sm:$0xff] (!%p7264_p8) }
 0x14e   : > { %v1063_v25 = vld [vmem:[#allocation13 + $0x68] sm:$0xff] (!%p7264_p8)  ;;  %v8975_v26 = vpack.c.bf16 (!%p7264_p8), %v773_v24, %v772_v20  ;;  %v774_v27 = vld [vmem:[#allocation11 + $0x20] sm:$0xff] (!%p7264_p8)  ;;  %v1064_v30 = vld [vmem:[#allocation13 + $0x70] sm:$0xff] (!%p7264_p8) }
 0x14f   : > { %v775_v28 = vld [vmem:[#allocation11 + $0x28] sm:$0xff] (!%p7264_p8)  ;;  %8972 = vmatprep.subr.bf16.mxu0 (!%p7264_p8), %v8971_v23  ;;  %v9027_v29 = vpack.c.bf16 (!%p7264_p8), %v1063_v25, %v1062_v22  ;;  %v1065_v32 = vld [vmem:[#allocation13 + $0x78] sm:$0xff] (!%p7264_p8)  ;;  %v776_v33 = vld [vmem:[#allocation11 + $0x30] sm:$0xff] (!%p7264_p8) }
 0x150   : > { %9010 = vmatpush3.bf16.msra.mxu1 %v9007_v5  ;;  %8974 = vmatpush3.bf16.msra.mxu0 %v8971_v23  ;;  %v8979_v31 = vpack.c.bf16 %v775_v28, %v774_v27  ;;  %v777_v34 = vld [vmem:[#allocation11 + $0x38] sm:$0xff]  ;;  %v9031_v35 = vpack.c.bf16 %v1065_v32, %v1064_v30  ;;  %v778_v37 = vld [vmem:[#allocation11 + $0x40] sm:$0xff]  ;;  %v779_v38 = vld [vmem:[#allocation11 + $0x48] sm:$0xff] }
 0x151   : > { %9012 = vmatprep.subr.bf16.mxu1 %v9011_v8  ;;  %8976 = vmatprep.subr.bf16.mxu0 %v8975_v26  ;;  %v8983_v36 = vpack.c.bf16 %v777_v34, %v776_v33  ;;  %v8987_v39 = vpack.c.bf16 %v779_v38, %v778_v37  ;;  %v780_v40 = vld [vmem:[#allocation11 + $0x50] sm:$0xff]  ;;  %v781_v41 = vld [vmem:[#allocation11 + $0x58] sm:$0xff]  ;;  %v739_v42 = vld [vmem:[%s11253_s6 + $0x8] sm:$0xff] }
 0x152   : > { %v740_v43 = vld [vmem:[%s11253_s6 + $0x10] sm:$0xff]  ;;  %v8991_v44 = vpack.c.bf16 %v781_v41, %v780_v40  ;;  %v782_v45 = vld [vmem:[#allocation11 + $0x60] sm:$0xff]  ;;  %v741_v47 = vld [vmem:[%s11253_s6 + $0x18] sm:$0xff] }
 0x153   : > { %v783_v46 = vld [vmem:[#allocation11 + $0x68] sm:$0xff]  ;;  %v742_v48 = vld [vmem:[%s11253_s6 + $0x20] sm:$0xff]  ;;  %v784_v50 = vld [vmem:[#allocation11 + $0x70] sm:$0xff] }
 0x154   : > { %9014 = vmatpush3.bf16.msra.mxu1 %v9011_v8  ;;  %8978 = vmatpush3.bf16.msra.mxu0 %v8975_v26  ;;  %v8995_v49 = vpack.c.bf16 %v783_v46, %v782_v45  ;;  %v785_v51 = vld [vmem:[#allocation11 + $0x78] sm:$0xff]  ;;  %v743_v52 = vld [vmem:[%s11253_s6 + $0x28] sm:$0xff]  ;;  %v744_v53 = vld [vmem:[%s11253_s6 + $0x30] sm:$0xff] }
 0x155   : > { %9016 = vmatprep.subr.bf16.mxu1 %v9015_v12  ;;  %8980 = vmatprep.subr.bf16.mxu0 %v8979_v31  ;;  %v8999_v54 = vpack.c.bf16 %v785_v51, %v784_v50  ;;  %v1298_v55 = vld [vmem:[#allocation14] sm:$0xff]  ;;  %v1299_v56 = vld [vmem:[#allocation14 + $0x8] sm:$0xff]  ;;  %v745_v57 = vld [vmem:[%s11253_s6 + $0x38] sm:$0xff] }
 0x156   : > { %v746_v58 = vld [vmem:[%s11253_s6 + $0x40] sm:$0xff]  ;;  %v9035_v59 = vpack.c.bf16 %v1299_v56, %v1298_v55  ;;  %v747_v60 = vld [vmem:[%s11253_s6 + $0x48] sm:$0xff]  ;;  %v748_v61 = vld [vmem:[%s11253_s6 + $0x50] sm:$0xff] }
 0x157   : > { %v749_v62 = vld [vmem:[%s11253_s6 + $0x58] sm:$0xff]  ;;  %v750_v63 = vld [vmem:[%s11253_s6 + $0x60] sm:$0xff]  ;;  %v751_v0 = vld [vmem:[%s11253_s6 + $0x68] sm:$0xff] }
 0x158   : > { %9018 = vmatpush3.bf16.msra.mxu1 %v9015_v12  ;;  %8982 = vmatpush3.bf16.msra.mxu0 %v8979_v31  ;;  %v752_v1 = vld [vmem:[%s11253_s6 + $0x70] sm:$0xff]  ;;  %v753_v2 = vld [vmem:[%s11253_s6 + $0x78] sm:$0xff]  ;;  %v754_v3 = vld [vmem:[%s11253_s6 + $0x80] sm:$0xff] }
 0x159   : > { %9020 = vmatprep.subr.bf16.mxu1 %v9019_v15  ;;  %8984 = vmatprep.subr.bf16.mxu0 %v8983_v36  ;;  %v755_v4 = vld [vmem:[%s11253_s6 + $0x88] sm:$0xff]  ;;  %v756_v5 = vld [vmem:[%s11253_s6 + $0x90] sm:$0xff]  ;;  %v757_v6 = vld [vmem:[%s11253_s6 + $0x98] sm:$0xff] }
 0x15a   : > { %v758_v7 = vld [vmem:[%s11253_s6 + $0xa0] sm:$0xff]  ;;  %v759_v8 = vld [vmem:[%s11253_s6 + $0xa8] sm:$0xff]  ;;  %v760_v9 = vld [vmem:[%s11253_s6 + $0xb0] sm:$0xff] }
 0x15b   : > { %v761_v10 = vld [vmem:[%s11253_s6 + $0xb8] sm:$0xff]  ;;  %v762_v11 = vld [vmem:[%s11253_s6 + $0xc0] sm:$0xff]  ;;  %v763_v12 = vld [vmem:[%s11253_s6 + $0xc8] sm:$0xff] }
 0x15c   : > { %9022 = vmatpush3.bf16.msra.mxu1 %v9019_v15  ;;  %8986 = vmatpush3.bf16.msra.mxu0 %v8983_v36  ;;  %v764_v13 = vld [vmem:[%s11253_s6 + $0xd0] sm:$0xff]  ;;  %v765_v14 = vld [vmem:[%s11253_s6 + $0xd8] sm:$0xff]  ;;  %v766_v15 = vld [vmem:[%s11253_s6 + $0xe0] sm:$0xff] }
 0x15d   : > { %9024 = vmatprep.subr.bf16.mxu1 %v9023_v21  ;;  %8988 = vmatprep.subr.bf16.mxu0 %v8987_v39  ;;  %v767_v16 = vld [vmem:[%s11253_s6 + $0xe8] sm:$0xff]  ;;  %v768_v17 = vld [vmem:[%s11253_s6 + $0xf0] sm:$0xff]  ;;  %v769_v18 = vld [vmem:[%s11253_s6 + $0xf8] sm:$0xff] }
 0x15e   : > { %v1300_v19 = vld [vmem:[#allocation14 + $0x10] sm:$0xff]  ;;  %v1301_v20 = vld [vmem:[#allocation14 + $0x18] sm:$0xff]  ;;  %v1656_v22 = vld [vmem:[#allocation14 + $0x20] sm:$0xff] }
 0x15f   : > { %v1657_v23 = vld [vmem:[#allocation14 + $0x28] sm:$0xff]  ;;  %v1658_v25 = vld [vmem:[#allocation14 + $0x30] sm:$0xff]  ;;  %v1659_v26 = vld [vmem:[#allocation14 + $0x38] sm:$0xff] }
 0x160   : > { %9026 = vmatpush3.bf16.msra.mxu1 %v9023_v21  ;;  %8990 = vmatpush3.bf16.msra.mxu0 %v8987_v39  ;;  %v9039_v21 = vpack.c.bf16 %v1301_v20, %v1300_v19  ;;  %v9043_v24 = vpack.c.bf16 %v1657_v23, %v1656_v22  ;;  %v2046_v27 = vld [vmem:[#allocation14 + $0x40] sm:$0xff]  ;;  %v9047_v28 = vpack.c.bf16 %v1659_v26, %v1658_v25  ;;  %v11323_v31 = vld [vmem:[%s14526_s14] ss:$0 sm:$0xff] }
 0x161   : > { %9028 = vmatprep.subr.bf16.mxu1 %v9027_v29  ;;  %8992 = vmatprep.subr.bf16.mxu0 %v8991_v44  ;;  %v2049_v36 = vld [vmem:[#allocation14 + $0x58] sm:$0xff]  ;;  %v2436_v23 = vld [vmem:[#allocation14 + $0x60] sm:$0xff] }
 0x164   : > { %9030 = vmatpush3.bf16.msra.mxu1 %v9027_v29  ;;  %8994 = vmatpush3.bf16.msra.mxu0 %v8991_v44  ;;  %v2047_v29 = vld [vmem:[#allocation14 + $0x48] sm:$0xff] }
 0x165   : > { %9032 = vmatprep.subr.bf16.mxu1 %v9031_v35  ;;  %8996 = vmatprep.subr.bf16.mxu0 %v8995_v49  ;;  %v9051_v30 = vpack.c.bf16 %v2047_v29, %v2046_v27 }
 0x168   : > { %9034 = vmatpush3.bf16.msra.mxu1 %v9031_v35  ;;  %8998 = vmatpush3.bf16.msra.mxu0 %v8995_v49  ;;  %v2048_v35 = vld [vmem:[#allocation14 + $0x50] sm:$0xff] }
 0x169   : > { %9000 = vmatprep.subr.bf16.mxu0 %v8999_v54  ;;  %9044 = vmatprep.subr.bf16.mxu1 %v9043_v24  ;;  %v9055_v39 = vpack.c.bf16 %v2049_v36, %v2048_v35 }
 0x16b   : > { %8644 = vmatmul.mubr.f32.vlgmr.msra.gmra.mrb[0].mxu1 %v739_v42 }
 0x16c   : > { %8646 = vmatprep.mubr.f32.mxu1 %v740_v43  ;;  %9002 = vmatpush3.bf16.msra.mxu0 %v8999_v54 }
 0x16d   : > { %9036 = vmatprep.subr.bf16.mxu0 %v9035_v59  ;;  %9046 = vmatpush3.bf16.msra.mxu1 %v9043_v24  ;;  %v2437_v24 = vld [vmem:[#allocation14 + $0x68] sm:$0xff] }
 0x16e   : > { %9048 = vmatprep.subr.bf16.mxu1 %v9047_v28  ;;  %v11463_v26 = vpack.c.bf16 %v2437_v24, %v2436_v23 }
 0x16f   : > { %8647 = vmatmul.mubr.f32.gmra.mrb[2].mxu1 %v741_v47  ;;  %8564 = vmatmul.mubr.f32.vlgmr.msra.gmra.mrb[0].mxu0 %v739_v42 }
 0x170   : > { %8649 = vmatprep.mubr.f32.mxu1 %v742_v48  ;;  %8566 = vmatprep.mubr.f32.mxu0 %v740_v43 }
 0x171   : > { %9038 = vmatpush3.bf16.msra.mxu0 %v9035_v59  ;;  %9050 = vmatpush3.bf16.msra.mxu1 %v9047_v28 }
 0x172   : > { %9040 = vmatprep.subr.bf16.mxu0 %v9039_v21  ;;  %9060 = vmatprep.subr.bf16.mxu1 %v11463_v26 }
 0x173   : > { %8650 = vmatmul.mubr.f32.gmra.mrb[4].mxu1 %v743_v52  ;;  %8567 = vmatmul.mubr.f32.gmra.mrb[2].mxu0 %v741_v47 }
 0x174   : > { %8652 = vmatprep.mubr.f32.mxu1 %v744_v53  ;;  %8569 = vmatprep.mubr.f32.mxu0 %v742_v48 }
 0x175   : > { %9042 = vmatpush3.bf16.msra.mxu0 %v9039_v21 }
 0x176   : > { %9052 = vmatprep.subr.bf16.mxu0 %v9051_v30 }
 0x177   : > { %8653 = vmatmul.mubr.f32.gmra.mrb[6].mxu1 %v745_v57  ;;  %8570 = vmatmul.mubr.f32.gmra.mrb[4].mxu0 %v743_v52 }
 0x178   : > { %8655 = vmatprep.mubr.f32.mxu1 %v746_v58  ;;  %8572 = vmatprep.mubr.f32.mxu0 %v744_v53 }
 0x17b   : > { %8656 = vmatmul.mubr.f32.gmra.mrb[8].mxu1 %v747_v60  ;;  %8573 = vmatmul.mubr.f32.gmra.mrb[6].mxu0 %v745_v57 }
 0x17c   : > { %8658 = vmatprep.mubr.f32.mxu1 %v748_v61  ;;  %8575 = vmatprep.mubr.f32.mxu0 %v746_v58 }
 0x17f   : > { %8659 = vmatmul.mubr.f32.gmra.mrb[10].mxu1 %v749_v62  ;;  %8576 = vmatmul.mubr.f32.gmra.mrb[8].mxu0 %v747_v60 }
 0x180   : > { %8661 = vmatprep.mubr.f32.mxu1 %v750_v63  ;;  %8578 = vmatprep.mubr.f32.mxu0 %v748_v61 }
 0x183   : > { %8662 = vmatmul.mubr.f32.gmra.mrb[12].mxu1 %v751_v0  ;;  %8579 = vmatmul.mubr.f32.gmra.mrb[10].mxu0 %v749_v62 }
 0x184   : > { %8664 = vmatprep.mubr.f32.mxu1 %v752_v1  ;;  %8581 = vmatprep.mubr.f32.mxu0 %v750_v63 }
 0x187   : > { %8665 = vmatmul.mubr.f32.gmra.mrb[14].mxu1 %v753_v2  ;;  %8582 = vmatmul.mubr.f32.gmra.mrb[12].mxu0 %v751_v0 }
 0x188   : > { %8667 = vmatprep.mubr.f32.mxu1 %v754_v3  ;;  %8584 = vmatprep.mubr.f32.mxu0 %v752_v1 }
 0x18b   : > { %8668 = vmatmul.mubr.f32.gmra.mrb[16].mxu1 %v755_v4  ;;  %8585 = vmatmul.mubr.f32.gmra.mrb[14].mxu0 %v753_v2 }
 0x18c   : > { %8670 = vmatprep.mubr.f32.mxu1 %v756_v5  ;;  %8587 = vmatprep.mubr.f32.mxu0 %v754_v3 }
 0x18f   : > { %8671 = vmatmul.mubr.f32.gmra.mrb[18].mxu1 %v757_v6  ;;  %8588 = vmatmul.mubr.f32.gmra.mrb[16].mxu0 %v755_v4 }
 0x190   : > { %8673 = vmatprep.mubr.f32.mxu1 %v758_v7  ;;  %8590 = vmatprep.mubr.f32.mxu0 %v756_v5 }
 0x193   : > { %8674 = vmatmul.mubr.f32.gmra.mrb[20].mxu1 %v759_v8  ;;  %8591 = vmatmul.mubr.f32.gmra.mrb[18].mxu0 %v757_v6 }
 0x194   : > { %8676 = vmatprep.mubr.f32.mxu1 %v760_v9  ;;  %8593 = vmatprep.mubr.f32.mxu0 %v758_v7 }
 0x197   : > { %8677 = vmatmul.mubr.f32.gmra.mrb[22].mxu1 %v761_v10  ;;  %8594 = vmatmul.mubr.f32.gmra.mrb[20].mxu0 %v759_v8 }
 0x198   : > { %8679 = vmatprep.mubr.f32.mxu1 %v762_v11  ;;  %8596 = vmatprep.mubr.f32.mxu0 %v760_v9 }
 0x19b   : > { %8680 = vmatmul.mubr.f32.gmra.mrb[24].mxu1 %v763_v12  ;;  %8597 = vmatmul.mubr.f32.gmra.mrb[22].mxu0 %v761_v10 }
 0x19c   : > { %8682 = vmatprep.mubr.f32.mxu1 %v764_v13  ;;  %8599 = vmatprep.mubr.f32.mxu0 %v762_v11 }
 0x19f   : > { %8683 = vmatmul.mubr.f32.gmra.mrb[26].mxu1 %v765_v14  ;;  %8600 = vmatmul.mubr.f32.gmra.mrb[24].mxu0 %v763_v12 }
 0x1a0   : > { %8685 = vmatprep.mubr.f32.mxu1 %v766_v15  ;;  %8602 = vmatprep.mubr.f32.mxu0 %v764_v13 }
 0x1a3   : > { %8686 = vmatmul.mubr.f32.gmra.mrb[28].mxu1 %v767_v16  ;;  %8603 = vmatmul.mubr.f32.gmra.mrb[26].mxu0 %v765_v14 }
 0x1a4   : > { %8688 = vmatprep.mubr.f32.mxu1 %v768_v17  ;;  %8605 = vmatprep.mubr.f32.mxu0 %v766_v15 }
 0x1a7   : > { %8689 = vmatmul.mubr.f32.gmra.mrb[30].mxu1 %v769_v18  ;;  %8606 = vmatmul.mubr.f32.gmra.mrb[28].mxu0 %v767_v16 }
 0x1a8   : > { %8608 = vmatprep.mubr.f32.mxu0 %v768_v17 }
 0x1ab   : > { %8609 = vmatmul.mubr.f32.gmra.mrb[30].mxu0 %v769_v18 }
 0x23e   : > { %v8645_v32 = vpop.f32.mrb[0].mxu1 }
 0x23f   : > { %v1145_v33 = vadd.f32 %v8645_v32, %v11323_v31  ;;  %v1139_v34 = vpop.f32.mrb[1].mxu1 }
 0x240   : > { %v1140_v37 = vadd.f32 %v11323_v31, %v1139_v34 }
 0x241   : > { %2442 = vrot.lane.b32.xlu1 %v1145_v33, %s10785_s26  ;;  %1662 = vrot.lane.b32.xlu0 %v1145_v33, %s10786_s15 }
 0x242   : > { %8699 = vmatprep.mubr.msk.f32.mxu0 %vm1302_vm0, %v1140_v37  ;;  %v8648_v38 = vpop.f32.mrb[2].mxu1  ;;  %v8565_v32 = vpop.f32.mrb[0].mxu0 }
 0x243   : > { %v1155_v40 = vadd.f32 %v8648_v38, %v11323_v31  ;;  %8700 = vmatmul.mubr.msk.f32.vlgmr.msra.gmra.mrb[32].mxu0 %vm1302_vm0, %v1145_v33  ;;  %v1149_v41 = vpop.f32.mrb[3].mxu1 }
 0x244   : > { %v1150_v42 = vadd.f32 %v11323_v31, %v1149_v41  ;;  %9054 = vmatpush3.bf16.msra.mxu0 %v9051_v30 }
 0x245   : > { %2052 = vrot.lane.b32.xlu0 %v1145_v33, %s10787_s3  ;;  %2440 = vrot.lane.b32.xlu1 %v1140_v37, %s10785_s26  ;;  %v11483_v33 = vld [vmem:[%s14527_s16] ss:$0 sm:$0xff] }
 0x246   : > { %8702 = vmatprep.mubr.msk.f32.mxu0 %vm1302_vm0, %v1150_v42  ;;  %v8651_v43 = vpop.f32.mrb[4].mxu1  ;;  %9056 = vmatprep.subr.bf16.mxu0 %v9055_v39  ;;  %v865_v36 = vadd.f32 %v8565_v32, %v11483_v33 }
 0x247   : > { %8703 = vmatmul.mubr.msk.f32.gmra.mrb[34].mxu0 %vm1302_vm0, %v1155_v40  ;;  %v1165_v44 = vadd.f32 %v8651_v43, %v11323_v31  ;;  %v1159_v45 = vpop.f32.mrb[5].mxu1 }
 0x248   : > { %v1160_v46 = vadd.f32 %v11323_v31, %v1159_v45  ;;  %9058 = vmatpush3.bf16.msra.mxu0 %v9055_v39  ;;  %1019 = vst [vmem:[#allocation2 + $0x8] sm:$0xff] %v865_v36 }
 0x249   : > { %1666 = vrot.lane.b32.xlu1 %v1155_v40, %s10786_s15  ;;  %1660 = vrot.lane.b32.xlu0 %v1140_v37, %s10786_s15 }
 0x24a   : > { %8705 = vmatprep.mubr.msk.f32.mxu0 %vm1302_vm0, %v1160_v46  ;;  %v8654_v47 = vpop.f32.mrb[6].mxu1 }
 0x24b   : > { %8706 = vmatmul.mubr.msk.f32.gmra.mrb[36].mxu0 %vm1302_vm0, %v1165_v44  ;;  %v1175_v48 = vadd.f32 %v8654_v47, %v11323_v31  ;;  %v1169_v49 = vpop.f32.mrb[7].mxu1 }
 0x24c   : > { %v11345_v50 = vadd.f32 %v11323_v31, %v1169_v49 }
 0x24d   : > { %2446 = vrot.lane.b32.xlu1 %v1155_v40, %s10785_s26  ;;  %2050 = vrot.lane.b32.xlu0 %v1140_v37, %s10787_s3  ;;  %v859_v37 = vpop.f32.mrb[1].mxu0 }
 0x24e   : > { %8708 = vmatprep.mubr.msk.f32.mxu0 %vm1302_vm0, %v11345_v50  ;;  %v8657_v51 = vpop.f32.mrb[8].mxu1  ;;  %v860_v39 = vadd.f32 %v11483_v33, %v859_v37 }
 0x24f   : > { %8709 = vmatmul.mubr.msk.f32.gmra.mrb[38].mxu0 %vm1302_vm0, %v1175_v48  ;;  %v11353_v52 = vadd.f32 %v8657_v51, %v11323_v31  ;;  %v1179_v53 = vpop.f32.mrb[9].mxu1 }
 0x250   : > { %v11356_v54 = vadd.f32 %v11323_v31, %v1179_v53  ;;  %1018 = vst [vmem:[#allocation2] sm:$0xff] %v860_v39 }
 0x251   : > { %1664 = vrot.lane.b32.xlu1 %v1150_v42, %s10786_s15  ;;  %2056 = vrot.lane.b32.xlu0 %v1155_v40, %s10787_s3  ;;  %v8568_v40 = vpop.f32.mrb[2].mxu0 }
 0x252   : > { %8711 = vmatprep.mubr.msk.f32.mxu0 %vm1302_vm0, %v11356_v54  ;;  %v8660_v55 = vpop.f32.mrb[10].mxu1  ;;  %v875_v41 = vadd.f32 %v8568_v40, %v11483_v33 }
 0x253   : > { %8712 = vmatmul.mubr.msk.f32.gmra.mrb[40].mxu0 %vm1302_vm0, %v11353_v52  ;;  %v11365_v56 = vadd.f32 %v8660_v55, %v11323_v31  ;;  %v1189_v57 = vpop.f32.mrb[11].mxu1 }
 0x254   : > { %v11368_v58 = vadd.f32 %v11323_v31, %v1189_v57  ;;  %1021 = vst [vmem:[#allocation2 + $0x18] sm:$0xff] %v875_v41 }
 0x255   : > { %2444 = vrot.lane.b32.xlu1 %v1150_v42, %s10785_s26  ;;  %2054 = vrot.lane.b32.xlu0 %v1150_v42, %s10787_s3  ;;  %v869_v42 = vpop.f32.mrb[3].mxu0 }
 0x256   : > { %8714 = vmatprep.mubr.msk.f32.mxu0 %vm1302_vm0, %v11368_v58  ;;  %v8663_v59 = vpop.f32.mrb[12].mxu1  ;;  %v8571_v45 = vpop.f32.mrb[4].mxu0 }
 0x257   : > { %8715 = vmatmul.mubr.msk.f32.gmra.mrb[42].mxu0 %vm1302_vm0, %v11365_v56  ;;  %v11377_v60 = vadd.f32 %v8663_v59, %v11323_v31  ;;  %v1199_v61 = vpop.f32.mrb[13].mxu1  ;;  %v879_v49 = vpop.f32.mrb[5].mxu0 }
 0x258   : > { %v11380_v62 = vadd.f32 %v11323_v31, %v1199_v61  ;;  %v880_v51 = vadd.f32 %v11483_v33, %v879_v49 }
 0x259   : > { %1670 = vrot.lane.b32.xlu1 %v1165_v44, %s10786_s15  ;;  %2060 = vrot.lane.b32.xlu0 %v1165_v44, %s10787_s3 }
 0x25a   : > { %8717 = vmatprep.mubr.msk.f32.mxu0 %vm1302_vm0, %v11380_v62  ;;  %v8666_v63 = vpop.f32.mrb[14].mxu1  ;;  %1022 = vst [vmem:[#allocation2 + $0x20] sm:$0xff] %v880_v51 }
 0x25b   : > { %8718 = vmatmul.mubr.msk.f32.gmra.mrb[44].mxu0 %vm1302_vm0, %v11377_v60  ;;  %v11389_v0 = vadd.f32 %v8666_v63, %v11323_v31  ;;  %v1209_v1 = vpop.f32.mrb[15].mxu1 }
 0x25c   : > { %v11392_v2 = vadd.f32 %v11323_v31, %v1209_v1 }
 0x25d   : > { %2450 = vrot.lane.b32.xlu1 %v1165_v44, %s10785_s26  ;;  %1668 = vrot.lane.b32.xlu0 %v1160_v46, %s10786_s15  ;;  %v870_v44 = vadd.f32 %v11483_v33, %v869_v42 }
 0x25e   : > { %8720 = vmatprep.mubr.msk.f32.mxu0 %vm1302_vm0, %v11392_v2  ;;  %v8669_v3 = vpop.f32.mrb[16].mxu1 }
 0x25f   : > { %8721 = vmatmul.mubr.msk.f32.gmra.mrb[46].mxu0 %vm1302_vm0, %v11389_v0  ;;  %v11401_v4 = vadd.f32 %v8669_v3, %v11323_v31  ;;  %v1219_v5 = vpop.f32.mrb[17].mxu1  ;;  %1020 = vst [vmem:[#allocation2 + $0x10] sm:$0xff] %v870_v44 }
 0x260   : > { %v11404_v6 = vadd.f32 %v11323_v31, %v1219_v5 }
 0x261   : > { %2448 = vrot.lane.b32.xlu1 %v1160_v46, %s10785_s26  ;;  %2058 = vrot.lane.b32.xlu0 %v1160_v46, %s10787_s3 }
 0x262   : > { %v8672_v7 = vpop.f32.mrb[18].mxu1  ;;  %8723 = vmatprep.mubr.msk.f32.mxu0 %vm1302_vm0, %v11404_v6 }
 0x263   : > { %v11411_v8 = vadd.f32 %v8672_v7, %v11323_v31  ;;  %v1229_v9 = vpop.f32.mrb[19].mxu1  ;;  %8724 = vmatmul.mubr.msk.f32.gmra.mrb[48].mxu0 %vm1302_vm0, %v11401_v4 }
 0x264   : > { %v11416_v10 = vadd.f32 %v11323_v31, %v1229_v9 }
 0x265   : > { %1674 = vrot.lane.b32.xlu1 %v1175_v48, %s10786_s15  ;;  %2064 = vrot.lane.b32.xlu0 %v1175_v48, %s10787_s3 }
 0x266   : > { %v8675_v11 = vpop.f32.mrb[20].mxu1  ;;  %8726 = vmatprep.mubr.msk.f32.mxu0 %vm1302_vm0, %v11416_v10 }
 0x267   : > { %v11423_v12 = vadd.f32 %v8675_v11, %v11323_v31  ;;  %v1239_v13 = vpop.f32.mrb[21].mxu1  ;;  %8727 = vmatmul.mubr.msk.f32.gmra.mrb[50].mxu0 %vm1302_vm0, %v11411_v8 }
 0x268   : > { %v11428_v14 = vadd.f32 %v11323_v31, %v1239_v13 }
 0x269   : > { %2454 = vrot.lane.b32.xlu1 %v1175_v48, %s10785_s26  ;;  %1672 = vrot.lane.b32.xlu0 %v11345_v50, %s10786_s15  ;;  %v885_v48 = vadd.f32 %v8571_v45, %v11483_v33 }
 0x26a   : > { %v8678_v15 = vpop.f32.mrb[22].mxu1  ;;  %8729 = vmatprep.mubr.msk.f32.mxu0 %vm1302_vm0, %v11428_v14 }
 0x26b   : > { %v11436_v16 = vadd.f32 %v8678_v15, %v11323_v31  ;;  %v1249_v17 = vpop.f32.mrb[23].mxu1  ;;  %8730 = vmatmul.mubr.msk.f32.gmra.mrb[52].mxu0 %vm1302_vm0, %v11423_v12  ;;  %1023 = vst [vmem:[#allocation2 + $0x28] sm:$0xff] %v885_v48 }
 0x26c   : > { %v11441_v18 = vadd.f32 %v11323_v31, %v1249_v17 }
 0x26d   : > { %2452 = vrot.lane.b32.xlu1 %v11345_v50, %s10785_s26  ;;  %2062 = vrot.lane.b32.xlu0 %v11345_v50, %s10787_s3 }
 0x26e   : > { %v8681_v19 = vpop.f32.mrb[24].mxu1  ;;  %8732 = vmatprep.mubr.msk.f32.mxu0 %vm1302_vm0, %v11441_v18 }
 0x26f   : > { %v11450_v20 = vadd.f32 %v8681_v19, %v11323_v31  ;;  %v1259_v21 = vpop.f32.mrb[25].mxu1  ;;  %8733 = vmatmul.mubr.msk.f32.gmra.mrb[54].mxu0 %vm1302_vm0, %v11436_v16 }
 0x270   : > { %v11455_v22 = vadd.f32 %v11323_v31, %v1259_v21 }
 0x271   : > { %1678 = vrot.lane.b32.xlu1 %v11353_v52, %s10786_s15  ;;  %2068 = vrot.lane.b32.xlu0 %v11353_v52, %s10787_s3 }
 0x272   : > { %v8684_v25 = vpop.f32.mrb[26].mxu1  ;;  %8735 = vmatprep.mubr.msk.f32.mxu0 %vm1302_vm0, %v11455_v22 }
 0x273   : > { %v11466_v27 = vadd.f32 %v8684_v25, %v11323_v31  ;;  %v1269_v28 = vpop.f32.mrb[27].mxu1  ;;  %8736 = vmatmul.mubr.msk.f32.gmra.mrb[56].mxu0 %vm1302_vm0, %v11450_v20 }
 0x274   : > { %v11471_v29 = vadd.f32 %v11323_v31, %v1269_v28 }
 0x275   : > { %2458 = vrot.lane.b32.xlu1 %v11353_v52, %s10785_s26  ;;  %1676 = vrot.lane.b32.xlu0 %v11356_v54, %s10786_s15  ;;  %v8574_v52 = vpop.f32.mrb[6].mxu0 }
 0x276   : > { %v8687_v30 = vpop.f32.mrb[28].mxu1  ;;  %8738 = vmatprep.mubr.msk.f32.mxu0 %vm1302_vm0, %v11471_v29  ;;  %v895_v53 = vadd.f32 %v8574_v52, %v11483_v33 }
 0x277   : > { %v11486_v34 = vadd.f32 %v8687_v30, %v11323_v31  ;;  %v1279_v35 = vpop.f32.mrb[29].mxu1  ;;  %8739 = vmatmul.mubr.msk.f32.gmra.mrb[58].mxu0 %vm1302_vm0, %v11466_v27 }
 0x278   : > { %v11492_v38 = vadd.f32 %v11323_v31, %v1279_v35  ;;  %1025 = vst [vmem:[#allocation2 + $0x38] sm:$0xff] %v895_v53 }
 0x279   : > { %2456 = vrot.lane.b32.xlu1 %v11356_v54, %s10785_s26  ;;  %2066 = vrot.lane.b32.xlu0 %v11356_v54, %s10787_s3  ;;  %v889_v54 = vpop.f32.mrb[7].mxu0 }
 0x27a   : > { %v8690_v43 = vpop.f32.mrb[30].mxu1  ;;  %8741 = vmatprep.mubr.msk.f32.mxu0 %vm1302_vm0, %v11492_v38  ;;  %v8577_v55 = vpop.f32.mrb[8].mxu0 }
 0x27b   : > { %v11504_v46 = vadd.f32 %v8690_v43, %v11323_v31  ;;  %v1289_v47 = vpop.f32.mrb[31].mxu1  ;;  %8742 = vmatmul.mubr.msk.f32.gmra.mrb[60].mxu0 %vm1302_vm0, %v11486_v34  ;;  %v905_v57 = vadd.f32 %v8577_v55, %v11483_v33  ;;  %v899_v59 = vpop.f32.mrb[9].mxu0 }
 0x27c   : > { %v11510_v50 = vadd.f32 %v11323_v31, %v1289_v47  ;;  %v890_v31 = vadd.f32 %v11483_v33, %v889_v54  ;;  %v900_v61 = vadd.f32 %v11483_v33, %v899_v59  ;;  %v8580_v63 = vpop.f32.mrb[10].mxu0 }
 0x27d   : > { %1682 = vrot.lane.b32.xlu1 %v11365_v56, %s10786_s15  ;;  %2072 = vrot.lane.b32.xlu0 %v11365_v56, %s10787_s3  ;;  %1027 = vst [vmem:[#allocation2 + $0x48] sm:$0xff] %v905_v57  ;;  %v915_v1 = vadd.f32 %v8580_v63, %v11483_v33  ;;  %v909_v3 = vpop.f32.mrb[11].mxu0 }
 0x27e   : > { %8744 = vmatprep.mubr.msk.f32.mxu0 %vm1302_vm0, %v11510_v50  ;;  %1024 = vst [vmem:[#allocation2 + $0x30] sm:$0xff] %v890_v31  ;;  %1026 = vst [vmem:[#allocation2 + $0x40] sm:$0xff] %v900_v61  ;;  %v910_v5 = vadd.f32 %v11483_v33, %v909_v3  ;;  %v8583_v7 = vpop.f32.mrb[12].mxu0  ;;  %v2438_v3 = vld [vmem:[#allocation14 + $0x70] sm:$0xff] }
 0x27f   : > { %8745 = vmatmul.mubr.msk.f32.gmra.mrb[62].mxu0 %vm1302_vm0, %v11504_v46  ;;  %1029 = vst [vmem:[#allocation2 + $0x58] sm:$0xff] %v915_v1  ;;  %v925_v9 = vadd.f32 %v8583_v7, %v11483_v33  ;;  %v919_v11 = vpop.f32.mrb[13].mxu0 }
 0x280   : > { %1028 = vst [vmem:[#allocation2 + $0x50] sm:$0xff] %v910_v5  ;;  %v920_v13 = vadd.f32 %v11483_v33, %v919_v11  ;;  %v8586_v15 = vpop.f32.mrb[14].mxu0  ;;  %v2439_v5 = vld [vmem:[#allocation14 + $0x78] sm:$0xff] }
 0x281   : > { %2462 = vrot.lane.b32.xlu1 %v11365_v56, %s10785_s26  ;;  %1680 = vrot.lane.b32.xlu0 %v11368_v58, %s10786_s15  ;;  %1031 = vst [vmem:[#allocation2 + $0x68] sm:$0xff] %v925_v9  ;;  %v935_v56 = vadd.f32 %v8586_v15, %v11483_v33  ;;  %v929_v17 = vpop.f32.mrb[15].mxu0  ;;  %v9063_v11 = vpack.c.bf16 %v2439_v5, %v2438_v3 }
 0x282   : > { %1030 = vst [vmem:[#allocation2 + $0x60] sm:$0xff] %v920_v13  ;;  %v930_v19 = vadd.f32 %v11483_v33, %v929_v17  ;;  %v8589_v21 = vpop.f32.mrb[16].mxu0 }
 0x283   : > { %1033 = vst [vmem:[#allocation2 + $0x78] sm:$0xff] %v935_v56  ;;  %v945_v23 = vadd.f32 %v8589_v21, %v11483_v33  ;;  %v939_v24 = vpop.f32.mrb[17].mxu0 }
 0x284   : > { %1032 = vst [vmem:[#allocation2 + $0x70] sm:$0xff] %v930_v19  ;;  %v940_v25 = vadd.f32 %v11483_v33, %v939_v24  ;;  %v8592_v28 = vpop.f32.mrb[18].mxu0 }
 0x285   : > { %2460 = vrot.lane.b32.xlu1 %v11368_v58, %s10785_s26  ;;  %2070 = vrot.lane.b32.xlu0 %v11368_v58, %s10787_s3  ;;  %1035 = vst [vmem:[#allocation2 + $0x88] sm:$0xff] %v945_v23  ;;  %v955_v58 = vadd.f32 %v8592_v28, %v11483_v33  ;;  %v949_v30 = vpop.f32.mrb[19].mxu0 }
 0x286   : > { %1034 = vst [vmem:[#allocation2 + $0x80] sm:$0xff] %v940_v25  ;;  %v950_v32 = vadd.f32 %v11483_v33, %v949_v30  ;;  %v8595_v35 = vpop.f32.mrb[20].mxu0 }
 0x287   : > { %1037 = vst [vmem:[#allocation2 + $0x98] sm:$0xff] %v955_v58  ;;  %v965_v36 = vadd.f32 %v8595_v35, %v11483_v33  ;;  %v959_v37 = vpop.f32.mrb[21].mxu0 }
 0x288   : > { %1036 = vst [vmem:[#allocation2 + $0x90] sm:$0xff] %v950_v32  ;;  %v960_v39 = vadd.f32 %v11483_v33, %v959_v37  ;;  %v8598_v40 = vpop.f32.mrb[22].mxu0 }
 0x289   : > { %1686 = vrot.lane.b32.xlu1 %v11377_v60, %s10786_s15  ;;  %2076 = vrot.lane.b32.xlu0 %v11377_v60, %s10787_s3  ;;  %1039 = vst [vmem:[#allocation2 + $0xa8] sm:$0xff] %v965_v36  ;;  %v975_v41 = vadd.f32 %v8598_v40, %v11483_v33  ;;  %v969_v42 = vpop.f32.mrb[23].mxu0 }
 0x28a   : > { %1038 = vst [vmem:[#allocation2 + $0xa0] sm:$0xff] %v960_v39  ;;  %v970_v43 = vadd.f32 %v11483_v33, %v969_v42  ;;  %v8601_v44 = vpop.f32.mrb[24].mxu0 }
 0x28b   : > { %1041 = vst [vmem:[#allocation2 + $0xb8] sm:$0xff] %v975_v41  ;;  %v985_v45 = vadd.f32 %v8601_v44, %v11483_v33  ;;  %v979_v47 = vpop.f32.mrb[25].mxu0 }
 0x28c   : > { %1040 = vst [vmem:[#allocation2 + $0xb0] sm:$0xff] %v970_v43  ;;  %v980_v48 = vadd.f32 %v11483_v33, %v979_v47  ;;  %v8604_v49 = vpop.f32.mrb[26].mxu0 }
 0x28d   : > { %2466 = vrot.lane.b32.xlu1 %v11377_v60, %s10785_s26  ;;  %1684 = vrot.lane.b32.xlu0 %v11380_v62, %s10786_s15  ;;  %1043 = vst [vmem:[#allocation2 + $0xc8] sm:$0xff] %v985_v45  ;;  %v995_v60 = vadd.f32 %v8604_v49, %v11483_v33  ;;  %v989_v51 = vpop.f32.mrb[27].mxu0 }
 0x28e   : > { %1042 = vst [vmem:[#allocation2 + $0xc0] sm:$0xff] %v980_v48  ;;  %v990_v52 = vadd.f32 %v11483_v33, %v989_v51  ;;  %v8607_v53 = vpop.f32.mrb[28].mxu0 }
 0x28f   : > { %1045 = vst [vmem:[#allocation2 + $0xd8] sm:$0xff] %v995_v60  ;;  %v1005_v54 = vadd.f32 %v8607_v53, %v11483_v33  ;;  %v999_v31 = vpop.f32.mrb[29].mxu0 }
 0x290   : > { %1044 = vst [vmem:[#allocation2 + $0xd0] sm:$0xff] %v990_v52  ;;  %v1000_v55 = vadd.f32 %v11483_v33, %v999_v31  ;;  %v8610_v57 = vpop.f32.mrb[30].mxu0 }
 0x291   : > { %2464 = vrot.lane.b32.xlu1 %v11380_v62, %s10785_s26  ;;  %2074 = vrot.lane.b32.xlu0 %v11380_v62, %s10787_s3  ;;  %1047 = vst [vmem:[#allocation2 + $0xe8] sm:$0xff] %v1005_v54  ;;  %v1015_v62 = vadd.f32 %v8610_v57, %v11483_v33  ;;  %v1009_v59 = vpop.f32.mrb[31].mxu0 }
 0x292   : > { %1046 = vst [vmem:[#allocation2 + $0xe0] sm:$0xff] %v1000_v55  ;;  %v1010_v61 = vadd.f32 %v11483_v33, %v1009_v59 }
 0x293   : > { %1049 = vst [vmem:[#allocation2 + $0xf8] sm:$0xff] %v1015_v62 }
 0x294   : > { %1048 = vst [vmem:[#allocation2 + $0xf0] sm:$0xff] %v1010_v61 }
 0x295   : > { %1690 = vrot.lane.b32.xlu1 %v11389_v0, %s10786_s15  ;;  %1688 = vrot.lane.b32.xlu0 %v11392_v2, %s10786_s15 }
 0x299   : > { %2468 = vrot.lane.b32.xlu1 %v11392_v2, %s10785_s26  ;;  %2078 = vrot.lane.b32.xlu0 %v11392_v2, %s10787_s3 }
 0x29d   : > { %1694 = vrot.lane.b32.xlu1 %v11401_v4, %s10786_s15  ;;  %1692 = vrot.lane.b32.xlu0 %v11404_v6, %s10786_s15 }
 0x2a1   : > { %1698 = vrot.lane.b32.xlu1 %v11411_v8, %s10786_s15  ;;  %1696 = vrot.lane.b32.xlu0 %v11416_v10, %s10786_s15 }
 0x2a5   : > { %1702 = vrot.lane.b32.xlu1 %v11423_v12, %s10786_s15  ;;  %1700 = vrot.lane.b32.xlu0 %v11428_v14, %s10786_s15 }
 0x2a9   : > { %1706 = vrot.lane.b32.xlu1 %v11436_v16, %s10786_s15  ;;  %1704 = vrot.lane.b32.xlu0 %v11441_v18, %s10786_s15 }
 0x2ad   : > { %1710 = vrot.lane.b32.xlu1 %v11450_v20, %s10786_s15  ;;  %1708 = vrot.lane.b32.xlu0 %v11455_v22, %s10786_s15 }
 0x2b1   : > { %1714 = vrot.lane.b32.xlu1 %v11466_v27, %s10786_s15  ;;  %1712 = vrot.lane.b32.xlu0 %v11471_v29, %s10786_s15 }
 0x2b3   : > { %v11599_v2 = vpop.permute.xlu1 %2442  ;;  %v1663_v33 = vpop.permute.xlu0 %1662 }
 0x2b5   : > { %1718 = vrot.lane.b32.xlu1 %v11486_v34, %s10786_s15  ;;  %1716 = vrot.lane.b32.xlu0 %v11492_v38, %s10786_s15 }
 0x2b7   : > { %v2053_v63 = vpop.permute.xlu0 %2052  ;;  %v11605_v1 = vpop.permute.xlu1 %2440 }
 0x2b9   : > { %1722 = vrot.lane.b32.xlu1 %v11504_v46, %s10786_s15  ;;  %1720 = vrot.lane.b32.xlu0 %v11510_v50, %s10786_s15 }
 0x2bb   : > { %v1667_v7 = vpop.permute.xlu1 %1666  ;;  %v1661_v9 = vpop.permute.xlu0 %1660 }
 0x2bc   : > { %8755 = vmatprep.mubr.msk.f32.mxu1 %vm1302_vm0, %v1661_v9 }
 0x2bd   : > { %2470 = vrot.lane.b32.xlu1 %v11389_v0, %s10785_s26  ;;  %2080 = vrot.lane.b32.xlu0 %v11389_v0, %s10787_s3 }
 0x2be   : > { %8756 = vmatmul.mubr.msk.f32.vlgmr.msra.gmra.mrb[32].mxu1 %vm1302_vm0, %v1663_v33 }
 0x2bf   : > { %v11617_v13 = vpop.permute.xlu1 %2446  ;;  %v2051_v15 = vpop.permute.xlu0 %2050  ;;  %9062 = vmatpush3.bf16.msra.mxu1 %v11463_v26 }
 0x2c0   : > { %8811 = vmatprep.mubr.msk.f32.mxu0 %vm1302_vm0, %v2051_v15  ;;  %9064 = vmatprep.subr.bf16.mxu1 %v9063_v11 }
 0x2c1   : > { %2472 = vrot.lane.b32.xlu1 %v11404_v6, %s10785_s26  ;;  %2082 = vrot.lane.b32.xlu0 %v11404_v6, %s10787_s3 }
 0x2c2   : > { %8812 = vmatmul.mubr.msk.f32.vlgmr.msra.gmra.mrb[64].mxu0 %vm1302_vm0, %v2053_v63 }
 0x2c3   : > { %v1665_v56 = vpop.permute.xlu1 %1664  ;;  %v2057_v0 = vpop.permute.xlu0 %2056  ;;  %9066 = vmatpush3.bf16.msra.mxu1 %v9063_v11 }
 0x2c4   : > { %8758 = vmatprep.mubr.msk.f32.mxu1 %vm1302_vm0, %v1665_v56 }
 0x2c5   : > { %2474 = vrot.lane.b32.xlu1 %v11401_v4, %s10785_s26  ;;  %2084 = vrot.lane.b32.xlu0 %v11401_v4, %s10787_s3 }
 0x2c6   : > { %8759 = vmatmul.mubr.msk.f32.gmra.mrb[34].mxu1 %vm1302_vm0, %v1667_v7 }
 0x2c7   : > { %v11632_v26 = vpop.permute.xlu1 %2444  ;;  %v2055_v17 = vpop.permute.xlu0 %2054 }
 0x2c8   : > { %8814 = vmatprep.mubr.msk.f32.mxu0 %vm1302_vm0, %v2055_v17 }
 0x2c9   : > { %2476 = vrot.lane.b32.xlu1 %v11416_v10, %s10785_s26  ;;  %2086 = vrot.lane.b32.xlu0 %v11416_v10, %s10787_s3 }
 0x2ca   : > { %8815 = vmatmul.mubr.msk.f32.gmra.mrb[66].mxu0 %vm1302_vm0, %v2057_v0 }
 0x2cb   : > { %v1671_v6 = vpop.permute.xlu1 %1670  ;;  %v2061_v19 = vpop.permute.xlu0 %2060 }
 0x2cd   : > { %2478 = vrot.lane.b32.xlu1 %v11411_v8, %s10785_s26  ;;  %2088 = vrot.lane.b32.xlu0 %v11411_v8, %s10787_s3 }
 0x2cf   : > { %v11644_v4 = vpop.permute.xlu1 %2450  ;;  %v1669_v21 = vpop.permute.xlu0 %1668 }
 0x2d0   : > { %8761 = vmatprep.mubr.msk.f32.mxu1 %vm1302_vm0, %v1669_v21 }
 0x2d1   : > { %2480 = vrot.lane.b32.xlu1 %v11428_v14, %s10785_s26  ;;  %2090 = vrot.lane.b32.xlu0 %v11428_v14, %s10787_s3 }
 0x2d2   : > { %8762 = vmatmul.mubr.msk.f32.gmra.mrb[36].mxu1 %vm1302_vm0, %v1671_v6 }
 0x2d3   : > { %v11652_v10 = vpop.permute.xlu1 %2448  ;;  %v2059_v23 = vpop.permute.xlu0 %2058 }
 0x2d4   : > { %8817 = vmatprep.mubr.msk.f32.mxu0 %vm1302_vm0, %v2059_v23 }
 0x2d5   : > { %2482 = vrot.lane.b32.xlu1 %v11423_v12, %s10785_s26  ;;  %2092 = vrot.lane.b32.xlu0 %v11423_v12, %s10787_s3 }
 0x2d6   : > { %8818 = vmatmul.mubr.msk.f32.gmra.mrb[68].mxu0 %vm1302_vm0, %v2061_v19 }
 0x2d7   : > { %v1675_v8 = vpop.permute.xlu1 %1674  ;;  %v2065_v24 = vpop.permute.xlu0 %2064 }
 0x2d9   : > { %2484 = vrot.lane.b32.xlu1 %v11441_v18, %s10785_s26  ;;  %2094 = vrot.lane.b32.xlu0 %v11441_v18, %s10787_s3 }
 0x2db   : > { %v11664_v14 = vpop.permute.xlu1 %2454  ;;  %v1673_v25 = vpop.permute.xlu0 %1672 }
 0x2dc   : > { %8764 = vmatprep.mubr.msk.f32.mxu1 %vm1302_vm0, %v1673_v25 }
 0x2dd   : > { %2486 = vrot.lane.b32.xlu1 %v11436_v16, %s10785_s26  ;;  %2096 = vrot.lane.b32.xlu0 %v11436_v16, %s10787_s3 }
 0x2de   : > { %8765 = vmatmul.mubr.msk.f32.gmra.mrb[38].mxu1 %vm1302_vm0, %v1675_v8 }
 0x2df   : > { %v11672_v12 = vpop.permute.xlu1 %2452  ;;  %v2063_v28 = vpop.permute.xlu0 %2062 }
 0x2e0   : > { %8820 = vmatprep.mubr.msk.f32.mxu0 %vm1302_vm0, %v2063_v28 }
 0x2e1   : > { %2488 = vrot.lane.b32.xlu1 %v11455_v22, %s10785_s26  ;;  %2098 = vrot.lane.b32.xlu0 %v11455_v22, %s10787_s3 }
 0x2e2   : > { %8821 = vmatmul.mubr.msk.f32.gmra.mrb[70].mxu0 %vm1302_vm0, %v2065_v24 }
 0x2e3   : > { %v1679_v18 = vpop.permute.xlu1 %1678  ;;  %v2069_v58 = vpop.permute.xlu0 %2068 }
 0x2e5   : > { %2490 = vrot.lane.b32.xlu1 %v11450_v20, %s10785_s26  ;;  %2100 = vrot.lane.b32.xlu0 %v11450_v20, %s10787_s3 }
 0x2e7   : > { %v11684_v16 = vpop.permute.xlu1 %2458  ;;  %v1677_v30 = vpop.permute.xlu0 %1676 }
 0x2e8   : > { %8767 = vmatprep.mubr.msk.f32.mxu1 %vm1302_vm0, %v1677_v30 }
 0x2e9   : > { %2492 = vrot.lane.b32.xlu1 %v11471_v29, %s10785_s26  ;;  %2102 = vrot.lane.b32.xlu0 %v11471_v29, %s10787_s3 }
 0x2ea   : > { %8768 = vmatmul.mubr.msk.f32.gmra.mrb[40].mxu1 %vm1302_vm0, %v1679_v18 }
 0x2eb   : > { %v11692_v22 = vpop.permute.xlu1 %2456  ;;  %v2067_v32 = vpop.permute.xlu0 %2066 }
 0x2ec   : > { %8823 = vmatprep.mubr.msk.f32.mxu0 %vm1302_vm0, %v2067_v32 }
 0x2ed   : > { %2494 = vrot.lane.b32.xlu1 %v11466_v27, %s10785_s26  ;;  %2104 = vrot.lane.b32.xlu0 %v11466_v27, %s10787_s3 }
 0x2ee   : > { %8824 = vmatmul.mubr.msk.f32.gmra.mrb[72].mxu0 %vm1302_vm0, %v2069_v58 }
 0x2ef   : > { %v1683_v20 = vpop.permute.xlu1 %1682  ;;  %v2073_v35 = vpop.permute.xlu0 %2072 }
 0x2f1   : > { %2496 = vrot.lane.b32.xlu1 %v11492_v38, %s10785_s26  ;;  %2106 = vrot.lane.b32.xlu0 %v11492_v38, %s10787_s3 }
 0x2f3   : > { %v11704_v29 = vpop.permute.xlu1 %2462  ;;  %v1681_v36 = vpop.permute.xlu0 %1680 }
 0x2f4   : > { %8770 = vmatprep.mubr.msk.f32.mxu1 %vm1302_vm0, %v1681_v36 }
 0x2f5   : > { %2498 = vrot.lane.b32.xlu1 %v11486_v34, %s10785_s26  ;;  %2108 = vrot.lane.b32.xlu0 %v11486_v34, %s10787_s3 }
 0x2f6   : > { %8771 = vmatmul.mubr.msk.f32.gmra.mrb[42].mxu1 %vm1302_vm0, %v1683_v20 }
 0x2f7   : > { %v11712_v27 = vpop.permute.xlu1 %2460  ;;  %v2071_v37 = vpop.permute.xlu0 %2070 }
 0x2f8   : > { %8826 = vmatprep.mubr.msk.f32.mxu0 %vm1302_vm0, %v2071_v37 }
 0x2f9   : > { %2500 = vrot.lane.b32.xlu1 %v11510_v50, %s10785_s26  ;;  %2110 = vrot.lane.b32.xlu0 %v11510_v50, %s10787_s3 }
 0x2fa   : > { %8827 = vmatmul.mubr.msk.f32.gmra.mrb[74].mxu0 %vm1302_vm0, %v2073_v35 }
 0x2fb   : > { %v1687_v38 = vpop.permute.xlu1 %1686  ;;  %v2077_v39 = vpop.permute.xlu0 %2076 }
 0x2fd   : > { %2502 = vrot.lane.b32.xlu1 %v11504_v46, %s10785_s26  ;;  %2112 = vrot.lane.b32.xlu0 %v11504_v46, %s10787_s3 }
 0x2ff   : > { %v11724_v34 = vpop.permute.xlu1 %2466  ;;  %v1685_v40 = vpop.permute.xlu0 %1684 }
 0x300   : > { %8773 = vmatprep.mubr.msk.f32.mxu1 %vm1302_vm0, %v1685_v40 }
 0x301   : > { %8774 = vmatmul.mubr.msk.f32.gmra.mrb[44].mxu1 %vm1302_vm0, %v1687_v38 }
 0x303   : > { %v11728_v41 = vpop.permute.xlu1 %2464  ;;  %v2075_v50 = vpop.permute.xlu0 %2074 }
 0x304   : > { %8829 = vmatprep.mubr.msk.f32.mxu0 %vm1302_vm0, %v2075_v50 }
 0x305   : > { %8830 = vmatmul.mubr.msk.f32.gmra.mrb[76].mxu0 %vm1302_vm0, %v2077_v39 }
 0x307   : > { %v1691_v42 = vpop.permute.xlu1 %1690  ;;  %v1689_v43 = vpop.permute.xlu0 %1688 }
 0x308   : > { %8776 = vmatprep.mubr.msk.f32.mxu1 %vm1302_vm0, %v1689_v43 }
 0x309   : > { %8777 = vmatmul.mubr.msk.f32.gmra.mrb[46].mxu1 %vm1302_vm0, %v1691_v42 }
 0x30b   : > { %v11734_v46 = vpop.permute.xlu1 %2468  ;;  %v2079_v44 = vpop.permute.xlu0 %2078 }
 0x30c   : > { %8832 = vmatprep.mubr.msk.f32.mxu0 %vm1302_vm0, %v2079_v44 }
 0x30f   : > { %v1695_v45 = vpop.permute.xlu1 %1694  ;;  %v1693_v47 = vpop.permute.xlu0 %1692 }
 0x310   : > { %8779 = vmatprep.mubr.msk.f32.mxu1 %vm1302_vm0, %v1693_v47 }
 0x311   : > { %8780 = vmatmul.mubr.msk.f32.gmra.mrb[48].mxu1 %vm1302_vm0, %v1695_v45 }
 0x313   : > { %v1699_v48 = vpop.permute.xlu1 %1698  ;;  %v1697_v49 = vpop.permute.xlu0 %1696 }
 0x314   : > { %8782 = vmatprep.mubr.msk.f32.mxu1 %vm1302_vm0, %v1697_v49 }
 0x315   : > { %8783 = vmatmul.mubr.msk.f32.gmra.mrb[50].mxu1 %vm1302_vm0, %v1699_v48 }
 0x316   : > { %v8701_v60 = vpop.f32.mrb[32].mxu0 }
 0x317   : > { %1625 = vst [vmem:[#allocation3 + $0x8] sm:$0xff] %v8701_v60  ;;  %v1703_v51 = vpop.permute.xlu1 %1702  ;;  %v1701_v52 = vpop.permute.xlu0 %1700 }
 0x318   : > { %v1465_v53 = vpop.f32.mrb[33].mxu0  ;;  %8785 = vmatprep.mubr.msk.f32.mxu1 %vm1302_vm0, %v1701_v52 }
 0x319   : > { %1624 = vst [vmem:[#allocation3] sm:$0xff] %v1465_v53  ;;  %8786 = vmatmul.mubr.msk.f32.gmra.mrb[52].mxu1 %vm1302_vm0, %v1703_v51 }
 0x31a   : > { %v8704_v54 = vpop.f32.mrb[34].mxu0 }
 0x31b   : > { %v1707_v31 = vpop.permute.xlu1 %1706  ;;  %v1705_v55 = vpop.permute.xlu0 %1704  ;;  %1627 = vst [vmem:[#allocation3 + $0x18] sm:$0xff] %v8704_v54 }
 0x31c   : > { %v1475_v57 = vpop.f32.mrb[35].mxu0  ;;  %8788 = vmatprep.mubr.msk.f32.mxu1 %vm1302_vm0, %v1705_v55 }
 0x31d   : > { %1626 = vst [vmem:[#allocation3 + $0x10] sm:$0xff] %v1475_v57  ;;  %8789 = vmatmul.mubr.msk.f32.gmra.mrb[54].mxu1 %vm1302_vm0, %v1707_v31 }
 0x31e   : > { %v8707_v62 = vpop.f32.mrb[36].mxu0 }
 0x31f   : > { %v1711_v59 = vpop.permute.xlu1 %1710  ;;  %v1709_v61 = vpop.permute.xlu0 %1708  ;;  %1629 = vst [vmem:[#allocation3 + $0x28] sm:$0xff] %v8707_v62 }
 0x320   : > { %8791 = vmatprep.mubr.msk.f32.mxu1 %vm1302_vm0, %v1709_v61  ;;  %v1485_v33 = vpop.f32.mrb[37].mxu0 }
 0x321   : > { %8792 = vmatmul.mubr.msk.f32.gmra.mrb[56].mxu1 %vm1302_vm0, %v1711_v59  ;;  %1628 = vst [vmem:[#allocation3 + $0x20] sm:$0xff] %v1485_v33 }
 0x322   : > { %v8710_v63 = vpop.f32.mrb[38].mxu0 }
 0x323   : > { %v1715_v3 = vpop.permute.xlu1 %1714  ;;  %v1713_v5 = vpop.permute.xlu0 %1712  ;;  %1631 = vst [vmem:[#allocation3 + $0x38] sm:$0xff] %v8710_v63 }
 0x324   : > { %8794 = vmatprep.mubr.msk.f32.mxu1 %vm1302_vm0, %v1713_v5  ;;  %v1495_v7 = vpop.f32.mrb[39].mxu0 }
 0x325   : > { %8795 = vmatmul.mubr.msk.f32.gmra.mrb[58].mxu1 %vm1302_vm0, %v1715_v3  ;;  %1630 = vst [vmem:[#allocation3 + $0x30] sm:$0xff] %v1495_v7 }
 0x326   : > { %v8713_v9 = vpop.f32.mrb[40].mxu0 }
 0x327   : > { %v1719_v11 = vpop.permute.xlu1 %1718  ;;  %v1717_v15 = vpop.permute.xlu0 %1716  ;;  %1633 = vst [vmem:[#allocation3 + $0x48] sm:$0xff] %v8713_v9 }
 0x328   : > { %8797 = vmatprep.mubr.msk.f32.mxu1 %vm1302_vm0, %v1717_v15  ;;  %v1505_v56 = vpop.f32.mrb[41].mxu0 }
 0x329   : > { %8798 = vmatmul.mubr.msk.f32.gmra.mrb[60].mxu1 %vm1302_vm0, %v1719_v11  ;;  %1632 = vst [vmem:[#allocation3 + $0x40] sm:$0xff] %v1505_v56 }
 0x32a   : > { %v8716_v0 = vpop.f32.mrb[42].mxu0 }
 0x32b   : > { %v1723_v17 = vpop.permute.xlu1 %1722  ;;  %v1721_v6 = vpop.permute.xlu0 %1720  ;;  %1635 = vst [vmem:[#allocation3 + $0x58] sm:$0xff] %v8716_v0 }
 0x32c   : > { %8800 = vmatprep.mubr.msk.f32.mxu1 %vm1302_vm0, %v1721_v6  ;;  %v1515_v19 = vpop.f32.mrb[43].mxu0 }
 0x32d   : > { %8801 = vmatmul.mubr.msk.f32.gmra.mrb[62].mxu1 %vm1302_vm0, %v1723_v17  ;;  %1634 = vst [vmem:[#allocation3 + $0x50] sm:$0xff] %v1515_v19 }
 0x32e   : > { %8867 = vmatprep.mubr.msk.f32.mxu1 %vm1302_vm0, %v11605_v1  ;;  %v8719_v21 = vpop.f32.mrb[44].mxu0 }
 0x32f   : > { %v11755_v23 = vpop.permute.xlu1 %2470  ;;  %v2081_v8 = vpop.permute.xlu0 %2080  ;;  %1637 = vst [vmem:[#allocation3 + $0x68] sm:$0xff] %v8719_v21 }
 0x330   : > { %8833 = vmatmul.mubr.msk.f32.gmra.mrb[78].mxu0 %vm1302_vm0, %v2081_v8  ;;  %v1525_v24 = vpop.f32.mrb[45].mxu0 }
 0x331   : > { %8868 = vmatmul.mubr.msk.f32.vlgmr.msra.gmra.mrb[64].mxu1 %vm1302_vm0, %v11599_v2  ;;  %1636 = vst [vmem:[#allocation3 + $0x60] sm:$0xff] %v1525_v24 }
 0x332   : > { %8870 = vmatprep.mubr.msk.f32.mxu1 %vm1302_vm0, %v11632_v26  ;;  %v8722_v25 = vpop.f32.mrb[46].mxu0 }
 0x333   : > { %v2473_v28 = vpop.permute.xlu1 %2472  ;;  %v2083_v18 = vpop.permute.xlu0 %2082  ;;  %1639 = vst [vmem:[#allocation3 + $0x78] sm:$0xff] %v8722_v25 }
 0x334   : > { %8835 = vmatprep.mubr.msk.f32.mxu0 %vm1302_vm0, %v2083_v18  ;;  %v1535_v1 = vpop.f32.mrb[47].mxu0 }
 0x335   : > { %8871 = vmatmul.mubr.msk.f32.gmra.mrb[66].mxu1 %vm1302_vm0, %v11617_v13  ;;  %1638 = vst [vmem:[#allocation3 + $0x70] sm:$0xff] %v1535_v1 }
 0x336   : > { %8873 = vmatprep.mubr.msk.f32.mxu1 %vm1302_vm0, %v11652_v10  ;;  %v8725_v58 = vpop.f32.mrb[48].mxu0 }
 0x337   : > { %v2475_v2 = vpop.permute.xlu1 %2474  ;;  %v2085_v30 = vpop.permute.xlu0 %2084  ;;  %1641 = vst [vmem:[#allocation3 + $0x88] sm:$0xff] %v8725_v58 }
 0x338   : > { %8836 = vmatmul.mubr.msk.f32.gmra.mrb[80].mxu0 %vm1302_vm0, %v2085_v30  ;;  %v1545_v26 = vpop.f32.mrb[49].mxu0  ;;  %v2826_v30 = vld [vmem:[%s11260_s25] sm:$0x3] }
 0x339   : > { %8874 = vmatmul.mubr.msk.f32.gmra.mrb[68].mxu1 %vm1302_vm0, %v11644_v4  ;;  %1640 = vst [vmem:[#allocation3 + $0x80] sm:$0xff] %v1545_v26  ;;  %v2829_v26 = vlaneseq  ;;  %vm2827_vm1 = vcmp.eq.s32.totalorder %v2826_v30, 0 }
 0x33a   : > { %8876 = vmatprep.mubr.msk.f32.mxu1 %vm1302_vm0, %v11672_v12  ;;  %v8728_v32 = vpop.f32.mrb[50].mxu0 }
 0x33b   : > { %v2477_v13 = vpop.permute.xlu1 %2476  ;;  %v2087_v20 = vpop.permute.xlu0 %2086  ;;  %1643 = vst [vmem:[#allocation3 + $0x98] sm:$0xff] %v8728_v32  ;;  %v10788_v32 = vmov 0.0   ;;  %vm2831_vm2 = vcmp.lt.s32.totalorder %v2829_v26, 256 }
 0x33c   : > { %8838 = vmatprep.mubr.msk.f32.mxu0 %vm1302_vm0, %v2087_v20  ;;  %v1555_v10 = vpop.f32.mrb[51].mxu0 }
 0x33d   : > { %8877 = vmatmul.mubr.msk.f32.gmra.mrb[70].mxu1 %vm1302_vm0, %v11664_v14  ;;  %1642 = vst [vmem:[#allocation3 + $0x90] sm:$0xff] %v1555_v10 }
 0x33e   : > { %8879 = vmatprep.mubr.msk.f32.mxu1 %vm1302_vm0, %v11692_v22  ;;  %v8731_v35 = vpop.f32.mrb[52].mxu0 }
 0x33f   : > { %v2479_v4 = vpop.permute.xlu1 %2478  ;;  %v2089_v36 = vpop.permute.xlu0 %2088  ;;  %1645 = vst [vmem:[#allocation3 + $0xa8] sm:$0xff] %v8731_v35 }
 0x340   : > { %8839 = vmatmul.mubr.msk.f32.gmra.mrb[82].mxu0 %vm1302_vm0, %v2089_v36  ;;  %v1565_v12 = vpop.f32.mrb[53].mxu0 }
 0x341   : > { %8880 = vmatmul.mubr.msk.f32.gmra.mrb[72].mxu1 %vm1302_vm0, %v11684_v16  ;;  %1644 = vst [vmem:[#allocation3 + $0xa0] sm:$0xff] %v1565_v12 }
 0x342   : > { %8882 = vmatprep.mubr.msk.f32.mxu1 %vm1302_vm0, %v11712_v27  ;;  %v8734_v37 = vpop.f32.mrb[54].mxu0 }
 0x343   : > { %v2481_v14 = vpop.permute.xlu1 %2480  ;;  %v2091_v38 = vpop.permute.xlu0 %2090  ;;  %1647 = vst [vmem:[#allocation3 + $0xb8] sm:$0xff] %v8734_v37 }
 0x344   : > { %8841 = vmatprep.mubr.msk.f32.mxu0 %vm1302_vm0, %v2091_v38  ;;  %v1575_v22 = vpop.f32.mrb[55].mxu0 }
 0x345   : > { %8883 = vmatmul.mubr.msk.f32.gmra.mrb[74].mxu1 %vm1302_vm0, %v11704_v29  ;;  %1646 = vst [vmem:[#allocation3 + $0xb0] sm:$0xff] %v1575_v22 }
 0x346   : > { %8885 = vmatprep.mubr.msk.f32.mxu1 %vm1302_vm0, %v11728_v41  ;;  %v8737_v39 = vpop.f32.mrb[56].mxu0 }
 0x347   : > { %v2483_v16 = vpop.permute.xlu1 %2482  ;;  %v2093_v40 = vpop.permute.xlu0 %2092  ;;  %1649 = vst [vmem:[#allocation3 + $0xc8] sm:$0xff] %v8737_v39 }
 0x348   : > { %8842 = vmatmul.mubr.msk.f32.gmra.mrb[84].mxu0 %vm1302_vm0, %v2093_v40  ;;  %v1585_v27 = vpop.f32.mrb[57].mxu0 }
 0x349   : > { %8886 = vmatmul.mubr.msk.f32.gmra.mrb[76].mxu1 %vm1302_vm0, %v11724_v34  ;;  %1648 = vst [vmem:[#allocation3 + $0xc0] sm:$0xff] %v1585_v27 }
 0x34a   : > { %8888 = vmatprep.mubr.msk.f32.mxu1 %vm1302_vm0, %v11734_v46  ;;  %v8740_v50 = vpop.f32.mrb[58].mxu0 }
 0x34b   : > { %v2485_v29 = vpop.permute.xlu1 %2484  ;;  %v2095_v42 = vpop.permute.xlu0 %2094  ;;  %1651 = vst [vmem:[#allocation3 + $0xd8] sm:$0xff] %v8740_v50 }
 0x34c   : > { %8844 = vmatprep.mubr.msk.f32.mxu0 %vm1302_vm0, %v2095_v42  ;;  %v1595_v41 = vpop.f32.mrb[59].mxu0 }
 0x34d   : > { %8889 = vmatmul.mubr.msk.f32.gmra.mrb[78].mxu1 %vm1302_vm0, %v11755_v23  ;;  %1650 = vst [vmem:[#allocation3 + $0xd0] sm:$0xff] %v1595_v41 }
 0x34e   : > { %8891 = vmatprep.mubr.msk.f32.mxu1 %vm1302_vm0, %v2473_v28  ;;  %v8743_v43 = vpop.f32.mrb[60].mxu0 }
 0x34f   : > { %v2487_v44 = vpop.permute.xlu1 %2486  ;;  %v2097_v34 = vpop.permute.xlu0 %2096  ;;  %1653 = vst [vmem:[#allocation3 + $0xe8] sm:$0xff] %v8743_v43 }
 0x350   : > { %8845 = vmatmul.mubr.msk.f32.gmra.mrb[86].mxu0 %vm1302_vm0, %v2097_v34  ;;  %v1605_v46 = vpop.f32.mrb[61].mxu0 }
 0x351   : > { %8892 = vmatmul.mubr.msk.f32.gmra.mrb[80].mxu1 %vm1302_vm0, %v2475_v2  ;;  %1652 = vst [vmem:[#allocation3 + $0xe0] sm:$0xff] %v1605_v46 }
 0x352   : > { %8894 = vmatprep.mubr.msk.f32.mxu1 %vm1302_vm0, %v2477_v13  ;;  %v8746_v45 = vpop.f32.mrb[62].mxu0  ;;  %v2828_v13 = vsel %vm2827_vm1, -1e+10, %v10788_v32 }
 0x353   : > { %v2489_v47 = vpop.permute.xlu1 %2488  ;;  %v2099_v48 = vpop.permute.xlu0 %2098  ;;  %1655 = vst [vmem:[#allocation3 + $0xf8] sm:$0xff] %v8746_v45  ;;  %2833 = vst.msk [vmem:[#allocation4] sm:$0x3] %vm2831_vm2, %v2828_v13 }
 0x354   : > { %8847 = vmatprep.mubr.msk.f32.mxu0 %vm1302_vm0, %v2099_v48  ;;  %v1615_v49 = vpop.f32.mrb[63].mxu0 }
 0x355   : > { %8895 = vmatmul.mubr.msk.f32.gmra.mrb[82].mxu1 %vm1302_vm0, %v2479_v4  ;;  %1654 = vst [vmem:[#allocation3 + $0xf0] sm:$0xff] %v1615_v49 }
 0x356   : > { %8897 = vmatprep.mubr.msk.f32.mxu1 %vm1302_vm0, %v2481_v14 }
 0x357   : > { %v2491_v60 = vpop.permute.xlu1 %2490  ;;  %v2101_v51 = vpop.permute.xlu0 %2100 }
 0x358   : > { %8848 = vmatmul.mubr.msk.f32.gmra.mrb[88].mxu0 %vm1302_vm0, %v2101_v51 }
 0x359   : > { %8898 = vmatmul.mubr.msk.f32.gmra.mrb[84].mxu1 %vm1302_vm0, %v2483_v16 }
 0x35a   : > { %8900 = vmatprep.mubr.msk.f32.mxu1 %vm1302_vm0, %v2485_v29 }
 0x35b   : > { %v2493_v52 = vpop.permute.xlu1 %2492  ;;  %v2103_v53 = vpop.permute.xlu0 %2102 }
 0x35c   : > { %8850 = vmatprep.mubr.msk.f32.mxu0 %vm1302_vm0, %v2103_v53 }
 0x35d   : > { %8901 = vmatmul.mubr.msk.f32.gmra.mrb[86].mxu1 %vm1302_vm0, %v2487_v44 }
 0x35e   : > { %8903 = vmatprep.mubr.msk.f32.mxu1 %vm1302_vm0, %v2489_v47 }
 0x35f   : > { %v2495_v54 = vpop.permute.xlu1 %2494  ;;  %v2105_v31 = vpop.permute.xlu0 %2104 }
 0x360   : > { %8851 = vmatmul.mubr.msk.f32.gmra.mrb[90].mxu0 %vm1302_vm0, %v2105_v31 }
 0x361   : > { %8904 = vmatmul.mubr.msk.f32.gmra.mrb[88].mxu1 %vm1302_vm0, %v2491_v60 }
 0x362   : > { %8906 = vmatprep.mubr.msk.f32.mxu1 %vm1302_vm0, %v2493_v52 }
 0x363   : > { %v2497_v55 = vpop.permute.xlu1 %2496  ;;  %v2107_v57 = vpop.permute.xlu0 %2106 }
 0x364   : > { %8853 = vmatprep.mubr.msk.f32.mxu0 %vm1302_vm0, %v2107_v57 }
 0x365   : > { %8907 = vmatmul.mubr.msk.f32.gmra.mrb[90].mxu1 %vm1302_vm0, %v2495_v54 }
 0x366   : > { %8909 = vmatprep.mubr.msk.f32.mxu1 %vm1302_vm0, %v2497_v55 }
 0x367   : > { %v2499_v62 = vpop.permute.xlu1 %2498  ;;  %v2109_v59 = vpop.permute.xlu0 %2108 }
 0x368   : > { %8854 = vmatmul.mubr.msk.f32.gmra.mrb[92].mxu0 %vm1302_vm0, %v2109_v59 }
 0x369   : > { %8910 = vmatmul.mubr.msk.f32.gmra.mrb[92].mxu1 %vm1302_vm0, %v2499_v62 }
 0x36b   : > { %v2501_v61 = vpop.permute.xlu1 %2500  ;;  %v2111_v33 = vpop.permute.xlu0 %2110 }
 0x36c   : > { %8856 = vmatprep.mubr.msk.f32.mxu0 %vm1302_vm0, %v2111_v33  ;;  %8912 = vmatprep.mubr.msk.f32.mxu1 %vm1302_vm0, %v2501_v61 }
 0x36f   : > { %v2503_v63 = vpop.permute.xlu1 %2502  ;;  %v2113_v3 = vpop.permute.xlu0 %2112 }
 0x370   : > { %8857 = vmatmul.mubr.msk.f32.gmra.mrb[94].mxu0 %vm1302_vm0, %v2113_v3  ;;  %8913 = vmatmul.mubr.msk.f32.gmra.mrb[94].mxu1 %vm1302_vm0, %v2503_v63 }
 0x391   : > { %v8757_v5 = vpop.f32.mrb[32].mxu1 }
 0x392   : > { %2015 = vst [vmem:[#allocation3 + $0x108] sm:$0xff] %v8757_v5  ;;  %v1854_v7 = vpop.f32.mrb[33].mxu1 }
 0x393   : > { %2014 = vst [vmem:[#allocation3 + $0x100] sm:$0xff] %v1854_v7 }
 0x395   : > { %v8813_v9 = vpop.f32.mrb[64].mxu0 }
 0x396   : > { %2405 = vst [vmem:[#allocation3 + $0x208] sm:$0xff] %v8813_v9  ;;  %v2244_v11 = vpop.f32.mrb[65].mxu0 }
 0x397   : > { %2404 = vst [vmem:[#allocation3 + $0x200] sm:$0xff] %v2244_v11 }
 0x399   : > { %v8760_v15 = vpop.f32.mrb[34].mxu1 }
 0x39a   : > { %2017 = vst [vmem:[#allocation3 + $0x118] sm:$0xff] %v8760_v15  ;;  %v1864_v56 = vpop.f32.mrb[35].mxu1 }
 0x39b   : > { %2016 = vst [vmem:[#allocation3 + $0x110] sm:$0xff] %v1864_v56 }
 0x39d   : > { %v8816_v0 = vpop.f32.mrb[66].mxu0 }
 0x39e   : > { %2407 = vst [vmem:[#allocation3 + $0x218] sm:$0xff] %v8816_v0  ;;  %v2254_v17 = vpop.f32.mrb[67].mxu0 }
 0x39f   : > { %2406 = vst [vmem:[#allocation3 + $0x210] sm:$0xff] %v2254_v17 }
 0x3a5   : > { %v8763_v6 = vpop.f32.mrb[36].mxu1 }
 0x3a6   : > { %2019 = vst [vmem:[#allocation3 + $0x128] sm:$0xff] %v8763_v6  ;;  %v1874_v19 = vpop.f32.mrb[37].mxu1 }
 0x3a7   : > { %2018 = vst [vmem:[#allocation3 + $0x120] sm:$0xff] %v1874_v19 }
 0x3a9   : > { %v8819_v21 = vpop.f32.mrb[68].mxu0 }
 0x3aa   : > { %2409 = vst [vmem:[#allocation3 + $0x228] sm:$0xff] %v8819_v21  ;;  %v2264_v23 = vpop.f32.mrb[69].mxu0 }
 0x3ab   : > { %2408 = vst [vmem:[#allocation3 + $0x220] sm:$0xff] %v2264_v23 }
 0x3b1   : > { %v8766_v8 = vpop.f32.mrb[38].mxu1 }
 0x3b2   : > { %2021 = vst [vmem:[#allocation3 + $0x138] sm:$0xff] %v8766_v8  ;;  %v1884_v24 = vpop.f32.mrb[39].mxu1 }
 0x3b3   : > { %2020 = vst [vmem:[#allocation3 + $0x130] sm:$0xff] %v1884_v24 }
 0x3b5   : > { %v8822_v25 = vpop.f32.mrb[70].mxu0 }
 0x3b6   : > { %2411 = vst [vmem:[#allocation3 + $0x238] sm:$0xff] %v8822_v25  ;;  %v2274_v28 = vpop.f32.mrb[71].mxu0 }
 0x3b7   : > { %2410 = vst [vmem:[#allocation3 + $0x230] sm:$0xff] %v2274_v28 }
 0x3bd   : > { %v8769_v18 = vpop.f32.mrb[40].mxu1 }
 0x3be   : > { %2023 = vst [vmem:[#allocation3 + $0x148] sm:$0xff] %v8769_v18  ;;  %v1894_v1 = vpop.f32.mrb[41].mxu1 }
 0x3bf   : > { %2022 = vst [vmem:[#allocation3 + $0x140] sm:$0xff] %v1894_v1 }
 0x3c1   : > { %v8825_v58 = vpop.f32.mrb[72].mxu0 }
 0x3c2   : > { %2413 = vst [vmem:[#allocation3 + $0x248] sm:$0xff] %v8825_v58  ;;  %v2284_v2 = vpop.f32.mrb[73].mxu0 }
 0x3c3   : > { %2412 = vst [vmem:[#allocation3 + $0x240] sm:$0xff] %v2284_v2 }
 0x3c9   : > { %v8772_v20 = vpop.f32.mrb[42].mxu1 }
 0x3ca   : > { %2025 = vst [vmem:[#allocation3 + $0x158] sm:$0xff] %v8772_v20  ;;  %v1904_v10 = vpop.f32.mrb[43].mxu1 }
 0x3cb   : > { %2024 = vst [vmem:[#allocation3 + $0x150] sm:$0xff] %v1904_v10 }
 0x3cd   : > { %v8828_v35 = vpop.f32.mrb[74].mxu0 }
 0x3ce   : > { %2415 = vst [vmem:[#allocation3 + $0x258] sm:$0xff] %v8828_v35  ;;  %v2294_v4 = vpop.f32.mrb[75].mxu0 }
 0x3cf   : > { %2414 = vst [vmem:[#allocation3 + $0x250] sm:$0xff] %v2294_v4 }
 0x3d4   : > { %v8775_v36 = vpop.f32.mrb[44].mxu1 }
 0x3d5   : > { %2027 = vst [vmem:[#allocation3 + $0x168] sm:$0xff] %v8775_v36  ;;  %v1914_v12 = vpop.f32.mrb[45].mxu1 }
 0x3d6   : > { %2026 = vst [vmem:[#allocation3 + $0x160] sm:$0xff] %v1914_v12 }
 0x3d8   : > { %v8831_v37 = vpop.f32.mrb[76].mxu0 }
 0x3d9   : > { %2417 = vst [vmem:[#allocation3 + $0x268] sm:$0xff] %v8831_v37  ;;  %v2304_v14 = vpop.f32.mrb[77].mxu0 }
 0x3da   : > { %2416 = vst [vmem:[#allocation3 + $0x260] sm:$0xff] %v2304_v14 }
 0x3dc   : > { %v8778_v38 = vpop.f32.mrb[46].mxu1 }
 0x3dd   : > { %2029 = vst [vmem:[#allocation3 + $0x178] sm:$0xff] %v8778_v38  ;;  %v1924_v22 = vpop.f32.mrb[47].mxu1 }
 0x3de   : > { %2028 = vst [vmem:[#allocation3 + $0x170] sm:$0xff] %v1924_v22 }
 0x3e4   : > { %v8781_v39 = vpop.f32.mrb[48].mxu1 }
 0x3e5   : > { %2031 = vst [vmem:[#allocation3 + $0x188] sm:$0xff] %v8781_v39  ;;  %v1934_v16 = vpop.f32.mrb[49].mxu1 }
 0x3e6   : > { %2030 = vst [vmem:[#allocation3 + $0x180] sm:$0xff] %v1934_v16 }
 0x3e8   : > { %v8784_v40 = vpop.f32.mrb[50].mxu1 }
 0x3e9   : > { %2033 = vst [vmem:[#allocation3 + $0x198] sm:$0xff] %v8784_v40  ;;  %v1944_v27 = vpop.f32.mrb[51].mxu1 }
 0x3ea   : > { %2032 = vst [vmem:[#allocation3 + $0x190] sm:$0xff] %v1944_v27 }
 0x3ec   : > { %v8787_v50 = vpop.f32.mrb[52].mxu1 }
 0x3ed   : > { %2035 = vst [vmem:[#allocation3 + $0x1a8] sm:$0xff] %v8787_v50  ;;  %v1954_v29 = vpop.f32.mrb[53].mxu1 }
 0x3ee   : > { %2034 = vst [vmem:[#allocation3 + $0x1a0] sm:$0xff] %v1954_v29 }
 0x3f0   : > { %v8790_v42 = vpop.f32.mrb[54].mxu1 }
 0x3f1   : > { %2037 = vst [vmem:[#allocation3 + $0x1b8] sm:$0xff] %v8790_v42  ;;  %v1964_v41 = vpop.f32.mrb[55].mxu1 }
 0x3f2   : > { %2036 = vst [vmem:[#allocation3 + $0x1b0] sm:$0xff] %v1964_v41 }
 0x3f4   : > { %v8793_v43 = vpop.f32.mrb[56].mxu1 }
 0x3f5   : > { %2039 = vst [vmem:[#allocation3 + $0x1c8] sm:$0xff] %v8793_v43  ;;  %v1974_v44 = vpop.f32.mrb[57].mxu1 }
 0x3f6   : > { %2038 = vst [vmem:[#allocation3 + $0x1c0] sm:$0xff] %v1974_v44 }
 0x3f8   : > { %v8796_v34 = vpop.f32.mrb[58].mxu1 }
 0x3f9   : > { %2041 = vst [vmem:[#allocation3 + $0x1d8] sm:$0xff] %v8796_v34  ;;  %v1984_v46 = vpop.f32.mrb[59].mxu1 }
 0x3fa   : > { %2040 = vst [vmem:[#allocation3 + $0x1d0] sm:$0xff] %v1984_v46 }
 0x3fc   : > { %v8799_v45 = vpop.f32.mrb[60].mxu1 }
 0x3fd   : > { %2043 = vst [vmem:[#allocation3 + $0x1e8] sm:$0xff] %v8799_v45  ;;  %v1994_v47 = vpop.f32.mrb[61].mxu1 }
 0x3fe   : > { %2042 = vst [vmem:[#allocation3 + $0x1e0] sm:$0xff] %v1994_v47 }
 0x400   : > { %v8802_v48 = vpop.f32.mrb[62].mxu1 }
 0x401   : > { %2045 = vst [vmem:[#allocation3 + $0x1f8] sm:$0xff] %v8802_v48  ;;  %v2004_v49 = vpop.f32.mrb[63].mxu1 }
 0x402   : > { %2044 = vst [vmem:[#allocation3 + $0x1f0] sm:$0xff] %v2004_v49 }
 0x403   : > { %v8834_v60 = vpop.f32.mrb[78].mxu0 }
 0x404   : > { %2419 = vst [vmem:[#allocation3 + $0x278] sm:$0xff] %v8834_v60  ;;  %v2314_v51 = vpop.f32.mrb[79].mxu0  ;;  %v8869_v52 = vpop.f32.mrb[64].mxu1 }
 0x405   : > { %2418 = vst [vmem:[#allocation3 + $0x270] sm:$0xff] %v2314_v51  ;;  %2795 = vst [vmem:[#allocation3 + $0x308] sm:$0xff] %v8869_v52  ;;  %v2634_v53 = vpop.f32.mrb[65].mxu1 }
 0x406   : > { %2794 = vst [vmem:[#allocation3 + $0x300] sm:$0xff] %v2634_v53 }
 0x408   : > { %v8872_v54 = vpop.f32.mrb[66].mxu1 }
 0x409   : > { %2797 = vst [vmem:[#allocation3 + $0x318] sm:$0xff] %v8872_v54  ;;  %v2644_v31 = vpop.f32.mrb[67].mxu1 }
 0x40a   : > { %2796 = vst [vmem:[#allocation3 + $0x310] sm:$0xff] %v2644_v31 }
 0x40b   : > { %v8837_v55 = vpop.f32.mrb[80].mxu0 }
 0x40c   : > { %2421 = vst [vmem:[#allocation3 + $0x288] sm:$0xff] %v8837_v55  ;;  %v2324_v57 = vpop.f32.mrb[81].mxu0  ;;  %v8875_v62 = vpop.f32.mrb[68].mxu1 }
 0x40d   : > { %2420 = vst [vmem:[#allocation3 + $0x280] sm:$0xff] %v2324_v57  ;;  %2799 = vst [vmem:[#allocation3 + $0x328] sm:$0xff] %v8875_v62  ;;  %v2654_v59 = vpop.f32.mrb[69].mxu1 }
 0x40e   : > { %2798 = vst [vmem:[#allocation3 + $0x320] sm:$0xff] %v2654_v59 }
 0x410   : > { %v8878_v61 = vpop.f32.mrb[70].mxu1 }
 0x411   : > { %2801 = vst [vmem:[#allocation3 + $0x338] sm:$0xff] %v8878_v61  ;;  %v2664_v33 = vpop.f32.mrb[71].mxu1 }
 0x412   : > { %2800 = vst [vmem:[#allocation3 + $0x330] sm:$0xff] %v2664_v33 }
 0x413   : > { %v8840_v63 = vpop.f32.mrb[82].mxu0 }
 0x414   : > { %2423 = vst [vmem:[#allocation3 + $0x298] sm:$0xff] %v8840_v63  ;;  %v2334_v3 = vpop.f32.mrb[83].mxu0  ;;  %v8881_v5 = vpop.f32.mrb[72].mxu1 }
 0x415   : > { %2422 = vst [vmem:[#allocation3 + $0x290] sm:$0xff] %v2334_v3  ;;  %2803 = vst [vmem:[#allocation3 + $0x348] sm:$0xff] %v8881_v5  ;;  %v2674_v7 = vpop.f32.mrb[73].mxu1 }
 0x416   : > { %2802 = vst [vmem:[#allocation3 + $0x340] sm:$0xff] %v2674_v7 }
 0x418   : > { %v8884_v9 = vpop.f32.mrb[74].mxu1 }
 0x419   : > { %2805 = vst [vmem:[#allocation3 + $0x358] sm:$0xff] %v8884_v9  ;;  %v2684_v11 = vpop.f32.mrb[75].mxu1 }
 0x41a   : > { %2804 = vst [vmem:[#allocation3 + $0x350] sm:$0xff] %v2684_v11 }
 0x41b   : > { %v8843_v15 = vpop.f32.mrb[84].mxu0 }
 0x41c   : > { %2425 = vst [vmem:[#allocation3 + $0x2a8] sm:$0xff] %v8843_v15  ;;  %v2344_v56 = vpop.f32.mrb[85].mxu0  ;;  %v8887_v0 = vpop.f32.mrb[76].mxu1 }
 0x41d   : > { %2424 = vst [vmem:[#allocation3 + $0x2a0] sm:$0xff] %v2344_v56  ;;  %2807 = vst [vmem:[#allocation3 + $0x368] sm:$0xff] %v8887_v0  ;;  %v2694_v17 = vpop.f32.mrb[77].mxu1 }
 0x41e   : > { %2806 = vst [vmem:[#allocation3 + $0x360] sm:$0xff] %v2694_v17 }
 0x420   : > { %v8890_v6 = vpop.f32.mrb[78].mxu1 }
 0x421   : > { %2809 = vst [vmem:[#allocation3 + $0x378] sm:$0xff] %v8890_v6  ;;  %v2704_v19 = vpop.f32.mrb[79].mxu1 }
 0x422   : > { %2808 = vst [vmem:[#allocation3 + $0x370] sm:$0xff] %v2704_v19 }
 0x423   : > { %v8846_v21 = vpop.f32.mrb[86].mxu0 }
 0x424   : > { %2427 = vst [vmem:[#allocation3 + $0x2b8] sm:$0xff] %v8846_v21  ;;  %v2354_v23 = vpop.f32.mrb[87].mxu0  ;;  %v8893_v8 = vpop.f32.mrb[80].mxu1 }
 0x425   : > { %2426 = vst [vmem:[#allocation3 + $0x2b0] sm:$0xff] %v2354_v23  ;;  %2811 = vst [vmem:[#allocation3 + $0x388] sm:$0xff] %v8893_v8  ;;  %v2714_v24 = vpop.f32.mrb[81].mxu1 }
 0x426   : > { %2810 = vst [vmem:[#allocation3 + $0x380] sm:$0xff] %v2714_v24 }
 0x428   : > { %v8896_v25 = vpop.f32.mrb[82].mxu1 }
 0x429   : > { %2813 = vst [vmem:[#allocation3 + $0x398] sm:$0xff] %v8896_v25  ;;  %v2724_v28 = vpop.f32.mrb[83].mxu1 }
 0x42a   : > { %2812 = vst [vmem:[#allocation3 + $0x390] sm:$0xff] %v2724_v28 }
 0x42b   : > { %v8849_v18 = vpop.f32.mrb[88].mxu0 }
 0x42c   : > { %2429 = vst [vmem:[#allocation3 + $0x2c8] sm:$0xff] %v8849_v18  ;;  %v2364_v1 = vpop.f32.mrb[89].mxu0  ;;  %v8899_v58 = vpop.f32.mrb[84].mxu1 }
 0x42d   : > { %2428 = vst [vmem:[#allocation3 + $0x2c0] sm:$0xff] %v2364_v1  ;;  %2815 = vst [vmem:[#allocation3 + $0x3a8] sm:$0xff] %v8899_v58  ;;  %v2734_v2 = vpop.f32.mrb[85].mxu1 }
 0x42e   : > { %2814 = vst [vmem:[#allocation3 + $0x3a0] sm:$0xff] %v2734_v2 }
 0x430   : > { %v8902_v30 = vpop.f32.mrb[86].mxu1 }
 0x431   : > { %2817 = vst [vmem:[#allocation3 + $0x3b8] sm:$0xff] %v8902_v30  ;;  %v2744_v26 = vpop.f32.mrb[87].mxu1 }
 0x432   : > { %2816 = vst [vmem:[#allocation3 + $0x3b0] sm:$0xff] %v2744_v26 }
 0x433   : > { %v8852_v32 = vpop.f32.mrb[90].mxu0 }
 0x434   : > { %2431 = vst [vmem:[#allocation3 + $0x2d8] sm:$0xff] %v8852_v32  ;;  %v2374_v13 = vpop.f32.mrb[91].mxu0  ;;  %v8905_v20 = vpop.f32.mrb[88].mxu1 }
 0x435   : > { %2430 = vst [vmem:[#allocation3 + $0x2d0] sm:$0xff] %v2374_v13  ;;  %2819 = vst [vmem:[#allocation3 + $0x3c8] sm:$0xff] %v8905_v20  ;;  %v2754_v10 = vpop.f32.mrb[89].mxu1 }
 0x436   : > { %2818 = vst [vmem:[#allocation3 + $0x3c0] sm:$0xff] %v2754_v10 }
 0x438   : > { %v8908_v35 = vpop.f32.mrb[90].mxu1 }
 0x439   : > { %2821 = vst [vmem:[#allocation3 + $0x3d8] sm:$0xff] %v8908_v35  ;;  %v2764_v4 = vpop.f32.mrb[91].mxu1 }
 0x43a   : > { %2820 = vst [vmem:[#allocation3 + $0x3d0] sm:$0xff] %v2764_v4 }
 0x43b   : > { %v8855_v36 = vpop.f32.mrb[92].mxu0 }
 0x43c   : > { %2433 = vst [vmem:[#allocation3 + $0x2e8] sm:$0xff] %v8855_v36  ;;  %v2384_v12 = vpop.f32.mrb[93].mxu0  ;;  %v8911_v37 = vpop.f32.mrb[92].mxu1 }
 0x43d   : > { %2432 = vst [vmem:[#allocation3 + $0x2e0] sm:$0xff] %v2384_v12  ;;  %2823 = vst [vmem:[#allocation3 + $0x3e8] sm:$0xff] %v8911_v37  ;;  %v2774_v14 = vpop.f32.mrb[93].mxu1 }
 0x43e   : > { %2822 = vst [vmem:[#allocation3 + $0x3e0] sm:$0xff] %v2774_v14 }
 0x443   : > { %v8858_v38 = vpop.f32.mrb[94].mxu0  ;;  %v8914_v22 = vpop.f32.mrb[94].mxu1 }
 0x444   : > { %2435 = vst [vmem:[#allocation3 + $0x2f8] sm:$0xff] %v8858_v38  ;;  %2825 = vst [vmem:[#allocation3 + $0x3f8] sm:$0xff] %v8914_v22  ;;  %v2394_v39 = vpop.f32.mrb[95].mxu0  ;;  %v2784_v16 = vpop.f32.mrb[95].mxu1 }
 0x445   : > { %2434 = vst [vmem:[#allocation3 + $0x2f0] sm:$0xff] %v2394_v39  ;;  %2824 = vst [vmem:[#allocation3 + $0x3f0] sm:$0xff] %v2784_v16 }
 0x446 PF: > { %v2852_v40 = vld [vmem:[#allocation10] sm:$0xff]  ;;  %s14528_s30 = sld [smem:[#allocation28_spill]]  ;;  %v2853_v27 = vld [vmem:[#allocation10 + $0x8] sm:$0xff]  ;;  %v2854_v50 = vld [vmem:[#allocation10 + $0x10] sm:$0xff]  ;;  %vm3080_vm3 = vcmask 261120   ;;  %s14532_s20 = sld [smem:[#allocation113_spill]] }
 0x447   : > { %v9067_v29 = vpack.c.bf16 %v2853_v27, %v2852_v40  ;;  %v2855_v42 = vld [vmem:[#allocation10 + $0x18] sm:$0xff]  ;;  %v2856_v43 = vld [vmem:[#allocation10 + $0x20] sm:$0xff]  ;;  %v2857_v44 = vld [vmem:[#allocation10 + $0x28] sm:$0xff]  ;;  %s10790_s27 = smov 64   ;;  %s10791_s23 = smov 32  }
 0x448   : > { %v9071_v41 = vpack.c.bf16 %v2855_v42, %v2854_v50  ;;  %v9075_v34 = vpack.c.bf16 %v2857_v44, %v2856_v43  ;;  %v2858_v45 = vld [vmem:[#allocation10 + $0x30] sm:$0xff]  ;;  %v2859_v47 = vld [vmem:[#allocation10 + $0x38] sm:$0xff]  ;;  %v2860_v49 = vld [vmem:[#allocation10 + $0x40] sm:$0xff]  ;;  %s14723_s26 = sld [smem:[#allocation119_spill]]  ;;  %s14724_s18 = sld [smem:[#allocation120_spill]] }
 0x449   : > { %9068 = vmatprep.subr.bf16.mxu0 %v9067_v29  ;;  %v9079_v48 = vpack.c.bf16 %v2859_v47, %v2858_v45  ;;  %v2861_v60 = vld [vmem:[#allocation10 + $0x48] sm:$0xff]  ;;  %v11826_v51 = vld [vmem:[#allocation2 + $0x80] sm:$0xff]  ;;  %vm11832_vm4 = vmpackc.low %vm3080_vm3, %vm3080_vm3  ;;  %s14726_s4 = sld [smem:[#allocation123_spill]]  ;;  %s14731_s14 = sld [smem:[#allocation126_spill]] }
 0x44a   : > { %9070 = vmatpush3.bf16.msra.mxu0 %v9067_v29  ;;  %v11828_v52 = vld [vmem:[#allocation2 + $0x88] sm:$0xff]  ;;  %v11836_v54 = vld [vmem:[#allocation2] sm:$0xff]  ;;  %v11842_v57 = vld [vmem:[#allocation2 + $0x90] sm:$0xff]  ;;  %v9083_v59 = vpack.c.bf16 %v2861_v60, %v2860_v49  ;;  %s14732_s3 = sld [smem:[#allocation127_spill]]  ;;  %s14734_s25 = sld [smem:[#allocation128_spill]] }
 0x44b   : > { %9072 = vmatprep.subr.bf16.mxu0 %v9071_v41  ;;  %v9099_v31 = vpack.c.bf16 %v11828_v52, %v11826_v51  ;;  %v11840_v55 = vld [vmem:[#allocation2 + $0x8] sm:$0xff]  ;;  %v11844_v62 = vld [vmem:[#allocation2 + $0x98] sm:$0xff]  ;;  %v11856_v5 = vld [vmem:[#allocation2 + $0x10] sm:$0xff]  ;;  %p14735_p11 = scmp.ne.s32.totalorder %s14508_s1, 0  ;;  %s10793_s24 = smov [#allocation19]  }
 0x44c   : > { %s7395_s8 = sshll.u32 %s14528_s30, 7  ;;  %v9102_v61 = vpack.c.bf16 %v11840_v55, %v11836_v54  ;;  %v9105_v33 = vpack.c.bf16 %v11844_v62, %v11842_v57  ;;  %v2862_v63 = vld [vmem:[#allocation10 + $0x50] sm:$0xff]  ;;  %v2863_v3 = vld [vmem:[#allocation10 + $0x58] sm:$0xff]  ;;  %v11862_v15 = vld [vmem:[#allocation2 + $0xa8] sm:$0xff]  ;;  %s7596_s11 = sshll.u32 %s14528_s30, 4 }
 0x44d   : > { %s11823_s12 = scalar_lea.vmem %s11253_s6, %s7395_s8 [#allocation5]  ;;  %9101 = vmatprep.subr.msk.bf16.mxu1 %vm11832_vm4, %v9099_v31  ;;  %v11858_v7 = vld [vmem:[#allocation2 + $0x18] sm:$0xff]  ;;  %v9087_v9 = vpack.c.bf16 %v2863_v3, %v2862_v63  ;;  %v11860_v11 = vld [vmem:[#allocation2 + $0xa0] sm:$0xff]  ;;  %v2865_v0 = vld [vmem:[#allocation10 + $0x68] sm:$0xff]  ;;  %s10789_s6 = smov 96  }
 0x44e   : > { %v2836_v46 = vld [vmem:[%s11823_s12] sm:$0xff]  ;;  %9074 = vmatpush3.bf16.msra.mxu0 %v9071_v41  ;;  %9104 = vmatpush3.bf16.xpose.msk.msra.mxu1 %vm11832_vm4, %v9102_v61  ;;  %v9108_v17 = vpack.c.bf16 %v11858_v7, %v11856_v5  ;;  %v9111_v6 = vpack.c.bf16 %v11862_v15, %v11860_v11  ;;  %v2866_v21 = vld [vmem:[#allocation10 + $0x70] sm:$0xff]  ;;  %v11874_v24 = vld [vmem:[#allocation2 + $0x28] sm:$0xff]  ;;  %s14725_s8 = sld [smem:[#allocation121_spill]]  ;;  %s7069_s30 = sshll.u32 %s11285_s7, 4  ;;  %s14284_s30 = int_to_ptr.vmem [resolvable:$true] %s7069_s30 }
 0x44f   : > { %8947 = vmatprep.mubr.f32.mxu0 %v2836_v46  ;;  %9076 = vmatprep.subr.bf16.mxu0 %v9075_v34  ;;  %v2864_v56 = vld [vmem:[#allocation10 + $0x60] sm:$0xff]  ;;  %v2867_v23 = vld [vmem:[#allocation10 + $0x78] sm:$0xff]  ;;  %v11876_v28 = vld [vmem:[#allocation2 + $0xb0] sm:$0xff] }
 0x450   : > { %9107 = vmatprep.subr.msk.bf16.mxu1 %vm11832_vm4, %v9105_v33  ;;  %v9091_v19 = vpack.c.bf16 %v2865_v0, %v2864_v56  ;;  %v11872_v8 = vld [vmem:[#allocation2 + $0x20] sm:$0xff]  ;;  %v9095_v25 = vpack.c.bf16 %v2867_v23, %v2866_v21  ;;  %v11878_v18 = vld [vmem:[#allocation2 + $0xb8] sm:$0xff]  ;;  %v2837_v2 = vld [vmem:[%s11823_s12 + $0x8] sm:$0xff]  ;;  %v11977_v21 = vpack.i.bf16 %v11858_v7, %v11856_v5  ;;  %v11981_v23 = vpack.i.bf16 %v11844_v62, %v11842_v57 }
 0x451   : > { %v9114_v1 = vpack.c.bf16 %v11874_v24, %v11872_v8  ;;  %v9117_v58 = vpack.c.bf16 %v11878_v18, %v11876_v28  ;;  %v11889_v30 = vld [vmem:[#allocation2 + $0x30] sm:$0xff]  ;;  %v11891_v26 = vld [vmem:[#allocation2 + $0x38] sm:$0xff]  ;;  %v11894_v13 = vld [vmem:[#allocation2 + $0xc0] sm:$0xff] }
 0x452   : > { %9078 = vmatpush3.bf16.msra.mxu0 %v9075_v34  ;;  %v2838_v32 = vld [vmem:[%s11823_s12 + $0x10] sm:$0xff]  ;;  %v11896_v20 = vld [vmem:[#allocation2 + $0xc8] sm:$0xff]  ;;  %v9120_v10 = vpack.c.bf16 %v11891_v26, %v11889_v30  ;;  %v2839_v35 = vld [vmem:[%s11823_s12 + $0x18] sm:$0xff] }
 0x453   : > { %9080 = vmatprep.subr.bf16.mxu0 %v9079_v48  ;;  %v9123_v4 = vpack.c.bf16 %v11896_v20, %v11894_v13  ;;  %v2840_v36 = vld [vmem:[%s11823_s12 + $0x20] sm:$0xff]  ;;  %v2841_v12 = vld [vmem:[%s11823_s12 + $0x28] sm:$0xff]  ;;  %v2842_v38 = vld [vmem:[%s11823_s12 + $0x30] sm:$0xff]  ;;  %v12017_v62 = vpack.i.bf16 %v11896_v20, %v11894_v13 }
 0x454   : > { %v11909_v37 = vld [vmem:[#allocation2 + $0x40] sm:$0xff]  ;;  %v11911_v14 = vld [vmem:[#allocation2 + $0x48] sm:$0xff]  ;;  %v11914_v22 = vld [vmem:[#allocation2 + $0xd0] sm:$0xff] }
 0x455   : > { %v11916_v39 = vld [vmem:[#allocation2 + $0xd8] sm:$0xff]  ;;  %v9126_v16 = vpack.c.bf16 %v11911_v14, %v11909_v37  ;;  %v2844_v50 = vld [vmem:[%s11823_s12 + $0x40] sm:$0xff]  ;;  %v2845_v29 = vld [vmem:[%s11823_s12 + $0x48] sm:$0xff]  ;;  %v12013_v57 = vpack.i.bf16 %v11911_v14, %v11909_v37 }
 0x456   : > { %9082 = vmatpush3.bf16.msra.mxu0 %v9079_v48  ;;  %9110 = vmatpush3.bf16.xpose.msk.msra.mxu1 %vm11832_vm4, %v9108_v17  ;;  %v2843_v40 = vld [vmem:[%s11823_s12 + $0x38] sm:$0xff]  ;;  %v9129_v27 = vpack.c.bf16 %v11916_v39, %v11914_v22  ;;  %v3047_v42 = vld [vmem:[#allocation2 + $0x50] sm:$0xff]  ;;  %v3065_v44 = vld [vmem:[#allocation2 + $0xe0] sm:$0xff]  ;;  %v12025_v5 = vpack.i.bf16 %v11916_v39, %v11914_v22 }
 0x457   : > { %9084 = vmatprep.subr.bf16.mxu0 %v9083_v59  ;;  %9113 = vmatprep.subr.msk.bf16.mxu1 %vm11832_vm4, %v9111_v6  ;;  %v3048_v41 = vld [vmem:[#allocation2 + $0x58] sm:$0xff]  ;;  %v2846_v43 = vld [vmem:[%s11823_s12 + $0x50] sm:$0xff]  ;;  %v3066_v34 = vld [vmem:[#allocation2 + $0xe8] sm:$0xff]  ;;  %v11965_v6 = vpack.i.bf16 %v11840_v55, %v11836_v54  ;;  %v12001_v54 = vpack.i.bf16 %v11891_v26, %v11889_v30  ;;  %v12005_v55 = vpack.i.bf16 %v11878_v18, %v11876_v28 }
 0x458   : > { %v9132_v46 = vpack.c.bf16 %v3048_v41, %v3047_v42  ;;  %v2847_v45 = vld [vmem:[%s11823_s12 + $0x58] sm:$0xff]  ;;  %v9135_v47 = vpack.c.bf16 %v3066_v34, %v3065_v44  ;;  %v2848_v48 = vld [vmem:[%s11823_s12 + $0x60] sm:$0xff]  ;;  %v2849_v49 = vld [vmem:[%s11823_s12 + $0x68] sm:$0xff]  ;;  %v12027_v7 = vpack.i.bf16 %v3066_v34, %v3065_v44 }
 0x459   : > { %v11937_v60 = vld [vmem:[#allocation2 + $0x60] sm:$0xff]  ;;  %v11939_v31 = vld [vmem:[#allocation2 + $0x68] sm:$0xff]  ;;  %v11942_v61 = vld [vmem:[#allocation2 + $0xf0] sm:$0xff]  ;;  %9671 = vrot.lane.b32.xlu1 %v11965_v6, %s10789_s6 }
 0x45a   : > { %9086 = vmatpush3.bf16.msra.mxu0 %v9083_v59  ;;  %v2850_v59 = vld [vmem:[%s11823_s12 + $0x70] sm:$0xff]  ;;  %v11944_v33 = vld [vmem:[#allocation2 + $0xf8] sm:$0xff]  ;;  %v9138_v63 = vpack.c.bf16 %v11939_v31, %v11937_v60  ;;  %14531 = vst [vmem:[#allocation33_spill] sm:$0xff] %v12027_v7 }
 0x45b   : > { %9088 = vmatprep.subr.bf16.mxu0 %v9087_v9  ;;  %v2851_v3 = vld [vmem:[%s11823_s12 + $0x78] sm:$0xff]  ;;  %v11955_v56 = vld [vmem:[#allocation2 + $0x70] sm:$0xff] }
 0x45c   : > { %v11957_v0 = vld [vmem:[#allocation2 + $0x78] sm:$0xff] }
 0x45d   : > { %v9144_v17 = vpack.c.bf16 %v11957_v0, %v11955_v56  ;;  %9681 = vrot.lane.b32.xlu1 %v11977_v21, %s10789_s6 }
 0x45e   : > { %9090 = vmatpush3.bf16.msra.mxu0 %v9087_v9  ;;  %9116 = vmatpush3.bf16.xpose.msk.msra.mxu1 %vm11832_vm4, %v9114_v1  ;;  %v9141_v9 = vpack.c.bf16 %v11944_v33, %v11942_v61 }
 0x45f   : > { %9092 = vmatprep.subr.bf16.mxu0 %v9091_v19  ;;  %9119 = vmatprep.subr.msk.bf16.mxu1 %vm11832_vm4, %v9117_v58 }
 0x462   : > { %9094 = vmatpush3.bf16.msra.mxu0 %v9091_v19  ;;  %v11969_v19 = vpack.i.bf16 %v11828_v52, %v11826_v51  ;;  %v11989_v51 = vpack.i.bf16 %v11874_v24, %v11872_v8  ;;  %v11993_v52 = vpack.i.bf16 %v11862_v15, %v11860_v11  ;;  %v12033_v11 = vpack.i.bf16 %v3048_v41, %v3047_v42  ;;  %v12040_v15 = vld [vmem:[%s14532_s20] ss:$0 sm:$0xff] }
 0x463   : > { %9096 = vmatprep.subr.bf16.mxu0 %v9095_v25 }
 0x464   : > { %9666 = vrot.lane.b32.xlu0 %v11969_v19, %s10789_s6  ;;  %9691 = vrot.lane.b32.xlu1 %v11989_v51, %s10789_s6 }
 0x466   : > { %9098 = vmatpush3.bf16.msra.mxu0 %v9095_v25  ;;  %9122 = vmatpush3.bf16.xpose.msk.msra.mxu1 %vm11832_vm4, %v9120_v10 }
 0x467   : > { %9125 = vmatprep.subr.msk.bf16.mxu1 %vm11832_vm4, %v9123_v4 }
 0x468   : > { %9676 = vrot.lane.b32.xlu0 %v11981_v23, %s10789_s6  ;;  %9701 = vrot.lane.b32.xlu1 %v12001_v54, %s10789_s6 }
 0x469   : > { %8948 = vmatmul.mubr.f32.vlgmr.msra.gmra.mrb[0].mxu0 %v2837_v2 }
 0x46a   : > { %8950 = vmatprep.mubr.f32.mxu0 %v2838_v32 }
 0x46c   : > { %9686 = vrot.lane.b32.xlu0 %v11993_v52, %s10789_s6  ;;  %9711 = vrot.lane.b32.xlu1 %v12013_v57, %s10789_s6 }
 0x46d   : > { %8951 = vmatmul.mubr.f32.gmra.mrb[2].mxu0 %v2839_v35 }
 0x46e   : > { %8953 = vmatprep.mubr.f32.mxu0 %v2840_v36  ;;  %9128 = vmatpush3.bf16.xpose.msk.msra.mxu1 %vm11832_vm4, %v9126_v16 }
 0x46f   : > { %9131 = vmatprep.subr.msk.bf16.mxu1 %vm11832_vm4, %v9129_v27 }
 0x470   : > { %9696 = vrot.lane.b32.xlu0 %v12005_v55, %s10789_s6  ;;  %9716 = vrot.lane.b32.xlu1 %v12025_v5, %s10789_s6 }
 0x471   : > { %8954 = vmatmul.mubr.f32.gmra.mrb[4].mxu0 %v2841_v12 }
 0x472   : > { %8956 = vmatprep.mubr.f32.mxu0 %v2842_v38 }
 0x474   : > { %9706 = vrot.lane.b32.xlu0 %v12017_v62, %s10789_s6  ;;  %9721 = vrot.lane.b32.xlu1 %v12033_v11, %s10789_s6 }
 0x475   : > { %8957 = vmatmul.mubr.f32.gmra.mrb[6].mxu0 %v2843_v40 }
 0x476   : > { %8959 = vmatprep.mubr.f32.mxu0 %v2844_v50  ;;  %9134 = vmatpush3.bf16.xpose.msk.msra.mxu1 %vm11832_vm4, %v9132_v46 }
 0x477   : > { %9137 = vmatprep.subr.msk.bf16.mxu1 %vm11832_vm4, %v9135_v47 }
 0x478   : > { %9726 = vrot.lane.b32.xlu0 %v12027_v7, %s10789_s6 }
 0x479   : > { %8960 = vmatmul.mubr.f32.gmra.mrb[8].mxu0 %v2845_v29 }
 0x47a   : > { %8962 = vmatprep.mubr.f32.mxu0 %v2846_v43 }
 0x47d   : > { %8963 = vmatmul.mubr.f32.gmra.mrb[10].mxu0 %v2847_v45 }
 0x47e   : > { %8965 = vmatprep.mubr.f32.mxu0 %v2848_v48  ;;  %9140 = vmatpush3.bf16.xpose.msk.msra.mxu1 %vm11832_vm4, %v9138_v63 }
 0x47f   : > { %9143 = vmatprep.subr.msk.bf16.mxu1 %vm11832_vm4, %v9141_v9 }
 0x481   : > { %8966 = vmatmul.mubr.f32.gmra.mrb[12].mxu0 %v2849_v49 }
 0x482   : > { %8968 = vmatprep.mubr.f32.mxu0 %v2850_v59 }
 0x485   : > { %8969 = vmatmul.mubr.f32.gmra.mrb[14].mxu0 %v2851_v3 }
 0x486   : > { %9146 = vmatpush3.bf16.xpose.msk.msra.mxu1 %vm11832_vm4, %v9144_v17 }
 0x53c   : > { %v8949_v8 = vpop.f32.mrb[0].mxu0 }
 0x53d   : > { %v2941_v24 = vpop.f32.mrb[1].mxu0  ;;  %v2947_v25 = vadd.f32 %v8949_v8, %v12040_v15 }
 0x53e   : > { %v2942_v28 = vadd.f32 %v12040_v15, %v2941_v24 }
 0x53f   : > { %v12046_v2 = vmul.f32 0.17677669, %v2947_v25 }
 0x540   : > { %v12044_v18 = vmul.f32 0.17677669, %v2942_v28  ;;  %v8952_v1 = vpop.f32.mrb[2].mxu0 }
 0x541   : > { %v2951_v58 = vpop.f32.mrb[3].mxu0  ;;  %v2957_v20 = vadd.f32 %v8952_v1, %v12040_v15 }
 0x542   : > { %7907 = vmatprep.mubr.msk.f32.mxu1 %vm3080_vm3, %v12044_v18  ;;  %v2952_v30 = vadd.f32 %v12040_v15, %v2951_v58  ;;  %v3595_v58 = vld [vmem:[#allocation3 + $0x88] sm:$0xff] }
 0x543   : > { %7908 = vmatmul.mubr.msk.f32.vlgmr.msra.gmra.mrb[0].mxu1 %vm3080_vm3, %v12044_v18  ;;  %v12063_v36 = vmul.f32 0.17677669, %v2957_v20  ;;  %v3596_v20 = vld [vmem:[#allocation3 + $0x90] sm:$0xff] }
 0x544   : > { %v12053_v26 = vmul.f32 0.17677669, %v2952_v30  ;;  %7909 = vmatprep.mubr.msk.f32.mxu1 %vm3080_vm3, %v12046_v2  ;;  %v8955_v32 = vpop.f32.mrb[4].mxu0  ;;  %v3578_v30 = vld [vmem:[#allocation3] sm:$0xff] }
 0x545   : > { %v2961_v13 = vpop.f32.mrb[5].mxu0  ;;  %v2967_v38 = vadd.f32 %v8955_v32, %v12040_v15 }
 0x546   : > { %v2962_v10 = vadd.f32 %v12040_v15, %v2961_v13  ;;  %v3579_v13 = vld [vmem:[#allocation3 + $0x8] sm:$0xff] }
 0x547   : > { %7910 = vmatmul.mubr.msk.f32.gmra.mrb[2].mxu1 %vm3080_vm3, %v12046_v2  ;;  %v12077_v40 = vmul.f32 0.17677669, %v2967_v38  ;;  %v3598_v38 = vld [vmem:[#allocation3 + $0xa0] sm:$0xff] }
 0x548   : > { %7911 = vmatprep.mubr.msk.f32.mxu1 %vm3080_vm3, %v12053_v26  ;;  %v8958_v35 = vpop.f32.mrb[6].mxu0  ;;  %v12067_v12 = vmul.f32 0.17677669, %v2962_v10  ;;  %v3597_v10 = vld [vmem:[#allocation3 + $0x98] sm:$0xff] }
 0x549   : > { %v2971_v4 = vpop.f32.mrb[7].mxu0  ;;  %v2977_v42 = vadd.f32 %v8958_v35, %v12040_v15  ;;  %v9149_v35 = vpack.c.bf16 %v3579_v13, %v3578_v30  ;;  %v3605_v30 = vld [vmem:[#allocation3 + $0xd8] sm:$0xff] }
 0x54a   : > { %v2972_v22 = vadd.f32 %v12040_v15, %v2971_v4  ;;  %v9151_v4 = vpack.c.bf16 %v3597_v10, %v3596_v20  ;;  %v3588_v20 = vld [vmem:[#allocation3 + $0x50] sm:$0xff]  ;;  %v3589_v10 = vld [vmem:[#allocation3 + $0x58] sm:$0xff] }
 0x54b   : > { %7912 = vmatmul.mubr.msk.f32.gmra.mrb[4].mxu1 %vm3080_vm3, %v12053_v26  ;;  %v12091_v34 = vmul.f32 0.17677669, %v2977_v42 }
 0x54c   : > { %7913 = vmatprep.mubr.msk.f32.mxu1 %vm3080_vm3, %v12063_v36  ;;  %v8961_v37 = vpop.f32.mrb[8].mxu0  ;;  %v12081_v27 = vmul.f32 0.17677669, %v2972_v22  ;;  %v3599_v22 = vld [vmem:[#allocation3 + $0xa8] sm:$0xff] }
 0x54d   : > { %v2981_v14 = vpop.f32.mrb[9].mxu0  ;;  %v2987_v45 = vadd.f32 %v8961_v37, %v12040_v15  ;;  %v3580_v37 = vld [vmem:[#allocation3 + $0x10] sm:$0xff] }
 0x54e   : > { %v2982_v41 = vadd.f32 %v12040_v15, %v2981_v14  ;;  %v3581_v14 = vld [vmem:[#allocation3 + $0x18] sm:$0xff] }
 0x54f   : > { %7914 = vmatmul.mubr.msk.f32.gmra.mrb[6].mxu1 %vm3080_vm3, %v12063_v36  ;;  %v12105_v48 = vmul.f32 0.17677669, %v2987_v45 }
 0x550   : > { %7915 = vmatprep.mubr.msk.f32.mxu1 %vm3080_vm3, %v12067_v12  ;;  %v8964_v39 = vpop.f32.mrb[10].mxu0  ;;  %v12095_v46 = vmul.f32 0.17677669, %v2982_v41  ;;  %v3600_v41 = vld [vmem:[#allocation3 + $0xb0] sm:$0xff] }
 0x551   : > { %v2991_v16 = vpop.f32.mrb[11].mxu0  ;;  %v2997_v59 = vadd.f32 %v8964_v39, %v12040_v15  ;;  %v9153_v39 = vpack.c.bf16 %v3581_v14, %v3580_v37  ;;  %v9169_v37 = vpack.c.bf16 %v3589_v10, %v3588_v20 }
 0x552   : > { %v2992_v47 = vadd.f32 %v12040_v15, %v2991_v16  ;;  %v9155_v16 = vpack.c.bf16 %v3599_v22, %v3598_v38  ;;  %v3590_v38 = vld [vmem:[#allocation3 + $0x60] sm:$0xff]  ;;  %v3591_v22 = vld [vmem:[#allocation3 + $0x68] sm:$0xff] }
 0x553   : > { %7916 = vmatmul.mubr.msk.f32.gmra.mrb[8].mxu1 %vm3080_vm3, %v12067_v12  ;;  %v12119_v3 = vmul.f32 0.17677669, %v2997_v59  ;;  %v3602_v59 = vld [vmem:[#allocation3 + $0xc0] sm:$0xff] }
 0x554   : > { %7917 = vmatprep.mubr.msk.f32.mxu1 %vm3080_vm3, %v12077_v40  ;;  %v8967_v50 = vpop.f32.mrb[12].mxu0  ;;  %v12109_v49 = vmul.f32 0.17677669, %v2992_v47  ;;  %v3585_v47 = vld [vmem:[#allocation3 + $0x38] sm:$0xff] }
 0x555   : > { %v3001_v29 = vpop.f32.mrb[13].mxu0  ;;  %v3007_v17 = vadd.f32 %v8967_v50, %v12040_v15  ;;  %v3582_v50 = vld [vmem:[#allocation3 + $0x20] sm:$0xff] }
 0x556   : > { %v3002_v63 = vadd.f32 %v12040_v15, %v3001_v29  ;;  %v3583_v29 = vld [vmem:[#allocation3 + $0x28] sm:$0xff] }
 0x557   : > { %7918 = vmatmul.mubr.msk.f32.gmra.mrb[10].mxu1 %vm3080_vm3, %v12077_v40  ;;  %v12133_v24 = vmul.f32 0.17677669, %v3007_v17  ;;  %v9157_v42 = vpack.c.bf16 %v3583_v29, %v3582_v50 }
 0x558   : > { %7919 = vmatprep.mubr.msk.f32.mxu1 %vm3080_vm3, %v12081_v27  ;;  %v8970_v43 = vpop.f32.mrb[14].mxu0  ;;  %v12123_v9 = vmul.f32 0.17677669, %v3002_v63  ;;  %v3603_v63 = vld [vmem:[#allocation3 + $0xc8] sm:$0xff] }
 0x559   : > { %v3011_v44 = vpop.f32.mrb[15].mxu0  ;;  %v3017_v25 = vadd.f32 %v8970_v43, %v12040_v15  ;;  %v3601_v43 = vld [vmem:[#allocation3 + $0xb8] sm:$0xff] }
 0x55a   : > { %v3012_v8 = vadd.f32 %v12040_v15, %v3011_v44  ;;  %v3594_v15 = vld [vmem:[#allocation3 + $0x80] sm:$0xff]  ;;  %v3584_v44 = vld [vmem:[#allocation3 + $0x30] sm:$0xff]  ;;  %v9159_v45 = vpack.c.bf16 %v3601_v43, %v3600_v41  ;;  %v3609_v41 = vld [vmem:[#allocation3 + $0xf8] sm:$0xff] }
 0x55b   : > { %7920 = vmatmul.mubr.msk.f32.gmra.mrb[12].mxu1 %vm3080_vm3, %v12081_v27  ;;  %v12144_v1 = vmul.f32 0.17677669, %v3017_v25  ;;  %v9147_v32 = vpack.c.bf16 %v3595_v58, %v3594_v15  ;;  %v9161_v17 = vpack.c.bf16 %v3585_v47, %v3584_v44  ;;  %v3586_v25 = vld [vmem:[#allocation3 + $0x40] sm:$0xff]  ;;  %v3587_v15 = vld [vmem:[#allocation3 + $0x48] sm:$0xff]  ;;  %v3604_v58 = vld [vmem:[#allocation3 + $0xd0] sm:$0xff] }
 0x55c   : > { %7921 = vmatprep.mubr.msk.f32.mxu1 %vm3080_vm3, %v12091_v34  ;;  %v12140_v28 = vmul.f32 0.17677669, %v3012_v8  ;;  %v9163_v8 = vpack.c.bf16 %v3603_v63, %v3602_v59  ;;  %v9167_v13 = vpack.c.bf16 %v3605_v30, %v3604_v58  ;;  %v3593_v47 = vld [vmem:[#allocation3 + $0x78] sm:$0xff]  ;;  %v3070_v63 = vlaneseq }
 0x55d   : > { %14534 = vst [vmem:[#allocation35_spill] sm:$0xff] %v12144_v1  ;;  %9148 = vmatprep.subr.bf16.mxu0 %v9147_v32  ;;  %v9165_v32 = vpack.c.bf16 %v3587_v15, %v3586_v25  ;;  %v3036_v25 = vld [vmem:[#allocation4] sm:$0x3] }
 0x55e   : > { %14533 = vst [vmem:[#allocation34_spill] sm:$0xff] %v12140_v28  ;;  %9150 = vmatpush3.bf16.msra.mxu0 %v9149_v35  ;;  %v3606_v35 = vld [vmem:[#allocation3 + $0xe0] sm:$0xff] }
 0x55f   : > { %7922 = vmatmul.mubr.msk.f32.gmra.mrb[14].mxu1 %vm3080_vm3, %v12091_v34  ;;  %9152 = vmatprep.subr.bf16.mxu0 %v9151_v4  ;;  %v3607_v4 = vld [vmem:[#allocation3 + $0xe8] sm:$0xff] }
 0x560   : > { %7923 = vmatprep.mubr.msk.f32.mxu1 %vm3080_vm3, %v12095_v46  ;;  %v9171_v14 = vpack.c.bf16 %v3607_v4, %v3606_v35 }
 0x562   : > { %9154 = vmatpush3.bf16.msra.mxu0 %v9153_v39  ;;  %v9667_v39 = vpop.permute.xlu0 %9666 }
 0x563   : > { %7924 = vmatmul.mubr.msk.f32.gmra.mrb[16].mxu1 %vm3080_vm3, %v12095_v46  ;;  %9156 = vmatprep.subr.bf16.mxu0 %v9155_v16  ;;  %v9173_v16 = vpack.c.bf16 %v3591_v22, %v3590_v38  ;;  %v9669_v50 = vunpack.i.h.bf16 %v9667_v39  ;;  %v9668_v29 = vunpack.i.l.bf16 %v9667_v39 }
 0x564   : > { %7925 = vmatprep.mubr.msk.f32.mxu1 %vm3080_vm3, %v12105_v48 }
 0x565   : > { %v9179_v43 = vpack.c.bf16 %v9669_v50, %v9668_v29 }
 0x566   : > { %9158 = vmatpush3.bf16.msra.mxu0 %v9157_v42  ;;  %v3608_v42 = vld [vmem:[#allocation3 + $0xf0] sm:$0xff] }
 0x567   : > { %7926 = vmatmul.mubr.msk.f32.gmra.mrb[18].mxu1 %vm3080_vm3, %v12105_v48  ;;  %9160 = vmatprep.subr.bf16.mxu0 %v9159_v45  ;;  %v9175_v44 = vpack.c.bf16 %v3609_v41, %v3608_v42  ;;  %v3592_v45 = vld [vmem:[#allocation3 + $0x70] sm:$0xff] }
 0x568   : > { %7927 = vmatprep.mubr.msk.f32.mxu1 %vm3080_vm3, %v12109_v49  ;;  %v9177_v59 = vpack.c.bf16 %v3593_v47, %v3592_v45 }
 0x56a   : > { %9162 = vmatpush3.bf16.msra.mxu0 %v9161_v17  ;;  %v12156_v17 = vshrl.u32 %v3070_v63, 7 }
 0x56b   : > { %7928 = vmatmul.mubr.msk.f32.gmra.mrb[20].mxu1 %vm3080_vm3, %v12109_v49  ;;  %9164 = vmatprep.subr.bf16.mxu0 %v9163_v8 }
 0x56c   : > { %7929 = vmatprep.mubr.msk.f32.mxu1 %vm3080_vm3, %v12119_v3  ;;  %14535 = vst [vmem:[#allocation36_spill] sm:$0xff] %v12156_v17  ;;  %v14389_v8 = vsub.s32 0, %v12156_v17  ;;  %v14388_v15 = vsub.s32 1, %v12156_v17 }
 0x56e   : > { %9166 = vmatpush3.bf16.msra.mxu0 %v9165_v32  ;;  %v12162_v58 = vrot.slane %v3036_v25, %v14389_v8  ;;  %v12166_v30 = vrot.slane %v3036_v25, %v14388_v15 }
 0x56f   : > { %7930 = vmatmul.mubr.msk.f32.gmra.mrb[22].mxu1 %vm3080_vm3, %v12119_v3  ;;  %9168 = vmatprep.subr.bf16.mxu0 %v9167_v13 }
 0x570   : > { %7931 = vmatprep.mubr.msk.f32.mxu1 %vm3080_vm3, %v12123_v9  ;;  %14536 = vst [vmem:[#allocation37_spill] sm:$0xff] %v12162_v58  ;;  %14537 = vst [vmem:[#allocation38_spill] sm:$0xff] %v12166_v30 }
 0x572   : > { %9170 = vmatpush3.bf16.msra.mxu0 %v9169_v37 }
 0x573   : > { %7932 = vmatmul.mubr.msk.f32.gmra.mrb[24].mxu1 %vm3080_vm3, %v12123_v9  ;;  %9172 = vmatprep.subr.bf16.mxu0 %v9171_v14 }
 0x574   : > { %7933 = vmatprep.mubr.msk.f32.mxu1 %vm3080_vm3, %v12133_v24 }
 0x576   : > { %9174 = vmatpush3.bf16.msra.mxu0 %v9173_v16 }
 0x577   : > { %7934 = vmatmul.mubr.msk.f32.gmra.mrb[26].mxu1 %vm3080_vm3, %v12133_v24  ;;  %9176 = vmatprep.subr.bf16.mxu0 %v9175_v44 }
 0x578   : > { %7935 = vmatprep.mubr.msk.f32.mxu1 %vm3080_vm3, %v12140_v28 }
 0x57a   : > { %9178 = vmatpush3.bf16.msra.mxu0 %v9177_v59 }
 0x57b   : > { %7936 = vmatmul.mubr.msk.f32.gmra.mrb[28].mxu1 %vm3080_vm3, %v12140_v28  ;;  %9181 = vmatprep.subr.msk.bf16.mxu0 %vm11832_vm4, %v9179_v43 }
 0x57c   : > { %7937 = vmatprep.mubr.msk.f32.mxu1 %vm3080_vm3, %v12144_v1 }
 0x57f   : > { %7938 = vmatmul.mubr.msk.f32.gmra.mrb[30].mxu1 %vm3080_vm3, %v12144_v1 }
 0x616   : > { %v3291_v32 = vpop.f32.mrb[0].mxu1 }
 0x617   : > { %v12169_v13 = vadd.f32 %v3291_v32, %v12162_v58  ;;  %v3293_v20 = vpop.f32.mrb[1].mxu1 }
 0x618   : > { %v12172_v10 = vadd.f32 %v3293_v20, %v12166_v30 }
 0x61a   : > { %v3297_v35 = vpop.f32.mrb[2].mxu1  ;;  %v3386_v4 = vmax.f32 %v12169_v13, %v12172_v10 }
 0x61b   : > { %v12177_v37 = vadd.f32 %v3297_v35, %v12162_v58  ;;  %v3299_v14 = vpop.f32.mrb[3].mxu1 }
 0x61c   : > { %v12180_v38 = vadd.f32 %v3299_v14, %v12166_v30  ;;  %3387 = vmax.xlane.f32.xlu0 %v3386_v4 }
 0x61e   : > { %v3303_v22 = vpop.f32.mrb[4].mxu1  ;;  %v3389_v39 = vmax.f32 %v12177_v37, %v12180_v38 }
 0x61f   : > { %v12185_v16 = vadd.f32 %v3303_v22, %v12162_v58  ;;  %v3305_v50 = vpop.f32.mrb[5].mxu1 }
 0x620   : > { %v12188_v29 = vadd.f32 %v3305_v50, %v12166_v30  ;;  %3390 = vmax.xlane.f32.xlu0 %v3389_v39 }
 0x622   : > { %v3309_v42 = vpop.f32.mrb[6].mxu1  ;;  %v3392_v41 = vmax.f32 %v12185_v16, %v12188_v29 }
 0x623   : > { %v12193_v43 = vadd.f32 %v3309_v42, %v12162_v58  ;;  %v3311_v44 = vpop.f32.mrb[7].mxu1 }
 0x624   : > { %v12196_v45 = vadd.f32 %v3311_v44, %v12166_v30  ;;  %3393 = vmax.xlane.f32.xlu1 %v3392_v41 }
 0x626   : > { %v3315_v47 = vpop.f32.mrb[8].mxu1  ;;  %v3395_v59 = vmax.f32 %v12193_v43, %v12196_v45 }
 0x627   : > { %v12201_v63 = vadd.f32 %v3315_v47, %v12162_v58  ;;  %v3317_v25 = vpop.f32.mrb[9].mxu1 }
 0x628   : > { %v12204_v32 = vadd.f32 %v3317_v25, %v12166_v30  ;;  %3396 = vmax.xlane.f32.xlu1 %v3395_v59 }
 0x62a   : > { %v3321_v20 = vpop.f32.mrb[10].mxu1  ;;  %v3398_v35 = vmax.f32 %v12201_v63, %v12204_v32 }
 0x62b   : > { %v12209_v4 = vadd.f32 %v3321_v20, %v12162_v58  ;;  %v3323_v14 = vpop.f32.mrb[11].mxu1 }
 0x62c   : > { %v12212_v22 = vadd.f32 %v3323_v14, %v12166_v30  ;;  %3399 = vmax.xlane.f32.xlu0 %v3398_v35 }
 0x62e   : > { %v3327_v39 = vpop.f32.mrb[12].mxu1  ;;  %v3401_v50 = vmax.f32 %v12209_v4, %v12212_v22 }
 0x62f   : > { %v12217_v42 = vadd.f32 %v3327_v39, %v12162_v58  ;;  %v3329_v41 = vpop.f32.mrb[13].mxu1 }
 0x630   : > { %v12220_v44 = vadd.f32 %v3329_v41, %v12166_v30  ;;  %3402 = vmax.xlane.f32.xlu1 %v3401_v50 }
 0x632   : > { %v3333_v47 = vpop.f32.mrb[14].mxu1  ;;  %v3404_v59 = vmax.f32 %v12217_v42, %v12220_v44 }
 0x633   : > { %v12225_v25 = vadd.f32 %v3333_v47, %v12162_v58  ;;  %v3335_v20 = vpop.f32.mrb[15].mxu1 }
 0x634   : > { %v12228_v35 = vadd.f32 %v3335_v20, %v12166_v30  ;;  %3405 = vmax.xlane.f32.xlu0 %v3404_v59 }
 0x636   : > { %v3339_v14 = vpop.f32.mrb[16].mxu1  ;;  %v3407_v39 = vmax.f32 %v12225_v25, %v12228_v35 }
 0x637   : > { %v12233_v41 = vadd.f32 %v3339_v14, %v12162_v58  ;;  %v3341_v50 = vpop.f32.mrb[17].mxu1 }
 0x638   : > { %v12236_v15 = vadd.f32 %v3341_v50, %v12166_v30  ;;  %3408 = vmax.xlane.f32.xlu1 %v3407_v39 }
 0x639   : > { %14538 = vst [vmem:[#allocation39_spill] sm:$0xff] %v12233_v41 }
 0x63a   : > { %14539 = vst [vmem:[#allocation40_spill] sm:$0xff] %v12236_v15  ;;  %v3345_v8 = vpop.f32.mrb[18].mxu1  ;;  %v3410_v47 = vmax.f32 %v12233_v41, %v12236_v15 }
 0x63b   : > { %v12241_v20 = vadd.f32 %v3345_v8, %v12162_v58  ;;  %v3347_v59 = vpop.f32.mrb[19].mxu1 }
 0x63c   : > { %v12244_v17 = vadd.f32 %v3347_v59, %v12166_v30  ;;  %3411 = vmax.xlane.f32.xlu1 %v3410_v47 }
 0x63d   : > { %14540 = vst [vmem:[#allocation41_spill] sm:$0xff] %v12241_v20 }
 0x63e   : > { %14541 = vst [vmem:[#allocation42_spill] sm:$0xff] %v12244_v17  ;;  %v3351_v1 = vpop.f32.mrb[20].mxu1  ;;  %v3413_v14 = vmax.f32 %v12241_v20, %v12244_v17 }
 0x63f   : > { %v12249_v50 = vadd.f32 %v3351_v1, %v12162_v58  ;;  %v3353_v39 = vpop.f32.mrb[21].mxu1 }
 0x640   : > { %v12252_v7 = vadd.f32 %v3353_v39, %v12166_v30  ;;  %3414 = vmax.xlane.f32.xlu0 %v3413_v14 }
 0x641   : > { %14542 = vst [vmem:[#allocation43_spill] sm:$0xff] %v12249_v50 }
 0x642   : > { %14543 = vst [vmem:[#allocation44_spill] sm:$0xff] %v12252_v7  ;;  %v3357_v28 = vpop.f32.mrb[22].mxu1  ;;  %v3416_v8 = vmax.f32 %v12249_v50, %v12252_v7 }
 0x643   : > { %v12257_v59 = vadd.f32 %v3357_v28, %v12162_v58  ;;  %v3359_v47 = vpop.f32.mrb[23].mxu1 }
 0x644   : > { %v12260_v15 = vadd.f32 %v3359_v47, %v12166_v30  ;;  %3417 = vmax.xlane.f32.xlu1 %v3416_v8  ;;  %v12274_v8 = vpack.i.bf16 %v11939_v31, %v11937_v60 }
 0x646   : > { %14544 = vst [vmem:[#allocation45_spill] sm:$0xff] %v12260_v15  ;;  %v3363_v17 = vpop.f32.mrb[24].mxu1  ;;  %v3419_v1 = vmax.f32 %v12257_v59, %v12260_v15 }
 0x647   : > { %v3365_v20 = vpop.f32.mrb[25].mxu1 }
 0x648   : > { %3420 = vmax.xlane.f32.xlu0 %v3419_v1 }
 0x64a   : > { %v3369_v39 = vpop.f32.mrb[26].mxu1 }
 0x64b   : > { %v12265_v14 = vadd.f32 %v3369_v39, %v12162_v58  ;;  %v3371_v41 = vpop.f32.mrb[27].mxu1  ;;  %v12280_v39 = vpack.i.bf16 %v11944_v33, %v11942_v61 }
 0x64c   : > { %v12268_v7 = vadd.f32 %v3371_v41, %v12166_v30  ;;  %v12285_v41 = vadd.f32 %v3363_v17, %v12162_v58 }
 0x64e   : > { %14545 = vst [vmem:[#allocation46_spill] sm:$0xff] %v12268_v7  ;;  %v3425_v28 = vmax.f32 %v12265_v14, %v12268_v7  ;;  %v3375_v47 = vpop.f32.mrb[28].mxu1  ;;  %14546 = vst [vmem:[#allocation47_spill] sm:$0xff] %v12285_v41 }
 0x64f   : > { %v3377_v50 = vpop.f32.mrb[29].mxu1  ;;  %v12291_v60 = vadd.f32 %v3375_v47, %v12162_v58  ;;  %v12312_v47 = vpack.i.bf16 %v11957_v0, %v11955_v56 }
 0x650   : > { %3426 = vmax.xlane.f32.xlu0 %v3425_v28  ;;  %v12288_v28 = vadd.f32 %v3365_v20, %v12166_v30  ;;  %v12294_v31 = vadd.f32 %v3377_v50, %v12166_v30  ;;  %v12308_v50 = vpop.permute.xlu1 %9671 }
 0x651   : > { %14548 = vst [vmem:[#allocation49_spill] sm:$0xff] %v12291_v60 }
 0x652   : > { %v3381_v15 = vpop.f32.mrb[30].mxu1  ;;  %14547 = vst [vmem:[#allocation48_spill] sm:$0xff] %v12288_v28  ;;  %14549 = vst [vmem:[#allocation50_spill] sm:$0xff] %v12294_v31  ;;  %v3422_v7 = vmax.f32 %v12285_v41, %v12288_v28  ;;  %v3428_v61 = vmax.f32 %v12291_v60, %v12294_v31 }
 0x653   : > { %v3383_v1 = vpop.f32.mrb[31].mxu1  ;;  %v12301_v33 = vadd.f32 %v3381_v15, %v12162_v58 }
 0x654   : > { %v12304_v17 = vadd.f32 %v3383_v1, %v12166_v30  ;;  %v12318_v15 = vpop.permute.xlu1 %9681 }
 0x655   : > { %9731 = vrot.lane.b32.xlu1 %v12274_v8, %s10789_s6  ;;  %14550 = vst [vmem:[#allocation51_spill] sm:$0xff] %v12301_v33 }
 0x656   : > { %14551 = vst [vmem:[#allocation52_spill] sm:$0xff] %v12304_v17  ;;  %v3431_v20 = vmax.f32 %v12301_v33, %v12304_v17 }
 0x666   : > { %9736 = vrot.lane.b32.xlu0 %v12280_v39, %s10789_s6 }
 0x679   : > { %3423 = vmax.xlane.f32.xlu1 %v3422_v7  ;;  %v12314_v7 = vpop.permute.xlu0 %9676 }
 0x67d   : > { %3429 = vmax.xlane.f32.xlu1 %v3428_v61  ;;  %v12322_v1 = vpop.permute.xlu0 %9686  ;;  %v12324_v61 = vpop.permute.xlu1 %9691 }
 0x681   : > { %v12332_v56 = vpop.permute.xlu1 %9701 }
 0x685   : > { %3432 = vmax.xlane.f32.xlu0 %v3431_v20  ;;  %v12328_v20 = vpop.permute.xlu0 %9696  ;;  %v12342_v30 = vpop.permute.xlu1 %9711 }
 0x689   : > { %v12338_v0 = vpop.permute.xlu0 %9706 }
 0x68d   : > { %v12348_v58 = vpop.permute.xlu0 %9726 }
 0x68e   : > { %9741 = vrot.lane.b32.xlu1 %v12312_v47, %s10789_s6 }
 0x692   : > { %3803 = vrot.lane.b32.xlu1 %v12044_v18, %s10789_s6 }
 0x696   : > { %3805 = vrot.lane.b32.xlu1 %v12046_v2, %s10789_s6 }
 0x69a   : > { %3807 = vrot.lane.b32.xlu1 %v12053_v26, %s10789_s6 }
 0x69b   : > { %9746 = vrot.lane.b32.xlu0 %v11969_v19, %s10790_s27  ;;  %v12352_v19 = vpop.permute.xlu1 %9716 }
 0x69e   : > { %3809 = vrot.lane.b32.xlu1 %v12063_v36, %s10789_s6 }
 0x69f   : > { %9751 = vrot.lane.b32.xlu0 %v11965_v6, %s10790_s27  ;;  %v12362_v60 = vpop.permute.xlu1 %9721 }
 0x6a2   : > { %3811 = vrot.lane.b32.xlu1 %v12067_v12, %s10789_s6 }
 0x6a3   : > { %9756 = vrot.lane.b32.xlu0 %v11981_v23, %s10790_s27 }
 0x6a6   : > { %3813 = vrot.lane.b32.xlu1 %v12077_v40, %s10789_s6 }
 0x6a7   : > { %9761 = vrot.lane.b32.xlu0 %v11977_v21, %s10790_s27 }
 0x6a9   : > { %v3388_v17 = vpop.xlane.xlu0 %3387 }
 0x6aa   : > { %v3434_v6 = vsub.f32 %v12169_v13, %v3388_v17  ;;  %v3435_v33 = vsub.f32 %v12172_v10, %v3388_v17  ;;  %3815 = vrot.lane.b32.xlu1 %v12081_v27, %s10789_s6 }
 0x6ab   : > { %9766 = vrot.lane.b32.xlu0 %v11993_v52, %s10790_s27 }
 0x6ac   : > { %v3466_v23 = vmul.f32 1.442695, %v3434_v6  ;;  %v3468_v31 = vmul.f32 1.442695, %v3435_v33  ;;  %v9678_v6 = vunpack.i.l.bf16 %v12314_v7 }
 0x6ad   : > { %v3391_v28 = vpop.xlane.xlu0 %3390 }
 0x6ae   : > { %9905 = vpow2.f32 %v3466_v23  ;;  %v3436_v41 = vsub.f32 %v12177_v37, %v3391_v28  ;;  %v3437_v21 = vsub.f32 %v12180_v38, %v3391_v28  ;;  %3817 = vrot.lane.b32.xlu1 %v12091_v34, %s10789_s6  ;;  %v9674_v28 = vunpack.i.h.bf16 %v12308_v50 }
 0x6af   : > { %9907 = vpow2.f32 %v3468_v31  ;;  %9771 = vrot.lane.b32.xlu0 %v11989_v51, %s10790_s27  ;;  %v9673_v51 = vunpack.i.l.bf16 %v12308_v50 }
 0x6b0   : > { %v3470_v13 = vmul.f32 1.442695, %v3436_v41  ;;  %v3472_v10 = vmul.f32 1.442695, %v3437_v21 }
 0x6b1   : > { %v3394_v52 = vpop.xlane.xlu1 %3393 }
 0x6b2   : > { %9909 = vpow2.f32 %v3470_v13  ;;  %v3438_v33 = vsub.f32 %v12185_v16, %v3394_v52  ;;  %v3439_v17 = vsub.f32 %v12188_v29, %v3394_v52  ;;  %3819 = vrot.lane.b32.xlu1 %v12095_v46, %s10789_s6  ;;  %v9679_v29 = vunpack.i.h.bf16 %v12314_v7 }
 0x6b3   : > { %9911 = vpow2.f32 %v3472_v10  ;;  %9776 = vrot.lane.b32.xlu0 %v12005_v55, %s10790_s27  ;;  %v9182_v13 = vpack.c.bf16 %v9674_v28, %v9673_v51 }
 0x6b4   : > { %v3474_v37 = vmul.f32 1.442695, %v3438_v33  ;;  %v3476_v38 = vmul.f32 1.442695, %v3439_v17  ;;  %v9185_v52 = vpack.c.bf16 %v9679_v29, %v9678_v6 }
 0x6b5   : > { %v3397_v41 = vpop.xlane.xlu1 %3396 }
 0x6b6   : > { %9913 = vpow2.f32 %v3474_v37  ;;  %v3440_v31 = vsub.f32 %v12193_v43, %v3397_v41  ;;  %v3441_v16 = vsub.f32 %v12196_v45, %v3397_v41  ;;  %3821 = vrot.lane.b32.xlu1 %v12105_v48, %s10789_s6  ;;  %v9683_v37 = vunpack.i.l.bf16 %v12318_v15 }
 0x6b7   : > { %9915 = vpow2.f32 %v3476_v38  ;;  %9781 = vrot.lane.b32.xlu0 %v12001_v54, %s10790_s27  ;;  %v9689_v41 = vunpack.i.h.bf16 %v12322_v1 }
 0x6b8   : > { %v9906_v55 = vpop.eup %9905  ;;  %v3478_v23 = vmul.f32 1.442695, %v3440_v31  ;;  %v3480_v50 = vmul.f32 1.442695, %v3441_v16  ;;  %v9688_v31 = vunpack.i.l.bf16 %v12322_v1 }
 0x6b9   : > { %v9908_v21 = vpop.eup %9907  ;;  %v3400_v10 = vpop.xlane.xlu0 %3399 }
 0x6ba   : > { %9917 = vpow2.f32 %v3478_v23  ;;  %3674 = vmatprep.mubr.f32.mxu0 %v9908_v21  ;;  %v3442_v43 = vsub.f32 %v12201_v63, %v3400_v10  ;;  %v3443_v45 = vsub.f32 %v12204_v32, %v3400_v10  ;;  %3823 = vrot.lane.b32.xlu1 %v12109_v49, %s10789_s6  ;;  %v12390_v7 = vadd.f32 %v9908_v21, %v9906_v55 }
 0x6bb   : > { %9919 = vpow2.f32 %v3480_v50  ;;  %3675 = vmatmul.mubr.f32.vlgmr.msra.gmra.mrb[16].mxu0 %v9906_v55  ;;  %9786 = vrot.lane.b32.xlu0 %v12017_v62, %s10790_s27  ;;  %v9684_v32 = vunpack.i.h.bf16 %v12318_v15  ;;  %v9191_v50 = vpack.c.bf16 %v9689_v41, %v9688_v31  ;;  %v9693_v10 = vunpack.i.l.bf16 %v12324_v61  ;;  %v14554_v41 = vld [vmem:[#allocation34_spill] sm:$0xff] }
 0x6bc   : > { %v9910_v54 = vpop.eup %9909  ;;  %v3482_v33 = vmul.f32 1.442695, %v3442_v43  ;;  %v3484_v17 = vmul.f32 1.442695, %v3443_v45  ;;  %9184 = vmatpush3.bf16.xpose.msk.msra.mxu0 %vm11832_vm4, %v9182_v13 }
 0x6bd   : > { %v9912_v63 = vpop.eup %9911  ;;  %9187 = vmatprep.subr.msk.bf16.mxu0 %vm11832_vm4, %v9185_v52  ;;  %v3403_v38 = vpop.xlane.xlu1 %3402 }
 0x6be   : > { %9921 = vpow2.f32 %v3482_v33  ;;  %v3444_v28 = vsub.f32 %v12209_v4, %v3403_v38  ;;  %v3445_v62 = vsub.f32 %v12212_v22, %v3403_v38  ;;  %3679 = vmatprep.mubr.f32.mxu0 %v9912_v63  ;;  %3825 = vrot.lane.b32.xlu1 %v12119_v3, %s10789_s6  ;;  %v12404_v51 = vadd.f32 %v9912_v63, %v9910_v54 }
 0x6bf   : > { %9923 = vpow2.f32 %v3484_v17  ;;  %3680 = vmatmul.mubr.f32.gmra.mrb[18].mxu0 %v9910_v54  ;;  %9791 = vrot.lane.b32.xlu0 %v12013_v57, %s10790_s27  ;;  %v9188_v22 = vpack.c.bf16 %v9684_v32, %v9683_v37  ;;  %v9699_v54 = vunpack.i.h.bf16 %v12328_v20  ;;  %v9698_v33 = vunpack.i.l.bf16 %v12328_v20  ;;  %v14552_v37 = vld [vmem:[#allocation39_spill] sm:$0xff] }
 0x6c0   : > { %v9914_v15 = vpop.eup %9913  ;;  %v3486_v16 = vmul.f32 1.442695, %v3444_v28  ;;  %v3488_v4 = vmul.f32 1.442695, %v3445_v62  ;;  %v14553_v28 = vld [vmem:[#allocation40_spill] sm:$0xff] }
 0x6c1   : > { %v9916_v29 = vpop.eup %9915  ;;  %v3406_v6 = vpop.xlane.xlu0 %3405  ;;  %v9197_v31 = vpack.c.bf16 %v9699_v54, %v9698_v33 }
 0x6c2   : > { %9925 = vpow2.f32 %v3486_v16  ;;  %3684 = vmatprep.mubr.f32.mxu0 %v9916_v29  ;;  %v3446_v55 = vsub.f32 %v12217_v42, %v3406_v6  ;;  %v3447_v23 = vsub.f32 %v12220_v44, %v3406_v6  ;;  %3827 = vrot.lane.b32.xlu1 %v12123_v9, %s10789_s6  ;;  %v12414_v1 = vadd.f32 %v9916_v29, %v9914_v15 }
 0x6c3   : > { %9927 = vpow2.f32 %v3488_v4  ;;  %3685 = vmatmul.mubr.f32.gmra.mrb[20].mxu0 %v9914_v15  ;;  %9796 = vrot.lane.b32.xlu0 %v12025_v5, %s10790_s27  ;;  %v9694_v44 = vunpack.i.h.bf16 %v12324_v61  ;;  %v9703_v6 = vunpack.i.l.bf16 %v12332_v56 }
 0x6c4   : > { %v9918_v57 = vpop.eup %9917  ;;  %v3490_v21 = vmul.f32 1.442695, %v3446_v55  ;;  %v3492_v13 = vmul.f32 1.442695, %v3447_v23  ;;  %9190 = vmatpush3.bf16.xpose.msk.msra.mxu0 %vm11832_vm4, %v9188_v22  ;;  %v9704_v22 = vunpack.i.h.bf16 %v12332_v56  ;;  %v14556_v23 = vld [vmem:[#allocation41_spill] sm:$0xff] }
 0x6c5   : > { %v9920_v42 = vpop.eup %9919  ;;  %9193 = vmatprep.subr.msk.bf16.mxu0 %vm11832_vm4, %v9191_v50  ;;  %v3409_v43 = vpop.xlane.xlu1 %3408 }
 0x6c6   : > { %9929 = vpow2.f32 %v3490_v21  ;;  %v3448_v45 = vsub.f32 %v12225_v25, %v3409_v43  ;;  %v3449_v5 = vsub.f32 %v12228_v35, %v3409_v43  ;;  %3689 = vmatprep.mubr.f32.mxu0 %v9920_v42  ;;  %3829 = vrot.lane.b32.xlu1 %v12133_v24, %s10789_s6  ;;  %v12428_v52 = vadd.f32 %v9920_v42, %v9918_v57 }
 0x6c7   : > { %9931 = vpow2.f32 %v3492_v13  ;;  %3690 = vmatmul.mubr.f32.gmra.mrb[22].mxu0 %v9918_v57  ;;  %9801 = vrot.lane.b32.xlu0 %v12033_v11, %s10790_s27  ;;  %v9194_v35 = vpack.c.bf16 %v9694_v44, %v9693_v10  ;;  %v14555_v11 = vld [vmem:[#allocation33_spill] sm:$0xff]  ;;  %v14557_v57 = vld [vmem:[#allocation42_spill] sm:$0xff]  ;;  %v14558_v13 = vld [vmem:[#allocation35_spill] sm:$0xff]  ;;  %v9709_v44 = vunpack.i.h.bf16 %v12338_v0  ;;  %v9708_v10 = vunpack.i.l.bf16 %v12338_v0 }
 0x6c8   : > { %v9922_v61 = vpop.eup %9921  ;;  %v3494_v17 = vmul.f32 1.442695, %v3448_v45  ;;  %v3496_v25 = vmul.f32 1.442695, %v3449_v5  ;;  %v9200_v54 = vpack.c.bf16 %v9704_v22, %v9703_v6 }
 0x6c9   : > { %v9924_v63 = vpop.eup %9923  ;;  %v3412_v32 = vpop.xlane.xlu1 %3411 }
 0x6ca   : > { %9933 = vpow2.f32 %v3494_v17  ;;  %v3450_v38 = vsub.f32 %v14552_v37, %v3412_v32  ;;  %v3451_v62 = vsub.f32 %v14553_v28, %v3412_v32  ;;  %3694 = vmatprep.mubr.f32.mxu0 %v9924_v63  ;;  %3831 = vrot.lane.b32.xlu1 %v14554_v41, %s10789_s6  ;;  %v12438_v20 = vadd.f32 %v9924_v63, %v9922_v61 }
 0x6cb   : > { %9935 = vpow2.f32 %v3496_v25  ;;  %3695 = vmatmul.mubr.f32.gmra.mrb[24].mxu0 %v9922_v61  ;;  %9806 = vrot.lane.b32.xlu0 %v14555_v11, %s10790_s27  ;;  %v14559_v61 = vld [vmem:[#allocation43_spill] sm:$0xff]  ;;  %v14560_v25 = vld [vmem:[#allocation44_spill] sm:$0xff]  ;;  %v9714_v28 = vunpack.i.h.bf16 %v12342_v30  ;;  %v9719_v11 = vunpack.i.h.bf16 %v12352_v19 }
 0x6cc   : > { %v9926_v15 = vpop.eup %9925  ;;  %v3498_v16 = vmul.f32 1.442695, %v3450_v38  ;;  %v3500_v4 = vmul.f32 1.442695, %v3451_v62  ;;  %9196 = vmatpush3.bf16.xpose.msk.msra.mxu0 %vm11832_vm4, %v9194_v35  ;;  %v9203_v35 = vpack.c.bf16 %v9709_v44, %v9708_v10  ;;  %v9713_v62 = vunpack.i.l.bf16 %v12342_v30  ;;  %v10353_v30 = vld [vmem:[#allocation2 + $0x80] sm:$0xff]  ;;  %v10356_v44 = vld [vmem:[#allocation2 + $0x8] sm:$0xff] }
 0x6cd   : > { %v9928_v29 = vpop.eup %9927  ;;  %9199 = vmatprep.subr.msk.bf16.mxu0 %vm11832_vm4, %v9197_v31  ;;  %v3415_v55 = vpop.xlane.xlu0 %3414 }
 0x6ce   : > { %9937 = vpow2.f32 %v3498_v16  ;;  %3699 = vmatprep.mubr.f32.mxu0 %v9928_v29  ;;  %v3452_v50 = vsub.f32 %v14556_v23, %v3415_v55  ;;  %v3453_v21 = vsub.f32 %v14557_v57, %v3415_v55  ;;  %3833 = vrot.lane.b32.xlu1 %v14558_v13, %s10789_s6  ;;  %v12452_v42 = vadd.f32 %v9928_v29, %v9926_v15  ;;  %v14561_v16 = vld [vmem:[#allocation45_spill] sm:$0xff] }
 0x6cf   : > { %9939 = vpow2.f32 %v3500_v4  ;;  %3700 = vmatmul.mubr.f32.gmra.mrb[26].mxu0 %v9926_v15  ;;  %9811 = vrot.lane.b32.xlu0 %v12274_v8, %s10790_s27  ;;  %v9718_v15 = vunpack.i.l.bf16 %v12352_v19  ;;  %v10354_v29 = vld [vmem:[#allocation2 + $0x88] sm:$0xff] }
 0x6d0   : > { %v9930_v56 = vpop.eup %9929  ;;  %v3502_v43 = vmul.f32 1.442695, %v3452_v50  ;;  %v3504_v45 = vmul.f32 1.442695, %v3453_v21  ;;  %v9825_v22 = vpack.i.bf16 %v10354_v29, %v10353_v30 }
 0x6d1   : > { %v9932_v5 = vpop.eup %9931  ;;  %v3418_v33 = vpop.xlane.xlu1 %3417  ;;  %v9209_v21 = vpack.c.bf16 %v9719_v11, %v9718_v15  ;;  %v10359_v15 = vld [vmem:[#allocation2 + $0x10] sm:$0xff] }
 0x6d2   : > { %9941 = vpow2.f32 %v3502_v43  ;;  %v3454_v17 = vsub.f32 %v14559_v61, %v3418_v33  ;;  %v3455_v63 = vsub.f32 %v14560_v25, %v3418_v33  ;;  %3704 = vmatprep.mubr.f32.mxu0 %v9932_v5  ;;  %4574 = vrot.lane.b32.xlu1 %v12044_v18, %s10790_s27  ;;  %v12462_v0 = vadd.f32 %v9932_v5, %v9930_v56  ;;  %v14563_v61 = vld [vmem:[#allocation46_spill] sm:$0xff] }
 0x6d3   : > { %9943 = vpow2.f32 %v3504_v45  ;;  %3705 = vmatmul.mubr.f32.gmra.mrb[28].mxu0 %v9930_v56  ;;  %9816 = vrot.lane.b32.xlu0 %v12280_v39, %s10790_s27  ;;  %v9724_v45 = vunpack.i.h.bf16 %v12362_v60 }
 0x6d4   : > { %v9934_v8 = vpop.eup %9933  ;;  %v3506_v32 = vmul.f32 1.442695, %v3454_v17  ;;  %v3508_v37 = vmul.f32 1.442695, %v3455_v63  ;;  %9202 = vmatpush3.bf16.xpose.msk.msra.mxu0 %vm11832_vm4, %v9200_v54  ;;  %v9723_v54 = vunpack.i.l.bf16 %v12362_v60  ;;  %v9729_v63 = vunpack.i.h.bf16 %v12348_v58 }
 0x6d5   : > { %v9936_v38 = vpop.eup %9935  ;;  %9205 = vmatprep.subr.msk.bf16.mxu0 %vm11832_vm4, %v9203_v35  ;;  %v3421_v31 = vpop.xlane.xlu0 %3420  ;;  %v9728_v35 = vunpack.i.l.bf16 %v12348_v58 }
 0x6d6   : > { %9945 = vpow2.f32 %v3506_v32  ;;  %3709 = vmatprep.mubr.f32.mxu0 %v9936_v38  ;;  %v3456_v39 = vsub.f32 %v12257_v59, %v3421_v31  ;;  %4576 = vrot.lane.b32.xlu1 %v12046_v2, %s10790_s27  ;;  %v3457_v4 = vsub.f32 %v14561_v16, %v3421_v31  ;;  %v12480_v6 = vadd.f32 %v9936_v38, %v9934_v8  ;;  %v10358_v32 = vld [vmem:[#allocation2 + $0x98] sm:$0xff]  ;;  %v9732_v58 = vpop.permute.xlu1 %9731 }
 0x6d7   : > { %9947 = vpow2.f32 %v3508_v37  ;;  %3710 = vmatmul.mubr.f32.gmra.mrb[30].mxu0 %v9934_v8  ;;  %9821 = vrot.lane.b32.xlu0 %v12312_v47, %s10790_s27  ;;  %v9206_v59 = vpack.c.bf16 %v9714_v28, %v9713_v62  ;;  %v10355_v47 = vld [vmem:[#allocation2] sm:$0xff]  ;;  %v10357_v8 = vld [vmem:[#allocation2 + $0x90] sm:$0xff]  ;;  %v9212_v62 = vpack.c.bf16 %v9724_v45, %v9723_v54  ;;  %v9215_v11 = vpack.c.bf16 %v9729_v63, %v9728_v35 }
 0x6d8   : > { %v9938_v19 = vpop.eup %9937  ;;  %v3510_v55 = vmul.f32 1.442695, %v3456_v39  ;;  %v3512_v50 = vmul.f32 1.442695, %v3457_v4  ;;  %v9830_v10 = vpack.i.bf16 %v10356_v44, %v10355_v47  ;;  %v9835_v60 = vpack.i.bf16 %v10358_v32, %v10357_v8  ;;  %v10360_v39 = vld [vmem:[#allocation2 + $0x18] sm:$0xff]  ;;  %v10367_v35 = vld [vmem:[#allocation2 + $0x30] sm:$0xff] }
 0x6d9   : > { %v9940_v23 = vpop.eup %9939  ;;  %v9840_v16 = vpack.i.bf16 %v10360_v39, %v10359_v15  ;;  %v10368_v8 = vld [vmem:[#allocation2 + $0x38] sm:$0xff]  ;;  %v10375_v39 = vld [vmem:[#allocation2 + $0x50] sm:$0xff] }
 0x6da   : > { %9949 = vpow2.f32 %v3510_v55  ;;  %3714 = vmatprep.mubr.f32.mxu0 %v9940_v23  ;;  %4578 = vrot.lane.b32.xlu1 %v12053_v26, %s10790_s27  ;;  %v12484_v57 = vadd.f32 %v9940_v23, %v9938_v19  ;;  %v9860_v32 = vpack.i.bf16 %v10368_v8, %v10367_v35 }
 0x6db   : > { %9951 = vpow2.f32 %v3512_v50  ;;  %3715 = vmatmul.mubr.f32.gmra.mrb[32].mxu0 %v9938_v19  ;;  %9826 = vrot.lane.b32.xlu0 %v9825_v22, %s10791_s23  ;;  %v9734_v22 = vunpack.i.h.bf16 %v9732_v58  ;;  %v9733_v19 = vunpack.i.l.bf16 %v9732_v58  ;;  %v10374_v58 = vld [vmem:[#allocation2 + $0xd8] sm:$0xff] }
 0x6dc   : > { %14562 = vst [vmem:[#allocation39_spill] sm:$0xff] %v12484_v57  ;;  %v9942_v56 = vpop.eup %9941  ;;  %9208 = vmatpush3.bf16.xpose.msk.msra.mxu0 %vm11832_vm4, %v9206_v59  ;;  %v10361_v59 = vld [vmem:[#allocation2 + $0xa0] sm:$0xff] }
 0x6dd   : > { %v9944_v43 = vpop.eup %9943  ;;  %9211 = vmatprep.subr.msk.bf16.mxu0 %vm11832_vm4, %v9209_v21  ;;  %v3427_v5 = vpop.xlane.xlu0 %3426  ;;  %v10362_v21 = vld [vmem:[#allocation2 + $0xa8] sm:$0xff]  ;;  %v9218_v44 = vpack.c.bf16 %v9734_v22, %v9733_v19  ;;  %v14569_v19 = vld [vmem:[#allocation48_spill] sm:$0xff] }
 0x6de   : > { %3719 = vmatprep.mubr.f32.mxu0 %v9944_v43  ;;  %v3460_v33 = vsub.f32 %v12265_v14, %v3427_v5  ;;  %v3461_v17 = vsub.f32 %v14563_v61, %v3427_v5  ;;  %4580 = vrot.lane.b32.xlu1 %v12063_v36, %s10790_s27  ;;  %v12497_v25 = vadd.f32 %v9944_v43, %v9942_v56  ;;  %v10364_v43 = vld [vmem:[#allocation2 + $0x28] sm:$0xff]  ;;  %v10365_v61 = vld [vmem:[#allocation2 + $0xb0] sm:$0xff] }
 0x6df   : > { %3720 = vmatmul.mubr.f32.gmra.mrb[34].mxu0 %v9942_v56  ;;  %9831 = vrot.lane.b32.xlu0 %v9830_v10, %s10791_s23  ;;  %v9845_v47 = vpack.i.bf16 %v10362_v21, %v10361_v59  ;;  %v10363_v56 = vld [vmem:[#allocation2 + $0x20] sm:$0xff]  ;;  %v10378_v59 = vld [vmem:[#allocation2 + $0xe8] sm:$0xff] }
 0x6e0   : > { %14564 = vst [vmem:[#allocation40_spill] sm:$0xff] %v12497_v25  ;;  %v9946_v37 = vpop.eup %9945  ;;  %v3518_v38 = vmul.f32 1.442695, %v3460_v33  ;;  %v3520_v14 = vmul.f32 1.442695, %v3461_v17  ;;  %v9850_v45 = vpack.i.bf16 %v10364_v43, %v10363_v56  ;;  %v10366_v17 = vld [vmem:[#allocation2 + $0xb8] sm:$0xff] }
 0x6e1   : > { %v9948_v28 = vpop.eup %9947  ;;  %v9737_v30 = vpop.permute.xlu0 %9736  ;;  %v9855_v63 = vpack.i.bf16 %v10366_v17, %v10365_v61  ;;  %v14570_v56 = vld [vmem:[#allocation49_spill] sm:$0xff] }
 0x6e2   : > { %9953 = vpow2.f32 %v3518_v38  ;;  %3724 = vmatprep.mubr.f32.mxu0 %v9948_v28  ;;  %4582 = vrot.lane.b32.xlu1 %v12067_v12, %s10790_s27  ;;  %v12504_v31 = vadd.f32 %v9948_v28, %v9946_v37  ;;  %v9739_v23 = vunpack.i.h.bf16 %v9737_v30  ;;  %v9738_v50 = vunpack.i.l.bf16 %v9737_v30  ;;  %v10372_v28 = vld [vmem:[#allocation2 + $0x48] sm:$0xff]  ;;  %v10379_v17 = vld [vmem:[#allocation2 + $0x60] sm:$0xff] }
 0x6e3   : > { %9955 = vpow2.f32 %v3520_v14  ;;  %3725 = vmatmul.mubr.f32.gmra.mrb[36].mxu0 %v9946_v37  ;;  %9836 = vrot.lane.b32.xlu0 %v9835_v60, %s10791_s23  ;;  %v10369_v60 = vld [vmem:[#allocation2 + $0xc0] sm:$0xff]  ;;  %v10370_v37 = vld [vmem:[#allocation2 + $0xc8] sm:$0xff] }
 0x6e4   : > { %14565 = vst [vmem:[#allocation34_spill] sm:$0xff] %v12504_v31  ;;  %v9950_v4 = vpop.eup %9949  ;;  %9214 = vmatpush3.bf16.xpose.msk.msra.mxu0 %vm11832_vm4, %v9212_v62  ;;  %v9221_v10 = vpack.c.bf16 %v9739_v23, %v9738_v50  ;;  %v9865_v38 = vpack.i.bf16 %v10370_v37, %v10369_v60  ;;  %v10371_v14 = vld [vmem:[#allocation2 + $0x40] sm:$0xff] }
 0x6e5   : > { %v9952_v29 = vpop.eup %9951  ;;  %9217 = vmatprep.subr.msk.bf16.mxu0 %vm11832_vm4, %v9215_v11  ;;  %v9870_v62 = vpack.i.bf16 %v10372_v28, %v10371_v14  ;;  %v10373_v11 = vld [vmem:[#allocation2 + $0xd0] sm:$0xff]  ;;  %v10377_v50 = vld [vmem:[#allocation2 + $0xe0] sm:$0xff]  ;;  %v10382_v28 = vld [vmem:[#allocation2 + $0xf8] sm:$0xff] }
 0x6e6   : > { %3729 = vmatprep.mubr.f32.mxu0 %v9952_v29  ;;  %4584 = vrot.lane.b32.xlu1 %v12077_v40, %s10790_s27  ;;  %v12513_v55 = vadd.f32 %v9952_v29, %v9950_v4  ;;  %v9875_v15 = vpack.i.bf16 %v10374_v58, %v10373_v11  ;;  %v14568_v29 = vld [vmem:[#allocation47_spill] sm:$0xff]  ;;  %v9885_v21 = vpack.i.bf16 %v10378_v59, %v10377_v50 }
 0x6e7   : > { %3730 = vmatmul.mubr.f32.gmra.mrb[38].mxu0 %v9950_v4  ;;  %9841 = vrot.lane.b32.xlu0 %v9840_v16, %s10791_s23  ;;  %v10376_v16 = vld [vmem:[#allocation2 + $0x58] sm:$0xff]  ;;  %v10381_v14 = vld [vmem:[#allocation2 + $0xf0] sm:$0xff] }
 0x6e8   : > { %14566 = vst [vmem:[#allocation33_spill] sm:$0xff] %v12513_v55  ;;  %v9880_v4 = vpack.i.bf16 %v10376_v16, %v10375_v39  ;;  %v14572_v39 = vld [vmem:[#allocation51_spill] sm:$0xff] }
 0x6ea   : > { %4586 = vrot.lane.b32.xlu1 %v12081_v27, %s10790_s27 }
 0x6eb   : > { %9846 = vrot.lane.b32.xlu0 %v9845_v47, %s10791_s23 }
 0x6ec   : > { %v12519_v5 = vpop.eup %9953  ;;  %9220 = vmatpush3.bf16.xpose.msk.msra.mxu0 %vm11832_vm4, %v9218_v44 }
 0x6ed   : > { %v12523_v54 = vpop.eup %9955  ;;  %9223 = vmatprep.subr.msk.bf16.mxu0 %vm11832_vm4, %v9221_v10 }
 0x6ee   : > { %4588 = vrot.lane.b32.xlu1 %v12091_v34, %s10790_s27  ;;  %v12531_v33 = vadd.f32 %v12523_v54, %v12519_v5 }
 0x6ef   : > { %9851 = vrot.lane.b32.xlu0 %v9850_v45, %s10791_s23  ;;  %v14571_v45 = vld [vmem:[#allocation50_spill] sm:$0xff] }
 0x6f0   : > { %14567 = vst [vmem:[#allocation41_spill] sm:$0xff] %v12531_v33 }
 0x6f2   : > { %4590 = vrot.lane.b32.xlu1 %v12095_v46, %s10790_s27 }
 0x6f3   : > { %9856 = vrot.lane.b32.xlu0 %v9855_v63, %s10791_s23  ;;  %v10380_v63 = vld [vmem:[#allocation2 + $0x68] sm:$0xff] }
 0x6f4   : > { %v9890_v35 = vpack.i.bf16 %v10380_v63, %v10379_v17 }
 0x6f6   : > { %4592 = vrot.lane.b32.xlu1 %v12105_v48, %s10790_s27 }
 0x6f7   : > { %9861 = vrot.lane.b32.xlu0 %v9860_v32, %s10791_s23 }
 0x6fa   : > { %4594 = vrot.lane.b32.xlu1 %v12109_v49, %s10790_s27 }
 0x6fb   : > { %9866 = vrot.lane.b32.xlu0 %v9865_v38, %s10791_s23 }
 0x6fe   : > { %4596 = vrot.lane.b32.xlu1 %v12119_v3, %s10790_s27 }
 0x6ff   : > { %9871 = vrot.lane.b32.xlu0 %v9870_v62, %s10791_s23  ;;  %v9895_v62 = vpack.i.bf16 %v10382_v28, %v10381_v14 }
 0x702   : > { %4598 = vrot.lane.b32.xlu1 %v12123_v9, %s10790_s27 }
 0x703   : > { %9876 = vrot.lane.b32.xlu0 %v9875_v15, %s10791_s23 }
 0x706   : > { %4600 = vrot.lane.b32.xlu1 %v12133_v24, %s10790_s27  ;;  %v3424_v30 = vpop.xlane.xlu1 %3423 }
 0x707   : > { %v3458_v22 = vsub.f32 %v14568_v29, %v3424_v30  ;;  %v3459_v23 = vsub.f32 %v14569_v19, %v3424_v30  ;;  %9881 = vrot.lane.b32.xlu0 %v9880_v4, %s10791_s23  ;;  %v14573_v4 = vld [vmem:[#allocation52_spill] sm:$0xff]  ;;  %v10383_v29 = vld [vmem:[#allocation2 + $0x70] sm:$0xff] }
 0x709   : > { %v3514_v47 = vmul.f32 1.442695, %v3458_v22  ;;  %v3516_v44 = vmul.f32 1.442695, %v3459_v23  ;;  %v10384_v22 = vld [vmem:[#allocation2 + $0x78] sm:$0xff] }
 0x70a   : > { %4602 = vrot.lane.b32.xlu1 %v14554_v41, %s10790_s27  ;;  %v3430_v10 = vpop.xlane.xlu1 %3429  ;;  %v9900_v19 = vpack.i.bf16 %v10384_v22, %v10383_v29 }
 0x70b   : > { %9957 = vpow2.f32 %v3514_v47  ;;  %v3462_v43 = vsub.f32 %v14570_v56, %v3430_v10  ;;  %v3463_v61 = vsub.f32 %v14571_v45, %v3430_v10  ;;  %9886 = vrot.lane.b32.xlu0 %v9885_v21, %s10791_s23 }
 0x70c   : > { %9959 = vpow2.f32 %v3516_v44 }
 0x70d   : > { %v3522_v8 = vmul.f32 1.442695, %v3462_v43  ;;  %v3524_v32 = vmul.f32 1.442695, %v3463_v61 }
 0x70e   : > { %4604 = vrot.lane.b32.xlu1 %v14558_v13, %s10790_s27  ;;  %v9742_v60 = vpop.permute.xlu1 %9741  ;;  %s14730_s27 = sld [smem:[#allocation125_spill]] }
 0x70f   : > { %9961 = vpow2.f32 %v3522_v8  ;;  %v9744_v37 = vunpack.i.h.bf16 %v9742_v60  ;;  %v9743_v38 = vunpack.i.l.bf16 %v9742_v60  ;;  %9891 = vrot.lane.b32.xlu0 %v9890_v35, %s10791_s23 }
 0x710   : > { %9963 = vpow2.f32 %v3524_v32 }
 0x711   : > { %v9224_v11 = vpack.c.bf16 %v9744_v37, %v9743_v38 }
 0x712   : > { %5347 = vrot.lane.b32.xlu1 %v12046_v2, %s10791_s23  ;;  %v3804_v58 = vpop.permute.xlu1 %3803  ;;  %v3433_v15 = vpop.xlane.xlu0 %3432 }
 0x713   : > { %v3464_v16 = vsub.f32 %v14572_v39, %v3433_v15  ;;  %v3465_v30 = vsub.f32 %v14573_v4, %v3433_v15  ;;  %9896 = vrot.lane.b32.xlu0 %v9895_v62, %s10791_s23  ;;  %9226 = vmatpush3.bf16.xpose.msk.msra.mxu0 %vm11832_vm4, %v9224_v11 }
 0x715   : > { %v9958_v23 = vpop.eup %9957  ;;  %v3526_v50 = vmul.f32 1.442695, %v3464_v16  ;;  %v3528_v59 = vmul.f32 1.442695, %v3465_v30 }
 0x716   : > { %v9960_v21 = vpop.eup %9959  ;;  %5351 = vrot.lane.b32.xlu1 %v12063_v36, %s10791_s23  ;;  %v3806_v2 = vpop.permute.xlu1 %3805 }
 0x717   : > { %v9747_v47 = vpop.permute.xlu0 %9746  ;;  %9965 = vpow2.f32 %v3526_v50  ;;  %3734 = vmatprep.mubr.f32.mxu0 %v9960_v21  ;;  %9901 = vrot.lane.b32.xlu0 %v9900_v19, %s10791_s23  ;;  %v12572_v56 = vadd.f32 %v9960_v21, %v9958_v23 }
 0x718   : > { %v9749_v44 = vunpack.i.h.bf16 %v9747_v47  ;;  %v9748_v10 = vunpack.i.l.bf16 %v9747_v47  ;;  %9967 = vpow2.f32 %v3528_v59  ;;  %3735 = vmatmul.mubr.f32.gmra.mrb[40].mxu0 %v9958_v23 }
 0x719   : > { %14574 = vst [vmem:[#allocation42_spill] sm:$0xff] %v12572_v56  ;;  %v9962_v43 = vpop.eup %9961  ;;  %3739 = vmatprep.mubr.f32.mxu0 %v12523_v54 }
 0x71a   : > { %v9259_v45 = vpack.c.bf16 %v9749_v44, %v9748_v10  ;;  %v9964_v61 = vpop.eup %9963  ;;  %5355 = vrot.lane.b32.xlu1 %v12077_v40, %s10791_s23  ;;  %v3808_v36 = vpop.permute.xlu1 %3807 }
 0x71b   : > { %v9752_v17 = vpop.permute.xlu0 %9751  ;;  %5345 = vrot.lane.b32.xlu0 %v12044_v18, %s10791_s23  ;;  %v12581_v63 = vadd.f32 %v9964_v61, %v9962_v43 }
 0x71c   : > { %9261 = vmatprep.subr.msk.bf16.mxu0 %vm11832_vm4, %v9259_v45  ;;  %3740 = vmatmul.mubr.f32.gmra.mrb[42].mxu0 %v12519_v5  ;;  %v9754_v8 = vunpack.i.h.bf16 %v9752_v17  ;;  %v9753_v18 = vunpack.i.l.bf16 %v9752_v17 }
 0x71d   : > { %14575 = vst [vmem:[#allocation35_spill] sm:$0xff] %v12581_v63  ;;  %3744 = vmatprep.mubr.f32.mxu0 %v9964_v61 }
 0x71e   : > { %5359 = vrot.lane.b32.xlu1 %v12091_v34, %s10791_s23  ;;  %v3810_v54 = vpop.permute.xlu1 %3809 }
 0x71f   : > { %v9757_v35 = vpop.permute.xlu0 %9756  ;;  %5349 = vrot.lane.b32.xlu0 %v12053_v26, %s10791_s23  ;;  %v9262_v26 = vpack.c.bf16 %v9754_v8, %v9753_v18 }
 0x720   : > { %3745 = vmatmul.mubr.f32.gmra.mrb[44].mxu0 %v9962_v43  ;;  %v9759_v60 = vunpack.i.h.bf16 %v9757_v35  ;;  %v9758_v37 = vunpack.i.l.bf16 %v9757_v35 }
 0x721   : > { %v9966_v40 = vpop.eup %9965 }
 0x722   : > { %v9968_v32 = vpop.eup %9967  ;;  %5363 = vrot.lane.b32.xlu1 %v12105_v48, %s10791_s23  ;;  %v3812_v5 = vpop.permute.xlu1 %3811  ;;  %v9265_v14 = vpack.c.bf16 %v9759_v60, %v9758_v37 }
 0x723   : > { %v9762_v38 = vpop.permute.xlu0 %9761  ;;  %3749 = vmatprep.mubr.f32.mxu0 %v9968_v32  ;;  %5353 = vrot.lane.b32.xlu0 %v12067_v12, %s10791_s23  ;;  %v12592_v34 = vadd.f32 %v9968_v32, %v9966_v40 }
 0x724   : > { %3750 = vmatmul.mubr.f32.gmra.mrb[46].mxu0 %v9966_v40  ;;  %v9764_v48 = vunpack.i.h.bf16 %v9762_v38  ;;  %v9763_v11 = vunpack.i.l.bf16 %v9762_v38 }
 0x725   : > { %14576 = vst [vmem:[#allocation43_spill] sm:$0xff] %v12592_v34  ;;  %8051 = vmatprep.mubr.msk.f32.mxu0 %vm3080_vm3, %v3804_v58 }
 0x726   : > { %5367 = vrot.lane.b32.xlu1 %v12119_v3, %s10791_s23  ;;  %v3814_v28 = vpop.permute.xlu1 %3813 }
 0x727   : > { %v9767_v62 = vpop.permute.xlu0 %9766  ;;  %5357 = vrot.lane.b32.xlu0 %v12081_v27, %s10791_s23  ;;  %v9268_v27 = vpack.c.bf16 %v9764_v48, %v9763_v11 }
 0x728   : > { %8052 = vmatmul.mubr.msk.f32.vlgmr.msra.gmra.mrb[48].mxu0 %vm3080_vm3, %v3804_v58  ;;  %v9769_v12 = vunpack.i.h.bf16 %v9767_v62  ;;  %v9768_v15 = vunpack.i.l.bf16 %v9767_v62 }
 0x729   : > { %9264 = vmatpush3.bf16.xpose.msk.msra.mxu0 %vm11832_vm4, %v9262_v26  ;;  %8053 = vmatprep.mubr.msk.f32.mxu0 %vm3080_vm3, %v3806_v2 }
 0x72a   : > { %5371 = vrot.lane.b32.xlu1 %v12133_v24, %s10791_s23  ;;  %v3816_v3 = vpop.permute.xlu1 %3815  ;;  %9267 = vmatprep.subr.msk.bf16.mxu0 %vm11832_vm4, %v9265_v14  ;;  %v9271_v58 = vpack.c.bf16 %v9769_v12, %v9768_v15 }
 0x72b   : > { %v9772_v39 = vpop.permute.xlu0 %9771  ;;  %5361 = vrot.lane.b32.xlu0 %v12095_v46, %s10791_s23 }
 0x72c   : > { %8054 = vmatmul.mubr.msk.f32.gmra.mrb[50].mxu0 %vm3080_vm3, %v3806_v2  ;;  %v9774_v24 = vunpack.i.h.bf16 %v9772_v39  ;;  %v9773_v30 = vunpack.i.l.bf16 %v9772_v39 }
 0x72d   : > { %8055 = vmatprep.mubr.msk.f32.mxu0 %vm3080_vm3, %v3808_v36 }
 0x72e   : > { %5375 = vrot.lane.b32.xlu1 %v14558_v13, %s10791_s23  ;;  %v3818_v16 = vpop.permute.xlu1 %3817 }
 0x72f   : > { %v9777_v4 = vpop.permute.xlu0 %9776  ;;  %5365 = vrot.lane.b32.xlu0 %v12109_v49, %s10791_s23  ;;  %v9274_v49 = vpack.c.bf16 %v9774_v24, %v9773_v30 }
 0x730   : > { %8056 = vmatmul.mubr.msk.f32.gmra.mrb[52].mxu0 %vm3080_vm3, %v3808_v36  ;;  %v9779_v46 = vunpack.i.h.bf16 %v9777_v4  ;;  %v9778_v29 = vunpack.i.l.bf16 %v9777_v4 }
 0x731   : > { %9270 = vmatpush3.bf16.xpose.msk.msra.mxu0 %vm11832_vm4, %v9268_v27  ;;  %8057 = vmatprep.mubr.msk.f32.mxu0 %vm3080_vm3, %v3810_v54 }
 0x732   : > { %v3820_v22 = vpop.permute.xlu1 %3819  ;;  %9273 = vmatprep.subr.msk.bf16.mxu0 %vm11832_vm4, %v9271_v58  ;;  %v9277_v13 = vpack.c.bf16 %v9779_v46, %v9778_v29 }
 0x733   : > { %v9782_v19 = vpop.permute.xlu0 %9781  ;;  %5369 = vrot.lane.b32.xlu0 %v12123_v9, %s10791_s23 }
 0x734   : > { %8058 = vmatmul.mubr.msk.f32.gmra.mrb[54].mxu0 %vm3080_vm3, %v3810_v54  ;;  %v9784_v59 = vunpack.i.h.bf16 %v9782_v19  ;;  %v9783_v21 = vunpack.i.l.bf16 %v9782_v19 }
 0x735   : > { %8059 = vmatprep.mubr.msk.f32.mxu0 %vm3080_vm3, %v3812_v5 }
 0x736   : > { %v3822_v23 = vpop.permute.xlu1 %3821  ;;  %v9280_v10 = vpack.c.bf16 %v9784_v59, %v9783_v21 }
 0x737   : > { %v9787_v50 = vpop.permute.xlu0 %9786  ;;  %5373 = vrot.lane.b32.xlu0 %v14554_v41, %s10791_s23  ;;  %s10629_s23 = scalar_lea.vmem %s14284_s30, 2048 }
 0x738   : > { %8060 = vmatmul.mubr.msk.f32.gmra.mrb[56].mxu0 %vm3080_vm3, %v3812_v5  ;;  %v9789_v9 = vunpack.i.h.bf16 %v9787_v50  ;;  %v9788_v2 = vunpack.i.l.bf16 %v9787_v50  ;;  %p10630_p13 = scmp.ne.s32.totalorder %s14284_s30, %s10629_s23 }
 0x739   : > { %9276 = vmatpush3.bf16.xpose.msk.msra.mxu0 %vm11832_vm4, %v9274_v49  ;;  %8061 = vmatprep.mubr.msk.f32.mxu0 %vm3080_vm3, %v3814_v28 }
 0x73a   : > { %v3824_v47 = vpop.permute.xlu1 %3823  ;;  %9279 = vmatprep.subr.msk.bf16.mxu0 %vm11832_vm4, %v9277_v13  ;;  %v9283_v41 = vpack.c.bf16 %v9789_v9, %v9788_v2  ;;  %p10631_p12 = pnand %p10630_p13, %p14735_p11 }
 0x73b   : > { %v9792_v44 = vpop.permute.xlu0 %9791 }
 0x73c   : > { %8062 = vmatmul.mubr.msk.f32.gmra.mrb[58].mxu0 %vm3080_vm3, %v3814_v28  ;;  %v9794_v61 = vunpack.i.h.bf16 %v9792_v44  ;;  %v9793_v36 = vunpack.i.l.bf16 %v9792_v44  ;;  %p10632_p9 = pneg %p10631_p12 }
 0x73d   : > { %8063 = vmatprep.mubr.msk.f32.mxu0 %vm3080_vm3, %v3816_v3 }
 0x73e   : > { %v3826_v43 = vpop.permute.xlu1 %3825  ;;  %v9286_v8 = vpack.c.bf16 %v9794_v61, %v9793_v36 }
 0x73f   : > { %v9797_v45 = vpop.permute.xlu0 %9796 }
 0x740   : > { %8064 = vmatmul.mubr.msk.f32.gmra.mrb[60].mxu0 %vm3080_vm3, %v3816_v3  ;;  %v9799_v17 = vunpack.i.h.bf16 %v9797_v45  ;;  %v9798_v54 = vunpack.i.l.bf16 %v9797_v45 }
 0x741   : > { %9282 = vmatpush3.bf16.xpose.msk.msra.mxu0 %vm11832_vm4, %v9280_v10  ;;  %8065 = vmatprep.mubr.msk.f32.mxu0 %vm3080_vm3, %v3818_v16 }
 0x742   : > { %v3828_v35 = vpop.permute.xlu1 %3827  ;;  %9285 = vmatprep.subr.msk.bf16.mxu0 %vm11832_vm4, %v9283_v41  ;;  %v9289_v18 = vpack.c.bf16 %v9799_v17, %v9798_v54 }
 0x743   : > { %v9802_v40 = vpop.permute.xlu0 %9801 }
 0x744   : > { %8066 = vmatmul.mubr.msk.f32.gmra.mrb[62].mxu0 %vm3080_vm3, %v3818_v16  ;;  %v9804_v37 = vunpack.i.h.bf16 %v9802_v40  ;;  %v9803_v5 = vunpack.i.l.bf16 %v9802_v40 }
 0x745   : > { %8067 = vmatprep.mubr.msk.f32.mxu0 %vm3080_vm3, %v3820_v22 }
 0x746   : > { %v3830_v32 = vpop.permute.xlu1 %3829  ;;  %v9292_v62 = vpack.c.bf16 %v9804_v37, %v9803_v5 }
 0x747   : > { %v9807_v60 = vpop.permute.xlu0 %9806 }
 0x748   : > { %8068 = vmatmul.mubr.msk.f32.gmra.mrb[64].mxu0 %vm3080_vm3, %v3820_v22  ;;  %v9809_v38 = vunpack.i.h.bf16 %v9807_v60  ;;  %v9808_v26 = vunpack.i.l.bf16 %v9807_v60 }
 0x749   : > { %9288 = vmatpush3.bf16.xpose.msk.msra.mxu0 %vm11832_vm4, %v9286_v8  ;;  %8069 = vmatprep.mubr.msk.f32.mxu0 %vm3080_vm3, %v3822_v23 }
 0x74a   : > { %v3832_v14 = vpop.permute.xlu1 %3831  ;;  %9291 = vmatprep.subr.msk.bf16.mxu0 %vm11832_vm4, %v9289_v18  ;;  %v9295_v48 = vpack.c.bf16 %v9809_v38, %v9808_v26 }
 0x74b   : > { %v9812_v28 = vpop.permute.xlu0 %9811 }
 0x74c   : > { %8070 = vmatmul.mubr.msk.f32.gmra.mrb[66].mxu0 %vm3080_vm3, %v3822_v23  ;;  %v9814_v15 = vunpack.i.h.bf16 %v9812_v28  ;;  %v9813_v3 = vunpack.i.l.bf16 %v9812_v28 }
 0x74d   : > { %8071 = vmatprep.mubr.msk.f32.mxu0 %vm3080_vm3, %v3824_v47 }
 0x74e   : > { %v3834_v11 = vpop.permute.xlu1 %3833  ;;  %v9298_v4 = vpack.c.bf16 %v9814_v15, %v9813_v3 }
 0x74f   : > { %v9817_v12 = vpop.permute.xlu0 %9816 }
 0x750   : > { %8072 = vmatmul.mubr.msk.f32.gmra.mrb[68].mxu0 %vm3080_vm3, %v3824_v47  ;;  %v9819_v39 = vunpack.i.h.bf16 %v9817_v12  ;;  %v9818_v27 = vunpack.i.l.bf16 %v9817_v12 }
 0x751   : > { %9294 = vmatpush3.bf16.xpose.msk.msra.mxu0 %vm11832_vm4, %v9292_v62  ;;  %8073 = vmatprep.mubr.msk.f32.mxu0 %vm3080_vm3, %v3826_v43 }
 0x752   : > { %v4575_v58 = vpop.permute.xlu1 %4574  ;;  %9297 = vmatprep.subr.msk.bf16.mxu0 %vm11832_vm4, %v9295_v48  ;;  %v9301_v24 = vpack.c.bf16 %v9819_v39, %v9818_v27 }
 0x753   : > { %v9822_v16 = vpop.permute.xlu0 %9821 }
 0x754   : > { %8074 = vmatmul.mubr.msk.f32.gmra.mrb[70].mxu0 %vm3080_vm3, %v3826_v43  ;;  %v9824_v29 = vunpack.i.h.bf16 %v9822_v16  ;;  %v9823_v22 = vunpack.i.l.bf16 %v9822_v16 }
 0x755   : > { %8075 = vmatprep.mubr.msk.f32.mxu0 %vm3080_vm3, %v3828_v35 }
 0x756   : > { %v4577_v30 = vpop.permute.xlu1 %4576  ;;  %v9304_v50 = vpack.c.bf16 %v9824_v29, %v9823_v22 }
 0x757   : > { %v9827_v46 = vpop.permute.xlu0 %9826 }
 0x758   : > { %8076 = vmatmul.mubr.msk.f32.gmra.mrb[72].mxu0 %vm3080_vm3, %v3828_v35  ;;  %v9829_v19 = vunpack.i.h.bf16 %v9827_v46  ;;  %v9828_v49 = vunpack.i.l.bf16 %v9827_v46 }
 0x759   : > { %9300 = vmatpush3.bf16.xpose.msk.msra.mxu0 %vm11832_vm4, %v9298_v4  ;;  %8077 = vmatprep.mubr.msk.f32.mxu0 %vm3080_vm3, %v3830_v32 }
 0x75a   : > { %v4579_v13 = vpop.permute.xlu1 %4578  ;;  %9303 = vmatprep.subr.msk.bf16.mxu0 %vm11832_vm4, %v9301_v24  ;;  %v9339_v59 = vpack.c.bf16 %v9829_v19, %v9828_v49 }
 0x75b   : > { %v9832_v23 = vpop.permute.xlu0 %9831 }
 0x75c   : > { %8078 = vmatmul.mubr.msk.f32.gmra.mrb[74].mxu0 %vm3080_vm3, %v3830_v32  ;;  %v9834_v2 = vunpack.i.h.bf16 %v9832_v23  ;;  %v9833_v47 = vunpack.i.l.bf16 %v9832_v23 }
 0x75d   : > { %8079 = vmatprep.mubr.msk.f32.mxu0 %vm3080_vm3, %v3832_v14 }
 0x75e   : > { %v4581_v21 = vpop.permute.xlu1 %4580  ;;  %v9342_v45 = vpack.c.bf16 %v9834_v2, %v9833_v47 }
 0x75f   : > { %v9837_v9 = vpop.permute.xlu0 %9836 }
 0x760   : > { %8080 = vmatmul.mubr.msk.f32.gmra.mrb[76].mxu0 %vm3080_vm3, %v3832_v14  ;;  %v9839_v44 = vunpack.i.h.bf16 %v9837_v9  ;;  %v9838_v10 = vunpack.i.l.bf16 %v9837_v9 }
 0x761   : > { %9306 = vmatpush3.bf16.xpose.msk.msra.mxu0 %vm11832_vm4, %v9304_v50  ;;  %8081 = vmatprep.mubr.msk.f32.mxu0 %vm3080_vm3, %v3834_v11 }
 0x762   : > { %v4583_v41 = vpop.permute.xlu1 %4582  ;;  %9341 = vmatprep.subr.msk.bf16.mxu0 %vm11832_vm4, %v9339_v59  ;;  %v9345_v61 = vpack.c.bf16 %v9839_v44, %v9838_v10 }
 0x763   : > { %v9842_v43 = vpop.permute.xlu0 %9841 }
 0x764   : > { %8082 = vmatmul.mubr.msk.f32.gmra.mrb[78].mxu0 %vm3080_vm3, %v3834_v11  ;;  %v9844_v54 = vunpack.i.h.bf16 %v9842_v43  ;;  %v9843_v35 = vunpack.i.l.bf16 %v9842_v43 }
 0x765   : > { %8195 = vmatprep.mubr.msk.f32.mxu0 %vm3080_vm3, %v4575_v58 }
 0x766   : > { %v4585_v36 = vpop.permute.xlu1 %4584  ;;  %v9348_v60 = vpack.c.bf16 %v9844_v54, %v9843_v35 }
 0x767   : > { %v9847_v17 = vpop.permute.xlu0 %9846 }
 0x768   : > { %8196 = vmatmul.mubr.msk.f32.vlgmr.msra.gmra.mrb[80].mxu0 %vm3080_vm3, %v4575_v58  ;;  %v9849_v40 = vunpack.i.h.bf16 %v9847_v17  ;;  %v9848_v8 = vunpack.i.l.bf16 %v9847_v17 }
 0x769   : > { %9344 = vmatpush3.bf16.xpose.msk.msra.mxu0 %vm11832_vm4, %v9342_v45  ;;  %8197 = vmatprep.mubr.msk.f32.mxu0 %vm3080_vm3, %v4577_v30 }
 0x76a   : > { %v4587_v18 = vpop.permute.xlu1 %4586  ;;  %9347 = vmatprep.subr.msk.bf16.mxu0 %vm11832_vm4, %v9345_v61  ;;  %v9351_v37 = vpack.c.bf16 %v9849_v40, %v9848_v8 }
 0x76b   : > { %v9852_v32 = vpop.permute.xlu0 %9851 }
 0x76c   : > { %8198 = vmatmul.mubr.msk.f32.gmra.mrb[82].mxu0 %vm3080_vm3, %v4577_v30  ;;  %v9854_v26 = vunpack.i.h.bf16 %v9852_v32  ;;  %v9853_v14 = vunpack.i.l.bf16 %v9852_v32 }
 0x76d   : > { %8199 = vmatprep.mubr.msk.f32.mxu0 %vm3080_vm3, %v4579_v13 }
 0x76e   : > { %v4589_v38 = vpop.permute.xlu1 %4588  ;;  %v9354_v11 = vpack.c.bf16 %v9854_v26, %v9853_v14 }
 0x76f   : > { %v9857_v5 = vpop.permute.xlu0 %9856 }
 0x770   : > { %8200 = vmatmul.mubr.msk.f32.gmra.mrb[84].mxu0 %vm3080_vm3, %v4579_v13  ;;  %v9859_v28 = vunpack.i.h.bf16 %v9857_v5  ;;  %v9858_v62 = vunpack.i.l.bf16 %v9857_v5 }
 0x771   : > { %9350 = vmatpush3.bf16.xpose.msk.msra.mxu0 %vm11832_vm4, %v9348_v60  ;;  %8201 = vmatprep.mubr.msk.f32.mxu0 %vm3080_vm3, %v4581_v21 }
 0x772   : > { %9353 = vmatprep.subr.msk.bf16.mxu0 %vm11832_vm4, %v9351_v37  ;;  %v9357_v12 = vpack.c.bf16 %v9859_v28, %v9858_v62  ;;  %v4591_v15 = vpop.permute.xlu1 %4590 }
 0x773   : > { %v9862_v48 = vpop.permute.xlu0 %9861 }
 0x774   : > { %8202 = vmatmul.mubr.msk.f32.gmra.mrb[86].mxu0 %vm3080_vm3, %v4581_v21  ;;  %v9864_v39 = vunpack.i.h.bf16 %v9862_v48  ;;  %v9863_v27 = vunpack.i.l.bf16 %v9862_v48 }
 0x775   : > { %8203 = vmatprep.mubr.msk.f32.mxu0 %vm3080_vm3, %v4583_v41 }
 0x776   : > { %v4593_v24 = vpop.permute.xlu1 %4592  ;;  %v9360_v30 = vpack.c.bf16 %v9864_v39, %v9863_v27 }
 0x777   : > { %v9867_v3 = vpop.permute.xlu0 %9866 }
 0x778   : > { %8204 = vmatmul.mubr.msk.f32.gmra.mrb[88].mxu0 %vm3080_vm3, %v4583_v41  ;;  %v9869_v58 = vunpack.i.h.bf16 %v9867_v3  ;;  %v9868_v16 = vunpack.i.l.bf16 %v9867_v3 }
 0x779   : > { %9356 = vmatpush3.bf16.xpose.msk.msra.mxu0 %vm11832_vm4, %v9354_v11  ;;  %8205 = vmatprep.mubr.msk.f32.mxu0 %vm3080_vm3, %v4585_v36 }
 0x77a   : > { %9359 = vmatprep.subr.msk.bf16.mxu0 %vm11832_vm4, %v9357_v12  ;;  %v9363_v46 = vpack.c.bf16 %v9869_v58, %v9868_v16  ;;  %v4595_v49 = vpop.permute.xlu1 %4594 }
 0x77b   : > { %v9872_v4 = vpop.permute.xlu0 %9871 }
 0x77c   : > { %8206 = vmatmul.mubr.msk.f32.gmra.mrb[90].mxu0 %vm3080_vm3, %v4585_v36  ;;  %v9874_v22 = vunpack.i.h.bf16 %v9872_v4  ;;  %v9873_v19 = vunpack.i.l.bf16 %v9872_v4 }
 0x77d   : > { %8207 = vmatprep.mubr.msk.f32.mxu0 %vm3080_vm3, %v4587_v18 }
 0x77e   : > { %v9366_v59 = vpack.c.bf16 %v9874_v22, %v9873_v19  ;;  %v4597_v2 = vpop.permute.xlu1 %4596 }
 0x77f   : > { %v9877_v29 = vpop.permute.xlu0 %9876 }
 0x780   : > { %8208 = vmatmul.mubr.msk.f32.gmra.mrb[92].mxu0 %vm3080_vm3, %v4587_v18  ;;  %v9879_v13 = vunpack.i.h.bf16 %v9877_v29  ;;  %v9878_v23 = vunpack.i.l.bf16 %v9877_v29 }
 0x781   : > { %9362 = vmatpush3.bf16.xpose.msk.msra.mxu0 %vm11832_vm4, %v9360_v30  ;;  %8209 = vmatprep.mubr.msk.f32.mxu0 %vm3080_vm3, %v4589_v38 }
 0x782   : > { %9365 = vmatprep.subr.msk.bf16.mxu0 %vm11832_vm4, %v9363_v46  ;;  %v9369_v21 = vpack.c.bf16 %v9879_v13, %v9878_v23  ;;  %v4599_v61 = vpop.permute.xlu1 %4598 }
 0x783   : > { %v9882_v50 = vpop.permute.xlu0 %9881 }
 0x784   : > { %8210 = vmatmul.mubr.msk.f32.gmra.mrb[94].mxu0 %vm3080_vm3, %v4589_v38  ;;  %v9884_v47 = vunpack.i.h.bf16 %v9882_v50  ;;  %v9883_v44 = vunpack.i.l.bf16 %v9882_v50 }
 0x785   : > { %8211 = vmatprep.mubr.msk.f32.mxu0 %vm3080_vm3, %v4591_v15 }
 0x786   : > { %v9372_v45 = vpack.c.bf16 %v9884_v47, %v9883_v44  ;;  %v4601_v38 = vpop.permute.xlu1 %4600 }
 0x787   : > { %v9887_v9 = vpop.permute.xlu0 %9886 }
 0x788   : > { %8212 = vmatmul.mubr.msk.f32.gmra.mrb[96].mxu0 %vm3080_vm3, %v4591_v15  ;;  %v9889_v10 = vunpack.i.h.bf16 %v9887_v9  ;;  %v9888_v41 = vunpack.i.l.bf16 %v9887_v9 }
 0x789   : > { %9368 = vmatpush3.bf16.xpose.msk.msra.mxu0 %vm11832_vm4, %v9366_v59  ;;  %8213 = vmatprep.mubr.msk.f32.mxu0 %vm3080_vm3, %v4593_v24 }
 0x78a   : > { %9371 = vmatprep.subr.msk.bf16.mxu0 %vm11832_vm4, %v9369_v21  ;;  %v9375_v36 = vpack.c.bf16 %v9889_v10, %v9888_v41  ;;  %v4603_v39 = vpop.permute.xlu1 %4602 }
 0x78b   : > { %v9892_v43 = vpop.permute.xlu0 %9891 }
 0x78c   : > { %8214 = vmatmul.mubr.msk.f32.gmra.mrb[98].mxu0 %vm3080_vm3, %v4593_v24  ;;  %v9894_v40 = vunpack.i.h.bf16 %v9892_v43  ;;  %v9893_v8 = vunpack.i.l.bf16 %v9892_v43 }
 0x78d   : > { %8215 = vmatprep.mubr.msk.f32.mxu0 %vm3080_vm3, %v4595_v49 }
 0x78e   : > { %v7971_v17 = vpop.f32.mrb[16].mxu0  ;;  %v9378_v14 = vpack.c.bf16 %v9894_v40, %v9893_v8  ;;  %v4605_v46 = vpop.permute.xlu1 %4604 }
 0x78f   : > { %v7972_v54 = vpop.f32.mrb[17].mxu0  ;;  %v9897_v18 = vpop.permute.xlu0 %9896 }
 0x790   : > { %v12715_v35 = vadd.f32 %v7972_v54, %v7971_v17  ;;  %8216 = vmatmul.mubr.msk.f32.gmra.mrb[100].mxu0 %vm3080_vm3, %v4595_v49  ;;  %v9899_v32 = vunpack.i.h.bf16 %v9897_v18  ;;  %v9898_v60 = vunpack.i.l.bf16 %v9897_v18 }
 0x791   : > { %9374 = vmatpush3.bf16.xpose.msk.msra.mxu0 %vm11832_vm4, %v9372_v45  ;;  %8217 = vmatprep.mubr.msk.f32.mxu0 %vm3080_vm3, %v4597_v2 }
 0x792   : > { %14577 = vst [vmem:[#allocation44_spill] sm:$0xff] %v12715_v35  ;;  %v7974_v37 = vpop.f32.mrb[18].mxu0  ;;  %9377 = vmatprep.subr.msk.bf16.mxu0 %vm11832_vm4, %v9375_v36  ;;  %v9381_v28 = vpack.c.bf16 %v9899_v32, %v9898_v60  ;;  %v5348_v59 = vpop.permute.xlu1 %5347 }
 0x793   : > { %v7975_v5 = vpop.f32.mrb[19].mxu0  ;;  %v9902_v11 = vpop.permute.xlu0 %9901 }
 0x794   : > { %v12723_v26 = vadd.f32 %v7975_v5, %v7974_v37  ;;  %8218 = vmatmul.mubr.msk.f32.gmra.mrb[102].mxu0 %vm3080_vm3, %v4597_v2  ;;  %v9904_v15 = vunpack.i.h.bf16 %v9902_v11  ;;  %v9903_v3 = vunpack.i.l.bf16 %v9902_v11 }
 0x795   : > { %8219 = vmatprep.mubr.msk.f32.mxu0 %vm3080_vm3, %v4599_v61 }
 0x796   : > { %14578 = vst [vmem:[#allocation45_spill] sm:$0xff] %v12723_v26  ;;  %v7977_v62 = vpop.f32.mrb[20].mxu0  ;;  %v9384_v4 = vpack.c.bf16 %v9904_v15, %v9903_v3  ;;  %v5352_v41 = vpop.permute.xlu1 %5351 }
 0x797   : > { %v7978_v48 = vpop.f32.mrb[21].mxu0  ;;  %v5346_v49 = vpop.permute.xlu0 %5345 }
 0x798   : > { %v12727_v12 = vadd.f32 %v7978_v48, %v7977_v62  ;;  %8220 = vmatmul.mubr.msk.f32.gmra.mrb[104].mxu0 %vm3080_vm3, %v4599_v61 }
 0x799   : > { %9380 = vmatpush3.bf16.xpose.msk.msra.mxu0 %vm11832_vm4, %v9378_v14  ;;  %8221 = vmatprep.mubr.msk.f32.mxu0 %vm3080_vm3, %v4601_v38 }
 0x79a   : > { %14579 = vst [vmem:[#allocation46_spill] sm:$0xff] %v12727_v12  ;;  %v7980_v27 = vpop.f32.mrb[22].mxu0  ;;  %9383 = vmatprep.subr.msk.bf16.mxu0 %vm11832_vm4, %v9381_v28  ;;  %v5356_v8 = vpop.permute.xlu1 %5355 }
 0x79b   : > { %v7981_v58 = vpop.f32.mrb[23].mxu0  ;;  %v5350_v2 = vpop.permute.xlu0 %5349 }
 0x79c   : > { %v12735_v16 = vadd.f32 %v7981_v58, %v7980_v27  ;;  %8222 = vmatmul.mubr.msk.f32.gmra.mrb[106].mxu0 %vm3080_vm3, %v4601_v38  ;;  %v4366_v27 = vld [vmem:[#allocation3 + $0x188] sm:$0xff]  ;;  %v4349_v58 = vld [vmem:[#allocation3 + $0x100] sm:$0xff] }
 0x79d   : > { %8223 = vmatprep.mubr.msk.f32.mxu0 %vm3080_vm3, %v4603_v39 }
 0x79e   : > { %14580 = vst [vmem:[#allocation47_spill] sm:$0xff] %v12735_v16  ;;  %v7983_v24 = vpop.f32.mrb[24].mxu0  ;;  %v5360_v38 = vpop.permute.xlu1 %5359 }
 0x79f   : > { %v7984_v30 = vpop.f32.mrb[25].mxu0  ;;  %v5354_v36 = vpop.permute.xlu0 %5353 }
 0x7a0   : > { %v12739_v29 = vadd.f32 %v7984_v30, %v7983_v24  ;;  %8224 = vmatmul.mubr.msk.f32.gmra.mrb[108].mxu0 %vm3080_vm3, %v4603_v39  ;;  %v4365_v39 = vld [vmem:[#allocation3 + $0x180] sm:$0xff]  ;;  %v4350_v30 = vld [vmem:[#allocation3 + $0x108] sm:$0xff] }
 0x7a1   : > { %9386 = vmatpush3.bf16.xpose.msk.msra.mxu0 %vm11832_vm4, %v9384_v4  ;;  %8225 = vmatprep.mubr.msk.f32.mxu0 %vm3080_vm3, %v4605_v46  ;;  %v9227_v24 = vpack.c.bf16 %v4366_v27, %v4365_v39 }
 0x7a2   : > { %14581 = vst [vmem:[#allocation48_spill] sm:$0xff] %v12739_v29  ;;  %v7986_v22 = vpop.f32.mrb[26].mxu0  ;;  %v5364_v28 = vpop.permute.xlu1 %5363 }
 0x7a3   : > { %v7987_v19 = vpop.f32.mrb[27].mxu0  ;;  %v5358_v37 = vpop.permute.xlu0 %5357  ;;  %9228 = vmatprep.subr.bf16.mxu1 %v9227_v24 }
 0x7a4   : > { %v12745_v13 = vadd.f32 %v7987_v19, %v7986_v22  ;;  %8226 = vmatmul.mubr.msk.f32.gmra.mrb[110].mxu0 %vm3080_vm3, %v4605_v46  ;;  %v9229_v46 = vpack.c.bf16 %v4350_v30, %v4349_v58  ;;  %v4367_v22 = vld [vmem:[#allocation3 + $0x190] sm:$0xff]  ;;  %v4368_v19 = vld [vmem:[#allocation3 + $0x198] sm:$0xff]  ;;  %v14593_v58 = vld [vmem:[#allocation37_spill] sm:$0xff] }
 0x7a5   : > { %8339 = vmatprep.mubr.msk.f32.mxu0 %vm3080_vm3, %v5346_v49  ;;  %v14594_v30 = vld [vmem:[#allocation38_spill] sm:$0xff] }
 0x7a6   : > { %14582 = vst [vmem:[#allocation49_spill] sm:$0xff] %v12745_v13  ;;  %v7989_v23 = vpop.f32.mrb[28].mxu0  ;;  %v5368_v48 = vpop.permute.xlu1 %5367  ;;  %9230 = vmatpush3.bf16.msra.mxu1 %v9229_v46 }
 0x7a7   : > { %v7990_v50 = vpop.f32.mrb[29].mxu0  ;;  %v5362_v14 = vpop.permute.xlu0 %5361 }
 0x7a8   : > { %v12749_v21 = vadd.f32 %v7990_v50, %v7989_v23  ;;  %8340 = vmatmul.mubr.msk.f32.vlgmr.msra.gmra.mrb[112].mxu0 %vm3080_vm3, %v5346_v49  ;;  %v4351_v49 = vld [vmem:[#allocation3 + $0x110] sm:$0xff]  ;;  %v9231_v23 = vpack.c.bf16 %v4368_v19, %v4367_v22  ;;  %v4352_v50 = vld [vmem:[#allocation3 + $0x118] sm:$0xff] }
 0x7a9   : > { %8341 = vmatprep.mubr.msk.f32.mxu0 %vm3080_vm3, %v5348_v59 }
 0x7aa   : > { %14583 = vst [vmem:[#allocation50_spill] sm:$0xff] %v12749_v21  ;;  %v7992_v53 = vpop.f32.mrb[30].mxu0  ;;  %v5372_v15 = vpop.permute.xlu1 %5371  ;;  %9232 = vmatprep.subr.bf16.mxu1 %v9231_v23  ;;  %v4374_v23 = vld [vmem:[#allocation3 + $0x1c8] sm:$0xff] }
 0x7ab   : > { %v7993_v9 = vpop.f32.mrb[31].mxu0  ;;  %v5366_v62 = vpop.permute.xlu0 %5365 }
 0x7ac   : > { %v12753_v47 = vadd.f32 %v7993_v9, %v7992_v53  ;;  %8342 = vmatmul.mubr.msk.f32.gmra.mrb[114].mxu0 %vm3080_vm3, %v5348_v59  ;;  %v9233_v59 = vpack.c.bf16 %v4352_v50, %v4351_v49  ;;  %v4373_v49 = vld [vmem:[#allocation3 + $0x1c0] sm:$0xff] }
 0x7ad   : > { %8343 = vmatprep.mubr.msk.f32.mxu0 %vm3080_vm3, %v5350_v2  ;;  %v4357_v50 = vld [vmem:[#allocation3 + $0x140] sm:$0xff] }
 0x7ae   : > { %14584 = vst [vmem:[#allocation51_spill] sm:$0xff] %v12753_v47  ;;  %v7995_v44 = vpop.f32.mrb[32].mxu0  ;;  %v5376_v4 = vpop.permute.xlu1 %5375  ;;  %9234 = vmatpush3.bf16.msra.mxu1 %v9233_v59 }
 0x7af   : > { %v7996_v10 = vpop.f32.mrb[33].mxu0  ;;  %v5370_v11 = vpop.permute.xlu0 %5369 }
 0x7b0   : > { %v12757_v43 = vadd.f32 %v7996_v10, %v7995_v44  ;;  %8344 = vmatmul.mubr.msk.f32.gmra.mrb[116].mxu0 %vm3080_vm3, %v5350_v2  ;;  %v4369_v10 = vld [vmem:[#allocation3 + $0x1a0] sm:$0xff] }
 0x7b1   : > { %8345 = vmatprep.mubr.msk.f32.mxu0 %vm3080_vm3, %v5352_v41 }
 0x7b2   : > { %14585 = vst [vmem:[#allocation52_spill] sm:$0xff] %v12757_v43  ;;  %v7998_v45 = vpop.f32.mrb[34].mxu0 }
 0x7b3   : > { %v7999_v61 = vpop.f32.mrb[35].mxu0  ;;  %v5374_v3 = vpop.permute.xlu0 %5373 }
 0x7b4   : > { %v12761_v17 = vadd.f32 %v7999_v61, %v7998_v45  ;;  %8346 = vmatmul.mubr.msk.f32.gmra.mrb[118].mxu0 %vm3080_vm3, %v5352_v41  ;;  %v4370_v41 = vld [vmem:[#allocation3 + $0x1a8] sm:$0xff]  ;;  %v4353_v45 = vld [vmem:[#allocation3 + $0x120] sm:$0xff] }
 0x7b5   : > { %8347 = vmatprep.mubr.msk.f32.mxu0 %vm3080_vm3, %v5354_v36 }
 0x7b6   : > { %14586 = vst [vmem:[#allocation53_spill] sm:$0xff] %v12761_v17  ;;  %v8001_v54 = vpop.f32.mrb[36].mxu0 }
 0x7b7   : > { %v8002_v40 = vpop.f32.mrb[37].mxu0 }
 0x7b8   : > { %v12765_v18 = vadd.f32 %v8002_v40, %v8001_v54  ;;  %8348 = vmatmul.mubr.msk.f32.gmra.mrb[120].mxu0 %vm3080_vm3, %v5354_v36  ;;  %v9235_v36 = vpack.c.bf16 %v4370_v41, %v4369_v10  ;;  %v4354_v54 = vld [vmem:[#allocation3 + $0x128] sm:$0xff] }
 0x7b9   : > { %8349 = vmatprep.mubr.msk.f32.mxu0 %vm3080_vm3, %v5356_v8 }
 0x7ba   : > { %14587 = vst [vmem:[#allocation54_spill] sm:$0xff] %v12765_v18  ;;  %v8004_v32 = vpop.f32.mrb[38].mxu0  ;;  %9236 = vmatprep.subr.bf16.mxu1 %v9235_v36 }
 0x7bb   : > { %v8005_v60 = vpop.f32.mrb[39].mxu0 }
 0x7bc   : > { %v12769_v5 = vadd.f32 %v8005_v60, %v8004_v32  ;;  %8350 = vmatmul.mubr.msk.f32.gmra.mrb[122].mxu0 %vm3080_vm3, %v5356_v8  ;;  %v9237_v8 = vpack.c.bf16 %v4354_v54, %v4353_v45 }
 0x7bd   : > { %8351 = vmatprep.mubr.msk.f32.mxu0 %vm3080_vm3, %v5358_v37 }
 0x7be   : > { %14588 = vst [vmem:[#allocation55_spill] sm:$0xff] %v12769_v5  ;;  %9238 = vmatpush3.bf16.msra.mxu1 %v9237_v8 }
 0x7c0   : > { %8352 = vmatmul.mubr.msk.f32.gmra.mrb[124].mxu0 %vm3080_vm3, %v5358_v37 }
 0x7c1   : > { %8353 = vmatprep.mubr.msk.f32.mxu0 %vm3080_vm3, %v5360_v38 }
 0x7c4   : > { %8354 = vmatmul.mubr.msk.f32.gmra.mrb[126].mxu0 %vm3080_vm3, %v5360_v38 }
 0x7c5   : > { %8355 = vmatprep.mubr.msk.f32.mxu0 %vm3080_vm3, %v5362_v14 }
 0x7c8   : > { %8356 = vmatmul.mubr.msk.f32.gmra.mrb[128].mxu0 %vm3080_vm3, %v5362_v14  ;;  %v4371_v14 = vld [vmem:[#allocation3 + $0x1b0] sm:$0xff] }
 0x7c9   : > { %8357 = vmatprep.mubr.msk.f32.mxu0 %vm3080_vm3, %v5364_v28 }
 0x7cc   : > { %8358 = vmatmul.mubr.msk.f32.gmra.mrb[130].mxu0 %vm3080_vm3, %v5364_v28  ;;  %v4372_v28 = vld [vmem:[#allocation3 + $0x1b8] sm:$0xff] }
 0x7cd   : > { %8359 = vmatprep.mubr.msk.f32.mxu0 %vm3080_vm3, %v5366_v62 }
 0x7d0   : > { %8360 = vmatmul.mubr.msk.f32.gmra.mrb[132].mxu0 %vm3080_vm3, %v5366_v62  ;;  %v4355_v62 = vld [vmem:[#allocation3 + $0x130] sm:$0xff] }
 0x7d1   : > { %8361 = vmatprep.mubr.msk.f32.mxu0 %vm3080_vm3, %v5368_v48 }
 0x7d4   : > { %8362 = vmatmul.mubr.msk.f32.gmra.mrb[134].mxu0 %vm3080_vm3, %v5368_v48 }
 0x7d5   : > { %8363 = vmatprep.mubr.msk.f32.mxu0 %vm3080_vm3, %v5370_v11 }
 0x7d8   : > { %8364 = vmatmul.mubr.msk.f32.gmra.mrb[136].mxu0 %vm3080_vm3, %v5370_v11  ;;  %v9239_v11 = vpack.c.bf16 %v4372_v28, %v4371_v14  ;;  %v4376_v14 = vld [vmem:[#allocation3 + $0x1d8] sm:$0xff]  ;;  %v4359_v28 = vld [vmem:[#allocation3 + $0x150] sm:$0xff] }
 0x7d9   : > { %8365 = vmatprep.mubr.msk.f32.mxu0 %vm3080_vm3, %v5372_v15 }
 0x7da   : > { %9240 = vmatprep.subr.bf16.mxu1 %v9239_v11 }
 0x7dc   : > { %8366 = vmatmul.mubr.msk.f32.gmra.mrb[138].mxu0 %vm3080_vm3, %v5372_v15  ;;  %v4356_v15 = vld [vmem:[#allocation3 + $0x138] sm:$0xff] }
 0x7dd   : > { %8367 = vmatprep.mubr.msk.f32.mxu0 %vm3080_vm3, %v5374_v3  ;;  %v9241_v39 = vpack.c.bf16 %v4356_v15, %v4355_v62  ;;  %v4360_v15 = vld [vmem:[#allocation3 + $0x158] sm:$0xff] }
 0x7df   : > { %9242 = vmatpush3.bf16.msra.mxu1 %v9241_v39 }
 0x7e0   : > { %8368 = vmatmul.mubr.msk.f32.gmra.mrb[140].mxu0 %vm3080_vm3, %v5374_v3 }
 0x7e1   : > { %8369 = vmatprep.mubr.msk.f32.mxu0 %vm3080_vm3, %v5376_v4 }
 0x7e4   : > { %8370 = vmatmul.mubr.msk.f32.gmra.mrb[142].mxu0 %vm3080_vm3, %v5376_v4 }
 0x7eb   : > { %v8007_v53 = vpop.f32.mrb[40].mxu0 }
 0x7ec   : > { %v8008_v9 = vpop.f32.mrb[41].mxu0 }
 0x7ed   : > { %v12792_v2 = vadd.f32 %v8008_v9, %v8007_v53  ;;  %v9243_v9 = vpack.c.bf16 %v4374_v23, %v4373_v49 }
 0x7ef   : > { %14589 = vst [vmem:[#allocation56_spill] sm:$0xff] %v12792_v2  ;;  %v8010_v44 = vpop.f32.mrb[42].mxu0  ;;  %9244 = vmatprep.subr.bf16.mxu1 %v9243_v9  ;;  %v4377_v9 = vld [vmem:[#allocation3 + $0x1e0] sm:$0xff] }
 0x7f0   : > { %v8011_v61 = vpop.f32.mrb[43].mxu0 }
 0x7f1   : > { %v12794_v40 = vadd.f32 %v8011_v61, %v8010_v44  ;;  %v4358_v44 = vld [vmem:[#allocation3 + $0x148] sm:$0xff] }
 0x7f2   : > { %v9245_v41 = vpack.c.bf16 %v4358_v44, %v4357_v50  ;;  %v4378_v44 = vld [vmem:[#allocation3 + $0x1e8] sm:$0xff] }
 0x7f3   : > { %14590 = vst [vmem:[#allocation57_spill] sm:$0xff] %v12794_v40  ;;  %v8013_v32 = vpop.f32.mrb[44].mxu0 }
 0x7f4   : > { %v8014_v60 = vpop.f32.mrb[45].mxu0  ;;  %9246 = vmatpush3.bf16.msra.mxu1 %v9245_v41 }
 0x7f5   : > { %v12796_v37 = vadd.f32 %v8014_v60, %v8013_v32 }
 0x7f7   : > { %14591 = vst [vmem:[#allocation58_spill] sm:$0xff] %v12796_v37  ;;  %v8016_v38 = vpop.f32.mrb[46].mxu0 }
 0x7f8   : > { %v8017_v48 = vpop.f32.mrb[47].mxu0 }
 0x7f9   : > { %v12798_v3 = vadd.f32 %v8017_v48, %v8016_v38  ;;  %v4375_v38 = vld [vmem:[#allocation3 + $0x1d0] sm:$0xff] }
 0x7fa   : > { %v9247_v11 = vpack.c.bf16 %v4376_v14, %v4375_v38 }
 0x7fb   : > { %14592 = vst [vmem:[#allocation59_spill] sm:$0xff] %v12798_v3  ;;  %v4061_v27 = vpop.f32.mrb[48].mxu0 }
 0x7fc   : > { %v12801_v4 = vadd.f32 %v4061_v27, %v14593_v58  ;;  %v4063_v24 = vpop.f32.mrb[49].mxu0  ;;  %v9249_v27 = vpack.c.bf16 %v4360_v15, %v4359_v28  ;;  %9248 = vmatprep.subr.bf16.mxu1 %v9247_v11  ;;  %v4361_v28 = vld [vmem:[#allocation3 + $0x160] sm:$0xff] }
 0x7fd   : > { %v12804_v46 = vadd.f32 %v4063_v24, %v14594_v30 }
 0x7fe   : > { %9250 = vmatpush3.bf16.msra.mxu1 %v9249_v27 }
 0x7ff   : > { %v4156_v22 = vmax.f32 %v12801_v4, %v12804_v46  ;;  %v4067_v19 = vpop.f32.mrb[50].mxu0 }
 0x800   : > { %v12809_v59 = vadd.f32 %v4067_v19, %v14593_v58  ;;  %v4069_v53 = vpop.f32.mrb[51].mxu0 }
 0x801   : > { %v12812_v10 = vadd.f32 %v4069_v53, %v14594_v30  ;;  %4157 = vmax.xlane.f32.xlu0 %v4156_v22 }
 0x803   : > { %v4159_v45 = vmax.f32 %v12809_v59, %v12812_v10  ;;  %v4073_v61 = vpop.f32.mrb[52].mxu0 }
 0x804   : > { %v12817_v36 = vadd.f32 %v4073_v61, %v14593_v58  ;;  %v4075_v54 = vpop.f32.mrb[53].mxu0  ;;  %v9251_v61 = vpack.c.bf16 %v4378_v44, %v4377_v9 }
 0x805   : > { %v12820_v8 = vadd.f32 %v4075_v54, %v14594_v30  ;;  %4160 = vmax.xlane.f32.xlu1 %v4159_v45 }
 0x806   : > { %9252 = vmatprep.subr.bf16.mxu1 %v9251_v61  ;;  %v4364_v61 = vld [vmem:[#allocation3 + $0x178] sm:$0xff] }
 0x807   : > { %v4162_v32 = vmax.f32 %v12817_v36, %v12820_v8  ;;  %v4079_v60 = vpop.f32.mrb[54].mxu0 }
 0x808   : > { %v12825_v62 = vadd.f32 %v4079_v60, %v14593_v58  ;;  %v4081_v48 = vpop.f32.mrb[55].mxu0 }
 0x809   : > { %v12828_v39 = vadd.f32 %v4081_v48, %v14594_v30  ;;  %4163 = vmax.xlane.f32.xlu0 %v4162_v32  ;;  %v4362_v48 = vld [vmem:[#allocation3 + $0x168] sm:$0xff] }
 0x80a   : > { %v9253_v15 = vpack.c.bf16 %v4362_v48, %v4361_v28 }
 0x80b   : > { %v4165_v24 = vmax.f32 %v12825_v62, %v12828_v39  ;;  %v4085_v22 = vpop.f32.mrb[56].mxu0 }
 0x80c   : > { %v12833_v19 = vadd.f32 %v4085_v22, %v14593_v58  ;;  %v4087_v49 = vpop.f32.mrb[57].mxu0  ;;  %9254 = vmatpush3.bf16.msra.mxu1 %v9253_v15 }
 0x80d   : > { %v12836_v23 = vadd.f32 %v4087_v49, %v14594_v30  ;;  %4166 = vmax.xlane.f32.xlu0 %v4165_v24 }
 0x80f   : > { %v4168_v50 = vmax.f32 %v12833_v19, %v12836_v23  ;;  %v4091_v53 = vpop.f32.mrb[58].mxu0 }
 0x810   : > { %v12841_v41 = vadd.f32 %v4091_v53, %v14593_v58  ;;  %v4093_v45 = vpop.f32.mrb[59].mxu0  ;;  %v4380_v53 = vld [vmem:[#allocation3 + $0x1f8] sm:$0xff] }
 0x811   : > { %v12844_v54 = vadd.f32 %v4093_v45, %v14594_v30  ;;  %4169 = vmax.xlane.f32.xlu0 %v4168_v50  ;;  %v4379_v50 = vld [vmem:[#allocation3 + $0x1f0] sm:$0xff] }
 0x812   : > { %v9255_v44 = vpack.c.bf16 %v4380_v53, %v4379_v50  ;;  %v4363_v45 = vld [vmem:[#allocation3 + $0x170] sm:$0xff]  ;;  %v5136_v53 = vld [vmem:[#allocation3 + $0x280] sm:$0xff] }
 0x813   : > { %v4171_v32 = vmax.f32 %v12841_v41, %v12844_v54  ;;  %v4097_v60 = vpop.f32.mrb[60].mxu0 }
 0x814   : > { %v12849_v38 = vadd.f32 %v4097_v60, %v14593_v58  ;;  %v4099_v14 = vpop.f32.mrb[61].mxu0  ;;  %9256 = vmatprep.subr.bf16.mxu1 %v9255_v44  ;;  %v5137_v44 = vld [vmem:[#allocation3 + $0x288] sm:$0xff] }
 0x815   : > { %v12852_v11 = vadd.f32 %v4099_v14, %v14594_v30  ;;  %4172 = vmax.xlane.f32.xlu1 %v4171_v32  ;;  %v9257_v14 = vpack.c.bf16 %v4364_v61, %v4363_v45  ;;  %v9307_v61 = vpack.c.bf16 %v5137_v44, %v5136_v53 }
 0x817   : > { %v4174_v27 = vmax.f32 %v12849_v38, %v12852_v11  ;;  %v4103_v24 = vpop.f32.mrb[62].mxu0  ;;  %9258 = vmatpush3.bf16.msra.mxu1 %v9257_v14 }
 0x818   : > { %v12857_v22 = vadd.f32 %v4103_v24, %v14593_v58  ;;  %v4105_v49 = vpop.f32.mrb[63].mxu0  ;;  %9308 = vmatprep.subr.bf16.mxu1 %v9307_v61 }
 0x819   : > { %v12860_v9 = vadd.f32 %v4105_v49, %v14594_v30  ;;  %4175 = vmax.xlane.f32.xlu0 %v4174_v27 }
 0x81b   : > { %v4177_v32 = vmax.f32 %v12857_v22, %v12860_v9  ;;  %v4109_v60 = vpop.f32.mrb[64].mxu0 }
 0x81c   : > { %v12865_v28 = vadd.f32 %v4109_v60, %v14593_v58  ;;  %v4111_v48 = vpop.f32.mrb[65].mxu0 }
 0x81d   : > { %v12868_v15 = vadd.f32 %v4111_v48, %v14594_v30  ;;  %4178 = vmax.xlane.f32.xlu1 %v4177_v32 }
 0x81f   : > { %v4180_v27 = vmax.f32 %v12865_v28, %v12868_v15  ;;  %v4115_v24 = vpop.f32.mrb[66].mxu0 }
 0x820   : > { %v12873_v49 = vadd.f32 %v4115_v24, %v14593_v58  ;;  %v4117_v50 = vpop.f32.mrb[67].mxu0 }
 0x821   : > { %v12876_v45 = vadd.f32 %v4117_v50, %v14594_v30  ;;  %4181 = vmax.xlane.f32.xlu0 %v4180_v27 }
 0x823   : > { %v4183_v60 = vmax.f32 %v12873_v49, %v12876_v45  ;;  %v4121_v32 = vpop.f32.mrb[68].mxu0 }
 0x824   : > { %v12881_v14 = vadd.f32 %v4121_v32, %v14593_v58  ;;  %v4123_v48 = vpop.f32.mrb[69].mxu0 }
 0x825   : > { %v12884_v24 = vadd.f32 %v4123_v48, %v14594_v30  ;;  %4184 = vmax.xlane.f32.xlu1 %v4183_v60 }
 0x827   : > { %v4186_v3 = vmax.f32 %v12881_v14, %v12884_v24  ;;  %v4127_v50 = vpop.f32.mrb[70].mxu0 }
 0x828   : > { %v12889_v27 = vadd.f32 %v4127_v50, %v14593_v58  ;;  %v4129_v53 = vpop.f32.mrb[71].mxu0 }
 0x829   : > { %v12892_v44 = vadd.f32 %v4129_v53, %v14594_v30  ;;  %4187 = vmax.xlane.f32.xlu0 %v4186_v3 }
 0x82b   : > { %v4189_v61 = vmax.f32 %v12889_v27, %v12892_v44  ;;  %v4133_v32 = vpop.f32.mrb[72].mxu0 }
 0x82c   : > { %v12897_v48 = vadd.f32 %v4133_v32, %v14593_v58  ;;  %v4135_v60 = vpop.f32.mrb[73].mxu0 }
 0x82d   : > { %v12900_v37 = vadd.f32 %v4135_v60, %v14594_v30  ;;  %4190 = vmax.xlane.f32.xlu1 %v4189_v61 }
 0x82f   : > { %v4192_v50 = vmax.f32 %v12897_v48, %v12900_v37  ;;  %v4139_v40 = vpop.f32.mrb[74].mxu0 }
 0x830   : > { %v12905_v53 = vadd.f32 %v4139_v40, %v14593_v58  ;;  %v4141_v3 = vpop.f32.mrb[75].mxu0 }
 0x831   : > { %v12908_v2 = vadd.f32 %v4141_v3, %v14594_v30  ;;  %4193 = vmax.xlane.f32.xlu0 %v4192_v50 }
 0x833   : > { %v4195_v32 = vmax.f32 %v12905_v53, %v12908_v2  ;;  %v4145_v5 = vpop.f32.mrb[76].mxu0 }
 0x834   : > { %v12913_v60 = vadd.f32 %v4145_v5, %v14593_v58  ;;  %v4147_v61 = vpop.f32.mrb[77].mxu0 }
 0x835   : > { %v12916_v18 = vadd.f32 %v4147_v61, %v14594_v30  ;;  %4196 = vmax.xlane.f32.xlu1 %v4195_v32 }
 0x837   : > { %v4198_v40 = vmax.f32 %v12913_v60, %v12916_v18  ;;  %v4151_v17 = vpop.f32.mrb[78].mxu0 }
 0x838   : > { %v12921_v3 = vadd.f32 %v4151_v17, %v14593_v58  ;;  %v4153_v50 = vpop.f32.mrb[79].mxu0 }
 0x839   : > { %v12924_v43 = vadd.f32 %v4153_v50, %v14594_v30  ;;  %4199 = vmax.xlane.f32.xlu0 %v4198_v40 }
 0x83b   : > { %v4201_v5 = vmax.f32 %v12921_v3, %v12924_v43  ;;  %v4832_v47 = vpop.f32.mrb[80].mxu0 }
 0x83c   : > { %v12929_v61 = vadd.f32 %v4832_v47, %v14593_v58  ;;  %v4834_v32 = vpop.f32.mrb[81].mxu0 }
 0x83d   : > { %v12932_v21 = vadd.f32 %v4834_v32, %v14594_v30  ;;  %4202 = vmax.xlane.f32.xlu1 %v4201_v5 }
 0x83f   : > { %v4927_v17 = vmax.f32 %v12929_v61, %v12932_v21  ;;  %v4838_v13 = vpop.f32.mrb[82].mxu0 }
 0x840   : > { %v12937_v50 = vadd.f32 %v4838_v13, %v14593_v58  ;;  %v4840_v40 = vpop.f32.mrb[83].mxu0 }
 0x841   : > { %v12940_v29 = vadd.f32 %v4840_v40, %v14594_v30  ;;  %4928 = vmax.xlane.f32.xlu0 %v4927_v17 }
 0x843   : > { %v4930_v47 = vmax.f32 %v12937_v50, %v12940_v29  ;;  %v4844_v16 = vpop.f32.mrb[84].mxu0 }
 0x844   : > { %v12945_v32 = vadd.f32 %v4844_v16, %v14593_v58  ;;  %v4846_v5 = vpop.f32.mrb[85].mxu0 }
 0x845   : > { %v12948_v12 = vadd.f32 %v4846_v5, %v14594_v30  ;;  %4931 = vmax.xlane.f32.xlu1 %v4930_v47 }
 0x847   : > { %v4933_v13 = vmax.f32 %v12945_v32, %v12948_v12  ;;  %v4850_v26 = vpop.f32.mrb[86].mxu0 }
 0x848   : > { %v12953_v40 = vadd.f32 %v4850_v26, %v14593_v58  ;;  %v4852_v17 = vpop.f32.mrb[87].mxu0 }
 0x849   : > { %v12956_v35 = vadd.f32 %v4852_v17, %v14594_v30  ;;  %4934 = vmax.xlane.f32.xlu0 %v4933_v13 }
 0x84b   : > { %v4936_v16 = vmax.f32 %v12953_v40, %v12956_v35  ;;  %v4856_v34 = vpop.f32.mrb[88].mxu0 }
 0x84c   : > { %v12961_v5 = vadd.f32 %v4856_v34, %v14593_v58  ;;  %v4858_v47 = vpop.f32.mrb[89].mxu0 }
 0x84d   : > { %v12964_v63 = vadd.f32 %v4858_v47, %v14594_v30  ;;  %4937 = vmax.xlane.f32.xlu1 %v4936_v16 }
 0x84e   : > { %14595 = vst [vmem:[#allocation37_spill] sm:$0xff] %v12961_v5 }
 0x84f   : > { %14596 = vst [vmem:[#allocation38_spill] sm:$0xff] %v12964_v63  ;;  %v4939_v26 = vmax.f32 %v12961_v5, %v12964_v63  ;;  %v4862_v33 = vpop.f32.mrb[90].mxu0 }
 0x850   : > { %v12969_v17 = vadd.f32 %v4862_v33, %v14593_v58  ;;  %v4864_v13 = vpop.f32.mrb[91].mxu0 }
 0x851   : > { %v12972_v56 = vadd.f32 %v4864_v13, %v14594_v30  ;;  %4940 = vmax.xlane.f32.xlu0 %v4939_v26 }
 0x852   : > { %14597 = vst [vmem:[#allocation60_spill] sm:$0xff] %v12969_v17 }
 0x853   : > { %14598 = vst [vmem:[#allocation61_spill] sm:$0xff] %v12972_v56  ;;  %v4942_v34 = vmax.f32 %v12969_v17, %v12972_v56  ;;  %v4868_v55 = vpop.f32.mrb[92].mxu0 }
 0x854   : > { %v12977_v47 = vadd.f32 %v4868_v55, %v14593_v58  ;;  %v4870_v16 = vpop.f32.mrb[93].mxu0 }
 0x855   : > { %v12980_v31 = vadd.f32 %v4870_v16, %v14594_v30  ;;  %4943 = vmax.xlane.f32.xlu1 %v4942_v34 }
 0x856   : > { %14599 = vst [vmem:[#allocation62_spill] sm:$0xff] %v12977_v47 }
 0x857   : > { %14600 = vst [vmem:[#allocation63_spill] sm:$0xff] %v12980_v31  ;;  %v4945_v33 = vmax.f32 %v12977_v47, %v12980_v31  ;;  %v4874_v25 = vpop.f32.mrb[94].mxu0 }
 0x858   : > { %v12985_v13 = vadd.f32 %v4874_v25, %v14593_v58  ;;  %v4876_v26 = vpop.f32.mrb[95].mxu0 }
 0x859   : > { %v12988_v57 = vadd.f32 %v4876_v26, %v14594_v30  ;;  %4946 = vmax.xlane.f32.xlu0 %v4945_v33 }
 0x85a   : > { %14601 = vst [vmem:[#allocation64_spill] sm:$0xff] %v12985_v13 }
 0x85b   : > { %14602 = vst [vmem:[#allocation65_spill] sm:$0xff] %v12988_v57  ;;  %v4948_v55 = vmax.f32 %v12985_v13, %v12988_v57  ;;  %v4880_v56 = vpop.f32.mrb[96].mxu0 }
 0x85c   : > { %v12993_v16 = vadd.f32 %v4880_v56, %v14593_v58  ;;  %v4882_v34 = vpop.f32.mrb[97].mxu0 }
 0x85d   : > { %v12996_v17 = vadd.f32 %v4882_v34, %v14594_v30  ;;  %4949 = vmax.xlane.f32.xlu1 %v4948_v55 }
 0x85e   : > { %14603 = vst [vmem:[#allocation66_spill] sm:$0xff] %v12993_v16 }
 0x85f   : > { %14604 = vst [vmem:[#allocation67_spill] sm:$0xff] %v12996_v17  ;;  %v4951_v25 = vmax.f32 %v12993_v16, %v12996_v17  ;;  %v4886_v31 = vpop.f32.mrb[98].mxu0 }
 0x860   : > { %v13001_v26 = vadd.f32 %v4886_v31, %v14593_v58  ;;  %v4888_v33 = vpop.f32.mrb[99].mxu0 }
 0x861   : > { %v13004_v47 = vadd.f32 %v4888_v33, %v14594_v30  ;;  %4952 = vmax.xlane.f32.xlu0 %v4951_v25 }
 0x862   : > { %14605 = vst [vmem:[#allocation68_spill] sm:$0xff] %v13001_v26 }
 0x863   : > { %14606 = vst [vmem:[#allocation69_spill] sm:$0xff] %v13004_v47  ;;  %v4954_v56 = vmax.f32 %v13001_v26, %v13004_v47  ;;  %v4892_v57 = vpop.f32.mrb[100].mxu0 }
 0x864   : > { %v13009_v34 = vadd.f32 %v4892_v57, %v14593_v58  ;;  %v4894_v55 = vpop.f32.mrb[101].mxu0 }
 0x865   : > { %v13012_v13 = vadd.f32 %v4894_v55, %v14594_v30  ;;  %4955 = vmax.xlane.f32.xlu1 %v4954_v56 }
 0x866   : > { %14607 = vst [vmem:[#allocation70_spill] sm:$0xff] %v13009_v34 }
 0x867   : > { %14608 = vst [vmem:[#allocation71_spill] sm:$0xff] %v13012_v13  ;;  %v4957_v31 = vmax.f32 %v13009_v34, %v13012_v13  ;;  %v4898_v17 = vpop.f32.mrb[102].mxu0 }
 0x868   : > { %v13017_v33 = vadd.f32 %v4898_v17, %v14593_v58  ;;  %v4900_v25 = vpop.f32.mrb[103].mxu0 }
 0x869   : > { %v13020_v16 = vadd.f32 %v4900_v25, %v14594_v30  ;;  %4958 = vmax.xlane.f32.xlu0 %v4957_v31 }
 0x86a   : > { %14609 = vst [vmem:[#allocation72_spill] sm:$0xff] %v13017_v33 }
 0x86b   : > { %14610 = vst [vmem:[#allocation73_spill] sm:$0xff] %v13020_v16  ;;  %v4960_v57 = vmax.f32 %v13017_v33, %v13020_v16  ;;  %v4904_v47 = vpop.f32.mrb[104].mxu0 }
 0x86c   : > { %v13025_v55 = vadd.f32 %v4904_v47, %v14593_v58  ;;  %v4906_v56 = vpop.f32.mrb[105].mxu0 }
 0x86d   : > { %v13028_v26 = vadd.f32 %v4906_v56, %v14594_v30  ;;  %4961 = vmax.xlane.f32.xlu1 %v4960_v57 }
 0x86e   : > { %14611 = vst [vmem:[#allocation74_spill] sm:$0xff] %v13025_v55 }
 0x86f   : > { %14612 = vst [vmem:[#allocation75_spill] sm:$0xff] %v13028_v26  ;;  %v4963_v17 = vmax.f32 %v13025_v55, %v13028_v26  ;;  %v4910_v13 = vpop.f32.mrb[106].mxu0 }
 0x870   : > { %v13033_v25 = vadd.f32 %v4910_v13, %v14593_v58  ;;  %v4912_v31 = vpop.f32.mrb[107].mxu0 }
 0x871   : > { %v13036_v34 = vadd.f32 %v4912_v31, %v14594_v30  ;;  %4964 = vmax.xlane.f32.xlu0 %v4963_v17 }
 0x872   : > { %14613 = vst [vmem:[#allocation76_spill] sm:$0xff] %v13033_v25 }
 0x873   : > { %14614 = vst [vmem:[#allocation77_spill] sm:$0xff] %v13036_v34  ;;  %v4966_v47 = vmax.f32 %v13033_v25, %v13036_v34  ;;  %v4916_v16 = vpop.f32.mrb[108].mxu0 }
 0x874   : > { %v13041_v56 = vadd.f32 %v4916_v16, %v14593_v58  ;;  %v4918_v57 = vpop.f32.mrb[109].mxu0 }
 0x875   : > { %v13044_v33 = vadd.f32 %v4918_v57, %v14594_v30  ;;  %4967 = vmax.xlane.f32.xlu1 %v4966_v47 }
 0x876   : > { %14615 = vst [vmem:[#allocation78_spill] sm:$0xff] %v13041_v56 }
 0x877   : > { %14616 = vst [vmem:[#allocation79_spill] sm:$0xff] %v13044_v33  ;;  %v4969_v13 = vmax.f32 %v13041_v56, %v13044_v33  ;;  %v4922_v26 = vpop.f32.mrb[110].mxu0 }
 0x878   : > { %v13049_v31 = vadd.f32 %v4922_v26, %v14593_v58  ;;  %v4924_v17 = vpop.f32.mrb[111].mxu0 }
 0x879   : > { %v13052_v55 = vadd.f32 %v4924_v17, %v14594_v30  ;;  %4970 = vmax.xlane.f32.xlu0 %v4969_v13 }
 0x87a   : > { %14617 = vst [vmem:[#allocation80_spill] sm:$0xff] %v13049_v31 }
 0x87b   : > { %14618 = vst [vmem:[#allocation81_spill] sm:$0xff] %v13052_v55  ;;  %v4972_v16 = vmax.f32 %v13049_v31, %v13052_v55  ;;  %v5603_v34 = vpop.f32.mrb[112].mxu0 }
 0x87c   : > { %v13057_v57 = vadd.f32 %v5603_v34, %v14593_v58  ;;  %v5605_v47 = vpop.f32.mrb[113].mxu0 }
 0x87d   : > { %v13060_v25 = vadd.f32 %v5605_v47, %v14594_v30  ;;  %4973 = vmax.xlane.f32.xlu1 %v4972_v16 }
 0x87e   : > { %14619 = vst [vmem:[#allocation82_spill] sm:$0xff] %v13057_v57 }
 0x87f   : > { %14620 = vst [vmem:[#allocation83_spill] sm:$0xff] %v13060_v25  ;;  %v5698_v26 = vmax.f32 %v13057_v57, %v13060_v25  ;;  %v5609_v33 = vpop.f32.mrb[114].mxu0 }
 0x880   : > { %v13065_v17 = vadd.f32 %v5609_v33, %v14593_v58  ;;  %v5611_v13 = vpop.f32.mrb[115].mxu0 }
 0x881   : > { %v13068_v56 = vadd.f32 %v5611_v13, %v14594_v30  ;;  %5699 = vmax.xlane.f32.xlu0 %v5698_v26 }
 0x882   : > { %14621 = vst [vmem:[#allocation84_spill] sm:$0xff] %v13065_v17 }
 0x883   : > { %14622 = vst [vmem:[#allocation85_spill] sm:$0xff] %v13068_v56  ;;  %v5701_v34 = vmax.f32 %v13065_v17, %v13068_v56  ;;  %v5615_v55 = vpop.f32.mrb[116].mxu0 }
 0x884   : > { %v13073_v47 = vadd.f32 %v5615_v55, %v14593_v58  ;;  %v5617_v16 = vpop.f32.mrb[117].mxu0 }
 0x885   : > { %v13076_v31 = vadd.f32 %v5617_v16, %v14594_v30  ;;  %5702 = vmax.xlane.f32.xlu1 %v5701_v34 }
 0x886   : > { %14623 = vst [vmem:[#allocation86_spill] sm:$0xff] %v13073_v47 }
 0x887   : > { %14624 = vst [vmem:[#allocation87_spill] sm:$0xff] %v13076_v31  ;;  %v5704_v33 = vmax.f32 %v13073_v47, %v13076_v31  ;;  %v5621_v25 = vpop.f32.mrb[118].mxu0 }
 0x888   : > { %v13081_v13 = vadd.f32 %v5621_v25, %v14593_v58  ;;  %v5623_v26 = vpop.f32.mrb[119].mxu0 }
 0x889   : > { %v13084_v57 = vadd.f32 %v5623_v26, %v14594_v30  ;;  %5705 = vmax.xlane.f32.xlu0 %v5704_v33 }
 0x88a   : > { %14625 = vst [vmem:[#allocation88_spill] sm:$0xff] %v13081_v13 }
 0x88b   : > { %14626 = vst [vmem:[#allocation89_spill] sm:$0xff] %v13084_v57  ;;  %v5707_v55 = vmax.f32 %v13081_v13, %v13084_v57  ;;  %v5627_v56 = vpop.f32.mrb[120].mxu0 }
 0x88c   : > { %v13089_v16 = vadd.f32 %v5627_v56, %v14593_v58  ;;  %v5629_v34 = vpop.f32.mrb[121].mxu0 }
 0x88d   : > { %v13092_v17 = vadd.f32 %v5629_v34, %v14594_v30  ;;  %5708 = vmax.xlane.f32.xlu1 %v5707_v55 }
 0x88e   : > { %14627 = vst [vmem:[#allocation90_spill] sm:$0xff] %v13089_v16  ;;  %v4158_v31 = vpop.xlane.xlu0 %4157 }
 0x88f   : > { %14628 = vst [vmem:[#allocation91_spill] sm:$0xff] %v13092_v17  ;;  %v5710_v25 = vmax.f32 %v13089_v16, %v13092_v17  ;;  %v4204_v26 = vsub.f32 %v12801_v4, %v4158_v31  ;;  %v4205_v33 = vsub.f32 %v12804_v46, %v4158_v31  ;;  %v5633_v47 = vpop.f32.mrb[122].mxu0  ;;  %v5125_v16 = vld [vmem:[#allocation3 + $0x228] sm:$0xff] }
 0x890   : > { %v13099_v57 = vadd.f32 %v5633_v47, %v14593_v58  ;;  %v5635_v13 = vpop.f32.mrb[123].mxu0 }
 0x891   : > { %v4236_v56 = vmul.f32 1.442695, %v4204_v26  ;;  %v4238_v63 = vmul.f32 1.442695, %v4205_v33  ;;  %v13102_v5 = vadd.f32 %v5635_v13, %v14594_v30  ;;  %5711 = vmax.xlane.f32.xlu0 %v5710_v25 }
 0x892   : > { %14629 = vst [vmem:[#allocation92_spill] sm:$0xff] %v13099_v57  ;;  %v4161_v55 = vpop.xlane.xlu1 %4160 }
 0x893   : > { %14630 = vst [vmem:[#allocation93_spill] sm:$0xff] %v13102_v5  ;;  %9969 = vpow2.f32 %v4236_v56  ;;  %v5713_v34 = vmax.f32 %v13099_v57, %v13102_v5  ;;  %v4206_v4 = vsub.f32 %v12809_v59, %v4161_v55  ;;  %v4207_v46 = vsub.f32 %v12812_v10, %v4161_v55  ;;  %v5639_v31 = vpop.f32.mrb[124].mxu0  ;;  %v5121_v5 = vld [vmem:[#allocation3 + $0x208] sm:$0xff]  ;;  %v5123_v57 = vld [vmem:[#allocation3 + $0x218] sm:$0xff] }
 0x894   : > { %9971 = vpow2.f32 %v4238_v63  ;;  %v13109_v47 = vadd.f32 %v5639_v31, %v14593_v58  ;;  %v5641_v26 = vpop.f32.mrb[125].mxu0 }
 0x895   : > { %v4240_v33 = vmul.f32 1.442695, %v4206_v4  ;;  %v4242_v17 = vmul.f32 1.442695, %v4207_v46  ;;  %v13112_v13 = vadd.f32 %v5641_v26, %v14594_v30  ;;  %5714 = vmax.xlane.f32.xlu1 %v5713_v34 }
 0x896   : > { %14631 = vst [vmem:[#allocation94_spill] sm:$0xff] %v13109_v47  ;;  %v4164_v25 = vpop.xlane.xlu0 %4163 }
 0x897   : > { %14632 = vst [vmem:[#allocation95_spill] sm:$0xff] %v13112_v13  ;;  %9973 = vpow2.f32 %v4240_v33  ;;  %v5716_v56 = vmax.f32 %v13109_v47, %v13112_v13  ;;  %v4208_v59 = vsub.f32 %v12817_v36, %v4164_v25  ;;  %v4209_v10 = vsub.f32 %v12820_v8, %v4164_v25  ;;  %v5645_v63 = vpop.f32.mrb[126].mxu0  ;;  %v5120_v33 = vld [vmem:[#allocation3 + $0x200] sm:$0xff]  ;;  %v5139_v13 = vld [vmem:[#allocation3 + $0x298] sm:$0xff] }
 0x898   : > { %9975 = vpow2.f32 %v4242_v17  ;;  %v13119_v55 = vadd.f32 %v5645_v63, %v14593_v58  ;;  %v5647_v4 = vpop.f32.mrb[127].mxu0  ;;  %v5138_v63 = vld [vmem:[#allocation3 + $0x290] sm:$0xff] }
 0x899   : > { %v4244_v46 = vmul.f32 1.442695, %v4208_v59  ;;  %v4246_v31 = vmul.f32 1.442695, %v4209_v10  ;;  %v13122_v26 = vadd.f32 %v5647_v4, %v14594_v30  ;;  %5717 = vmax.xlane.f32.xlu0 %v5716_v56 }
 0x89a   : > { %14633 = vst [vmem:[#allocation96_spill] sm:$0xff] %v13119_v55  ;;  %v4167_v34 = vpop.xlane.xlu0 %4166 }
 0x89b   : > { %14634 = vst [vmem:[#allocation97_spill] sm:$0xff] %v13122_v26  ;;  %9977 = vpow2.f32 %v4244_v46  ;;  %v5719_v36 = vmax.f32 %v13119_v55, %v13122_v26  ;;  %v4210_v8 = vsub.f32 %v12825_v62, %v4167_v34  ;;  %v4211_v17 = vsub.f32 %v12828_v39, %v4167_v34  ;;  %v5651_v25 = vpop.f32.mrb[128].mxu0  ;;  %v5122_v55 = vld [vmem:[#allocation3 + $0x210] sm:$0xff] }
 0x89c   : > { %9979 = vpow2.f32 %v4246_v31  ;;  %v13129_v59 = vadd.f32 %v5651_v25, %v14593_v58  ;;  %v5653_v10 = vpop.f32.mrb[129].mxu0  ;;  %v9309_v26 = vpack.c.bf16 %v5121_v5, %v5120_v33  ;;  %v9311_v34 = vpack.c.bf16 %v5139_v13, %v5138_v63 }
 0x89d   : > { %v13131_v56 = vpop.eup %9969  ;;  %v4248_v4 = vmul.f32 1.442695, %v4210_v8  ;;  %v4250_v47 = vmul.f32 1.442695, %v4211_v17  ;;  %v13134_v46 = vadd.f32 %v5653_v10, %v14594_v30  ;;  %5720 = vmax.xlane.f32.xlu1 %v5719_v36  ;;  %v5140_v10 = vld [vmem:[#allocation3 + $0x2a0] sm:$0xff]  ;;  %v5141_v36 = vld [vmem:[#allocation3 + $0x2a8] sm:$0xff] }
 0x89e   : > { %14635 = vst [vmem:[#allocation98_spill] sm:$0xff] %v13129_v59  ;;  %v13136_v62 = vpop.eup %9971  ;;  %v4170_v39 = vpop.xlane.xlu0 %4169 }
 0x89f   : > { %14636 = vst [vmem:[#allocation99_spill] sm:$0xff] %v13134_v46  ;;  %9981 = vpow2.f32 %v4248_v4  ;;  %v5722_v31 = vmax.f32 %v13129_v59, %v13134_v46  ;;  %4445 = vmatprep.mubr.f32.mxu1 %v13136_v62  ;;  %v4212_v8 = vsub.f32 %v12833_v19, %v4170_v39  ;;  %v4213_v17 = vsub.f32 %v12836_v23, %v4170_v39  ;;  %v5657_v25 = vpop.f32.mrb[130].mxu0  ;;  %v5124_v59 = vld [vmem:[#allocation3 + $0x220] sm:$0xff] }
 0x8a0   : > { %9983 = vpow2.f32 %v4250_v47  ;;  %4446 = vmatmul.mubr.f32.vlgmr.msra.gmra.mrb[32].mxu1 %v13131_v56  ;;  %v13145_v5 = vadd.f32 %v5657_v25, %v14593_v58  ;;  %v5659_v13 = vpop.f32.mrb[131].mxu0  ;;  %v9313_v19 = vpack.c.bf16 %v5123_v57, %v5122_v55  ;;  %v9315_v47 = vpack.c.bf16 %v5141_v36, %v5140_v10  ;;  %v5143_v57 = vld [vmem:[#allocation3 + $0x2b8] sm:$0xff] }
 0x8a1   : > { %v13147_v33 = vpop.eup %9973  ;;  %v4252_v63 = vmul.f32 1.442695, %v4212_v8  ;;  %v4254_v4 = vmul.f32 1.442695, %v4213_v17  ;;  %9310 = vmatpush3.bf16.msra.mxu1 %v9309_v26  ;;  %v13150_v46 = vadd.f32 %v5659_v13, %v14594_v30  ;;  %5723 = vmax.xlane.f32.xlu0 %v5722_v31  ;;  %v5142_v31 = vld [vmem:[#allocation3 + $0x2b0] sm:$0xff] }
 0x8a2   : > { %14637 = vst [vmem:[#allocation100_spill] sm:$0xff] %v13145_v5  ;;  %v13152_v23 = vpop.eup %9975  ;;  %v4173_v39 = vpop.xlane.xlu1 %4172  ;;  %9312 = vmatprep.subr.bf16.mxu1 %v9311_v34 }
 0x8a3   : > { %14638 = vst [vmem:[#allocation101_spill] sm:$0xff] %v13150_v46  ;;  %9985 = vpow2.f32 %v4252_v63  ;;  %v5725_v25 = vmax.f32 %v13145_v5, %v13150_v46  ;;  %v4214_v8 = vsub.f32 %v12841_v41, %v4173_v39  ;;  %v4215_v26 = vsub.f32 %v12844_v54, %v4173_v39  ;;  %4450 = vmatprep.mubr.f32.mxu1 %v13152_v23  ;;  %v5663_v17 = vpop.f32.mrb[132].mxu0  ;;  %v5126_v46 = vld [vmem:[#allocation3 + $0x230] sm:$0xff]  ;;  %v5127_v5 = vld [vmem:[#allocation3 + $0x238] sm:$0xff] }
 0x8a4   : > { %9987 = vpow2.f32 %v4254_v4  ;;  %4451 = vmatmul.mubr.f32.gmra.mrb[34].mxu1 %v13147_v33  ;;  %v13161_v55 = vadd.f32 %v5663_v17, %v14593_v58  ;;  %v5665_v34 = vpop.f32.mrb[133].mxu0  ;;  %v9317_v54 = vpack.c.bf16 %v5125_v16, %v5124_v59  ;;  %v9319_v4 = vpack.c.bf16 %v5143_v57, %v5142_v31  ;;  %v5145_v16 = vld [vmem:[#allocation3 + $0x2c8] sm:$0xff] }
 0x8a5   : > { %v13163_v10 = vpop.eup %9977  ;;  %v4256_v36 = vmul.f32 1.442695, %v4214_v8  ;;  %v4258_v13 = vmul.f32 1.442695, %v4215_v26  ;;  %v13166_v41 = vadd.f32 %v5665_v34, %v14594_v30  ;;  %5726 = vmax.xlane.f32.xlu1 %v5725_v25  ;;  %9314 = vmatpush3.bf16.msra.mxu1 %v9313_v19  ;;  %v5144_v19 = vld [vmem:[#allocation3 + $0x2c0] sm:$0xff] }
 0x8a6   : > { %14639 = vst [vmem:[#allocation102_spill] sm:$0xff] %v13161_v55  ;;  %v13168_v63 = vpop.eup %9979  ;;  %v4176_v39 = vpop.xlane.xlu0 %4175  ;;  %9316 = vmatprep.subr.bf16.mxu1 %v9315_v47 }
 0x8a7   : > { %14640 = vst [vmem:[#allocation103_spill] sm:$0xff] %v13166_v41  ;;  %9989 = vpow2.f32 %v4256_v36  ;;  %v5728_v17 = vmax.f32 %v13161_v55, %v13166_v41  ;;  %4455 = vmatprep.mubr.f32.mxu1 %v13168_v63  ;;  %v4216_v8 = vsub.f32 %v12849_v38, %v4176_v39  ;;  %v4217_v26 = vsub.f32 %v12852_v11, %v4176_v39  ;;  %v5669_v25 = vpop.f32.mrb[134].mxu0  ;;  %v5128_v41 = vld [vmem:[#allocation3 + $0x240] sm:$0xff]  ;;  %v5129_v55 = vld [vmem:[#allocation3 + $0x248] sm:$0xff] }
 0x8a8   : > { %9991 = vpow2.f32 %v4258_v13  ;;  %4456 = vmatmul.mubr.f32.gmra.mrb[36].mxu1 %v13163_v10  ;;  %v13177_v59 = vadd.f32 %v5669_v25, %v14593_v58  ;;  %v5671_v47 = vpop.f32.mrb[135].mxu0  ;;  %v9321_v38 = vpack.c.bf16 %v5127_v5, %v5126_v46  ;;  %v9323_v13 = vpack.c.bf16 %v5145_v16, %v5144_v19  ;;  %v5147_v46 = vld [vmem:[#allocation3 + $0x2d8] sm:$0xff] }
 0x8a9   : > { %v13179_v31 = vpop.eup %9981  ;;  %v4260_v57 = vmul.f32 1.442695, %v4216_v8  ;;  %v4262_v34 = vmul.f32 1.442695, %v4217_v26  ;;  %v13182_v36 = vadd.f32 %v5671_v47, %v14594_v30  ;;  %5729 = vmax.xlane.f32.xlu0 %v5728_v17  ;;  %9318 = vmatpush3.bf16.msra.mxu1 %v9317_v54  ;;  %v5146_v54 = vld [vmem:[#allocation3 + $0x2d0] sm:$0xff] }
 0x8aa   : > { %14641 = vst [vmem:[#allocation104_spill] sm:$0xff] %v13177_v59  ;;  %v13184_v11 = vpop.eup %9983  ;;  %v4179_v39 = vpop.xlane.xlu1 %4178  ;;  %9320 = vmatprep.subr.bf16.mxu1 %v9319_v4 }
 0x8ab   : > { %14642 = vst [vmem:[#allocation105_spill] sm:$0xff] %v13182_v36  ;;  %9993 = vpow2.f32 %v4260_v57  ;;  %v5731_v25 = vmax.f32 %v13177_v59, %v13182_v36  ;;  %v4218_v8 = vsub.f32 %v12857_v22, %v4179_v39  ;;  %v4219_v26 = vsub.f32 %v12860_v9, %v4179_v39  ;;  %4460 = vmatprep.mubr.f32.mxu1 %v13184_v11  ;;  %v5675_v17 = vpop.f32.mrb[136].mxu0  ;;  %v5130_v36 = vld [vmem:[#allocation3 + $0x250] sm:$0xff]  ;;  %v5131_v59 = vld [vmem:[#allocation3 + $0x258] sm:$0xff] }
 0x8ac   : > { %9995 = vpow2.f32 %v4262_v34  ;;  %4461 = vmatmul.mubr.f32.gmra.mrb[38].mxu1 %v13179_v31  ;;  %v13193_v5 = vadd.f32 %v5675_v17, %v14593_v58  ;;  %v5677_v4 = vpop.f32.mrb[137].mxu0  ;;  %v9325_v9 = vpack.c.bf16 %v5129_v55, %v5128_v41  ;;  %v9327_v34 = vpack.c.bf16 %v5147_v46, %v5146_v54  ;;  %v5149_v55 = vld [vmem:[#allocation3 + $0x2e8] sm:$0xff] }
 0x8ad   : > { %v13195_v19 = vpop.eup %9985  ;;  %v4264_v16 = vmul.f32 1.442695, %v4218_v8  ;;  %v4266_v47 = vmul.f32 1.442695, %v4219_v26  ;;  %v13198_v22 = vadd.f32 %v5677_v4, %v14594_v30  ;;  %5732 = vmax.xlane.f32.xlu1 %v5731_v25  ;;  %9322 = vmatpush3.bf16.msra.mxu1 %v9321_v38  ;;  %v5148_v38 = vld [vmem:[#allocation3 + $0x2e0] sm:$0xff] }
 0x8ae   : > { %14643 = vst [vmem:[#allocation106_spill] sm:$0xff] %v13193_v5  ;;  %v13200_v57 = vpop.eup %9987  ;;  %v4182_v39 = vpop.xlane.xlu0 %4181  ;;  %9324 = vmatprep.subr.bf16.mxu1 %v9323_v13 }
 0x8af   : > { %14644 = vst [vmem:[#allocation107_spill] sm:$0xff] %v13198_v22  ;;  %9997 = vpow2.f32 %v4264_v16  ;;  %v5734_v17 = vmax.f32 %v13193_v5, %v13198_v22  ;;  %4465 = vmatprep.mubr.f32.mxu1 %v13200_v57  ;;  %v4220_v8 = vsub.f32 %v12865_v28, %v4182_v39  ;;  %v4221_v26 = vsub.f32 %v12868_v15, %v4182_v39  ;;  %v5681_v25 = vpop.f32.mrb[138].mxu0  ;;  %v5132_v22 = vld [vmem:[#allocation3 + $0x260] sm:$0xff]  ;;  %v5133_v5 = vld [vmem:[#allocation3 + $0x268] sm:$0xff] }
 0x8b0   : > { %9999 = vpow2.f32 %v4266_v47  ;;  %4466 = vmatmul.mubr.f32.gmra.mrb[40].mxu1 %v13195_v19  ;;  %v13209_v41 = vadd.f32 %v5681_v25, %v14593_v58  ;;  %v5683_v13 = vpop.f32.mrb[139].mxu0  ;;  %v9329_v28 = vpack.c.bf16 %v5131_v59, %v5130_v36  ;;  %v9331_v47 = vpack.c.bf16 %v5149_v55, %v5148_v38  ;;  %v5151_v59 = vld [vmem:[#allocation3 + $0x2f8] sm:$0xff] }
 0x8b1   : > { %v13211_v54 = vpop.eup %9989  ;;  %v4268_v46 = vmul.f32 1.442695, %v4220_v8  ;;  %v4270_v4 = vmul.f32 1.442695, %v4221_v26  ;;  %v13214_v16 = vadd.f32 %v5683_v13, %v14594_v30  ;;  %5735 = vmax.xlane.f32.xlu0 %v5734_v17  ;;  %9326 = vmatpush3.bf16.msra.mxu1 %v9325_v9  ;;  %v5150_v9 = vld [vmem:[#allocation3 + $0x2f0] sm:$0xff] }
 0x8b2   : > { %v13216_v15 = vpop.eup %9991  ;;  %v4185_v39 = vpop.xlane.xlu1 %4184  ;;  %9328 = vmatprep.subr.bf16.mxu1 %v9327_v34 }
 0x8b3   : > { %14645 = vst [vmem:[#allocation108_spill] sm:$0xff] %v13214_v16  ;;  %10001 = vpow2.f32 %v4268_v46  ;;  %v5737_v25 = vmax.f32 %v13209_v41, %v13214_v16  ;;  %v4222_v8 = vsub.f32 %v12873_v49, %v4185_v39  ;;  %v4223_v26 = vsub.f32 %v12876_v45, %v4185_v39  ;;  %4470 = vmatprep.mubr.f32.mxu1 %v13216_v15  ;;  %v5687_v17 = vpop.f32.mrb[140].mxu0  ;;  %v5134_v16 = vld [vmem:[#allocation3 + $0x270] sm:$0xff] }
 0x8b4   : > { %10003 = vpow2.f32 %v4270_v4  ;;  %4471 = vmatmul.mubr.f32.gmra.mrb[42].mxu1 %v13211_v54  ;;  %v13225_v36 = vadd.f32 %v5687_v17, %v14593_v58  ;;  %v5689_v34 = vpop.f32.mrb[141].mxu0  ;;  %v9333_v45 = vpack.c.bf16 %v5133_v5, %v5132_v22  ;;  %v9335_v4 = vpack.c.bf16 %v5151_v59, %v5150_v9  ;;  %v5908_v5 = vld [vmem:[#allocation3 + $0x388] sm:$0xff] }
 0x8b5   : > { %v13227_v38 = vpop.eup %9993  ;;  %v4272_v55 = vmul.f32 1.442695, %v4222_v8  ;;  %v4274_v13 = vmul.f32 1.442695, %v4223_v26  ;;  %v13230_v49 = vadd.f32 %v5689_v34, %v14594_v30  ;;  %5738 = vmax.xlane.f32.xlu1 %v5737_v25  ;;  %9330 = vmatpush3.bf16.msra.mxu1 %v9329_v28  ;;  %v5135_v25 = vld [vmem:[#allocation3 + $0x278] sm:$0xff]  ;;  %v5907_v28 = vld [vmem:[#allocation3 + $0x380] sm:$0xff] }
 0x8b6   : > { %v13232_v46 = vpop.eup %9995  ;;  %v4188_v39 = vpop.xlane.xlu0 %4187  ;;  %9332 = vmatprep.subr.bf16.mxu1 %v9331_v47 }
 0x8b7   : > { %14646 = vst [vmem:[#allocation109_spill] sm:$0xff] %v13230_v49  ;;  %10005 = vpow2.f32 %v4272_v55  ;;  %v5740_v17 = vmax.f32 %v13225_v36, %v13230_v49  ;;  %4475 = vmatprep.mubr.f32.mxu1 %v13232_v46  ;;  %v4224_v8 = vsub.f32 %v12881_v14, %v4188_v39  ;;  %v4225_v26 = vsub.f32 %v12884_v24, %v4188_v39  ;;  %v5693_v34 = vpop.f32.mrb[142].mxu0 }
 0x8b8   : > { %10007 = vpow2.f32 %v4274_v13  ;;  %4476 = vmatmul.mubr.f32.gmra.mrb[44].mxu1 %v13227_v38  ;;  %v13241_v22 = vadd.f32 %v5693_v34, %v14593_v58  ;;  %v5695_v47 = vpop.f32.mrb[143].mxu0  ;;  %v9337_v13 = vpack.c.bf16 %v5135_v25, %v5134_v16  ;;  %v9387_v39 = vpack.c.bf16 %v5908_v5, %v5907_v28 }
 0x8b9   : > { %v13243_v9 = vpop.eup %9997  ;;  %v4276_v59 = vmul.f32 1.442695, %v4224_v8  ;;  %v4278_v55 = vmul.f32 1.442695, %v4225_v26  ;;  %v13246_v49 = vadd.f32 %v5695_v47, %v14594_v30  ;;  %5741 = vmax.xlane.f32.xlu0 %v5740_v17  ;;  %9334 = vmatpush3.bf16.msra.mxu1 %v9333_v45  ;;  %v4303_v25 = vadd.f32 %v13152_v23, %v13147_v33 }
 0x8ba   : > { %v13248_v14 = vpop.eup %9999  ;;  %v4191_v24 = vpop.xlane.xlu1 %4190  ;;  %9336 = vmatprep.subr.bf16.mxu1 %v9335_v4  ;;  %v4306_v33 = vadd.f32 %v13168_v63, %v13163_v10  ;;  %v4309_v63 = vadd.f32 %v13184_v11, %v13179_v31  ;;  %v4312_v31 = vadd.f32 %v13200_v57, %v13195_v19  ;;  %v4315_v57 = vadd.f32 %v13216_v15, %v13211_v54 }
 0x8bb   : > { %10009 = vpow2.f32 %v4276_v59  ;;  %v5743_v58 = vmax.f32 %v13241_v22, %v13246_v49  ;;  %v4226_v34 = vsub.f32 %v12889_v27, %v4191_v24  ;;  %v4227_v8 = vsub.f32 %v12892_v44, %v4191_v24  ;;  %4480 = vmatprep.mubr.f32.mxu1 %v13248_v14 }
 0x8bc   : > { %10011 = vpow2.f32 %v4278_v55  ;;  %4481 = vmatmul.mubr.f32.gmra.mrb[46].mxu1 %v13243_v9  ;;  %v4300_v27 = vadd.f32 %v13136_v62, %v13131_v56  ;;  %v4318_v54 = vadd.f32 %v13232_v46, %v13227_v38  ;;  %v4321_v46 = vadd.f32 %v13248_v14, %v13243_v9 }
 0x8bd   : > { %v13256_v30 = vpop.eup %10001  ;;  %v4280_v45 = vmul.f32 1.442695, %v4226_v34  ;;  %v4282_v17 = vmul.f32 1.442695, %v4227_v8  ;;  %5744 = vmax.xlane.f32.xlu1 %v5743_v58  ;;  %3531 = vadd.xlane.f32.xlu0 %v12390_v7 }
 0x8be   : > { %v13259_v16 = vpop.eup %10003  ;;  %v4194_v4 = vpop.xlane.xlu0 %4193  ;;  %9338 = vmatpush3.bf16.msra.mxu1 %v9337_v13 }
 0x8bf   : > { %10013 = vpow2.f32 %v4280_v45  ;;  %4485 = vmatprep.mubr.f32.mxu1 %v13259_v16  ;;  %v4228_v44 = vsub.f32 %v12897_v48, %v4194_v4  ;;  %v4229_v26 = vsub.f32 %v12900_v37, %v4194_v4  ;;  %9388 = vmatprep.subr.bf16.mxu1 %v9387_v39  ;;  %v4324_v14 = vadd.f32 %v13259_v16, %v13256_v30 }
 0x8c0   : > { %10015 = vpow2.f32 %v4282_v17  ;;  %4486 = vmatmul.mubr.f32.gmra.mrb[48].mxu1 %v13256_v30  ;;  %v14647_v30 = vld [vmem:[#allocation37_spill] sm:$0xff] }
 0x8c1   : > { %v13269_v7 = vpop.eup %10005  ;;  %v4284_v28 = vmul.f32 1.442695, %v4228_v44  ;;  %v4286_v5 = vmul.f32 1.442695, %v4229_v26  ;;  %4304 = vadd.xlane.f32.xlu0 %v4303_v25  ;;  %4301 = vadd.xlane.f32.xlu1 %v4300_v27 }
 0x8c2   : > { %v13271_v56 = vpop.eup %10007  ;;  %v4197_v62 = vpop.xlane.xlu1 %4196 }
 0x8c3   : > { %10017 = vpow2.f32 %v4284_v28  ;;  %v4230_v48 = vsub.f32 %v12905_v53, %v4197_v62  ;;  %v4231_v37 = vsub.f32 %v12908_v2, %v4197_v62  ;;  %4490 = vmatprep.mubr.f32.mxu1 %v13271_v56 }
 0x8c4   : > { %10019 = vpow2.f32 %v4286_v5  ;;  %4491 = vmatmul.mubr.f32.gmra.mrb[50].mxu1 %v13269_v7 }
 0x8c5   : > { %v13279_v23 = vpop.eup %10009  ;;  %v4288_v47 = vmul.f32 1.442695, %v4230_v48  ;;  %v4290_v59 = vmul.f32 1.442695, %v4231_v37  ;;  %3534 = vadd.xlane.f32.xlu1 %v12404_v51  ;;  %4307 = vadd.xlane.f32.xlu0 %v4306_v33  ;;  %v5891_v48 = vld [vmem:[#allocation3 + $0x300] sm:$0xff]  ;;  %v5909_v37 = vld [vmem:[#allocation3 + $0x390] sm:$0xff] }
 0x8c6   : > { %v13282_v55 = vpop.eup %10011  ;;  %v4200_v53 = vpop.xlane.xlu0 %4199  ;;  %v5910_v33 = vld [vmem:[#allocation3 + $0x398] sm:$0xff] }
 0x8c7   : > { %10021 = vpow2.f32 %v4288_v47  ;;  %4495 = vmatprep.mubr.f32.mxu1 %v13282_v55  ;;  %v4232_v2 = vsub.f32 %v12913_v60, %v4200_v53  ;;  %v4233_v10 = vsub.f32 %v12916_v18, %v4200_v53 }
 0x8c8   : > { %10023 = vpow2.f32 %v4290_v59  ;;  %4496 = vmatmul.mubr.f32.gmra.mrb[52].mxu1 %v13279_v23 }
 0x8c9   : > { %v13290_v24 = vpop.eup %10013  ;;  %v4292_v51 = vmul.f32 1.442695, %v4232_v2  ;;  %v4294_v13 = vmul.f32 1.442695, %v4233_v10  ;;  %3537 = vadd.xlane.f32.xlu1 %v12414_v1  ;;  %4310 = vadd.xlane.f32.xlu0 %v4309_v63  ;;  %v9391_v2 = vpack.c.bf16 %v5910_v33, %v5909_v37  ;;  %v5893_v10 = vld [vmem:[#allocation3 + $0x310] sm:$0xff]  ;;  %v5894_v63 = vld [vmem:[#allocation3 + $0x318] sm:$0xff] }
 0x8ca   : > { %v13293_v39 = vpop.eup %10015  ;;  %v4203_v58 = vpop.xlane.xlu1 %4202  ;;  %v5916_v37 = vld [vmem:[#allocation3 + $0x3c8] sm:$0xff] }
 0x8cb   : > { %10025 = vpow2.f32 %v4292_v51  ;;  %v4234_v60 = vsub.f32 %v12921_v3, %v4203_v58  ;;  %v4235_v18 = vsub.f32 %v12924_v43, %v4203_v58  ;;  %4500 = vmatprep.mubr.f32.mxu1 %v13293_v39  ;;  %v14648_v51 = vld [vmem:[#allocation38_spill] sm:$0xff]  ;;  %v5911_v58 = vld [vmem:[#allocation3 + $0x3a0] sm:$0xff]  ;;  %v4333_v33 = vadd.f32 %v13293_v39, %v13290_v24 }
 0x8cc   : > { %10027 = vpow2.f32 %v4294_v13  ;;  %4501 = vmatmul.mubr.f32.gmra.mrb[54].mxu1 %v13290_v24  ;;  %v14657_v24 = vld [vmem:[#allocation65_spill] sm:$0xff] }
 0x8cd   : > { %v13301_v11 = vpop.eup %10017  ;;  %v4296_v1 = vmul.f32 1.442695, %v4234_v60  ;;  %v4298_v34 = vmul.f32 1.442695, %v4235_v18  ;;  %3540 = vadd.xlane.f32.xlu1 %v12428_v52  ;;  %4313 = vadd.xlane.f32.xlu0 %v4312_v31  ;;  %v5912_v60 = vld [vmem:[#allocation3 + $0x3a8] sm:$0xff] }
 0x8ce   : > { %v13304_v8 = vpop.eup %10019  ;;  %v4929_v3 = vpop.xlane.xlu0 %4928 }
 0x8cf   : > { %10029 = vpow2.f32 %v4296_v1  ;;  %4505 = vmatprep.mubr.f32.mxu1 %v13304_v8  ;;  %v4975_v43 = vsub.f32 %v12929_v61, %v4929_v3  ;;  %v4976_v19 = vsub.f32 %v12932_v21, %v4929_v3  ;;  %v9393_v3 = vpack.c.bf16 %v5894_v63, %v5893_v10 }
 0x8d0   : > { %10031 = vpow2.f32 %v4298_v34  ;;  %4506 = vmatmul.mubr.f32.gmra.mrb[56].mxu1 %v13301_v11  ;;  %v14649_v34 = vld [vmem:[#allocation39_spill] sm:$0xff] }
 0x8d1   : > { %v13312_v45 = vpop.eup %10021  ;;  %v5007_v52 = vmul.f32 1.442695, %v4975_v43  ;;  %v5009_v17 = vmul.f32 1.442695, %v4976_v19  ;;  %3543 = vadd.xlane.f32.xlu1 %v12438_v20  ;;  %4316 = vadd.xlane.f32.xlu0 %v4315_v57  ;;  %v9395_v57 = vpack.c.bf16 %v5912_v60, %v5911_v58  ;;  %v5917_v60 = vld [vmem:[#allocation3 + $0x3d0] sm:$0xff] }
 0x8d2   : > { %v13315_v4 = vpop.eup %10023  ;;  %v4932_v27 = vpop.xlane.xlu1 %4931 }
 0x8d3   : > { %10033 = vpow2.f32 %v5007_v52  ;;  %v4977_v61 = vsub.f32 %v12937_v50, %v4932_v27  ;;  %v4978_v21 = vsub.f32 %v12940_v29, %v4932_v27  ;;  %4510 = vmatprep.mubr.f32.mxu1 %v13315_v4  ;;  %v5895_v52 = vld [vmem:[#allocation3 + $0x320] sm:$0xff] }
 0x8d4   : > { %10035 = vpow2.f32 %v5009_v17  ;;  %4511 = vmatmul.mubr.f32.gmra.mrb[58].mxu1 %v13312_v45  ;;  %v5896_v17 = vld [vmem:[#allocation3 + $0x328] sm:$0xff]  ;;  %v14650_v27 = vld [vmem:[#allocation60_spill] sm:$0xff] }
 0x8d5   : > { %v13323_v15 = vpop.eup %10025  ;;  %v5011_v20 = vmul.f32 1.442695, %v4977_v61  ;;  %v5013_v44 = vmul.f32 1.442695, %v4978_v21  ;;  %3546 = vadd.xlane.f32.xlu1 %v12452_v42  ;;  %4319 = vadd.xlane.f32.xlu0 %v4318_v54  ;;  %v5913_v21 = vld [vmem:[#allocation3 + $0x3b0] sm:$0xff]  ;;  %v5914_v54 = vld [vmem:[#allocation3 + $0x3b8] sm:$0xff] }
 0x8d6   : > { %v13326_v26 = vpop.eup %10027  ;;  %v4935_v50 = vpop.xlane.xlu0 %4934 }
 0x8d7   : > { %10037 = vpow2.f32 %v5011_v20  ;;  %4515 = vmatprep.mubr.f32.mxu1 %v13326_v26  ;;  %v4979_v29 = vsub.f32 %v12945_v32, %v4935_v50  ;;  %v4980_v38 = vsub.f32 %v12948_v12, %v4935_v50  ;;  %v5892_v32 = vld [vmem:[#allocation3 + $0x308] sm:$0xff]  ;;  %v4330_v20 = vadd.f32 %v13282_v55, %v13279_v23 }
 0x8d8   : > { %10039 = vpow2.f32 %v5013_v44  ;;  %4516 = vmatmul.mubr.f32.gmra.mrb[60].mxu1 %v13323_v15  ;;  %v14653_v23 = vld [vmem:[#allocation62_spill] sm:$0xff] }
 0x8d9   : > { %v13334_v25 = vpop.eup %10029  ;;  %v5015_v42 = vmul.f32 1.442695, %v4979_v29  ;;  %v5017_v28 = vmul.f32 1.442695, %v4980_v38  ;;  %3549 = vadd.xlane.f32.xlu1 %v12462_v0  ;;  %4322 = vadd.xlane.f32.xlu0 %v4321_v46  ;;  %v14652_v38 = vld [vmem:[#allocation40_spill] sm:$0xff]  ;;  %v9397_v46 = vpack.c.bf16 %v5896_v17, %v5895_v52 }
 0x8da   : > { %v13337_v5 = vpop.eup %10031  ;;  %v4938_v62 = vpop.xlane.xlu1 %4937 }
 0x8db   : > { %10041 = vpow2.f32 %v5015_v42  ;;  %v4981_v12 = vsub.f32 %v12953_v40, %v4938_v62  ;;  %v4982_v9 = vsub.f32 %v12956_v35, %v4938_v62  ;;  %4520 = vmatprep.mubr.f32.mxu1 %v13337_v5  ;;  %v9389_v40 = vpack.c.bf16 %v5892_v32, %v5891_v48  ;;  %v5897_v48 = vld [vmem:[#allocation3 + $0x330] sm:$0xff]  ;;  %v5898_v32 = vld [vmem:[#allocation3 + $0x338] sm:$0xff] }
 0x8dc   : > { %10043 = vpow2.f32 %v5017_v28  ;;  %4521 = vmatmul.mubr.f32.gmra.mrb[62].mxu1 %v13334_v25  ;;  %v9399_v62 = vpack.c.bf16 %v5914_v54, %v5913_v21  ;;  %v5919_v54 = vld [vmem:[#allocation3 + $0x3e0] sm:$0xff] }
 0x8dd   : > { %v13345_v0 = vpop.eup %10033  ;;  %v5019_v47 = vmul.f32 1.442695, %v4981_v12  ;;  %v5021_v59 = vmul.f32 1.442695, %v4982_v9  ;;  %3552 = vadd.xlane.f32.xlu1 %v12480_v6  ;;  %4325 = vadd.xlane.f32.xlu0 %v4324_v14  ;;  %v4327_v6 = vadd.f32 %v13271_v56, %v13269_v7  ;;  %v14651_v7 = vld [vmem:[#allocation61_spill] sm:$0xff]  ;;  %v14654_v12 = vld [vmem:[#allocation63_spill] sm:$0xff] }
 0x8de   : > { %v13348_v53 = vpop.eup %10035  ;;  %v4941_v35 = vpop.xlane.xlu0 %4940  ;;  %v5915_v14 = vld [vmem:[#allocation3 + $0x3c0] sm:$0xff] }
 0x8df   : > { %10045 = vpow2.f32 %v5019_v47  ;;  %5216 = vmatprep.mubr.f32.mxu1 %v13348_v53  ;;  %v4983_v16 = vsub.f32 %v14647_v30, %v4941_v35  ;;  %v4984_v13 = vsub.f32 %v14648_v51, %v4941_v35  ;;  %v14655_v35 = vld [vmem:[#allocation34_spill] sm:$0xff]  ;;  %v9403_v30 = vpack.c.bf16 %v5916_v37, %v5915_v14 }
 0x8e0   : > { %10047 = vpow2.f32 %v5021_v59  ;;  %5217 = vmatmul.mubr.f32.vlgmr.msra.gmra.mrb[64].mxu1 %v13345_v0  ;;  %v5900_v51 = vld [vmem:[#allocation3 + $0x348] sm:$0xff]  ;;  %v5921_v37 = vld [vmem:[#allocation3 + $0x3f0] sm:$0xff] }
 0x8e1   : > { %v13356_v18 = vpop.eup %10037  ;;  %v5023_v31 = vmul.f32 1.442695, %v4983_v16  ;;  %v5025_v1 = vmul.f32 1.442695, %v4984_v13  ;;  %9390 = vmatpush3.bf16.msra.mxu1 %v9389_v40  ;;  %3555 = vadd.xlane.f32.xlu1 %v14649_v34  ;;  %v5899_v16 = vld [vmem:[#allocation3 + $0x340] sm:$0xff] }
 0x8e2   : > { %v13359_v43 = vpop.eup %10039  ;;  %4328 = vadd.xlane.f32.xlu0 %v4327_v6  ;;  %v4944_v19 = vpop.xlane.xlu1 %4943  ;;  %9392 = vmatprep.subr.bf16.mxu1 %v9391_v2  ;;  %v9401_v2 = vpack.c.bf16 %v5898_v32, %v5897_v48  ;;  %v14656_v13 = vld [vmem:[#allocation64_spill] sm:$0xff] }
 0x8e3   : > { %10049 = vpow2.f32 %v5023_v31  ;;  %v4985_v61 = vsub.f32 %v14650_v27, %v4944_v19  ;;  %v4986_v56 = vsub.f32 %v14651_v7, %v4944_v19  ;;  %5221 = vmatprep.mubr.f32.mxu1 %v13359_v43  ;;  %v5918_v6 = vld [vmem:[#allocation3 + $0x3d8] sm:$0xff]  ;;  %v4336_v31 = vadd.f32 %v13304_v8, %v13301_v11  ;;  %v14658_v19 = vld [vmem:[#allocation33_spill] sm:$0xff]  ;;  %v14659_v11 = vld [vmem:[#allocation66_spill] sm:$0xff] }
 0x8e4   : > { %10051 = vpow2.f32 %v5025_v1  ;;  %5222 = vmatmul.mubr.f32.gmra.mrb[66].mxu1 %v13356_v18  ;;  %v9407_v27 = vpack.c.bf16 %v5918_v6, %v5917_v60  ;;  %v5902_v7 = vld [vmem:[#allocation3 + $0x358] sm:$0xff]  ;;  %v4345_v6 = vadd.f32 %v13337_v5, %v13334_v25  ;;  %v5071_v25 = vadd.f32 %v13348_v53, %v13345_v0 }
 0x8e5   : > { %v13367_v44 = vpop.eup %10041  ;;  %v5027_v50 = vmul.f32 1.442695, %v4985_v61  ;;  %v5029_v29 = vmul.f32 1.442695, %v4986_v56  ;;  %3558 = vadd.xlane.f32.xlu1 %v14652_v38  ;;  %9394 = vmatpush3.bf16.msra.mxu1 %v9393_v3  ;;  %v5901_v61 = vld [vmem:[#allocation3 + $0x350] sm:$0xff]  ;;  %v5074_v0 = vadd.f32 %v13359_v43, %v13356_v18 }
 0x8e6   : > { %v13370_v42 = vpop.eup %10043  ;;  %4331 = vadd.xlane.f32.xlu0 %v4330_v20  ;;  %v4947_v28 = vpop.xlane.xlu0 %4946  ;;  %9396 = vmatprep.subr.bf16.mxu1 %v9395_v57  ;;  %v9405_v57 = vpack.c.bf16 %v5900_v51, %v5899_v16  ;;  %v14660_v56 = vld [vmem:[#allocation67_spill] sm:$0xff]  ;;  %v5920_v20 = vld [vmem:[#allocation3 + $0x3e8] sm:$0xff] }
 0x8e7   : > { %10053 = vpow2.f32 %v5027_v50  ;;  %5226 = vmatprep.mubr.f32.mxu1 %v13370_v42  ;;  %v4987_v55 = vsub.f32 %v14653_v23, %v4947_v28  ;;  %v4988_v9 = vsub.f32 %v14654_v12, %v4947_v28  ;;  %v4339_v50 = vadd.f32 %v13315_v4, %v13312_v45  ;;  %v14661_v28 = vld [vmem:[#allocation42_spill] sm:$0xff]  ;;  %v14663_v45 = vld [vmem:[#allocation69_spill] sm:$0xff] }
 0x8e8   : > { %10055 = vpow2.f32 %v5029_v29  ;;  %5227 = vmatmul.mubr.f32.gmra.mrb[68].mxu1 %v13367_v44  ;;  %v9411_v23 = vpack.c.bf16 %v5920_v20, %v5919_v54  ;;  %v5904_v12 = vld [vmem:[#allocation3 + $0x368] sm:$0xff]  ;;  %v14670_v54 = vld [vmem:[#allocation43_spill] sm:$0xff]  ;;  %v5077_v18 = vadd.f32 %v13370_v42, %v13367_v44 }
 0x8e9   : > { %v13378_v47 = vpop.eup %10045  ;;  %v5031_v59 = vmul.f32 1.442695, %v4987_v55  ;;  %v5033_v40 = vmul.f32 1.442695, %v4988_v9  ;;  %3561 = vadd.xlane.f32.xlu1 %v14655_v35  ;;  %9398 = vmatpush3.bf16.msra.mxu1 %v9397_v46  ;;  %v5903_v55 = vld [vmem:[#allocation3 + $0x360] sm:$0xff] }
 0x8ea   : > { %v13381_v10 = vpop.eup %10047  ;;  %4334 = vadd.xlane.f32.xlu0 %v4333_v33  ;;  %v4950_v63 = vpop.xlane.xlu1 %4949  ;;  %9400 = vmatprep.subr.bf16.mxu1 %v9399_v62  ;;  %v9409_v62 = vpack.c.bf16 %v5902_v7, %v5901_v61  ;;  %v14662_v9 = vld [vmem:[#allocation68_spill] sm:$0xff] }
 0x8eb   : > { %10057 = vpow2.f32 %v5031_v59  ;;  %v4989_v58 = vsub.f32 %v14656_v13, %v4950_v63  ;;  %v4990_v39 = vsub.f32 %v14657_v24, %v4950_v63  ;;  %5231 = vmatprep.mubr.f32.mxu1 %v13381_v10  ;;  %v5922_v33 = vld [vmem:[#allocation3 + $0x3f8] sm:$0xff]  ;;  %v4342_v59 = vadd.f32 %v13326_v26, %v13323_v15  ;;  %v14664_v63 = vld [vmem:[#allocation41_spill] sm:$0xff]  ;;  %v14665_v15 = vld [vmem:[#allocation70_spill] sm:$0xff] }
 0x8ec   : > { %10059 = vpow2.f32 %v5033_v40  ;;  %5232 = vmatmul.mubr.f32.gmra.mrb[70].mxu1 %v13378_v47  ;;  %v9415_v13 = vpack.c.bf16 %v5922_v33, %v5921_v37  ;;  %v5906_v24 = vld [vmem:[#allocation3 + $0x378] sm:$0xff]  ;;  %v5080_v44 = vadd.f32 %v13381_v10, %v13378_v47 }
 0x8ed   : > { %v13389_v1 = vpop.eup %10049  ;;  %v5035_v34 = vmul.f32 1.442695, %v4989_v58  ;;  %v5037_v3 = vmul.f32 1.442695, %v4990_v39  ;;  %3564 = vadd.xlane.f32.xlu1 %v14658_v19  ;;  %9402 = vmatpush3.bf16.msra.mxu1 %v9401_v2  ;;  %v5905_v58 = vld [vmem:[#allocation3 + $0x370] sm:$0xff]  ;;  %v14668_v61 = vld [vmem:[#allocation72_spill] sm:$0xff] }
 0x8ee   : > { %v13392_v52 = vpop.eup %10051  ;;  %4337 = vadd.xlane.f32.xlu0 %v4336_v31  ;;  %v4953_v17 = vpop.xlane.xlu0 %4952  ;;  %9404 = vmatprep.subr.bf16.mxu1 %v9403_v30  ;;  %v9413_v30 = vpack.c.bf16 %v5904_v12, %v5903_v55  ;;  %v14666_v39 = vld [vmem:[#allocation71_spill] sm:$0xff] }
 0x8ef   : > { %10061 = vpow2.f32 %v5035_v34  ;;  %5236 = vmatprep.mubr.f32.mxu1 %v13392_v52  ;;  %v4991_v8 = vsub.f32 %v14659_v11, %v4953_v17  ;;  %v4992_v21 = vsub.f32 %v14660_v56, %v4953_v17  ;;  %v14667_v19 = vld [vmem:[#allocation35_spill] sm:$0xff]  ;;  %v14669_v11 = vld [vmem:[#allocation73_spill] sm:$0xff]  ;;  %v5083_v47 = vadd.f32 %v13392_v52, %v13389_v1 }
 0x8f0   : > { %10063 = vpow2.f32 %v5037_v3  ;;  %5237 = vmatmul.mubr.f32.gmra.mrb[72].mxu1 %v13389_v1 }
 0x8f1   : > { %v13400_v29 = vpop.eup %10053  ;;  %v5039_v38 = vmul.f32 1.442695, %v4991_v8  ;;  %v5041_v46 = vmul.f32 1.442695, %v4992_v21  ;;  %3567 = vadd.xlane.f32.xlu1 %v14661_v28  ;;  %9406 = vmatpush3.bf16.msra.mxu1 %v9405_v57  ;;  %v9417_v57 = vpack.c.bf16 %v5906_v24, %v5905_v58  ;;  %v14672_v28 = vld [vmem:[#allocation75_spill] sm:$0xff] }
 0x8f2   : > { %v13403_v48 = vpop.eup %10055  ;;  %4340 = vadd.xlane.f32.xlu0 %v4339_v50  ;;  %v4956_v32 = vpop.xlane.xlu1 %4955  ;;  %9408 = vmatprep.subr.bf16.mxu1 %v9407_v27 }
 0x8f3   : > { %10065 = vpow2.f32 %v5039_v38  ;;  %v4993_v14 = vsub.f32 %v14662_v9, %v4956_v32  ;;  %v4994_v4 = vsub.f32 %v14663_v45, %v4956_v32  ;;  %5241 = vmatprep.mubr.f32.mxu1 %v13403_v48  ;;  %v14671_v38 = vld [vmem:[#allocation74_spill] sm:$0xff]  ;;  %v14673_v9 = vld [vmem:[#allocation76_spill] sm:$0xff]  ;;  %v14674_v45 = vld [vmem:[#allocation77_spill] sm:$0xff]  ;;  %v5086_v1 = vadd.f32 %v13403_v48, %v13400_v29 }
 0x8f4   : > { %10067 = vpow2.f32 %v5041_v46  ;;  %5242 = vmatmul.mubr.f32.gmra.mrb[74].mxu1 %v13400_v29 }
 0x8f5   : > { %v13411_v40 = vpop.eup %10057  ;;  %v5043_v35 = vmul.f32 1.442695, %v4993_v14  ;;  %v5045_v2 = vmul.f32 1.442695, %v4994_v4  ;;  %3570 = vadd.xlane.f32.xlu1 %v14664_v63  ;;  %9410 = vmatpush3.bf16.msra.mxu1 %v9409_v62 }
 0x8f6   : > { %v13414_v16 = vpop.eup %10059  ;;  %4343 = vadd.xlane.f32.xlu0 %v4342_v59  ;;  %v4959_v51 = vpop.xlane.xlu0 %4958  ;;  %9412 = vmatprep.subr.bf16.mxu1 %v9411_v23 }
 0x8f7   : > { %10069 = vpow2.f32 %v5043_v35  ;;  %5246 = vmatprep.mubr.f32.mxu1 %v13414_v16  ;;  %v4995_v26 = vsub.f32 %v14665_v15, %v4959_v51  ;;  %v4996_v60 = vsub.f32 %v14666_v39, %v4959_v51  ;;  %v5089_v29 = vadd.f32 %v13414_v16, %v13411_v40 }
 0x8f8   : > { %10071 = vpow2.f32 %v5045_v2  ;;  %5247 = vmatmul.mubr.f32.gmra.mrb[76].mxu1 %v13411_v40  ;;  %v14675_v2 = vld [vmem:[#allocation78_spill] sm:$0xff] }
 0x8f9   : > { %v13422_v31 = vpop.eup %10061  ;;  %v5047_v34 = vmul.f32 1.442695, %v4995_v26  ;;  %v5049_v3 = vmul.f32 1.442695, %v4996_v60  ;;  %3573 = vadd.xlane.f32.xlu1 %v14667_v19  ;;  %9414 = vmatpush3.bf16.msra.mxu1 %v9413_v30  ;;  %v14676_v30 = vld [vmem:[#allocation79_spill] sm:$0xff]  ;;  %v14677_v26 = vld [vmem:[#allocation80_spill] sm:$0xff] }
 0x8fa   : > { %v13425_v17 = vpop.eup %10063  ;;  %4346 = vadd.xlane.f32.xlu0 %v4345_v6  ;;  %v4962_v27 = vpop.xlane.xlu1 %4961  ;;  %9416 = vmatprep.subr.bf16.mxu1 %v9415_v13  ;;  %v14678_v60 = vld [vmem:[#allocation81_spill] sm:$0xff] }
 0x8fb   : > { %10073 = vpow2.f32 %v5047_v34  ;;  %v4997_v7 = vsub.f32 %v14668_v61, %v4962_v27  ;;  %v4998_v8 = vsub.f32 %v14669_v11, %v4962_v27  ;;  %5251 = vmatprep.mubr.f32.mxu1 %v13425_v17  ;;  %v14679_v27 = vld [vmem:[#allocation82_spill] sm:$0xff]  ;;  %v5092_v40 = vadd.f32 %v13425_v17, %v13422_v31 }
 0x8fc   : > { %10075 = vpow2.f32 %v5049_v3  ;;  %5252 = vmatmul.mubr.f32.gmra.mrb[78].mxu1 %v13422_v31 }
 0x8fd   : > { %v13433_v5 = vpop.eup %10065  ;;  %v5051_v56 = vmul.f32 1.442695, %v4997_v7  ;;  %v5053_v21 = vmul.f32 1.442695, %v4998_v8  ;;  %3576 = vadd.xlane.f32.xlu1 %v14670_v54  ;;  %9418 = vmatpush3.bf16.msra.mxu1 %v9417_v57  ;;  %v14680_v7 = vld [vmem:[#allocation83_spill] sm:$0xff]  ;;  %v14681_v54 = vld [vmem:[#allocation84_spill] sm:$0xff] }
 0x8fe   : > { %v13436_v20 = vpop.eup %10067  ;;  %5072 = vadd.xlane.f32.xlu0 %v5071_v25  ;;  %v4965_v50 = vpop.xlane.xlu0 %4964 }
 0x8ff   : > { %10077 = vpow2.f32 %v5051_v56  ;;  %5256 = vmatprep.mubr.f32.mxu1 %v13436_v20  ;;  %v4999_v46 = vsub.f32 %v14671_v38, %v4965_v50  ;;  %v5000_v62 = vsub.f32 %v14672_v28, %v4965_v50  ;;  %v14682_v38 = vld [vmem:[#allocation85_spill] sm:$0xff]  ;;  %v5095_v31 = vadd.f32 %v13436_v20, %v13433_v5 }
 0x900   : > { %10079 = vpow2.f32 %v5053_v21  ;;  %5257 = vmatmul.mubr.f32.gmra.mrb[80].mxu1 %v13433_v5 }
 0x901   : > { %v13444_v53 = vpop.eup %10069  ;;  %v5055_v32 = vmul.f32 1.442695, %v4999_v46  ;;  %v5057_v23 = vmul.f32 1.442695, %v5000_v62 }
 0x902   : > { %v13446_v55 = vpop.eup %10071  ;;  %5075 = vadd.xlane.f32.xlu0 %v5074_v0  ;;  %v4968_v12 = vpop.xlane.xlu1 %4967 }
 0x903   : > { %10081 = vpow2.f32 %v5055_v32  ;;  %v5001_v14 = vsub.f32 %v14673_v9, %v4968_v12  ;;  %v5002_v4 = vsub.f32 %v14674_v45, %v4968_v12  ;;  %5261 = vmatprep.mubr.f32.mxu1 %v13446_v55  ;;  %v14684_v9 = vld [vmem:[#allocation87_spill] sm:$0xff] }
 0x904   : > { %10083 = vpow2.f32 %v5057_v23  ;;  %5262 = vmatmul.mubr.f32.gmra.mrb[82].mxu1 %v13444_v53  ;;  %v14683_v23 = vld [vmem:[#allocation86_spill] sm:$0xff] }
 0x905   : > { %v13454_v43 = vpop.eup %10073  ;;  %v5059_v37 = vmul.f32 1.442695, %v5001_v14  ;;  %v5061_v33 = vmul.f32 1.442695, %v5002_v4 }
 0x906   : > { %v13456_v59 = vpop.eup %10075  ;;  %5078 = vadd.xlane.f32.xlu0 %v5077_v18  ;;  %v4971_v35 = vpop.xlane.xlu0 %4970 }
 0x907   : > { %10085 = vpow2.f32 %v5059_v37  ;;  %5266 = vmatprep.mubr.f32.mxu1 %v13456_v59  ;;  %v5003_v63 = vsub.f32 %v14675_v2, %v4971_v35  ;;  %v5004_v51 = vsub.f32 %v14676_v30, %v4971_v35  ;;  %v14686_v2 = vld [vmem:[#allocation89_spill] sm:$0xff] }
 0x908   : > { %10087 = vpow2.f32 %v5061_v33  ;;  %5267 = vmatmul.mubr.f32.gmra.mrb[84].mxu1 %v13454_v43  ;;  %v14685_v33 = vld [vmem:[#allocation88_spill] sm:$0xff] }
 0x909   : > { %v13464_v42 = vpop.eup %10077  ;;  %v5063_v13 = vmul.f32 1.442695, %v5003_v63  ;;  %v5065_v58 = vmul.f32 1.442695, %v5004_v51 }
 0x90a   : > { %v13466_v24 = vpop.eup %10079  ;;  %5081 = vadd.xlane.f32.xlu0 %v5080_v44  ;;  %v4974_v15 = vpop.xlane.xlu1 %4973 }
 0x90b   : > { %10089 = vpow2.f32 %v5063_v13  ;;  %v5005_v39 = vsub.f32 %v14677_v26, %v4974_v15  ;;  %v5006_v6 = vsub.f32 %v14678_v60, %v4974_v15  ;;  %5271 = vmatprep.mubr.f32.mxu1 %v13466_v24  ;;  %v14688_v26 = vld [vmem:[#allocation91_spill] sm:$0xff] }
 0x90c   : > { %10091 = vpow2.f32 %v5065_v58  ;;  %5272 = vmatmul.mubr.f32.gmra.mrb[86].mxu1 %v13464_v42  ;;  %v14687_v58 = vld [vmem:[#allocation90_spill] sm:$0xff] }
 0x90d   : > { %v13474_v10 = vpop.eup %10081  ;;  %v5067_v34 = vmul.f32 1.442695, %v5005_v39  ;;  %v5069_v3 = vmul.f32 1.442695, %v5006_v6  ;;  %v5098_v6 = vadd.f32 %v13446_v55, %v13444_v53 }
 0x90e   : > { %v13476_v19 = vpop.eup %10083  ;;  %5084 = vadd.xlane.f32.xlu0 %v5083_v47  ;;  %v5700_v57 = vpop.xlane.xlu0 %5699 }
 0x90f   : > { %10093 = vpow2.f32 %v5067_v34  ;;  %5276 = vmatprep.mubr.f32.mxu1 %v13476_v19  ;;  %v5746_v61 = vsub.f32 %v14679_v27, %v5700_v57  ;;  %v5747_v11 = vsub.f32 %v14680_v7, %v5700_v57  ;;  %v14689_v57 = vld [vmem:[#allocation92_spill] sm:$0xff] }
 0x910   : > { %10095 = vpow2.f32 %v5069_v3  ;;  %5277 = vmatmul.mubr.f32.gmra.mrb[88].mxu1 %v13474_v10 }
 0x911   : > { %v13484_v52 = vpop.eup %10085  ;;  %v5778_v8 = vmul.f32 1.442695, %v5746_v61  ;;  %v5780_v25 = vmul.f32 1.442695, %v5747_v11  ;;  %v14690_v61 = vld [vmem:[#allocation93_spill] sm:$0xff] }
 0x912   : > { %v13486_v56 = vpop.eup %10087  ;;  %5087 = vadd.xlane.f32.xlu0 %v5086_v1  ;;  %v5703_v21 = vpop.xlane.xlu1 %5702  ;;  %v5101_v1 = vadd.f32 %v13456_v59, %v13454_v43 }
 0x913   : > { %10097 = vpow2.f32 %v5778_v8  ;;  %v5748_v50 = vsub.f32 %v14681_v54, %v5703_v21  ;;  %v5749_v46 = vsub.f32 %v14682_v38, %v5703_v21  ;;  %5281 = vmatprep.mubr.f32.mxu1 %v13486_v56  ;;  %v14691_v54 = vld [vmem:[#allocation94_spill] sm:$0xff]  ;;  %v14692_v38 = vld [vmem:[#allocation95_spill] sm:$0xff] }
 0x914   : > { %10099 = vpow2.f32 %v5780_v25  ;;  %5282 = vmatmul.mubr.f32.gmra.mrb[90].mxu1 %v13484_v52 }
 0x915   : > { %v13494_v48 = vpop.eup %10089  ;;  %v5782_v28 = vmul.f32 1.442695, %v5748_v50  ;;  %v5784_v62 = vmul.f32 1.442695, %v5749_v46 }
 0x916   : > { %v13496_v0 = vpop.eup %10091  ;;  %5090 = vadd.xlane.f32.xlu0 %v5089_v29  ;;  %v5706_v32 = vpop.xlane.xlu0 %5705 }
 0x917   : > { %10101 = vpow2.f32 %v5782_v28  ;;  %5286 = vmatprep.mubr.f32.mxu1 %v13496_v0  ;;  %v5750_v12 = vsub.f32 %v14683_v23, %v5706_v32  ;;  %v5751_v14 = vsub.f32 %v14684_v9, %v5706_v32  ;;  %v5104_v28 = vadd.f32 %v13466_v24, %v13464_v42 }
 0x918   : > { %10103 = vpow2.f32 %v5784_v62  ;;  %5287 = vmatmul.mubr.f32.gmra.mrb[92].mxu1 %v13494_v48 }
 0x919   : > { %v13504_v16 = vpop.eup %10093  ;;  %v5786_v45 = vmul.f32 1.442695, %v5750_v12  ;;  %v5788_v4 = vmul.f32 1.442695, %v5751_v14  ;;  %v14693_v12 = vld [vmem:[#allocation96_spill] sm:$0xff]  ;;  %v14694_v14 = vld [vmem:[#allocation97_spill] sm:$0xff] }
 0x91a   : > { %v13506_v18 = vpop.eup %10095  ;;  %5093 = vadd.xlane.f32.xlu0 %v5092_v40  ;;  %v5709_v37 = vpop.xlane.xlu1 %5708 }
 0x91b   : > { %10105 = vpow2.f32 %v5786_v45  ;;  %v5752_v35 = vsub.f32 %v14685_v33, %v5709_v37  ;;  %v5753_v63 = vsub.f32 %v14686_v2, %v5709_v37  ;;  %5291 = vmatprep.mubr.f32.mxu1 %v13506_v18  ;;  %v14695_v2 = vld [vmem:[#allocation98_spill] sm:$0xff] }
 0x91c   : > { %10107 = vpow2.f32 %v5788_v4  ;;  %5292 = vmatmul.mubr.f32.gmra.mrb[94].mxu1 %v13504_v16  ;;  %v5107_v4 = vadd.f32 %v13476_v19, %v13474_v10 }
 0x91d   : > { %v10098_v17 = vpop.eup %10097  ;;  %v5790_v30 = vmul.f32 1.442695, %v5752_v35  ;;  %v5792_v51 = vmul.f32 1.442695, %v5753_v63 }
 0x91e   : > { %v10100_v44 = vpop.eup %10099  ;;  %5096 = vadd.xlane.f32.xlu0 %v5095_v31  ;;  %v5712_v13 = vpop.xlane.xlu0 %5711  ;;  %v14696_v31 = vld [vmem:[#allocation99_spill] sm:$0xff] }
 0x91f   : > { %10109 = vpow2.f32 %v5790_v30  ;;  %5987 = vmatprep.mubr.f32.mxu1 %v10100_v44  ;;  %v5754_v15 = vsub.f32 %v14687_v58, %v5712_v13  ;;  %v5755_v39 = vsub.f32 %v14688_v26, %v5712_v13  ;;  %v5842_v60 = vadd.f32 %v10100_v44, %v10098_v17 }
 0x920   : > { %10111 = vpow2.f32 %v5792_v51  ;;  %5988 = vmatmul.mubr.f32.vlgmr.msra.gmra.mrb[96].mxu1 %v10098_v17  ;;  %v5110_v51 = vadd.f32 %v13486_v56, %v13484_v52 }
 0x921   : > { %v10102_v47 = vpop.eup %10101  ;;  %v5794_v5 = vmul.f32 1.442695, %v5754_v15  ;;  %v5796_v20 = vmul.f32 1.442695, %v5755_v39  ;;  %5843 = vadd.xlane.f32.xlu1 %v5842_v60  ;;  %v14697_v15 = vld [vmem:[#allocation100_spill] sm:$0xff]  ;;  %v14698_v39 = vld [vmem:[#allocation101_spill] sm:$0xff] }
 0x922   : > { %v10104_v34 = vpop.eup %10103  ;;  %5099 = vadd.xlane.f32.xlu0 %v5098_v6  ;;  %v5715_v3 = vpop.xlane.xlu1 %5714 }
 0x923   : > { %10113 = vpow2.f32 %v5794_v5  ;;  %v5756_v27 = vsub.f32 %v14689_v57, %v5715_v3  ;;  %v5757_v7 = vsub.f32 %v14690_v61, %v5715_v3  ;;  %5992 = vmatprep.mubr.f32.mxu1 %v10104_v34  ;;  %v5845_v11 = vadd.f32 %v10104_v34, %v10102_v47  ;;  %v14699_v3 = vld [vmem:[#allocation102_spill] sm:$0xff] }
 0x924   : > { %10115 = vpow2.f32 %v5796_v20  ;;  %5993 = vmatmul.mubr.f32.gmra.mrb[98].mxu1 %v10102_v47  ;;  %v5113_v47 = vadd.f32 %v13496_v0, %v13494_v48 }
 0x925   : > { %v10106_v53 = vpop.eup %10105  ;;  %v5798_v55 = vmul.f32 1.442695, %v5756_v27  ;;  %v5800_v8 = vmul.f32 1.442695, %v5757_v7  ;;  %5846 = vadd.xlane.f32.xlu1 %v5845_v11  ;;  %v14700_v27 = vld [vmem:[#allocation103_spill] sm:$0xff]  ;;  %v5116_v11 = vadd.f32 %v13506_v18, %v13504_v16 }
 0x926   : > { %v10108_v25 = vpop.eup %10107  ;;  %5102 = vadd.xlane.f32.xlu0 %v5101_v1  ;;  %v5718_v21 = vpop.xlane.xlu0 %5717 }
 0x927   : > { %10117 = vpow2.f32 %v5798_v55  ;;  %5997 = vmatprep.mubr.f32.mxu1 %v10108_v25  ;;  %v5758_v50 = vsub.f32 %v14691_v54, %v5718_v21  ;;  %v5759_v46 = vsub.f32 %v14692_v38, %v5718_v21  ;;  %v5848_v29 = vadd.f32 %v10108_v25, %v10106_v53  ;;  %v14702_v21 = vld [vmem:[#allocation105_spill] sm:$0xff] }
 0x928   : > { %10119 = vpow2.f32 %v5800_v8  ;;  %5998 = vmatmul.mubr.f32.gmra.mrb[100].mxu1 %v10106_v53  ;;  %v14701_v8 = vld [vmem:[#allocation104_spill] sm:$0xff] }
 0x929   : > { %v10110_v43 = vpop.eup %10109  ;;  %v5802_v59 = vmul.f32 1.442695, %v5758_v50  ;;  %v5804_v62 = vmul.f32 1.442695, %v5759_v46  ;;  %5849 = vadd.xlane.f32.xlu1 %v5848_v29 }
 0x92a   : > { %v10112_v32 = vpop.eup %10111  ;;  %5105 = vadd.xlane.f32.xlu0 %v5104_v28  ;;  %v5721_v23 = vpop.xlane.xlu1 %5720  ;;  %v14703_v28 = vld [vmem:[#allocation106_spill] sm:$0xff] }
 0x92b   : > { %10121 = vpow2.f32 %v5802_v59  ;;  %v5760_v9 = vsub.f32 %v14693_v12, %v5721_v23  ;;  %v5761_v40 = vsub.f32 %v14694_v14, %v5721_v23  ;;  %6002 = vmatprep.mubr.f32.mxu1 %v10112_v32  ;;  %v5851_v45 = vadd.f32 %v10112_v32, %v10110_v43  ;;  %v14704_v59 = vld [vmem:[#allocation107_spill] sm:$0xff] }
 0x92c   : > { %10123 = vpow2.f32 %v5804_v62  ;;  %6003 = vmatmul.mubr.f32.gmra.mrb[102].mxu1 %v10110_v43 }
 0x92d   : > { %v10114_v42 = vpop.eup %10113  ;;  %v5806_v24 = vmul.f32 1.442695, %v5760_v9  ;;  %v5808_v37 = vmul.f32 1.442695, %v5761_v40  ;;  %5852 = vadd.xlane.f32.xlu1 %v5851_v45 }
 0x92e   : > { %v10116_v33 = vpop.eup %10115  ;;  %5108 = vadd.xlane.f32.xlu0 %v5107_v4  ;;  %v5724_v35 = vpop.xlane.xlu0 %5723  ;;  %v14705_v4 = vld [vmem:[#allocation108_spill] sm:$0xff] }
 0x92f   : > { %10125 = vpow2.f32 %v5806_v24  ;;  %6007 = vmatprep.mubr.f32.mxu1 %v10116_v33  ;;  %v5762_v63 = vsub.f32 %v14695_v2, %v5724_v35  ;;  %v5763_v17 = vsub.f32 %v14696_v31, %v5724_v35  ;;  %v5854_v30 = vadd.f32 %v10116_v33, %v10114_v42 }
 0x930   : > { %10127 = vpow2.f32 %v5808_v37  ;;  %6008 = vmatmul.mubr.f32.gmra.mrb[104].mxu1 %v10114_v42 }
 0x931   : > { %v10118_v10 = vpop.eup %10117  ;;  %v5810_v19 = vmul.f32 1.442695, %v5762_v63  ;;  %v5812_v44 = vmul.f32 1.442695, %v5763_v17  ;;  %5855 = vadd.xlane.f32.xlu1 %v5854_v30  ;;  %v14706_v17 = vld [vmem:[#allocation109_spill] sm:$0xff] }
 0x932   : > { %v10120_v13 = vpop.eup %10119  ;;  %5111 = vadd.xlane.f32.xlu0 %v5110_v51  ;;  %v5727_v58 = vpop.xlane.xlu1 %5726 }
 0x933   : > { %10129 = vpow2.f32 %v5810_v19  ;;  %v5764_v26 = vsub.f32 %v14697_v15, %v5727_v58  ;;  %v5765_v60 = vsub.f32 %v14698_v39, %v5727_v58  ;;  %6012 = vmatprep.mubr.f32.mxu1 %v10120_v13  ;;  %v5857_v6 = vadd.f32 %v10120_v13, %v10118_v10 }
 0x934   : > { %10131 = vpow2.f32 %v5812_v44  ;;  %6013 = vmatmul.mubr.f32.gmra.mrb[106].mxu1 %v10118_v10 }
 0x935   : > { %v10122_v52 = vpop.eup %10121  ;;  %v5814_v56 = vmul.f32 1.442695, %v5764_v26  ;;  %v5816_v5 = vmul.f32 1.442695, %v5765_v60  ;;  %5858 = vadd.xlane.f32.xlu1 %v5857_v6 }
 0x936   : > { %v10124_v20 = vpop.eup %10123  ;;  %5114 = vadd.xlane.f32.xlu0 %v5113_v47  ;;  %v5730_v34 = vpop.xlane.xlu0 %5729 }
 0x937   : > { %10133 = vpow2.f32 %v5814_v56  ;;  %6017 = vmatprep.mubr.f32.mxu1 %v10124_v20  ;;  %v5766_v57 = vsub.f32 %v14699_v3, %v5730_v34  ;;  %v5767_v61 = vsub.f32 %v14700_v27, %v5730_v34  ;;  %v5860_v7 = vadd.f32 %v10124_v20, %v10122_v52 }
 0x938   : > { %10135 = vpow2.f32 %v5816_v5  ;;  %6018 = vmatmul.mubr.f32.gmra.mrb[108].mxu1 %v10122_v52 }
 0x939   : > { %v10126_v48 = vpop.eup %10125  ;;  %v5818_v0 = vmul.f32 1.442695, %v5766_v57  ;;  %v5820_v1 = vmul.f32 1.442695, %v5767_v61  ;;  %5861 = vadd.xlane.f32.xlu1 %v5860_v7 }
 0x93a   : > { %v10128_v53 = vpop.eup %10127  ;;  %5117 = vadd.xlane.f32.xlu0 %v5116_v11  ;;  %v5733_v55 = vpop.xlane.xlu1 %5732 }
 0x93b   : > { %10137 = vpow2.f32 %v5818_v0  ;;  %v5768_v25 = vsub.f32 %v14701_v8, %v5733_v55  ;;  %v5769_v54 = vsub.f32 %v14702_v21, %v5733_v55  ;;  %6022 = vmatprep.mubr.f32.mxu1 %v10128_v53  ;;  %v5863_v50 = vadd.f32 %v10128_v53, %v10126_v48 }
 0x93c   : > { %10139 = vpow2.f32 %v5820_v1  ;;  %6023 = vmatmul.mubr.f32.gmra.mrb[110].mxu1 %v10126_v48 }
 0x93d   : > { %v10130_v38 = vpop.eup %10129  ;;  %v5822_v46 = vmul.f32 1.442695, %v5768_v25  ;;  %v5824_v29 = vmul.f32 1.442695, %v5769_v54  ;;  %5864 = vadd.xlane.f32.xlu1 %v5863_v50 }
 0x93e   : > { %v10132_v16 = vpop.eup %10131  ;;  %v5736_v18 = vpop.xlane.xlu0 %5735 }
 0x93f   : > { %10141 = vpow2.f32 %v5822_v46  ;;  %6027 = vmatprep.mubr.f32.mxu1 %v10132_v16  ;;  %v5770_v43 = vsub.f32 %v14703_v28, %v5736_v18  ;;  %v5771_v62 = vsub.f32 %v14704_v59, %v5736_v18  ;;  %v5866_v32 = vadd.f32 %v10132_v16, %v10130_v38 }
 0x940   : > { %10143 = vpow2.f32 %v5824_v29  ;;  %6028 = vmatmul.mubr.f32.gmra.mrb[112].mxu1 %v10130_v38 }
 0x941   : > { %v10134_v23 = vpop.eup %10133  ;;  %v5826_v12 = vmul.f32 1.442695, %v5770_v43  ;;  %v5828_v9 = vmul.f32 1.442695, %v5771_v62  ;;  %5867 = vadd.xlane.f32.xlu1 %v5866_v32 }
 0x942   : > { %v10136_v14 = vpop.eup %10135  ;;  %v5739_v40 = vpop.xlane.xlu1 %5738 }
 0x943   : > { %10145 = vpow2.f32 %v5826_v12  ;;  %v5772_v45 = vsub.f32 %v13209_v41, %v5739_v40  ;;  %v5773_v42 = vsub.f32 %v14705_v4, %v5739_v40  ;;  %6032 = vmatprep.mubr.f32.mxu1 %v10136_v14  ;;  %v5869_v24 = vadd.f32 %v10136_v14, %v10134_v23 }
 0x944   : > { %10147 = vpow2.f32 %v5828_v9  ;;  %6033 = vmatmul.mubr.f32.gmra.mrb[114].mxu1 %v10134_v23  ;;  %v14707_v23 = vld [vmem:[#allocation44_spill] sm:$0xff] }
 0x945   : > { %v10138_v37 = vpop.eup %10137  ;;  %v5830_v33 = vmul.f32 1.442695, %v5772_v45  ;;  %v5832_v35 = vmul.f32 1.442695, %v5773_v42  ;;  %5870 = vadd.xlane.f32.xlu1 %v5869_v24 }
 0x946   : > { %v10140_v2 = vpop.eup %10139  ;;  %v5742_v63 = vpop.xlane.xlu0 %5741 }
 0x947   : > { %10149 = vpow2.f32 %v5830_v33  ;;  %6037 = vmatprep.mubr.f32.mxu1 %v10140_v2  ;;  %v5774_v31 = vsub.f32 %v13225_v36, %v5742_v63  ;;  %v5775_v30 = vsub.f32 %v14706_v17, %v5742_v63  ;;  %v5872_v51 = vadd.f32 %v10140_v2, %v10138_v37 }
 0x948   : > { %10151 = vpow2.f32 %v5832_v35  ;;  %6038 = vmatmul.mubr.f32.gmra.mrb[116].mxu1 %v10138_v37  ;;  %v14708_v35 = vld [vmem:[#allocation45_spill] sm:$0xff] }
 0x949   : > { %v10142_v41 = vpop.eup %10141  ;;  %v5834_v10 = vmul.f32 1.442695, %v5774_v31  ;;  %v5836_v19 = vmul.f32 1.442695, %v5775_v30  ;;  %5873 = vadd.xlane.f32.xlu1 %v5872_v51 }
 0x94a   : > { %v10144_v44 = vpop.eup %10143  ;;  %v5745_v13 = vpop.xlane.xlu1 %5744 }
 0x94b   : > { %v3532_v58 = vpop.xlane.xlu0 %3531  ;;  %10153 = vpow2.f32 %v5834_v10  ;;  %v5776_v15 = vsub.f32 %v13241_v22, %v5745_v13  ;;  %v5777_v26 = vsub.f32 %v13246_v49, %v5745_v13  ;;  %6042 = vmatprep.mubr.f32.mxu1 %v10144_v44  ;;  %v5875_v39 = vadd.f32 %v10144_v44, %v10142_v41  ;;  %v14709_v13 = vld [vmem:[#allocation46_spill] sm:$0xff] }
 0x94c   : > { %10155 = vpow2.f32 %v5836_v19  ;;  %6043 = vmatmul.mubr.f32.gmra.mrb[118].mxu1 %v10142_v41 }
 0x94d   : > { %v10146_v36 = vpop.eup %10145  ;;  %v5838_v60 = vmul.f32 1.442695, %v5776_v15  ;;  %v5840_v6 = vmul.f32 1.442695, %v5777_v26  ;;  %5876 = vadd.xlane.f32.xlu1 %v5875_v39 }
 0x94e   : > { %v10148_v47 = vpop.eup %10147  ;;  %v4302_v52 = vpop.xlane.xlu1 %4301 }
 0x94f   : > { %v4305_v56 = vpop.xlane.xlu0 %4304  ;;  %10157 = vpow2.f32 %v5838_v60  ;;  %6047 = vmatprep.mubr.f32.mxu1 %v10148_v47  ;;  %v5878_v5 = vadd.f32 %v10148_v47, %v10146_v36 }
 0x950   : > { %10159 = vpow2.f32 %v5840_v6  ;;  %6048 = vmatmul.mubr.f32.gmra.mrb[120].mxu1 %v10146_v36 }
 0x951   : > { %v10150_v20 = vpop.eup %10149  ;;  %5879 = vadd.xlane.f32.xlu1 %v5878_v5  ;;  %10161 = vrcp.f32 %v3532_v58 }
 0x952   : > { %v10152_v22 = vpop.eup %10151  ;;  %v3535_v49 = vpop.xlane.xlu1 %3534  ;;  %10163 = vrcp.f32 %v4302_v52 }
 0x953   : > { %v4308_v34 = vpop.xlane.xlu0 %4307  ;;  %6052 = vmatprep.mubr.f32.mxu1 %v10152_v22  ;;  %v5881_v3 = vadd.f32 %v10152_v22, %v10150_v20  ;;  %10165 = vrcp.f32 %v3535_v49 }
 0x954   : > { %6053 = vmatmul.mubr.f32.gmra.mrb[122].mxu1 %v10150_v20  ;;  %10167 = vrcp.f32 %v4305_v56  ;;  %v14710_v56 = vld [vmem:[#allocation47_spill] sm:$0xff] }
 0x955   : > { %v10154_v57 = vpop.eup %10153  ;;  %5882 = vadd.xlane.f32.xlu1 %v5881_v3 }
 0x956   : > { %v10156_v27 = vpop.eup %10155  ;;  %v3538_v61 = vpop.xlane.xlu1 %3537 }
 0x957   : > { %v4311_v7 = vpop.xlane.xlu0 %4310  ;;  %6057 = vmatprep.mubr.f32.mxu1 %v10156_v27  ;;  %v5884_v11 = vadd.f32 %v10156_v27, %v10154_v57  ;;  %10169 = vrcp.f32 %v3538_v61 }
 0x958   : > { %6058 = vmatmul.mubr.f32.gmra.mrb[124].mxu1 %v10154_v57  ;;  %10171 = vrcp.f32 %v4308_v34 }
 0x959   : > { %v10158_v48 = vpop.eup %10157  ;;  %5885 = vadd.xlane.f32.xlu1 %v5884_v11  ;;  %v14711_v11 = vld [vmem:[#allocation48_spill] sm:$0xff] }
 0x95a   : > { %v10160_v0 = vpop.eup %10159  ;;  %v3541_v1 = vpop.xlane.xlu1 %3540 }
 0x95b   : > { %v4314_v53 = vpop.xlane.xlu0 %4313  ;;  %6062 = vmatprep.mubr.f32.mxu1 %v10160_v0  ;;  %v5887_v55 = vadd.f32 %v10160_v0, %v10158_v48  ;;  %v10162_v43 = vpop.eup %10161  ;;  %10173 = vrcp.f32 %v3541_v1 }
 0x95c   : > { %6063 = vmatmul.mubr.f32.gmra.mrb[126].mxu1 %v10158_v48  ;;  %v10164_v32 = vpop.eup %10163  ;;  %v3771_v12 = vmul.f32 %v10162_v43, %v14707_v23  ;;  %10175 = vrcp.f32 %v4311_v7 }
 0x95d   : > { %5888 = vadd.xlane.f32.xlu1 %v5887_v55  ;;  %v10166_v45 = vpop.eup %10165 }
 0x95e   : > { %v3544_v25 = vpop.xlane.xlu1 %3543  ;;  %v10168_v33 = vpop.eup %10167  ;;  %v3772_v2 = vmul.f32 %v10166_v45, %v14708_v35 }
 0x95f   : > { %v4317_v8 = vpop.xlane.xlu0 %4316  ;;  %10177 = vrcp.f32 %v3544_v25 }
 0x960   : > { %10179 = vrcp.f32 %v4314_v53 }
 0x961   : > { %v10170_v30 = vpop.eup %10169 }
 0x962   : > { %v3547_v54 = vpop.xlane.xlu1 %3546  ;;  %v10172_v19 = vpop.eup %10171  ;;  %v3773_v58 = vmul.f32 %v10170_v30, %v14709_v13  ;;  %v14714_v30 = vld [vmem:[#allocation51_spill] sm:$0xff] }
 0x963   : > { %v4320_v21 = vpop.xlane.xlu0 %4319  ;;  %10181 = vrcp.f32 %v3547_v54 }
 0x964   : > { %10183 = vrcp.f32 %v4317_v8 }
 0x965   : > { %v10174_v36 = vpop.eup %10173 }
 0x966   : > { %v3550_v46 = vpop.xlane.xlu1 %3549  ;;  %v10176_v52 = vpop.eup %10175  ;;  %v3774_v5 = vmul.f32 %v10174_v36, %v14710_v56 }
 0x967   : > { %v13552_v50 = vpop.xlane.xlu0 %4322  ;;  %10185 = vrcp.f32 %v3550_v46 }
 0x968   : > { %10187 = vrcp.f32 %v4320_v21 }
 0x969   : > { %v10178_v34 = vpop.eup %10177 }
 0x96a   : > { %v3553_v16 = vpop.xlane.xlu1 %3552  ;;  %v10180_v7 = vpop.eup %10179  ;;  %v3775_v48 = vmul.f32 %v10178_v34, %v14711_v11 }
 0x96b   : > { %v13554_v38 = vpop.xlane.xlu0 %4325  ;;  %10189 = vrcp.f32 %v3553_v16 }
 0x96c   : > { %10191 = vrcp.f32 %v13552_v50 }
 0x96d   : > { %v10182_v55 = vpop.eup %10181 }
 0x96e   : > { %v3556_v4 = vpop.xlane.xlu1 %3555  ;;  %v10184_v54 = vpop.eup %10183 }
 0x96f   : > { %v13556_v29 = vpop.xlane.xlu0 %4328  ;;  %10193 = vrcp.f32 %v3556_v4 }
 0x970   : > { %10195 = vrcp.f32 %v13554_v38 }
 0x972   : > { %v3559_v44 = vpop.xlane.xlu1 %3558 }
 0x973   : > { %v8115_v18 = vpop.f32.mrb[32].mxu1  ;;  %v13558_v28 = vpop.xlane.xlu0 %4331  ;;  %10197 = vrcp.f32 %v3559_v44 }
 0x974   : > { %v8116_v59 = vpop.f32.mrb[33].mxu1  ;;  %10199 = vrcp.f32 %v13556_v29 }
 0x975   : > { %v8117_v62 = vadd.f32 %v8116_v59, %v8115_v18  ;;  %v14712_v18 = vld [vmem:[#allocation49_spill] sm:$0xff] }
 0x976   : > { %v3562_v3 = vpop.xlane.xlu1 %3561  ;;  %v3776_v43 = vmul.f32 %v10182_v55, %v14712_v18 }
 0x977   : > { %v4542_v9 = vmul.f32 %v10164_v32, %v8117_v62  ;;  %v8118_v14 = vpop.f32.mrb[34].mxu1  ;;  %v13561_v40 = vpop.xlane.xlu0 %4334  ;;  %10201 = vrcp.f32 %v3562_v3  ;;  %v14716_v3 = vld [vmem:[#allocation53_spill] sm:$0xff] }
 0x978   : > { %v8119_v42 = vpop.f32.mrb[35].mxu1  ;;  %v10186_v32 = vpop.eup %10185  ;;  %10203 = vrcp.f32 %v13558_v28 }
 0x979   : > { %v13563_v24 = vadd.f32 %v4542_v9, %v3771_v12  ;;  %v8120_v37 = vadd.f32 %v8119_v42, %v8118_v14  ;;  %v10188_v9 = vpop.eup %10187  ;;  %v14713_v14 = vld [vmem:[#allocation50_spill] sm:$0xff] }
 0x97a   : > { %v3565_v46 = vpop.xlane.xlu1 %3564  ;;  %v3777_v45 = vmul.f32 %v10186_v32, %v14713_v14 }
 0x97b   : > { %v4543_v63 = vmul.f32 %v10168_v33, %v8120_v37  ;;  %v8121_v31 = vpop.f32.mrb[36].mxu1  ;;  %v13566_v17 = vpop.xlane.xlu0 %4337  ;;  %10205 = vrcp.f32 %v3565_v46 }
 0x97c   : > { %v8122_v51 = vpop.f32.mrb[37].mxu1  ;;  %v10190_v37 = vpop.eup %10189  ;;  %10207 = vrcp.f32 %v13561_v40 }
 0x97d   : > { %v13568_v41 = vadd.f32 %v4543_v63, %v3772_v2  ;;  %v8123_v10 = vadd.f32 %v8122_v51, %v8121_v31  ;;  %v10192_v31 = vpop.eup %10191  ;;  %v3778_v51 = vmul.f32 %v10190_v37, %v14714_v30 }
 0x97e   : > { %v3568_v33 = vpop.xlane.xlu1 %3567  ;;  %v10194_v44 = vpop.eup %10193 }
 0x97f   : > { %v4544_v15 = vmul.f32 %v10172_v19, %v8123_v10  ;;  %v8124_v26 = vpop.f32.mrb[38].mxu1  ;;  %v13571_v39 = vpop.xlane.xlu0 %4340  ;;  %10209 = vrcp.f32 %v3568_v33 }
 0x980   : > { %v8125_v60 = vpop.f32.mrb[39].mxu1  ;;  %10211 = vrcp.f32 %v13566_v17 }
 0x981   : > { %v13573_v6 = vadd.f32 %v4544_v15, %v3773_v58  ;;  %v8126_v47 = vadd.f32 %v8125_v60, %v8124_v26  ;;  %v10196_v15 = vpop.eup %10195  ;;  %v14715_v60 = vld [vmem:[#allocation52_spill] sm:$0xff] }
 0x982   : > { %v3571_v26 = vpop.xlane.xlu1 %3570 }
 0x983   : > { %v4545_v20 = vmul.f32 %v10176_v52, %v8126_v47  ;;  %v8127_v22 = vpop.f32.mrb[40].mxu1  ;;  %v13576_v49 = vpop.xlane.xlu0 %4343  ;;  %v3779_v47 = vmul.f32 %v10194_v44, %v14715_v60  ;;  %10213 = vrcp.f32 %v3571_v26 }
 0x984   : > { %v8128_v57 = vpop.f32.mrb[41].mxu1  ;;  %10215 = vrcp.f32 %v13571_v39 }
 0x985   : > { %v13578_v27 = vadd.f32 %v4545_v20, %v3774_v5  ;;  %v8129_v61 = vadd.f32 %v8128_v57, %v8127_v22  ;;  %v10198_v5 = vpop.eup %10197 }
 0x986   : > { %v10200_v34 = vpop.eup %10199  ;;  %v3780_v57 = vmul.f32 %v10198_v5, %v14716_v3 }
 0x987   : > { %v4546_v0 = vmul.f32 %v10180_v7, %v8129_v61  ;;  %v8130_v1 = vpop.f32.mrb[42].mxu1  ;;  %v13581_v53 = vpop.xlane.xlu0 %4346 }
 0x988   : > { %v8131_v8 = vpop.f32.mrb[43].mxu1  ;;  %v10202_v11 = vpop.eup %10201 }
 0x989   : > { %v13584_v25 = vadd.f32 %v4546_v0, %v3775_v48  ;;  %v8132_v21 = vadd.f32 %v8131_v8, %v8130_v1  ;;  %v3574_v48 = vpop.xlane.xlu1 %3573  ;;  %v10204_v8 = vpop.eup %10203 }
 0x98a   : > { %10217 = vrcp.f32 %v3574_v48 }
 0x98b   : > { %v4547_v59 = vmul.f32 %v10184_v54, %v8132_v21  ;;  %v8133_v16 = vpop.f32.mrb[44].mxu1  ;;  %v13587_v62 = vpop.xlane.xlu0 %5072  ;;  %v14717_v21 = vld [vmem:[#allocation54_spill] sm:$0xff]  ;;  %10219 = vrcp.f32 %v13576_v49  ;;  %v14720_v49 = vld [vmem:[#allocation57_spill] sm:$0xff] }
 0x98c   : > { %v8134_v23 = vpop.f32.mrb[45].mxu1  ;;  %v3781_v54 = vmul.f32 %v10202_v11, %v14717_v21 }
 0x98d   : > { %v13590_v12 = vadd.f32 %v4547_v59, %v3776_v43  ;;  %v8135_v50 = vadd.f32 %v8134_v23, %v8133_v16  ;;  %v10206_v43 = vpop.eup %10205  ;;  %v3577_v23 = vpop.xlane.xlu1 %3576 }
 0x98e   : > { %v10208_v32 = vpop.eup %10207  ;;  %10221 = vrcp.f32 %v3577_v23 }
 0x98f   : > { %v4548_v42 = vmul.f32 %v10188_v9, %v8135_v50  ;;  %v8136_v4 = vpop.f32.mrb[46].mxu1  ;;  %v13596_v63 = vpop.xlane.xlu0 %5075  ;;  %v14718_v9 = vld [vmem:[#allocation55_spill] sm:$0xff]  ;;  %10223 = vrcp.f32 %v13581_v53  ;;  %v14721_v53 = vld [vmem:[#allocation58_spill] sm:$0xff] }
 0x990   : > { %v8137_v35 = vpop.f32.mrb[47].mxu1  ;;  %v3782_v14 = vmul.f32 %v10206_v43, %v14718_v9  ;;  %10225 = vrcp.f32 %v13587_v62 }
 0x991   : > { %v13594_v2 = vadd.f32 %v4548_v42, %v3777_v45  ;;  %v8138_v38 = vadd.f32 %v8137_v35, %v8136_v4  ;;  %v10210_v4 = vpop.eup %10209  ;;  %10227 = vrcp.f32 %v13596_v63 }
 0x992   : > { %v10212_v39 = vpop.eup %10211 }
 0x993   : > { %v4549_v10 = vmul.f32 %v10192_v31, %v8138_v38  ;;  %v8139_v19 = vpop.f32.mrb[48].mxu1  ;;  %v13602_v36 = vpop.xlane.xlu0 %5078  ;;  %v14719_v38 = vld [vmem:[#allocation56_spill] sm:$0xff] }
 0x994   : > { %v8140_v13 = vpop.f32.mrb[49].mxu1  ;;  %v3783_v31 = vmul.f32 %v10210_v4, %v14719_v38  ;;  %10229 = vrcp.f32 %v13602_v36 }
 0x995   : > { %v13600_v58 = vadd.f32 %v4549_v10, %v3778_v51  ;;  %v8141_v29 = vadd.f32 %v8140_v13, %v8139_v19  ;;  %v10214_v10 = vpop.eup %10213 }
 0x996   : > { %v3784_v26 = vmul.f32 %v10214_v10, %v14720_v49 }
 0x997   : > { %v4550_v52 = vmul.f32 %v10196_v15, %v8141_v29  ;;  %v8142_v56 = vpop.f32.mrb[50].mxu1  ;;  %v13610_v1 = vpop.xlane.xlu0 %5081 }
 0x998   : > { %v8143_v20 = vpop.f32.mrb[51].mxu1  ;;  %v10216_v15 = vpop.eup %10215  ;;  %10231 = vrcp.f32 %v13610_v1 }
 0x999   : > { %v13606_v22 = vadd.f32 %v4550_v52, %v3779_v47  ;;  %v8144_v28 = vadd.f32 %v8143_v20, %v8142_v56  ;;  %v10218_v52 = vpop.eup %10217 }
 0x99a   : > { %v3785_v3 = vmul.f32 %v10218_v52, %v14721_v53 }
 0x99b   : > { %v4551_v61 = vmul.f32 %v10200_v34, %v8144_v28  ;;  %v8145_v7 = vpop.f32.mrb[52].mxu1  ;;  %v5085_v50 = vpop.xlane.xlu0 %5084 }
 0x99c   : > { %v8146_v0 = vpop.f32.mrb[53].mxu1  ;;  %v10220_v28 = vpop.eup %10219  ;;  %10233 = vrcp.f32 %v5085_v50 }
 0x99d   : > { %v13612_v55 = vadd.f32 %v4551_v61, %v3780_v57  ;;  %v8147_v40 = vadd.f32 %v8146_v0, %v8145_v7  ;;  %v10222_v7 = vpop.eup %10221 }
 0x99f   : > { %v4552_v46 = vmul.f32 %v10204_v8, %v8147_v40  ;;  %v8148_v18 = vpop.f32.mrb[54].mxu1  ;;  %v5088_v44 = vpop.xlane.xlu0 %5087  ;;  %v14722_v8 = vld [vmem:[#allocation59_spill] sm:$0xff] }
 0x9a0   : > { %v8149_v59 = vpop.f32.mrb[55].mxu1  ;;  %v10224_v40 = vpop.eup %10223  ;;  %v3786_v62 = vmul.f32 %v10222_v7, %v14722_v8  ;;  %10235 = vrcp.f32 %v5088_v44 }
 0x9a1   : > { %v13616_v16 = vadd.f32 %v4552_v46, %v3781_v54  ;;  %v8150_v17 = vadd.f32 %v8149_v59, %v8148_v18 }
 0x9a3   : > { %v4553_v45 = vmul.f32 %v10208_v32, %v8150_v17  ;;  %v8151_v42 = vpop.f32.mrb[56].mxu1  ;;  %v5091_v34 = vpop.xlane.xlu0 %5090 }
 0x9a4   : > { %v8152_v37 = vpop.f32.mrb[57].mxu1  ;;  %v10226_v17 = vpop.eup %10225  ;;  %10237 = vrcp.f32 %v5091_v34 }
 0x9a5   : > { %v13620_v33 = vadd.f32 %v4553_v45, %v3782_v14  ;;  %v8153_v35 = vadd.f32 %v8152_v37, %v8151_v42  ;;  %v10228_v45 = vpop.eup %10227 }
 0x9a6   : > { %v10230_v38 = vpop.eup %10229 }
 0x9a7   : > { %v4554_v30 = vmul.f32 %v10212_v39, %v8153_v35  ;;  %v8154_v51 = vpop.f32.mrb[58].mxu1  ;;  %v5094_v18 = vpop.xlane.xlu0 %5093 }
 0x9a8   : > { %v8155_v19 = vpop.f32.mrb[59].mxu1  ;;  %10239 = vrcp.f32 %v5094_v18 }
 0x9a9   : > { %v13624_v13 = vadd.f32 %v4554_v30, %v3783_v31  ;;  %v8156_v29 = vadd.f32 %v8155_v19, %v8154_v51  ;;  %v10232_v19 = vpop.eup %10231 }
 0x9ab   : > { %v4555_v60 = vmul.f32 %v10216_v15, %v8156_v29  ;;  %v8157_v47 = vpop.f32.mrb[60].mxu1  ;;  %v5097_v42 = vpop.xlane.xlu0 %5096 }
 0x9ac   : > { %v8158_v56 = vpop.f32.mrb[61].mxu1  ;;  %10241 = vrcp.f32 %v5097_v42 }
 0x9ad   : > { %v13628_v5 = vadd.f32 %v4555_v60, %v3784_v26  ;;  %v8159_v20 = vadd.f32 %v8158_v56, %v8157_v47  ;;  %v10234_v26 = vpop.eup %10233 }
 0x9af   : > { %v4556_v57 = vmul.f32 %v10220_v28, %v8159_v20  ;;  %v8160_v61 = vpop.f32.mrb[62].mxu1  ;;  %v5100_v51 = vpop.xlane.xlu0 %5099 }
 0x9b0   : > { %v8161_v11 = vpop.f32.mrb[63].mxu1  ;;  %v10236_v20 = vpop.eup %10235  ;;  %10243 = vrcp.f32 %v5100_v51 }
 0x9b1   : > { %v13632_v48 = vadd.f32 %v4556_v57, %v3785_v3  ;;  %v8162_v0 = vadd.f32 %v8161_v11, %v8160_v61  ;;  %v13654_v28 = vpop.xlane.xlu1 %5843  ;;  %v10238_v7 = vpop.eup %10237 }
 0x9b3   : > { %v4557_v21 = vmul.f32 %v10224_v40, %v8162_v0  ;;  %v8259_v54 = vpop.f32.mrb[64].mxu1  ;;  %v5103_v60 = vpop.xlane.xlu0 %5102 }
 0x9b4   : > { %v8260_v46 = vpop.f32.mrb[65].mxu1  ;;  %10245 = vrcp.f32 %v5103_v60 }
 0x9b5   : > { %v13636_v43 = vadd.f32 %v4557_v21, %v3786_v62  ;;  %v8261_v59 = vadd.f32 %v8260_v46, %v8259_v54  ;;  %v10240_v21 = vpop.eup %10239 }
 0x9b7   : > { %v5313_v32 = vmul.f32 %v10226_v17, %v8261_v59  ;;  %v8262_v23 = vpop.f32.mrb[66].mxu1 }
 0x9b8   : > { %v8263_v63 = vpop.f32.mrb[67].mxu1 }
 0x9b9   : > { %v13640_v9 = vadd.f32 %v5313_v32, %v13563_v24  ;;  %v8264_v14 = vadd.f32 %v8263_v63, %v8262_v23  ;;  %v10242_v32 = vpop.eup %10241 }
 0x9bb   : > { %v5314_v4 = vmul.f32 %v10228_v45, %v8264_v14  ;;  %v8265_v37 = vpop.f32.mrb[68].mxu1 }
 0x9bc   : > { %v8266_v36 = vpop.f32.mrb[69].mxu1 }
 0x9bd   : > { %v13643_v35 = vadd.f32 %v5314_v4, %v13568_v41  ;;  %v8267_v39 = vadd.f32 %v8266_v36, %v8265_v37  ;;  %v10244_v37 = vpop.eup %10243 }
 0x9bf   : > { %v5315_v31 = vmul.f32 %v10230_v38, %v8267_v39  ;;  %v8268_v30 = vpop.f32.mrb[70].mxu1 }
 0x9c0   : > { %v8269_v1 = vpop.f32.mrb[71].mxu1 }
 0x9c1   : > { %v13646_v24 = vadd.f32 %v5315_v31, %v13573_v6  ;;  %v8270_v10 = vadd.f32 %v8269_v1, %v8268_v30  ;;  %v10246_v1 = vpop.eup %10245 }
 0x9c3   : > { %v5316_v29 = vmul.f32 %v10232_v19, %v8270_v10  ;;  %v8271_v15 = vpop.f32.mrb[72].mxu1 }
 0x9c4   : > { %v8272_v50 = vpop.f32.mrb[73].mxu1 }
 0x9c5   : > { %v13649_v49 = vadd.f32 %v5316_v29, %v13578_v27  ;;  %v8273_v41 = vadd.f32 %v8272_v50, %v8271_v15  ;;  %v5106_v27 = vpop.xlane.xlu0 %5105 }
 0x9c6   : > { %10247 = vrcp.f32 %v5106_v27 }
 0x9c7   : > { %v5317_v47 = vmul.f32 %v10234_v26, %v8273_v41  ;;  %v8274_v52 = vpop.f32.mrb[74].mxu1 }
 0x9c8   : > { %v8275_v44 = vpop.f32.mrb[75].mxu1 }
 0x9c9   : > { %v13652_v56 = vadd.f32 %v5317_v47, %v13584_v25  ;;  %v8276_v6 = vadd.f32 %v8275_v44, %v8274_v52  ;;  %v13659_v25 = vpop.xlane.xlu1 %5846  ;;  %v5109_v54 = vpop.xlane.xlu0 %5108 }
 0x9ca   : > { %10249 = vrcp.f32 %v5109_v54 }
 0x9cb   : > { %v5318_v53 = vmul.f32 %v10236_v20, %v8276_v6  ;;  %v8277_v34 = vpop.f32.mrb[76].mxu1 }
 0x9cc   : > { %v8278_v3 = vpop.f32.mrb[77].mxu1 }
 0x9cd   : > { %v13657_v57 = vadd.f32 %v5318_v53, %v13590_v12  ;;  %v8279_v61 = vadd.f32 %v8278_v3, %v8277_v34  ;;  %v5850_v23 = vpop.xlane.xlu1 %5849  ;;  %v5112_v42 = vpop.xlane.xlu0 %5111 }
 0x9ce   : > { %10251 = vrcp.f32 %v5112_v42 }
 0x9cf   : > { %v5319_v11 = vmul.f32 %v10238_v7, %v8279_v61  ;;  %v8280_v0 = vpop.f32.mrb[78].mxu1 }
 0x9d0   : > { %v8281_v40 = vpop.f32.mrb[79].mxu1  ;;  %v10248_v50 = vpop.eup %10247 }
 0x9d1   : > { %v13662_v8 = vadd.f32 %v5319_v11, %v13594_v2  ;;  %v8282_v62 = vadd.f32 %v8281_v40, %v8280_v0  ;;  %v5853_v31 = vpop.xlane.xlu1 %5852  ;;  %v5115_v51 = vpop.xlane.xlu0 %5114 }
 0x9d2   : > { %10253 = vrcp.f32 %v5115_v51 }
 0x9d3   : > { %v5320_v46 = vmul.f32 %v10240_v21, %v8282_v62  ;;  %v8283_v18 = vpop.f32.mrb[80].mxu1 }
 0x9d4   : > { %v8284_v59 = vpop.f32.mrb[81].mxu1  ;;  %v10250_v6 = vpop.eup %10249 }
 0x9d5   : > { %v13665_v12 = vadd.f32 %v5320_v46, %v13600_v58  ;;  %v8285_v17 = vadd.f32 %v8284_v59, %v8283_v18  ;;  %v5856_v41 = vpop.xlane.xlu1 %5855  ;;  %v5118_v52 = vpop.xlane.xlu0 %5117 }
 0x9d6   : > { %10255 = vrcp.f32 %v5118_v52 }
 0x9d7   : > { %v5321_v63 = vmul.f32 %v10242_v32, %v8285_v17  ;;  %v8286_v14 = vpop.f32.mrb[82].mxu1  ;;  %10257 = vrcp.f32 %v13654_v28 }
 0x9d8   : > { %v8287_v45 = vpop.f32.mrb[83].mxu1  ;;  %v10252_v61 = vpop.eup %10251  ;;  %10259 = vrcp.f32 %v13659_v25 }
 0x9d9   : > { %v13668_v2 = vadd.f32 %v5321_v63, %v13606_v22  ;;  %v8288_v4 = vadd.f32 %v8287_v45, %v8286_v14  ;;  %v5859_v3 = vpop.xlane.xlu1 %5858  ;;  %10261 = vrcp.f32 %v5850_v23 }
 0x9da   : > { %10263 = vrcp.f32 %v5853_v31 }
 0x9db   : > { %v5322_v36 = vmul.f32 %v10244_v37, %v8288_v4  ;;  %v8289_v39 = vpop.f32.mrb[84].mxu1  ;;  %10265 = vrcp.f32 %v5856_v41 }
 0x9dc   : > { %v8290_v38 = vpop.f32.mrb[85].mxu1  ;;  %v10254_v62 = vpop.eup %10253  ;;  %10267 = vrcp.f32 %v5859_v3 }
 0x9dd   : > { %v13671_v58 = vadd.f32 %v5322_v36, %v13612_v55  ;;  %v8291_v30 = vadd.f32 %v8290_v38, %v8289_v39  ;;  %v5862_v21 = vpop.xlane.xlu1 %5861 }
 0x9de   : > { %10269 = vrcp.f32 %v5862_v21 }
 0x9df   : > { %v5323_v10 = vmul.f32 %v10246_v1, %v8291_v30  ;;  %v8292_v19 = vpop.f32.mrb[86].mxu1 }
 0x9e0   : > { %v8293_v29 = vpop.f32.mrb[87].mxu1  ;;  %v10256_v17 = vpop.eup %10255 }
 0x9e1   : > { %v13674_v22 = vadd.f32 %v5323_v10, %v13616_v16  ;;  %v8294_v15 = vadd.f32 %v8293_v29, %v8292_v19  ;;  %v5865_v14 = vpop.xlane.xlu1 %5864  ;;  %v10258_v42 = vpop.eup %10257  ;;  %v10385_v19 = vld [vmem:[%s11823_s12] sm:$0xff] }
 0x9e2   : > { %v10260_v39 = vpop.eup %10259  ;;  %10271 = vrcp.f32 %v5865_v14 }
 0x9e3   : > { %v5324_v26 = vmul.f32 %v10248_v50, %v8294_v15  ;;  %v8295_v60 = vpop.f32.mrb[88].mxu1  ;;  %v10262_v15 = vpop.eup %10261 }
 0x9e4   : > { %v8296_v47 = vpop.f32.mrb[89].mxu1 }
 0x9e5   : > { %v13677_v55 = vadd.f32 %v5324_v26, %v13620_v33  ;;  %v8297_v44 = vadd.f32 %v8296_v47, %v8295_v60  ;;  %v5868_v38 = vpop.xlane.xlu1 %5867 }
 0x9e6   : > { %10273 = vrcp.f32 %v5868_v38 }
 0x9e7   : > { %v5325_v20 = vmul.f32 %v10250_v6, %v8297_v44  ;;  %v8298_v53 = vpop.f32.mrb[90].mxu1  ;;  %v10386_v44 = vld [vmem:[%s11823_s12 + $0x8] sm:$0xff]  ;;  %v10264_v6 = vpop.eup %10263 }
 0x9e8   : > { %v8299_v34 = vpop.f32.mrb[91].mxu1 }
 0x9e9   : > { %v13680_v16 = vadd.f32 %v5325_v20, %v13624_v13  ;;  %v8300_v27 = vadd.f32 %v8299_v34, %v8298_v53  ;;  %v5871_v47 = vpop.xlane.xlu1 %5870 }
 0x9ea   : > { %10275 = vrcp.f32 %v5871_v47 }
 0x9eb   : > { %v5326_v7 = vmul.f32 %v10252_v61, %v8300_v27  ;;  %v8301_v11 = vpop.f32.mrb[92].mxu1 }
 0x9ec   : > { %v8302_v0 = vpop.f32.mrb[93].mxu1 }
 0x9ed   : > { %v13684_v33 = vadd.f32 %v5326_v7, %v13628_v5  ;;  %v8303_v40 = vadd.f32 %v8302_v0, %v8301_v11  ;;  %v10387_v7 = vld [vmem:[%s11823_s12 + $0x10] sm:$0xff]  ;;  %v5874_v0 = vpop.xlane.xlu1 %5873 }
 0x9ee   : > { %10277 = vrcp.f32 %v5874_v0 }
 0x9ef   : > { %v5327_v54 = vmul.f32 %v10254_v62, %v8303_v40  ;;  %v8304_v46 = vpop.f32.mrb[94].mxu1 }
 0x9f0   : > { %v8305_v18 = vpop.f32.mrb[95].mxu1 }
 0x9f1   : > { %v13688_v13 = vadd.f32 %v5327_v54, %v13632_v48  ;;  %v8306_v59 = vadd.f32 %v8305_v18, %v8304_v46  ;;  %v13696_v48 = vld [vmem:[%s14723_s26] ss:$0 sm:$0xff] }
 0x9f3   : > { %v5328_v32 = vmul.f32 %v10256_v17, %v8306_v59  ;;  %v8403_v63 = vpop.f32.mrb[96].mxu1  ;;  %v10388_v59 = vld [vmem:[%s11823_s12 + $0x18] sm:$0xff] }
 0x9f4   : > { %v8404_v28 = vpop.f32.mrb[97].mxu1 }
 0x9f5   : > { %v13691_v5 = vadd.f32 %v5328_v32, %v13636_v43  ;;  %v8405_v45 = vadd.f32 %v8404_v28, %v8403_v63 }
 0x9f7   : > { %v6084_v4 = vmul.f32 %v10258_v42, %v8405_v45  ;;  %v8406_v37 = vpop.f32.mrb[98].mxu1  ;;  %v5877_v42 = vpop.xlane.xlu1 %5876 }
 0x9f8   : > { %v8407_v25 = vpop.f32.mrb[99].mxu1  ;;  %10279 = vrcp.f32 %v5877_v42 }
 0x9f9   : > { %v6100_v36 = vadd.f32 %v6084_v4, %v13640_v9  ;;  %v8408_v23 = vadd.f32 %v8407_v25, %v8406_v37  ;;  %v10389_v37 = vld [vmem:[%s11823_s12 + $0x20] sm:$0xff] }
 0x9fb   : > { %v6085_v30 = vmul.f32 %v10260_v39, %v8408_v23  ;;  %v8409_v43 = vpop.f32.mrb[100].mxu1  ;;  %v6123_v1 = vadd.f32 %v13696_v48, %v6100_v36 }
 0x9fc   : > { %v8410_v51 = vpop.f32.mrb[101].mxu1 }
 0x9fd   : > { %v6101_v31 = vadd.f32 %v6085_v30, %v13643_v35  ;;  %v8411_v10 = vadd.f32 %v8410_v51, %v8409_v43  ;;  %v13702_v29 = vadd.f32 %v10385_v19, %v6123_v1  ;;  %v10390_v1 = vld [vmem:[%s11823_s12 + $0x28] sm:$0xff] }
 0x9ff   : > { %v6086_v50 = vmul.f32 %v10262_v15, %v8411_v10  ;;  %v8412_v26 = vpop.f32.mrb[102].mxu1  ;;  %6155 = vadd.xlane.f32.xlu0 %v13702_v29  ;;  %v6124_v9 = vadd.f32 %v13696_v48, %v6101_v31  ;;  %v5880_v31 = vpop.xlane.xlu1 %5879 }
 0xa00   : > { %v8413_v60 = vpop.f32.mrb[103].mxu1  ;;  %10281 = vrcp.f32 %v5880_v31 }
 0xa01   : > { %v6102_v41 = vadd.f32 %v6086_v50, %v13646_v24  ;;  %v8414_v52 = vadd.f32 %v8413_v60, %v8412_v26  ;;  %v13708_v35 = vadd.f32 %v10386_v44, %v6124_v9  ;;  %v10266_v24 = vpop.eup %10265  ;;  %v10391_v60 = vld [vmem:[%s11823_s12 + $0x30] sm:$0xff] }
 0xa02   : > { %v10268_v17 = vpop.eup %10267 }
 0xa03   : > { %v6087_v20 = vmul.f32 %v10264_v6, %v8414_v52  ;;  %v8415_v53 = vpop.f32.mrb[104].mxu1  ;;  %6157 = vadd.xlane.f32.xlu1 %v13708_v35  ;;  %v6125_v34 = vadd.f32 %v13696_v48, %v6102_v41  ;;  %v10270_v25 = vpop.eup %10269 }
 0xa04   : > { %v8416_v27 = vpop.f32.mrb[105].mxu1 }
 0xa05   : > { %v6103_v3 = vadd.f32 %v6087_v20, %v13649_v49  ;;  %v8417_v61 = vadd.f32 %v8416_v27, %v8415_v53  ;;  %v13714_v11 = vadd.f32 %v10387_v7, %v6125_v34  ;;  %v5883_v20 = vpop.xlane.xlu1 %5882  ;;  %v10392_v27 = vld [vmem:[%s11823_s12 + $0x38] sm:$0xff] }
 0xa06   : > { %10283 = vrcp.f32 %v5883_v20 }
 0xa07   : > { %v6088_v40 = vmul.f32 %v10266_v24, %v8417_v61  ;;  %v8418_v62 = vpop.f32.mrb[106].mxu1  ;;  %6159 = vadd.xlane.f32.xlu0 %v13714_v11  ;;  %v6126_v54 = vadd.f32 %v13696_v48, %v6103_v3 }
 0xa08   : > { %v8419_v46 = vpop.f32.mrb[107].mxu1 }
 0xa09   : > { %v6104_v21 = vadd.f32 %v6088_v40, %v13652_v56  ;;  %v8420_v18 = vadd.f32 %v8419_v46, %v8418_v62  ;;  %v13720_v49 = vadd.f32 %v10388_v59, %v6126_v54  ;;  %v10393_v54 = vld [vmem:[%s11823_s12 + $0x40] sm:$0xff] }
 0xa0b   : > { %v6089_v32 = vmul.f32 %v10268_v17, %v8420_v18  ;;  %v8421_v63 = vpop.f32.mrb[108].mxu1  ;;  %6161 = vadd.xlane.f32.xlu1 %v13720_v49  ;;  %v6127_v28 = vadd.f32 %v13696_v48, %v6104_v21  ;;  %v5886_v21 = vpop.xlane.xlu1 %5885 }
 0xa0c   : > { %v8422_v45 = vpop.f32.mrb[109].mxu1  ;;  %10285 = vrcp.f32 %v5886_v21 }
 0xa0d   : > { %v6105_v14 = vadd.f32 %v6089_v32, %v13657_v57  ;;  %v8423_v4 = vadd.f32 %v8422_v45, %v8421_v63  ;;  %v13726_v56 = vadd.f32 %v10389_v37, %v6127_v28  ;;  %v10272_v57 = vpop.eup %10271  ;;  %v10394_v45 = vld [vmem:[%s11823_s12 + $0x48] sm:$0xff] }
 0xa0e   : > { %v10274_v47 = vpop.eup %10273 }
 0xa0f   : > { %v6090_v36 = vmul.f32 %v10270_v25, %v8423_v4  ;;  %v8424_v23 = vpop.f32.mrb[110].mxu1  ;;  %6163 = vadd.xlane.f32.xlu0 %v13726_v56  ;;  %v6128_v39 = vadd.f32 %v13696_v48, %v6105_v14  ;;  %v10276_v3 = vpop.eup %10275 }
 0xa10   : > { %v8425_v30 = vpop.f32.mrb[111].mxu1 }
 0xa11   : > { %v6106_v38 = vadd.f32 %v6090_v36, %v13662_v8  ;;  %v8426_v43 = vadd.f32 %v8425_v30, %v8424_v23  ;;  %v13732_v51 = vadd.f32 %v10390_v1, %v6128_v39  ;;  %v5889_v36 = vpop.xlane.xlu1 %5888  ;;  %v10395_v30 = vld [vmem:[%s11823_s12 + $0x50] sm:$0xff] }
 0xa12   : > { %10287 = vrcp.f32 %v5889_v36  ;;  %v6389_v36 = vld [vmem:[#allocation16 + $0x58] sm:$0xff] }
 0xa13   : > { %v6091_v10 = vmul.f32 %v10272_v57, %v8426_v43  ;;  %v8427_v19 = vpop.f32.mrb[112].mxu1  ;;  %6165 = vadd.xlane.f32.xlu1 %v13732_v51  ;;  %v6129_v15 = vadd.f32 %v13696_v48, %v6106_v38 }
 0xa14   : > { %v8428_v50 = vpop.f32.mrb[113].mxu1 }
 0xa15   : > { %v6107_v26 = vadd.f32 %v6091_v10, %v13665_v12  ;;  %v8429_v9 = vadd.f32 %v8428_v50, %v8427_v19  ;;  %v13738_v8 = vadd.f32 %v10391_v60, %v6129_v15  ;;  %v10396_v15 = vld [vmem:[%s11823_s12 + $0x58] sm:$0xff] }
 0xa17   : > { %v6092_v41 = vmul.f32 %v10274_v47, %v8429_v9  ;;  %v8430_v52 = vpop.f32.mrb[114].mxu1  ;;  %6167 = vadd.xlane.f32.xlu0 %v13738_v8  ;;  %v6130_v44 = vadd.f32 %v13696_v48, %v6107_v26 }
 0xa18   : > { %v8431_v6 = vpop.f32.mrb[115].mxu1 }
 0xa19   : > { %v6108_v53 = vadd.f32 %v6092_v41, %v13668_v2  ;;  %v8432_v34 = vadd.f32 %v8431_v6, %v8430_v52  ;;  %v13744_v12 = vadd.f32 %v10392_v27, %v6130_v44  ;;  %v10278_v2 = vpop.eup %10277  ;;  %v10397_v44 = vld [vmem:[%s11823_s12 + $0x60] sm:$0xff] }
 0xa1a   : > { %v10280_v42 = vpop.eup %10279 }
 0xa1b   : > { %v6093_v61 = vmul.f32 %v10276_v3, %v8432_v34  ;;  %v8433_v7 = vpop.f32.mrb[116].mxu1  ;;  %6169 = vadd.xlane.f32.xlu1 %v13744_v12  ;;  %v6131_v24 = vadd.f32 %v13696_v48, %v6108_v53  ;;  %v10282_v38 = vpop.eup %10281 }
 0xa1c   : > { %v8434_v0 = vpop.f32.mrb[117].mxu1 }
 0xa1d   : > { %v6109_v40 = vadd.f32 %v6093_v61, %v13671_v58  ;;  %v8435_v62 = vadd.f32 %v8434_v0, %v8433_v7  ;;  %v13750_v46 = vadd.f32 %v10393_v54, %v6131_v24  ;;  %v10398_v7 = vld [vmem:[%s11823_s12 + $0x68] sm:$0xff]  ;;  %v10399_v54 = vld [vmem:[%s11823_s12 + $0x70] sm:$0xff] }
 0xa1f   : > { %v6094_v18 = vmul.f32 %v10278_v2, %v8435_v62  ;;  %v8436_v59 = vpop.f32.mrb[118].mxu1  ;;  %6171 = vadd.xlane.f32.xlu0 %v13750_v46  ;;  %v6132_v17 = vadd.f32 %v13696_v48, %v6109_v40 }
 0xa20   : > { %v8437_v32 = vpop.f32.mrb[119].mxu1 }
 0xa21   : > { %v6110_v63 = vadd.f32 %v6094_v18, %v13674_v22  ;;  %v8438_v28 = vadd.f32 %v8437_v32, %v8436_v59  ;;  %v13756_v58 = vadd.f32 %v10394_v45, %v6132_v17  ;;  %v6379_v59 = vld [vmem:[#allocation16 + $0x8] sm:$0xff]  ;;  %v6381_v17 = vld [vmem:[#allocation16 + $0x18] sm:$0xff]  ;;  %v6378_v32 = vld [vmem:[#allocation16] sm:$0xff] }
 0xa22   : > { %v6383_v45 = vld [vmem:[#allocation16 + $0x28] sm:$0xff] }
 0xa23   : > { %v6095_v14 = vmul.f32 %v10280_v42, %v8438_v28  ;;  %v8439_v4 = vpop.f32.mrb[120].mxu1  ;;  %6173 = vadd.xlane.f32.xlu1 %v13756_v58  ;;  %v6133_v37 = vadd.f32 %v13696_v48, %v6110_v63  ;;  %v9419_v63 = vpack.c.bf16 %v6381_v17, %v6379_v59  ;;  %v6380_v28 = vld [vmem:[#allocation16 + $0x10] sm:$0xff]  ;;  %v6385_v42 = vld [vmem:[#allocation16 + $0x38] sm:$0xff] }
 0xa24   : > { %v8440_v25 = vpop.f32.mrb[121].mxu1 }
 0xa25   : > { %v6111_v23 = vadd.f32 %v6095_v14, %v13677_v55  ;;  %v8441_v39 = vadd.f32 %v8440_v25, %v8439_v4  ;;  %v13762_v22 = vadd.f32 %v10395_v30, %v6133_v37  ;;  %v10284_v55 = vpop.eup %10283  ;;  %v9423_v14 = vpack.c.bf16 %v6385_v42, %v6383_v45  ;;  %v6382_v4 = vld [vmem:[#allocation16 + $0x20] sm:$0xff]  ;;  %v6384_v37 = vld [vmem:[#allocation16 + $0x30] sm:$0xff]  ;;  %v6387_v25 = vld [vmem:[#allocation16 + $0x48] sm:$0xff]  ;;  %9420 = vmatprep.subr.bf16.mxu0 %v9419_v63 }
 0xa26   : > { %v6388_v30 = vld [vmem:[#allocation16 + $0x50] sm:$0xff] }
 0xa27   : > { %v6096_v43 = vmul.f32 %v10282_v38, %v8441_v39  ;;  %v8442_v1 = vpop.f32.mrb[122].mxu1  ;;  %6175 = vadd.xlane.f32.xlu0 %v13762_v22  ;;  %v6134_v57 = vadd.f32 %v13696_v48, %v6111_v23  ;;  %v9427_v23 = vpack.c.bf16 %v6389_v36, %v6387_v25  ;;  %v6386_v39 = vld [vmem:[#allocation16 + $0x40] sm:$0xff]  ;;  %v6391_v38 = vld [vmem:[#allocation16 + $0x68] sm:$0xff] }
 0xa28   : > { %v8443_v31 = vpop.f32.mrb[123].mxu1 }
 0xa29   : > { %v6112_v10 = vadd.f32 %v6096_v43, %v13680_v16  ;;  %v8444_v19 = vadd.f32 %v8443_v31, %v8442_v1  ;;  %v13768_v50 = vadd.f32 %v10396_v15, %v6134_v57  ;;  %v10286_v16 = vpop.eup %10285  ;;  %v6393_v43 = vld [vmem:[#allocation16 + $0x78] sm:$0xff]  ;;  %v9429_v1 = vpack.c.bf16 %v6388_v30, %v6386_v39  ;;  %v6390_v31 = vld [vmem:[#allocation16 + $0x60] sm:$0xff]  ;;  %v6403_v30 = vld [vmem:[#allocation16 + $0xc8] sm:$0xff] }
 0xa2a   : > { %v9431_v57 = vpack.c.bf16 %v6393_v43, %v6391_v38  ;;  %v6397_v15 = vld [vmem:[#allocation16 + $0x98] sm:$0xff] }
 0xa2b   : > { %v6097_v26 = vmul.f32 %v10284_v55, %v8444_v19  ;;  %v8445_v9 = vpop.f32.mrb[124].mxu1  ;;  %6177 = vadd.xlane.f32.xlu1 %v13768_v50  ;;  %v6135_v60 = vadd.f32 %v13696_v48, %v6112_v10  ;;  %v6392_v10 = vld [vmem:[#allocation16 + $0x70] sm:$0xff]  ;;  %v6395_v19 = vld [vmem:[#allocation16 + $0x88] sm:$0xff]  ;;  %v6405_v38 = vld [vmem:[#allocation16 + $0xd8] sm:$0xff] }
 0xa2c   : > { %v8446_v47 = vpop.f32.mrb[125].mxu1  ;;  %v9433_v55 = vpack.c.bf16 %v6392_v10, %v6390_v31  ;;  %v9443_v43 = vpack.c.bf16 %v6405_v38, %v6403_v30 }
 0xa2d   : > { %v6113_v41 = vadd.f32 %v6097_v26, %v13684_v33  ;;  %v8447_v52 = vadd.f32 %v8446_v47, %v8445_v9  ;;  %v13774_v6 = vadd.f32 %v10397_v44, %v6135_v60  ;;  %v10288_v33 = vpop.eup %10287  ;;  %v9435_v26 = vpack.c.bf16 %v6397_v15, %v6395_v19  ;;  %v6394_v9 = vld [vmem:[#allocation16 + $0x80] sm:$0xff]  ;;  %v6396_v60 = vld [vmem:[#allocation16 + $0x90] sm:$0xff]  ;;  %v6399_v47 = vld [vmem:[#allocation16 + $0xa8] sm:$0xff] }
 0xa2e   : > { %v6407_v15 = vld [vmem:[#allocation16 + $0xe8] sm:$0xff] }
 0xa2f   : > { %v6098_v20 = vmul.f32 %v10286_v16, %v8447_v52  ;;  %v8448_v53 = vpop.f32.mrb[126].mxu1  ;;  %6179 = vadd.xlane.f32.xlu0 %v13774_v6  ;;  %v6136_v34 = vadd.f32 %v13696_v48, %v6113_v41  ;;  %v6401_v41 = vld [vmem:[#allocation16 + $0xb8] sm:$0xff]  ;;  %v9437_v52 = vpack.c.bf16 %v6396_v60, %v6394_v9  ;;  %v6398_v16 = vld [vmem:[#allocation16 + $0xa0] sm:$0xff]  ;;  %v6408_v60 = vld [vmem:[#allocation16 + $0xf0] sm:$0xff] }
 0xa30   : > { %v8449_v27 = vpop.f32.mrb[127].mxu1  ;;  %v9439_v44 = vpack.c.bf16 %v6401_v41, %v6399_v47 }
 0xa31   : > { %v6114_v3 = vadd.f32 %v6098_v20, %v13688_v13  ;;  %v8450_v61 = vadd.f32 %v8449_v27, %v8448_v53  ;;  %v13780_v24 = vadd.f32 %v10398_v7, %v6136_v34  ;;  %v10400_v13 = vld [vmem:[%s11823_s12 + $0x78] sm:$0xff] }
 0xa32   : > { %v6400_v20 = vld [vmem:[#allocation16 + $0xb0] sm:$0xff] }
 0xa33   : > { %v6099_v0 = vmul.f32 %v10288_v33, %v8450_v61  ;;  %6181 = vadd.xlane.f32.xlu1 %v13780_v24  ;;  %v6137_v40 = vadd.f32 %v13696_v48, %v6114_v3  ;;  %v9441_v53 = vpack.c.bf16 %v6400_v20, %v6398_v16  ;;  %v10792_v20 = vmov 0.0  }
 0xa34   : > { %6486 = vmatprep.mubr.f32.mxu0 %v10792_v20 }
 0xa35   : > { %v6115_v62 = vadd.f32 %v6099_v0, %v13691_v5  ;;  %v13786_v2 = vadd.f32 %v10399_v54, %v6137_v40  ;;  %v9421_v5 = vpack.c.bf16 %v6380_v28, %v6378_v32 }
 0xa37   : > { %6183 = vadd.xlane.f32.xlu0 %v13786_v2  ;;  %v6138_v21 = vadd.f32 %v13696_v48, %v6115_v62  ;;  %9422 = vmatpush1.bf16.msra.mxu0 %v9421_v5  ;;  %v9425_v48 = vpack.c.bf16 %v6384_v37, %v6382_v4 }
 0xa38   : > { %9424 = vmatprep.subr.bf16.mxu0 %v9423_v14 }
 0xa39   : > { %v13791_v18 = vadd.f32 %v10400_v13, %v6138_v21 }
 0xa3b   : > { %6185 = vadd.xlane.f32.xlu1 %v13791_v18  ;;  %9426 = vmatpush1.bf16.msra.mxu0 %v9425_v48 }
 0xa3c   : > { %9428 = vmatprep.subr.bf16.mxu0 %v9427_v23 }
 0xa3f   : > { %9430 = vmatpush1.bf16.msra.mxu0 %v9429_v1  ;;  %v6404_v1 = vld [vmem:[#allocation16 + $0xd0] sm:$0xff] }
 0xa40   : > { %9432 = vmatprep.subr.bf16.mxu0 %v9431_v57 }
 0xa43   : > { %9434 = vmatpush1.bf16.msra.mxu0 %v9433_v55  ;;  %v6409_v55 = vld [vmem:[#allocation16 + $0xf8] sm:$0xff] }
 0xa44   : > { %9436 = vmatprep.subr.bf16.mxu0 %v9435_v26  ;;  %v6406_v26 = vld [vmem:[#allocation16 + $0xe0] sm:$0xff]  ;;  %v9447_v9 = vpack.c.bf16 %v6409_v55, %v6407_v15  ;;  %v6622_v15 = vld [vmem:[#allocation17 + $0x38] sm:$0xff] }
 0xa45   : > { %v6639_v55 = vld [vmem:[#allocation17 + $0xc0] sm:$0xff] }
 0xa47   : > { %9438 = vmatpush1.bf16.msra.mxu0 %v9437_v52 }
 0xa48   : > { %9440 = vmatprep.subr.bf16.mxu0 %v9439_v44 }
 0xa4b   : > { %9442 = vmatpush1.bf16.msra.mxu0 %v9441_v53 }
 0xa4c   : > { %9444 = vmatprep.subr.bf16.mxu0 %v9443_v43  ;;  %v6619_v43 = vld [vmem:[#allocation17 + $0x20] sm:$0xff] }
 0xa8c   : > { %v6156_v34 = vpop.xlane.xlu0 %6155 }
 0xa8d   : > { %v6188_v27 = vmul.f32 0.0078125, %v6156_v34 }
 0xa8f   : > { %v13795_v3 = vsub.f32 %v13702_v29, %v6188_v27 }
 0xa90   : > { %v6158_v61 = vpop.xlane.xlu1 %6157 }
 0xa91   : > { %v6189_v7 = vmul.f32 0.0078125, %v6158_v61  ;;  %v6220_v33 = vmul.f32 %v13795_v3, %v13795_v3 }
 0xa93   : > { %v13800_v0 = vsub.f32 %v13708_v35, %v6189_v7  ;;  %6236 = vadd.xlane.f32.xlu0 %v6220_v33 }
 0xa94   : > { %v6160_v40 = vpop.xlane.xlu0 %6159 }
 0xa95   : > { %v6190_v62 = vmul.f32 0.0078125, %v6160_v40  ;;  %v6221_v54 = vmul.f32 %v13800_v0, %v13800_v0 }
 0xa97   : > { %v13805_v21 = vsub.f32 %v13714_v11, %v6190_v62  ;;  %6238 = vadd.xlane.f32.xlu1 %v6221_v54 }
 0xa98   : > { %v6162_v29 = vpop.xlane.xlu1 %6161 }
 0xa99   : > { %v6191_v13 = vmul.f32 0.0078125, %v6162_v29  ;;  %v6222_v59 = vmul.f32 %v13805_v21, %v13805_v21 }
 0xa9b   : > { %v13810_v17 = vsub.f32 %v13720_v49, %v6191_v13  ;;  %6240 = vadd.xlane.f32.xlu0 %v6222_v59 }
 0xa9c   : > { %v6164_v35 = vpop.xlane.xlu0 %6163 }
 0xa9d   : > { %v6192_v32 = vmul.f32 0.0078125, %v6164_v35  ;;  %v6223_v63 = vmul.f32 %v13810_v17, %v13810_v17 }
 0xa9f   : > { %v13815_v28 = vsub.f32 %v13726_v56, %v6192_v32  ;;  %6242 = vadd.xlane.f32.xlu1 %v6223_v63 }
 0xaa0   : > { %v6166_v11 = vpop.xlane.xlu1 %6165 }
 0xaa1   : > { %v6193_v45 = vmul.f32 0.0078125, %v6166_v11  ;;  %v6224_v42 = vmul.f32 %v13815_v28, %v13815_v28 }
 0xaa3   : > { %v13820_v5 = vsub.f32 %v13732_v51, %v6193_v45  ;;  %6244 = vadd.xlane.f32.xlu0 %v6224_v42  ;;  %v6631_v45 = vld [vmem:[#allocation17 + $0x80] sm:$0xff]  ;;  %v6632_v42 = vld [vmem:[#allocation17 + $0x88] sm:$0xff] }
 0xaa4   : > { %v6168_v49 = vpop.xlane.xlu0 %6167 }
 0xaa5   : > { %v6194_v14 = vmul.f32 0.0078125, %v6168_v49  ;;  %v6225_v4 = vmul.f32 %v13820_v5, %v13820_v5  ;;  %v6615_v49 = vld [vmem:[#allocation17] sm:$0xff] }
 0xaa7   : > { %v13825_v37 = vsub.f32 %v13738_v8, %v6194_v14  ;;  %6246 = vadd.xlane.f32.xlu1 %v6225_v4  ;;  %v6402_v8 = vld [vmem:[#allocation16 + $0xc0] sm:$0xff]  ;;  %v9451_v14 = vpack.c.bf16 %v6632_v42, %v6631_v45  ;;  %v6633_v4 = vld [vmem:[#allocation17 + $0x90] sm:$0xff] }
 0xaa8   : > { %v6170_v56 = vpop.xlane.xlu1 %6169  ;;  %v9445_v31 = vpack.c.bf16 %v6404_v1, %v6402_v8  ;;  %v6620_v8 = vld [vmem:[#allocation17 + $0x28] sm:$0xff]  ;;  %v6637_v1 = vld [vmem:[#allocation17 + $0xb0] sm:$0xff] }
 0xaa9   : > { %v6195_v25 = vmul.f32 0.0078125, %v6170_v56  ;;  %v6226_v36 = vmul.f32 %v13825_v37, %v13825_v37  ;;  %v6634_v56 = vld [vmem:[#allocation17 + $0x98] sm:$0xff]  ;;  %9452 = vmatprep.subr.bf16.mxu1 %v9451_v14 }
 0xaaa   : > { %9446 = vmatpush1.bf16.msra.mxu0 %v9445_v31  ;;  %v6638_v31 = vld [vmem:[#allocation17 + $0xb8] sm:$0xff] }
 0xaab   : > { %v13830_v48 = vsub.f32 %v13744_v12, %v6195_v25  ;;  %6248 = vadd.xlane.f32.xlu0 %v6226_v36  ;;  %9448 = vmatprep.subr.bf16.mxu0 %v9447_v9  ;;  %v9455_v36 = vpack.c.bf16 %v6634_v56, %v6633_v4 }
 0xaac   : > { %v6172_v51 = vpop.xlane.xlu0 %6171 }
 0xaad   : > { %v6196_v23 = vmul.f32 0.0078125, %v6172_v51  ;;  %v6227_v39 = vmul.f32 %v13830_v48, %v13830_v48  ;;  %v6617_v51 = vld [vmem:[#allocation17 + $0x10] sm:$0xff] }
 0xaaf   : > { %v13835_v57 = vsub.f32 %v13750_v46, %v6196_v23  ;;  %6250 = vadd.xlane.f32.xlu1 %v6227_v39  ;;  %v9449_v46 = vpack.c.bf16 %v6408_v60, %v6406_v26  ;;  %v6618_v23 = vld [vmem:[#allocation17 + $0x18] sm:$0xff]  ;;  %v6635_v39 = vld [vmem:[#allocation17 + $0xa0] sm:$0xff]  ;;  %v6640_v26 = vld [vmem:[#allocation17 + $0xc8] sm:$0xff] }
 0xab0   : > { %v6174_v10 = vpop.xlane.xlu1 %6173  ;;  %v9457_v30 = vpack.c.bf16 %v6618_v23, %v6617_v51  ;;  %v9467_v60 = vpack.c.bf16 %v6640_v26, %v6639_v55 }
 0xab1   : > { %v6197_v12 = vmul.f32 0.0078125, %v6174_v10  ;;  %v6228_v19 = vmul.f32 %v13835_v57, %v13835_v57  ;;  %9450 = vmatpush1.bf16.msra.mxu0 %v9449_v46  ;;  %v9461_v10 = vpack.c.bf16 %v6620_v8, %v6619_v43  ;;  %v6623_v46 = vld [vmem:[#allocation17 + $0x40] sm:$0xff] }
 0xab3   : > { %v13840_v47 = vsub.f32 %v13756_v58, %v6197_v12  ;;  %6252 = vadd.xlane.f32.xlu0 %v6228_v19  ;;  %v9463_v12 = vpack.c.bf16 %v6638_v31, %v6637_v1  ;;  %v6621_v19 = vld [vmem:[#allocation17 + $0x30] sm:$0xff]  ;;  %v13884_v31 = vld [vmem:[%s14725_s8] ss:$0 sm:$0xff] }
 0xab4   : > { %v6176_v41 = vpop.xlane.xlu0 %6175  ;;  %v9465_v9 = vpack.c.bf16 %v6622_v15, %v6621_v19 }
 0xab5   : > { %v6198_v52 = vmul.f32 0.0078125, %v6176_v41  ;;  %v6229_v44 = vmul.f32 %v13840_v47, %v13840_v47  ;;  %v6624_v41 = vld [vmem:[#allocation17 + $0x48] sm:$0xff] }
 0xab7   : > { %v13845_v16 = vsub.f32 %v13762_v22, %v6198_v52  ;;  %6254 = vadd.xlane.f32.xlu1 %v6229_v44  ;;  %v6641_v52 = vld [vmem:[#allocation17 + $0xd0] sm:$0xff]  ;;  %v6642_v44 = vld [vmem:[#allocation17 + $0xd8] sm:$0xff] }
 0xab8   : > { %v6178_v53 = vpop.xlane.xlu1 %6177 }
 0xab9   : > { %v6199_v34 = vmul.f32 0.0078125, %v6178_v53  ;;  %v6230_v58 = vmul.f32 %v13845_v16, %v13845_v16  ;;  %v9469_v53 = vpack.c.bf16 %v6624_v41, %v6623_v46 }
 0xabb   : > { %v13851_v27 = vsub.f32 %v13768_v50, %v6199_v34  ;;  %6256 = vadd.xlane.f32.xlu0 %v6230_v58  ;;  %v9471_v34 = vpack.c.bf16 %v6642_v44, %v6641_v52  ;;  %v6625_v58 = vld [vmem:[#allocation17 + $0x50] sm:$0xff] }
 0xabc   : > { %v6180_v61 = vpop.xlane.xlu0 %6179 }
 0xabd   : > { %v6200_v7 = vmul.f32 0.0078125, %v6180_v61  ;;  %v6231_v33 = vmul.f32 %v13851_v27, %v13851_v27  ;;  %v6626_v61 = vld [vmem:[#allocation17 + $0x58] sm:$0xff] }
 0xabf   : > { %v13856_v22 = vsub.f32 %v13774_v6, %v6200_v7  ;;  %6258 = vadd.xlane.f32.xlu1 %v6231_v33  ;;  %v6643_v7 = vld [vmem:[#allocation17 + $0xe0] sm:$0xff]  ;;  %v6644_v33 = vld [vmem:[#allocation17 + $0xe8] sm:$0xff] }
 0xac0   : > { %v6182_v40 = vpop.xlane.xlu1 %6181 }
 0xac1   : > { %v6201_v62 = vmul.f32 0.0078125, %v6182_v40  ;;  %v6232_v54 = vmul.f32 %v13856_v22, %v13856_v22  ;;  %v9473_v40 = vpack.c.bf16 %v6626_v61, %v6625_v58 }
 0xac3   : > { %v13861_v29 = vsub.f32 %v13780_v24, %v6201_v62  ;;  %6260 = vadd.xlane.f32.xlu0 %v6232_v54  ;;  %v9475_v62 = vpack.c.bf16 %v6644_v33, %v6643_v7  ;;  %v6627_v54 = vld [vmem:[#allocation17 + $0x60] sm:$0xff] }
 0xac4   : > { %v6184_v50 = vpop.xlane.xlu0 %6183 }
 0xac5   : > { %v6202_v13 = vmul.f32 0.0078125, %v6184_v50  ;;  %v6233_v59 = vmul.f32 %v13861_v29, %v13861_v29  ;;  %v6628_v50 = vld [vmem:[#allocation17 + $0x68] sm:$0xff] }
 0xac7   : > { %v13866_v35 = vsub.f32 %v13786_v2, %v6202_v13  ;;  %6262 = vadd.xlane.f32.xlu1 %v6233_v59  ;;  %v6616_v2 = vld [vmem:[#allocation17 + $0x8] sm:$0xff]  ;;  %v6645_v13 = vld [vmem:[#allocation17 + $0xf0] sm:$0xff]  ;;  %v6646_v59 = vld [vmem:[#allocation17 + $0xf8] sm:$0xff] }
 0xac8   : > { %v6186_v6 = vpop.xlane.xlu1 %6185  ;;  %v9453_v25 = vpack.c.bf16 %v6616_v2, %v6615_v49 }
 0xac9   : > { %v6203_v32 = vmul.f32 0.0078125, %v6186_v6  ;;  %v6234_v63 = vmul.f32 %v13866_v35, %v13866_v35  ;;  %v9477_v6 = vpack.c.bf16 %v6628_v50, %v6627_v54 }
 0xaca   : > { %9454 = vmatpush3.bf16.msra.mxu1 %v9453_v25 }
 0xacb   : > { %v13871_v11 = vsub.f32 %v13791_v18, %v6203_v32  ;;  %6264 = vadd.xlane.f32.xlu0 %v6234_v63  ;;  %v6636_v18 = vld [vmem:[#allocation17 + $0xa8] sm:$0xff]  ;;  %9456 = vmatprep.subr.bf16.mxu1 %v9455_v36  ;;  %v9479_v32 = vpack.c.bf16 %v6646_v59, %v6645_v13  ;;  %v6629_v63 = vld [vmem:[#allocation17 + $0x70] sm:$0xff] }
 0xacc   : > { %v9459_v38 = vpack.c.bf16 %v6636_v18, %v6635_v39 }
 0xacd   : > { %v6235_v24 = vmul.f32 %v13871_v11, %v13871_v11 }
 0xace   : > { %9458 = vmatpush3.bf16.msra.mxu1 %v9457_v30 }
 0xacf   : > { %6266 = vadd.xlane.f32.xlu1 %v6235_v24  ;;  %9460 = vmatprep.subr.bf16.mxu1 %v9459_v38  ;;  %v6630_v24 = vld [vmem:[#allocation17 + $0x78] sm:$0xff] }
 0xad0   : > { %v9481_v45 = vpack.c.bf16 %v6630_v24, %v6629_v63  ;;  %v13878_v38 = vld [vmem:[%s14724_s18] ss:$0 sm:$0xff]  ;;  %s14733_s18 = sld [smem:[#allocation29_spill]] }
 0xad2   : > { %9462 = vmatpush3.bf16.msra.mxu1 %v9461_v10 }
 0xad3   : > { %9464 = vmatprep.subr.bf16.mxu1 %v9463_v12 }
 0xad6   : > { %9466 = vmatpush3.bf16.msra.mxu1 %v9465_v9  ;;  %s7597_s16 = sshll.u32 %s14733_s18, 5 }
 0xad7   : > { %9468 = vmatprep.subr.bf16.mxu1 %v9467_v60  ;;  %s7066_s8 = sadd.s32 %s7597_s16, %s7596_s11 }
 0xad8   : > { %s7598_s12 = sshll.u32 %s7066_s8, 7 }
 0xad9   : > { %s14282_s20 = scalar_lea.hbm %s14734_s25, %s7598_s12 }
 0xada   : > { %9470 = vmatpush3.bf16.msra.mxu1 %v9469_v53 }
 0xadb   : > { %9472 = vmatprep.subr.bf16.mxu1 %v9471_v34 }
 0xade   : > { %9474 = vmatpush3.bf16.msra.mxu1 %v9473_v40 }
 0xadf   : > { %9476 = vmatprep.subr.bf16.mxu1 %v9475_v62 }
 0xae2   : > { %9478 = vmatpush3.bf16.msra.mxu1 %v9477_v6 }
 0xae3   : > { %9480 = vmatprep.subr.bf16.mxu1 %v9479_v32 }
 0xae6   : > { %9482 = vmatpush3.bf16.msra.mxu1 %v9481_v45 }
 0xb20   : > { %v6237_v42 = vpop.xlane.xlu0 %6236 }
 0xb21   : > { %v6268_v49 = vmul.f32 0.0078125, %v6237_v42 }
 0xb23   : > { %v6284_v14 = vadd.f32 1e-05, %v6268_v49 }
 0xb24   : > { %v6239_v2 = vpop.xlane.xlu1 %6238 }
 0xb25   : > { %10289 = vrsqrt.f32 %v6284_v14  ;;  %v6269_v4 = vmul.f32 0.0078125, %v6239_v2 }
 0xb27   : > { %v6285_v56 = vadd.f32 1e-05, %v6269_v4 }
 0xb28   : > { %v6241_v25 = vpop.xlane.xlu0 %6240 }
 0xb29   : > { %10291 = vrsqrt.f32 %v6285_v56  ;;  %v6270_v36 = vmul.f32 0.0078125, %v6241_v25 }
 0xb2b   : > { %v6286_v51 = vadd.f32 1e-05, %v6270_v36 }
 0xb2c   : > { %v6243_v23 = vpop.xlane.xlu1 %6242 }
 0xb2d   : > { %10293 = vrsqrt.f32 %v6286_v51  ;;  %v6271_v39 = vmul.f32 0.0078125, %v6243_v23 }
 0xb2f   : > { %v10290_v18 = vpop.eup %10289  ;;  %v6287_v30 = vadd.f32 1e-05, %v6271_v39 }
 0xb30   : > { %v6316_v43 = vmul.f32 %v10290_v18, %v13795_v3  ;;  %v6245_v8 = vpop.xlane.xlu0 %6244 }
 0xb31   : > { %10295 = vrsqrt.f32 %v6287_v30  ;;  %v6272_v1 = vmul.f32 0.0078125, %v6245_v8 }
 0xb32   : > { %v6339_v10 = vmul.f32 %v13878_v38, %v6316_v43 }
 0xb33   : > { %v10292_v12 = vpop.eup %10291  ;;  %v6288_v19 = vadd.f32 1e-05, %v6272_v1 }
 0xb34   : > { %v6247_v15 = vpop.xlane.xlu1 %6246  ;;  %v13888_v55 = vadd.f32 %v13884_v31, %v6339_v10  ;;  %v6317_v26 = vmul.f32 %v10292_v12, %v13800_v0 }
 0xb35   : > { %10297 = vrsqrt.f32 %v6288_v19  ;;  %v6273_v3 = vmul.f32 0.0078125, %v6247_v15 }
 0xb36   : > { %6487 = vmatmul.mubr.f32.vlgmr.msra.gmra.mrb[144].mxu0 %v13888_v55  ;;  %v6340_v9 = vmul.f32 %v13878_v38, %v6317_v26 }
 0xb37   : > { %v10294_v60 = vpop.eup %10293  ;;  %v6289_v46 = vadd.f32 1e-05, %v6273_v3  ;;  %6492 = vmatprep.mubr.f32.mxu0 %v10792_v20 }
 0xb38   : > { %v6249_v41 = vpop.xlane.xlu0 %6248  ;;  %v13895_v52 = vadd.f32 %v13884_v31, %v6340_v9  ;;  %v6318_v44 = vmul.f32 %v10294_v60, %v13805_v21 }
 0xb39   : > { %10299 = vrsqrt.f32 %v6289_v46  ;;  %v6274_v53 = vmul.f32 0.0078125, %v6249_v41 }
 0xb3a   : > { %6493 = vmatmul.mubr.f32.gmra.mrb[146].mxu0 %v13895_v52  ;;  %v6341_v0 = vmul.f32 %v13878_v38, %v6318_v44 }
 0xb3b   : > { %v10296_v34 = vpop.eup %10295  ;;  %v6290_v58 = vadd.f32 1e-05, %v6274_v53  ;;  %6498 = vmatprep.mubr.f32.mxu0 %v10792_v20 }
 0xb3c   : > { %v6251_v61 = vpop.xlane.xlu1 %6250  ;;  %v13902_v7 = vadd.f32 %v13884_v31, %v6341_v0  ;;  %v6319_v33 = vmul.f32 %v10296_v34, %v13810_v17 }
 0xb3d   : > { %10301 = vrsqrt.f32 %v6290_v58  ;;  %v6275_v40 = vmul.f32 0.0078125, %v6251_v61 }
 0xb3e   : > { %6499 = vmatmul.mubr.f32.gmra.mrb[148].mxu0 %v13902_v7  ;;  %v6342_v21 = vmul.f32 %v13878_v38, %v6319_v33 }
 0xb3f   : > { %v10298_v62 = vpop.eup %10297  ;;  %v6291_v54 = vadd.f32 1e-05, %v6275_v40  ;;  %6504 = vmatprep.mubr.f32.mxu0 %v10792_v20 }
 0xb40   : > { %v6253_v50 = vpop.xlane.xlu0 %6252  ;;  %v13909_v13 = vadd.f32 %v13884_v31, %v6342_v21  ;;  %v6320_v59 = vmul.f32 %v10298_v62, %v13815_v28 }
 0xb41   : > { %10303 = vrsqrt.f32 %v6291_v54  ;;  %v6276_v6 = vmul.f32 0.0078125, %v6253_v50 }
 0xb42   : > { %6505 = vmatmul.mubr.f32.gmra.mrb[150].mxu0 %v13909_v13  ;;  %v6343_v17 = vmul.f32 %v13878_v38, %v6320_v59 }
 0xb43   : > { %v10300_v32 = vpop.eup %10299  ;;  %v6292_v63 = vadd.f32 1e-05, %v6276_v6  ;;  %6510 = vmatprep.mubr.f32.mxu0 %v10792_v20 }
 0xb44   : > { %v6255_v24 = vpop.xlane.xlu1 %6254  ;;  %v13916_v45 = vadd.f32 %v13884_v31, %v6343_v17  ;;  %v6321_v42 = vmul.f32 %v10300_v32, %v13820_v5 }
 0xb45   : > { %10305 = vrsqrt.f32 %v6292_v63  ;;  %v6277_v49 = vmul.f32 0.0078125, %v6255_v24 }
 0xb46   : > { %6511 = vmatmul.mubr.f32.gmra.mrb[152].mxu0 %v13916_v45  ;;  %v6344_v28 = vmul.f32 %v13878_v38, %v6321_v42 }
 0xb47   : > { %v10302_v14 = vpop.eup %10301  ;;  %v6293_v2 = vadd.f32 1e-05, %v6277_v49  ;;  %6516 = vmatprep.mubr.f32.mxu0 %v10792_v20 }
 0xb48   : > { %v6257_v4 = vpop.xlane.xlu0 %6256  ;;  %v13923_v56 = vadd.f32 %v13884_v31, %v6344_v28  ;;  %v6322_v25 = vmul.f32 %v10302_v14, %v13825_v37 }
 0xb49   : > { %10307 = vrsqrt.f32 %v6293_v2  ;;  %v6278_v36 = vmul.f32 0.0078125, %v6257_v4 }
 0xb4a   : > { %6517 = vmatmul.mubr.f32.gmra.mrb[154].mxu0 %v13923_v56  ;;  %v6345_v5 = vmul.f32 %v13878_v38, %v6322_v25 }
 0xb4b   : > { %v10304_v51 = vpop.eup %10303  ;;  %v6294_v23 = vadd.f32 1e-05, %v6278_v36  ;;  %6522 = vmatprep.mubr.f32.mxu0 %v10792_v20 }
 0xb4c   : > { %v6259_v39 = vpop.xlane.xlu1 %6258  ;;  %v13930_v18 = vadd.f32 %v13884_v31, %v6345_v5  ;;  %v6323_v30 = vmul.f32 %v10304_v51, %v13830_v48  ;;  %v6410_v5 = vld [vmem:[%s14726_s4] sm:$0x3] }
 0xb4d   : > { %10309 = vrsqrt.f32 %v6294_v23  ;;  %v6279_v43 = vmul.f32 0.0078125, %v6259_v39  ;;  %v14727_v51 = vld [vmem:[#allocation36_spill] sm:$0xff] }
 0xb4e   : > { %6523 = vmatmul.mubr.f32.gmra.mrb[156].mxu0 %v13930_v18  ;;  %v6346_v37 = vmul.f32 %v13878_v38, %v6323_v30  ;;  %v14728_v23 = vsub.s32 0, %v14727_v51 }
 0xb4f   : > { %v10306_v8 = vpop.eup %10305  ;;  %v6295_v1 = vadd.f32 1e-05, %v6279_v43  ;;  %6528 = vmatprep.mubr.f32.mxu0 %v10792_v20 }
 0xb50   : > { %v6261_v10 = vpop.xlane.xlu0 %6260  ;;  %v13937_v12 = vadd.f32 %v13884_v31, %v6346_v37  ;;  %v6324_v19 = vmul.f32 %v10306_v8, %v13835_v57  ;;  %v14001_v39 = vrot.slane %v6410_v5, %v14728_v23 }
 0xb51   : > { %10311 = vrsqrt.f32 %v6295_v1  ;;  %v6280_v15 = vmul.f32 0.0078125, %v6261_v10 }
 0xb52   : > { %6529 = vmatmul.mubr.f32.gmra.mrb[158].mxu0 %v13937_v12  ;;  %v6347_v48 = vmul.f32 %v13878_v38, %v6324_v19 }
 0xb53   : > { %v10308_v26 = vpop.eup %10307  ;;  %v6296_v3 = vadd.f32 1e-05, %v6280_v15  ;;  %6534 = vmatprep.mubr.f32.mxu0 %v10792_v20 }
 0xb54   : > { %v6263_v9 = vpop.xlane.xlu1 %6262  ;;  %v13944_v60 = vadd.f32 %v13884_v31, %v6347_v48  ;;  %v6325_v46 = vmul.f32 %v10308_v26, %v13840_v47 }
 0xb55   : > { %10313 = vrsqrt.f32 %v6296_v3  ;;  %v6281_v41 = vmul.f32 0.0078125, %v6263_v9 }
 0xb56   : > { %6535 = vmatmul.mubr.f32.gmra.mrb[160].mxu0 %v13944_v60  ;;  %v6348_v57 = vmul.f32 %v13878_v38, %v6325_v46 }
 0xb57   : > { %v10310_v44 = vpop.eup %10309  ;;  %v6297_v53 = vadd.f32 1e-05, %v6281_v41  ;;  %6540 = vmatprep.mubr.f32.mxu0 %v10792_v20 }
 0xb58   : > { %v6265_v0 = vpop.xlane.xlu0 %6264  ;;  %v13951_v34 = vadd.f32 %v13884_v31, %v6348_v57  ;;  %v6326_v58 = vmul.f32 %v10310_v44, %v13845_v16 }
 0xb59   : > { %10315 = vrsqrt.f32 %v6297_v53  ;;  %v6282_v61 = vmul.f32 0.0078125, %v6265_v0 }
 0xb5a   : > { %6541 = vmatmul.mubr.f32.gmra.mrb[162].mxu0 %v13951_v34  ;;  %v6349_v47 = vmul.f32 %v13878_v38, %v6326_v58 }
 0xb5b   : > { %v10312_v33 = vpop.eup %10311  ;;  %v6298_v40 = vadd.f32 1e-05, %v6282_v61  ;;  %6546 = vmatprep.mubr.f32.mxu0 %v10792_v20 }
 0xb5c   : > { %v6267_v21 = vpop.xlane.xlu1 %6266  ;;  %v13958_v62 = vadd.f32 %v13884_v31, %v6349_v47  ;;  %v6327_v54 = vmul.f32 %v10312_v33, %v13851_v27 }
 0xb5d   : > { %10317 = vrsqrt.f32 %v6298_v40  ;;  %v6283_v50 = vmul.f32 0.0078125, %v6267_v21 }
 0xb5e   : > { %6547 = vmatmul.mubr.f32.gmra.mrb[164].mxu0 %v13958_v62  ;;  %v6350_v16 = vmul.f32 %v13878_v38, %v6327_v54 }
 0xb5f   : > { %v10314_v59 = vpop.eup %10313  ;;  %v6299_v6 = vadd.f32 1e-05, %v6283_v50  ;;  %6552 = vmatprep.mubr.f32.mxu0 %v10792_v20 }
 0xb60   : > { %v13965_v17 = vadd.f32 %v13884_v31, %v6350_v16  ;;  %v6328_v32 = vmul.f32 %v10314_v59, %v13856_v22 }
 0xb61   : > { %10319 = vrsqrt.f32 %v6299_v6 }
 0xb62   : > { %6553 = vmatmul.mubr.f32.gmra.mrb[166].mxu0 %v13965_v17  ;;  %v6351_v27 = vmul.f32 %v13878_v38, %v6328_v32 }
 0xb63   : > { %v10316_v63 = vpop.eup %10315  ;;  %6558 = vmatprep.mubr.f32.mxu0 %v10792_v20 }
 0xb64   : > { %v13972_v24 = vadd.f32 %v13884_v31, %v6351_v27  ;;  %v6329_v42 = vmul.f32 %v10316_v63, %v13861_v29 }
 0xb66   : > { %6559 = vmatmul.mubr.f32.gmra.mrb[168].mxu0 %v13972_v24  ;;  %v6352_v49 = vmul.f32 %v13878_v38, %v6329_v42 }
 0xb67   : > { %v10318_v28 = vpop.eup %10317  ;;  %6564 = vmatprep.mubr.f32.mxu0 %v10792_v20 }
 0xb68   : > { %v13979_v22 = vadd.f32 %v13884_v31, %v6352_v49  ;;  %v6330_v14 = vmul.f32 %v10318_v28, %v13866_v35 }
 0xb6a   : > { %6565 = vmatmul.mubr.f32.gmra.mrb[170].mxu0 %v13979_v22  ;;  %v6353_v2 = vmul.f32 %v13878_v38, %v6330_v14 }
 0xb6b   : > { %v10320_v4 = vpop.eup %10319  ;;  %6570 = vmatprep.mubr.f32.mxu0 %v10792_v20 }
 0xb6c   : > { %v13986_v29 = vadd.f32 %v13884_v31, %v6353_v2  ;;  %v6331_v25 = vmul.f32 %v10320_v4, %v13871_v11  ;;  %v14729_v11 = vsub.s32 1, %v14727_v51 }
 0xb6e   : > { %6571 = vmatmul.mubr.f32.gmra.mrb[172].mxu0 %v13986_v29  ;;  %v6354_v36 = vmul.f32 %v13878_v38, %v6331_v25  ;;  %v14005_v30 = vrot.slane %v6410_v5, %v14729_v11 }
 0xb6f   : > { %6576 = vmatprep.mubr.f32.mxu0 %v10792_v20 }
 0xb70   : > { %v13993_v35 = vadd.f32 %v13884_v31, %v6354_v36 }
 0xb72   : > { %6577 = vmatmul.mubr.f32.gmra.mrb[174].mxu0 %v13993_v35 }
 0xc09   : > { %v6488_v38 = vpop.f32.mrb[144].mxu0 }
 0xc0a   : > { %v6489_v20 = vadd.f32 %v6488_v38, %v14001_v39  ;;  %v6490_v43 = vpop.f32.mrb[145].mxu0 }
 0xc0b   : > { %v6491_v31 = vadd.f32 %v6490_v43, %v14005_v30 }
 0xc0c   : > { %v6583_v1 = vmax.f32 %v6489_v20, 0.0 }
 0xc0d   : > { %v6584_v37 = vmax.f32 %v6491_v31, 0.0  ;;  %v6494_v8 = vpop.f32.mrb[146].mxu0 }
 0xc0e   : > { %v6495_v10 = vadd.f32 %v6494_v8, %v14001_v39  ;;  %v6496_v19 = vpop.f32.mrb[147].mxu0 }
 0xc0f   : > { %v6497_v15 = vadd.f32 %v6496_v19, %v14005_v30  ;;  %6718 = vmatprep.mubr.f32.mxu1 %v6584_v37 }
 0xc10   : > { %6719 = vmatmul.mubr.f32.vlgmr.msra.gmra.mrb[128].mxu1 %v6583_v1  ;;  %v6585_v3 = vmax.f32 %v6495_v10, 0.0 }
 0xc11   : > { %v6586_v48 = vmax.f32 %v6497_v15, 0.0  ;;  %v6500_v26 = vpop.f32.mrb[148].mxu0 }
 0xc12   : > { %v6501_v9 = vadd.f32 %v6500_v26, %v14001_v39  ;;  %v6502_v46 = vpop.f32.mrb[149].mxu0 }
 0xc13   : > { %v6503_v41 = vadd.f32 %v6502_v46, %v14005_v30  ;;  %6723 = vmatprep.mubr.f32.mxu1 %v6586_v48 }
 0xc14   : > { %6724 = vmatmul.mubr.f32.gmra.mrb[130].mxu1 %v6585_v3  ;;  %v6587_v53 = vmax.f32 %v6501_v9, 0.0 }
 0xc15   : > { %v6588_v57 = vmax.f32 %v6503_v41, 0.0  ;;  %v6506_v44 = vpop.f32.mrb[150].mxu0 }
 0xc16   : > { %v6507_v0 = vadd.f32 %v6506_v44, %v14001_v39  ;;  %v6508_v58 = vpop.f32.mrb[151].mxu0 }
 0xc17   : > { %v6509_v61 = vadd.f32 %v6508_v58, %v14005_v30  ;;  %6728 = vmatprep.mubr.f32.mxu1 %v6588_v57 }
 0xc18   : > { %6729 = vmatmul.mubr.f32.gmra.mrb[132].mxu1 %v6587_v53  ;;  %v6589_v40 = vmax.f32 %v6507_v0, 0.0 }
 0xc19   : > { %v6590_v47 = vmax.f32 %v6509_v61, 0.0  ;;  %v6512_v33 = vpop.f32.mrb[152].mxu0 }
 0xc1a   : > { %v6513_v21 = vadd.f32 %v6512_v33, %v14001_v39  ;;  %v6514_v54 = vpop.f32.mrb[153].mxu0 }
 0xc1b   : > { %v6515_v50 = vadd.f32 %v6514_v54, %v14005_v30  ;;  %6733 = vmatprep.mubr.f32.mxu1 %v6590_v47 }
 0xc1c   : > { %6734 = vmatmul.mubr.f32.gmra.mrb[134].mxu1 %v6589_v40  ;;  %v6591_v6 = vmax.f32 %v6513_v21, 0.0 }
 0xc1d   : > { %v6592_v16 = vmax.f32 %v6515_v50, 0.0  ;;  %v6518_v59 = vpop.f32.mrb[154].mxu0 }
 0xc1e   : > { %v6519_v32 = vadd.f32 %v6518_v59, %v14001_v39  ;;  %v6520_v27 = vpop.f32.mrb[155].mxu0 }
 0xc1f   : > { %v6521_v63 = vadd.f32 %v6520_v27, %v14005_v30  ;;  %6738 = vmatprep.mubr.f32.mxu1 %v6592_v16 }
 0xc20   : > { %6739 = vmatmul.mubr.f32.gmra.mrb[136].mxu1 %v6591_v6  ;;  %v6593_v28 = vmax.f32 %v6519_v32, 0.0 }
 0xc21   : > { %v6594_v42 = vmax.f32 %v6521_v63, 0.0  ;;  %v6524_v49 = vpop.f32.mrb[156].mxu0 }
 0xc22   : > { %v6525_v14 = vadd.f32 %v6524_v49, %v14001_v39  ;;  %v6526_v2 = vpop.f32.mrb[157].mxu0 }
 0xc23   : > { %v6527_v4 = vadd.f32 %v6526_v2, %v14005_v30  ;;  %6743 = vmatprep.mubr.f32.mxu1 %v6594_v42 }
 0xc24   : > { %6744 = vmatmul.mubr.f32.gmra.mrb[138].mxu1 %v6593_v28  ;;  %v6595_v5 = vmax.f32 %v6525_v14, 0.0 }
 0xc25   : > { %v6596_v25 = vmax.f32 %v6527_v4, 0.0  ;;  %v6530_v36 = vpop.f32.mrb[158].mxu0 }
 0xc26   : > { %v6531_v51 = vadd.f32 %v6530_v36, %v14001_v39  ;;  %v6532_v23 = vpop.f32.mrb[159].mxu0 }
 0xc27   : > { %v6533_v11 = vadd.f32 %v6532_v23, %v14005_v30  ;;  %6748 = vmatprep.mubr.f32.mxu1 %v6596_v25 }
 0xc28   : > { %6749 = vmatmul.mubr.f32.gmra.mrb[140].mxu1 %v6595_v5  ;;  %v6597_v43 = vmax.f32 %v6531_v51, 0.0 }
 0xc29   : > { %v6598_v38 = vmax.f32 %v6533_v11, 0.0  ;;  %v6536_v20 = vpop.f32.mrb[160].mxu0 }
 0xc2a   : > { %v6537_v31 = vadd.f32 %v6536_v20, %v14001_v39  ;;  %v6538_v37 = vpop.f32.mrb[161].mxu0 }
 0xc2b   : > { %v6539_v8 = vadd.f32 %v6538_v37, %v14005_v30  ;;  %6753 = vmatprep.mubr.f32.mxu1 %v6598_v38 }
 0xc2c   : > { %6754 = vmatmul.mubr.f32.gmra.mrb[142].mxu1 %v6597_v43  ;;  %v6599_v19 = vmax.f32 %v6537_v31, 0.0 }
 0xc2d   : > { %v6600_v1 = vmax.f32 %v6539_v8, 0.0  ;;  %v6542_v10 = vpop.f32.mrb[162].mxu0  ;;  %v14042_v8 = vld [vmem:[%s14730_s27] ss:$0 sm:$0xff]  ;;  %s14290_s27 = scalar_lea.sflag [#allocation7], %s730_s17 }
 0xc2e   : > { %v6543_v15 = vadd.f32 %v6542_v10, %v14001_v39  ;;  %v6544_v48 = vpop.f32.mrb[163].mxu0 }
 0xc2f   : > { %v6545_v26 = vadd.f32 %v6544_v48, %v14005_v30  ;;  %6758 = vmatprep.mubr.f32.mxu1 %v6600_v1 }
 0xc30   : > { %6759 = vmatmul.mubr.f32.gmra.mrb[144].mxu1 %v6599_v19  ;;  %v6601_v46 = vmax.f32 %v6543_v15, 0.0 }
 0xc31   : > { %v6602_v3 = vmax.f32 %v6545_v26, 0.0  ;;  %v6548_v9 = vpop.f32.mrb[164].mxu0 }
 0xc32   : > { %v6549_v41 = vadd.f32 %v6548_v9, %v14001_v39  ;;  %v6550_v57 = vpop.f32.mrb[165].mxu0 }
 0xc33   : > { %v6551_v44 = vadd.f32 %v6550_v57, %v14005_v30  ;;  %6763 = vmatprep.mubr.f32.mxu1 %v6602_v3 }
 0xc34   : > { %6764 = vmatmul.mubr.f32.gmra.mrb[146].mxu1 %v6601_v46  ;;  %v6603_v58 = vmax.f32 %v6549_v41, 0.0 }
 0xc35   : > { %v6604_v53 = vmax.f32 %v6551_v44, 0.0  ;;  %v6554_v0 = vpop.f32.mrb[166].mxu0 }
 0xc36   : > { %v6555_v61 = vadd.f32 %v6554_v0, %v14001_v39  ;;  %v6556_v47 = vpop.f32.mrb[167].mxu0 }
 0xc37   : > { %v6557_v33 = vadd.f32 %v6556_v47, %v14005_v30  ;;  %6768 = vmatprep.mubr.f32.mxu1 %v6604_v53 }
 0xc38   : > { %6769 = vmatmul.mubr.f32.gmra.mrb[148].mxu1 %v6603_v58  ;;  %v6605_v54 = vmax.f32 %v6555_v61, 0.0 }
 0xc39   : > { %v6606_v40 = vmax.f32 %v6557_v33, 0.0  ;;  %v6560_v21 = vpop.f32.mrb[168].mxu0 }
 0xc3a   : > { %v6561_v50 = vadd.f32 %v6560_v21, %v14001_v39  ;;  %v6562_v16 = vpop.f32.mrb[169].mxu0 }
 0xc3b   : > { %v6563_v59 = vadd.f32 %v6562_v16, %v14005_v30  ;;  %6773 = vmatprep.mubr.f32.mxu1 %v6606_v40 }
 0xc3c   : > { %6774 = vmatmul.mubr.f32.gmra.mrb[150].mxu1 %v6605_v54  ;;  %v6607_v27 = vmax.f32 %v6561_v50, 0.0 }
 0xc3d   : > { %v6608_v6 = vmax.f32 %v6563_v59, 0.0  ;;  %v6566_v32 = vpop.f32.mrb[170].mxu0 }
 0xc3e   : > { %v6567_v63 = vadd.f32 %v6566_v32, %v14001_v39  ;;  %v6568_v42 = vpop.f32.mrb[171].mxu0 }
 0xc3f   : > { %v6569_v49 = vadd.f32 %v6568_v42, %v14005_v30  ;;  %6778 = vmatprep.mubr.f32.mxu1 %v6608_v6 }
 0xc40   : > { %6779 = vmatmul.mubr.f32.gmra.mrb[152].mxu1 %v6607_v27  ;;  %v6609_v2 = vmax.f32 %v6567_v63, 0.0 }
 0xc41   : > { %v6610_v28 = vmax.f32 %v6569_v49, 0.0  ;;  %v6572_v14 = vpop.f32.mrb[172].mxu0 }
 0xc42   : > { %v6573_v4 = vadd.f32 %v6572_v14, %v14001_v39  ;;  %v6574_v25 = vpop.f32.mrb[173].mxu0 }
 0xc43   : > { %v6575_v36 = vadd.f32 %v6574_v25, %v14005_v30  ;;  %6783 = vmatprep.mubr.f32.mxu1 %v6610_v28 }
 0xc44   : > { %6784 = vmatmul.mubr.f32.gmra.mrb[154].mxu1 %v6609_v2  ;;  %v6611_v23 = vmax.f32 %v6573_v4, 0.0 }
 0xc45   : > { %v6612_v5 = vmax.f32 %v6575_v36, 0.0  ;;  %v6578_v51 = vpop.f32.mrb[174].mxu0 }
 0xc46   : > { %v6579_v11 = vadd.f32 %v6578_v51, %v14001_v39  ;;  %v6580_v38 = vpop.f32.mrb[175].mxu0 }
 0xc47   : > { %v6581_v20 = vadd.f32 %v6580_v38, %v14005_v30  ;;  %6788 = vmatprep.mubr.f32.mxu1 %v6612_v5 }
 0xc48   : > { %6789 = vmatmul.mubr.f32.gmra.mrb[156].mxu1 %v6611_v23  ;;  %v6613_v31 = vmax.f32 %v6579_v11, 0.0 }
 0xc49   : > { %v6614_v43 = vmax.f32 %v6581_v20, 0.0 }
 0xc4b   : > { %6793 = vmatprep.mubr.f32.mxu1 %v6614_v43 }
 0xc4c   : > { %6794 = vmatmul.mubr.f32.gmra.mrb[158].mxu1 %v6613_v31 }
 0xce3   : > { %v8483_v37 = vpop.f32.mrb[128].mxu1 }
 0xce4   : > { %v8484_v1 = vpop.f32.mrb[129].mxu1 }
 0xce5   : > { %v8485_v10 = vadd.f32 %v8484_v1, %v8483_v37 }
 0xce7   : > { %v6721_v19 = vadd.f32 %v8485_v10, %v14042_v8  ;;  %v8486_v39 = vpop.f32.mrb[130].mxu1 }
 0xce8   : > { %v8487_v15 = vpop.f32.mrb[131].mxu1 }
 0xce9   : > { %v8488_v48 = vadd.f32 %v8487_v15, %v8486_v39  ;;  %v14046_v30 = vadd.f32 %v6721_v19, %v13888_v55 }
 0xceb   : > { %v6726_v26 = vadd.f32 %v8488_v48, %v14042_v8  ;;  %6815 = vadd.xlane.f32.xlu0 %v14046_v30  ;;  %v8489_v3 = vpop.f32.mrb[132].mxu1 }
 0xcec   : > { %v8490_v9 = vpop.f32.mrb[133].mxu1 }
 0xced   : > { %v8491_v46 = vadd.f32 %v8490_v9, %v8489_v3  ;;  %v14051_v41 = vadd.f32 %v6726_v26, %v13895_v52 }
 0xcef   : > { %v6731_v57 = vadd.f32 %v8491_v46, %v14042_v8  ;;  %6817 = vadd.xlane.f32.xlu1 %v14051_v41  ;;  %v8492_v44 = vpop.f32.mrb[134].mxu1 }
 0xcf0   : > { %v8493_v53 = vpop.f32.mrb[135].mxu1 }
 0xcf1   : > { %v8494_v0 = vadd.f32 %v8493_v53, %v8492_v44  ;;  %v14056_v55 = vadd.f32 %v6731_v57, %v13902_v7 }
 0xcf3   : > { %v6736_v58 = vadd.f32 %v8494_v0, %v14042_v8  ;;  %6819 = vadd.xlane.f32.xlu0 %v14056_v55  ;;  %v8495_v61 = vpop.f32.mrb[136].mxu1 }
 0xcf4   : > { %v8496_v47 = vpop.f32.mrb[137].mxu1 }
 0xcf5   : > { %v8497_v33 = vadd.f32 %v8496_v47, %v8495_v61  ;;  %v14061_v52 = vadd.f32 %v6736_v58, %v13909_v13 }
 0xcf7   : > { %v6741_v40 = vadd.f32 %v8497_v33, %v14042_v8  ;;  %6821 = vadd.xlane.f32.xlu1 %v14061_v52  ;;  %v8498_v21 = vpop.f32.mrb[138].mxu1 }
 0xcf8   : > { %v8499_v54 = vpop.f32.mrb[139].mxu1 }
 0xcf9   : > { %v8500_v50 = vadd.f32 %v8499_v54, %v8498_v21  ;;  %v14066_v7 = vadd.f32 %v6741_v40, %v13916_v45 }
 0xcfb   : > { %v6746_v16 = vadd.f32 %v8500_v50, %v14042_v8  ;;  %6823 = vadd.xlane.f32.xlu0 %v14066_v7  ;;  %v8501_v59 = vpop.f32.mrb[140].mxu1 }
 0xcfc   : > { %v8502_v6 = vpop.f32.mrb[141].mxu1 }
 0xcfd   : > { %v8503_v32 = vadd.f32 %v8502_v6, %v8501_v59  ;;  %v14071_v13 = vadd.f32 %v6746_v16, %v13923_v56 }
 0xcff   : > { %v6751_v27 = vadd.f32 %v8503_v32, %v14042_v8  ;;  %6825 = vadd.xlane.f32.xlu1 %v14071_v13  ;;  %v8504_v63 = vpop.f32.mrb[142].mxu1 }
 0xd00   : > { %v8505_v42 = vpop.f32.mrb[143].mxu1 }
 0xd01   : > { %v8506_v49 = vadd.f32 %v8505_v42, %v8504_v63  ;;  %v14076_v45 = vadd.f32 %v6751_v27, %v13930_v18 }
 0xd03   : > { %v6756_v28 = vadd.f32 %v8506_v49, %v14042_v8  ;;  %6827 = vadd.xlane.f32.xlu0 %v14076_v45  ;;  %v8507_v14 = vpop.f32.mrb[144].mxu1 }
 0xd04   : > { %v8508_v2 = vpop.f32.mrb[145].mxu1 }
 0xd05   : > { %v8509_v4 = vadd.f32 %v8508_v2, %v8507_v14  ;;  %v14081_v56 = vadd.f32 %v6756_v28, %v13937_v12 }
 0xd07   : > { %v6761_v25 = vadd.f32 %v8509_v4, %v14042_v8  ;;  %6829 = vadd.xlane.f32.xlu1 %v14081_v56  ;;  %v8510_v36 = vpop.f32.mrb[146].mxu1 }
 0xd08   : > { %v8511_v5 = vpop.f32.mrb[147].mxu1 }
 0xd09   : > { %v8512_v51 = vadd.f32 %v8511_v5, %v8510_v36  ;;  %v14086_v18 = vadd.f32 %v6761_v25, %v13944_v60 }
 0xd0b   : > { %v6766_v23 = vadd.f32 %v8512_v51, %v14042_v8  ;;  %6831 = vadd.xlane.f32.xlu0 %v14086_v18  ;;  %v8513_v11 = vpop.f32.mrb[148].mxu1 }
 0xd0c   : > { %v8514_v38 = vpop.f32.mrb[149].mxu1 }
 0xd0d   : > { %v8515_v20 = vadd.f32 %v8514_v38, %v8513_v11  ;;  %v14091_v12 = vadd.f32 %v6766_v23, %v13951_v34 }
 0xd0f   : > { %v6771_v43 = vadd.f32 %v8515_v20, %v14042_v8  ;;  %6833 = vadd.xlane.f32.xlu1 %v14091_v12  ;;  %v8516_v31 = vpop.f32.mrb[150].mxu1 }
 0xd10   : > { %v8517_v37 = vpop.f32.mrb[151].mxu1 }
 0xd11   : > { %v8518_v1 = vadd.f32 %v8517_v37, %v8516_v31  ;;  %v14096_v60 = vadd.f32 %v6771_v43, %v13958_v62 }
 0xd13   : > { %v6776_v10 = vadd.f32 %v8518_v1, %v14042_v8  ;;  %6835 = vadd.xlane.f32.xlu0 %v14096_v60  ;;  %v8519_v19 = vpop.f32.mrb[152].mxu1 }
 0xd14   : > { %v8520_v39 = vpop.f32.mrb[153].mxu1 }
 0xd15   : > { %v8521_v15 = vadd.f32 %v8520_v39, %v8519_v19  ;;  %v14101_v34 = vadd.f32 %v6776_v10, %v13965_v17 }
 0xd17   : > { %v6781_v48 = vadd.f32 %v8521_v15, %v14042_v8  ;;  %6837 = vadd.xlane.f32.xlu1 %v14101_v34  ;;  %v8522_v26 = vpop.f32.mrb[154].mxu1 }
 0xd18   : > { %v8523_v3 = vpop.f32.mrb[155].mxu1 }
 0xd19   : > { %v8524_v9 = vadd.f32 %v8523_v3, %v8522_v26  ;;  %v14106_v62 = vadd.f32 %v6781_v48, %v13972_v24 }
 0xd1b   : > { %v6786_v46 = vadd.f32 %v8524_v9, %v14042_v8  ;;  %6839 = vadd.xlane.f32.xlu0 %v14106_v62  ;;  %v8525_v57 = vpop.f32.mrb[156].mxu1 }
 0xd1c   : > { %v8526_v44 = vpop.f32.mrb[157].mxu1 }
 0xd1d   : > { %v8527_v53 = vadd.f32 %v8526_v44, %v8525_v57  ;;  %v14111_v17 = vadd.f32 %v6786_v46, %v13979_v22 }
 0xd1f   : > { %v6791_v0 = vadd.f32 %v8527_v53, %v14042_v8  ;;  %6841 = vadd.xlane.f32.xlu1 %v14111_v17  ;;  %v8528_v58 = vpop.f32.mrb[158].mxu1 }
 0xd20   : > { %v8529_v61 = vpop.f32.mrb[159].mxu1 }
 0xd21   : > { %v8530_v47 = vadd.f32 %v8529_v61, %v8528_v58  ;;  %v14116_v24 = vadd.f32 %v6791_v0, %v13986_v29 }
 0xd23   : > { %v6796_v33 = vadd.f32 %v8530_v47, %v14042_v8  ;;  %6843 = vadd.xlane.f32.xlu0 %v14116_v24 }
 0xd25   : > { %v14121_v40 = vadd.f32 %v6796_v33, %v13993_v35 }
 0xd27   : > { %6845 = vadd.xlane.f32.xlu1 %v14121_v40 }
 0xd78   : > { %v6816_v22 = vpop.xlane.xlu0 %6815 }
 0xd79   : > { %v6847_v21 = vmul.f32 0.0078125, %v6816_v22 }
 0xd7b   : > { %v14125_v54 = vsub.f32 %v14046_v30, %v6847_v21 }
 0xd7c   : > { %v6818_v50 = vpop.xlane.xlu1 %6817 }
 0xd7d   : > { %v6848_v16 = vmul.f32 0.0078125, %v6818_v50  ;;  %v6879_v29 = vmul.f32 %v14125_v54, %v14125_v54 }
 0xd7f   : > { %v14130_v59 = vsub.f32 %v14051_v41, %v6848_v16  ;;  %6895 = vadd.xlane.f32.xlu0 %v6879_v29 }
 0xd80   : > { %v6820_v8 = vpop.xlane.xlu0 %6819 }
 0xd81   : > { %v6849_v6 = vmul.f32 0.0078125, %v6820_v8  ;;  %v6880_v35 = vmul.f32 %v14130_v59, %v14130_v59 }
 0xd83   : > { %v14135_v32 = vsub.f32 %v14056_v55, %v6849_v6  ;;  %6897 = vadd.xlane.f32.xlu1 %v6880_v35 }
 0xd84   : > { %v6822_v30 = vpop.xlane.xlu1 %6821 }
 0xd85   : > { %v6850_v27 = vmul.f32 0.0078125, %v6822_v30  ;;  %v6881_v63 = vmul.f32 %v14135_v32, %v14135_v32 }
 0xd87   : > { %v14140_v42 = vsub.f32 %v14061_v52, %v6850_v27  ;;  %6899 = vadd.xlane.f32.xlu0 %v6881_v63 }
 0xd88   : > { %v6824_v41 = vpop.xlane.xlu0 %6823 }
 0xd89   : > { %v6851_v49 = vmul.f32 0.0078125, %v6824_v41  ;;  %v6882_v28 = vmul.f32 %v14140_v42, %v14140_v42 }
 0xd8b   : > { %v14145_v14 = vsub.f32 %v14066_v7, %v6851_v49  ;;  %6901 = vadd.xlane.f32.xlu1 %v6882_v28  ;;  %v14207_v49 = vld [vmem:[%s14731_s14] ss:$0 sm:$0xff]  ;;  %s10633_s14 = sshll.u32 %s10793_s24, 4  ;;  %s10634_s14 = int_to_ptr.vmem [resolvable:$false] %s10633_s14 }
 0xd8c   : > { %v6826_v55 = vpop.xlane.xlu1 %6825  ;;  %s10635_s26 = scalar_lea.vmem %s10634_s14, 4096  ;;  %p10636_p3 = scmp.lt.s32.totalorder %s14284_s30, %s10634_s14 }
 0xd8d   : > { %v6852_v2 = vmul.f32 0.0078125, %v6826_v55  ;;  %v6883_v4 = vmul.f32 %v14145_v14, %v14145_v14  ;;  %p10637_p5 = scmp.lt.s32.totalorder %s10635_s26, %s10629_s23 }
 0xd8f   : > { %v14150_v25 = vsub.f32 %v14071_v13, %v6852_v2  ;;  %6903 = vadd.xlane.f32.xlu0 %v6883_v4  ;;  %v14213_v4 = vld [vmem:[%s14732_s3] ss:$0 sm:$0xff]  ;;  %p10638_p6 = por %p10637_p5, %p10636_p3 }
 0xd90   : > { %v6828_v52 = vpop.xlane.xlu0 %6827 }
 0xd91   : > { %v6853_v36 = vmul.f32 0.0078125, %v6828_v52  ;;  %v6884_v5 = vmul.f32 %v14150_v25, %v14150_v25  ;;  %p10639_p1 = pnand %p10638_p6, %p10632_p9 }
 0xd93   : > { %v14155_v51 = vsub.f32 %v14076_v45, %v6853_v36  ;;  %6905 = vadd.xlane.f32.xlu1 %v6884_v5 }
 0xd94   : > { %v6830_v7 = vpop.xlane.xlu1 %6829 }
 0xd95   : > { %v6854_v23 = vmul.f32 0.0078125, %v6830_v7  ;;  %v6885_v11 = vmul.f32 %v14155_v51, %v14155_v51 }
 0xd97   : > { %v14160_v38 = vsub.f32 %v14081_v56, %v6854_v23  ;;  %6907 = vadd.xlane.f32.xlu0 %v6885_v11 }
 0xd98   : > { %v6832_v13 = vpop.xlane.xlu0 %6831 }
 0xd99   : > { %v6855_v20 = vmul.f32 0.0078125, %v6832_v13  ;;  %v6886_v43 = vmul.f32 %v14160_v38, %v14160_v38 }
 0xd9b   : > { %v14165_v31 = vsub.f32 %v14086_v18, %v6855_v20  ;;  %6909 = vadd.xlane.f32.xlu1 %v6886_v43 }
 0xd9c   : > { %v6834_v45 = vpop.xlane.xlu1 %6833 }
 0xd9d   : > { %v6856_v37 = vmul.f32 0.0078125, %v6834_v45  ;;  %v6887_v1 = vmul.f32 %v14165_v31, %v14165_v31 }
 0xd9f   : > { %v14170_v10 = vsub.f32 %v14091_v12, %v6856_v37  ;;  %6911 = vadd.xlane.f32.xlu0 %v6887_v1 }
 0xda0   : > { %v6836_v56 = vpop.xlane.xlu0 %6835 }
 0xda1   : > { %v6857_v19 = vmul.f32 0.0078125, %v6836_v56  ;;  %v6888_v39 = vmul.f32 %v14170_v10, %v14170_v10 }
 0xda3   : > { %v14175_v15 = vsub.f32 %v14096_v60, %v6857_v19  ;;  %6913 = vadd.xlane.f32.xlu1 %v6888_v39 }
 0xda4   : > { %v6838_v18 = vpop.xlane.xlu1 %6837 }
 0xda5   : > { %v6858_v48 = vmul.f32 0.0078125, %v6838_v18  ;;  %v6889_v26 = vmul.f32 %v14175_v15, %v14175_v15 }
 0xda7   : > { %v14180_v3 = vsub.f32 %v14101_v34, %v6858_v48  ;;  %6915 = vadd.xlane.f32.xlu0 %v6889_v26 }
 0xda8   : > { %v6840_v12 = vpop.xlane.xlu0 %6839 }
 0xda9   : > { %v6859_v9 = vmul.f32 0.0078125, %v6840_v12  ;;  %v6890_v46 = vmul.f32 %v14180_v3, %v14180_v3 }
 0xdab   : > { %v14185_v57 = vsub.f32 %v14106_v62, %v6859_v9  ;;  %6917 = vadd.xlane.f32.xlu1 %v6890_v46 }
 0xdac   : > { %v6842_v60 = vpop.xlane.xlu1 %6841 }
 0xdad   : > { %v6860_v44 = vmul.f32 0.0078125, %v6842_v60  ;;  %v6891_v53 = vmul.f32 %v14185_v57, %v14185_v57 }
 0xdaf   : > { %v14190_v0 = vsub.f32 %v14111_v17, %v6860_v44  ;;  %6919 = vadd.xlane.f32.xlu0 %v6891_v53 }
 0xdb0   : > { %v6844_v34 = vpop.xlane.xlu0 %6843 }
 0xdb1   : > { %v6861_v58 = vmul.f32 0.0078125, %v6844_v34  ;;  %v6892_v61 = vmul.f32 %v14190_v0, %v14190_v0 }
 0xdb3   : > { %v14195_v47 = vsub.f32 %v14116_v24, %v6861_v58  ;;  %6921 = vadd.xlane.f32.xlu1 %v6892_v61 }
 0xdb4   : > { %v6846_v62 = vpop.xlane.xlu1 %6845 }
 0xdb5   : > { %v6862_v33 = vmul.f32 0.0078125, %v6846_v62  ;;  %v6893_v22 = vmul.f32 %v14195_v47, %v14195_v47 }
 0xdb7   : > { %v14200_v21 = vsub.f32 %v14121_v40, %v6862_v33  ;;  %6923 = vadd.xlane.f32.xlu0 %v6893_v22 }
 0xdb9   : > { %v6894_v17 = vmul.f32 %v14200_v21, %v14200_v21 }
 0xdbb   : > { %6925 = vadd.xlane.f32.xlu1 %v6894_v17 }
 0xe0c   : > { %v6896_v50 = vpop.xlane.xlu0 %6895 }
 0xe0d   : > { %v6927_v16 = vmul.f32 0.0078125, %v6896_v50 }
 0xe0f   : > { %v6943_v29 = vadd.f32 1e-05, %v6927_v16 }
 0xe10   : > { %v6898_v8 = vpop.xlane.xlu1 %6897 }
 0xe11   : > { %10321 = vrsqrt.f32 %v6943_v29  ;;  %v6928_v24 = vmul.f32 0.0078125, %v6898_v8 }
 0xe13   : > { %v6944_v6 = vadd.f32 1e-05, %v6928_v24 }
 0xe14   : > { %v6900_v35 = vpop.xlane.xlu0 %6899 }
 0xe15   : > { %10323 = vrsqrt.f32 %v6944_v6  ;;  %v6929_v30 = vmul.f32 0.0078125, %v6900_v35 }
 0xe17   : > { %v6945_v27 = vadd.f32 1e-05, %v6929_v30 }
 0xe18   : > { %v6902_v63 = vpop.xlane.xlu1 %6901 }
 0xe19   : > { %10325 = vrsqrt.f32 %v6945_v27  ;;  %v6930_v40 = vmul.f32 0.0078125, %v6902_v63 }
 0xe1b   : > { %v10322_v41 = vpop.eup %10321  ;;  %v6946_v28 = vadd.f32 1e-05, %v6930_v40 }
 0xe1c   : > { %v6975_v55 = vmul.f32 %v10322_v41, %v14125_v54  ;;  %v6904_v2 = vpop.xlane.xlu0 %6903 }
 0xe1d   : > { %10327 = vrsqrt.f32 %v6946_v28  ;;  %v6931_v52 = vmul.f32 0.0078125, %v6904_v2 }
 0xe1e   : > { %v6998_v36 = vmul.f32 %v14207_v49, %v6975_v55 }
 0xe1f   : > { %v10324_v5 = vpop.eup %10323  ;;  %v6947_v7 = vadd.f32 1e-05, %v6931_v52 }
 0xe20   : > { %v7021_v23 = vadd.f32 %v14213_v4, %v6998_v36  ;;  %v6976_v11 = vmul.f32 %v10324_v5, %v14130_v59  ;;  %v6906_v13 = vpop.xlane.xlu1 %6905 }
 0xe21   : > { %10329 = vrsqrt.f32 %v6947_v7  ;;  %v6932_v54 = vmul.f32 0.0078125, %v6906_v13 }
 0xe22   : > { %7037 = vst [vmem:[%s11285_s7] sm:$0xff] %v7021_v23  ;;  %v6999_v20 = vmul.f32 %v14207_v49, %v6976_v11 }
 0xe23   : > { %v10326_v43 = vpop.eup %10325  ;;  %v6948_v45 = vadd.f32 1e-05, %v6932_v54 }
 0xe24   : > { %v7022_v37 = vadd.f32 %v14213_v4, %v6999_v20  ;;  %v6977_v1 = vmul.f32 %v10326_v43, %v14135_v32  ;;  %v6908_v56 = vpop.xlane.xlu0 %6907 }
 0xe25   : > { %10331 = vrsqrt.f32 %v6948_v45  ;;  %v6933_v19 = vmul.f32 0.0078125, %v6908_v56 }
 0xe26   : > { %7038 = vst [vmem:[%s11285_s7 + $0x8] sm:$0xff] %v7022_v37  ;;  %v7000_v39 = vmul.f32 %v14207_v49, %v6977_v1 }
 0xe27   : > { %v10328_v59 = vpop.eup %10327  ;;  %v6949_v18 = vadd.f32 1e-05, %v6933_v19 }
 0xe28   : > { %v7023_v48 = vadd.f32 %v14213_v4, %v7000_v39  ;;  %v6978_v26 = vmul.f32 %v10328_v59, %v14140_v42  ;;  %v6910_v12 = vpop.xlane.xlu1 %6909 }
 0xe29   : > { %10333 = vrsqrt.f32 %v6949_v18  ;;  %v6934_v9 = vmul.f32 0.0078125, %v6910_v12 }
 0xe2a   : > { %7039 = vst [vmem:[%s11285_s7 + $0x10] sm:$0xff] %v7023_v48  ;;  %v7001_v46 = vmul.f32 %v14207_v49, %v6978_v26 }
 0xe2b   : > { %v10330_v32 = vpop.eup %10329  ;;  %v6950_v60 = vadd.f32 1e-05, %v6934_v9 }
 0xe2c   : > { %v7024_v44 = vadd.f32 %v14213_v4, %v7001_v46  ;;  %v6979_v53 = vmul.f32 %v10330_v32, %v14145_v14  ;;  %v6912_v34 = vpop.xlane.xlu0 %6911 }
 0xe2d   : > { %10335 = vrsqrt.f32 %v6950_v60  ;;  %v6935_v58 = vmul.f32 0.0078125, %v6912_v34 }
 0xe2e   : > { %7040 = vst [vmem:[%s11285_s7 + $0x18] sm:$0xff] %v7024_v44  ;;  %v7002_v61 = vmul.f32 %v14207_v49, %v6979_v53 }
 0xe2f   : > { %v10332_v42 = vpop.eup %10331  ;;  %v6951_v62 = vadd.f32 1e-05, %v6935_v58 }
 0xe30   : > { %v7025_v33 = vadd.f32 %v14213_v4, %v7002_v61  ;;  %v6980_v22 = vmul.f32 %v10332_v42, %v14150_v25  ;;  %v6914_v17 = vpop.xlane.xlu1 %6913 }
 0xe31   : > { %10337 = vrsqrt.f32 %v6951_v62  ;;  %v6936_v50 = vmul.f32 0.0078125, %v6914_v17 }
 0xe32   : > { %7041 = vst [vmem:[%s11285_s7 + $0x20] sm:$0xff] %v7025_v33  ;;  %v7003_v16 = vmul.f32 %v14207_v49, %v6980_v22 }
 0xe33   : > { %v10334_v14 = vpop.eup %10333  ;;  %v6952_v29 = vadd.f32 1e-05, %v6936_v50 }
 0xe34   : > { %v7026_v8 = vadd.f32 %v14213_v4, %v7003_v16  ;;  %v6981_v24 = vmul.f32 %v10334_v14, %v14155_v51  ;;  %v6916_v6 = vpop.xlane.xlu0 %6915 }
 0xe35   : > { %10339 = vrsqrt.f32 %v6952_v29  ;;  %v6937_v35 = vmul.f32 0.0078125, %v6916_v6 }
 0xe36   : > { %7042 = vst [vmem:[%s11285_s7 + $0x28] sm:$0xff] %v7026_v8  ;;  %v7004_v30 = vmul.f32 %v14207_v49, %v6981_v24 }
 0xe37   : > { %v10336_v25 = vpop.eup %10335  ;;  %v6953_v27 = vadd.f32 1e-05, %v6937_v35 }
 0xe38   : > { %v7027_v63 = vadd.f32 %v14213_v4, %v7004_v30  ;;  %v6982_v40 = vmul.f32 %v10336_v25, %v14160_v38  ;;  %v6918_v41 = vpop.xlane.xlu1 %6917 }
 0xe39   : > { %10341 = vrsqrt.f32 %v6953_v27  ;;  %v6938_v28 = vmul.f32 0.0078125, %v6918_v41 }
 0xe3a   : > { %7043 = vst [vmem:[%s11285_s7 + $0x30] sm:$0xff] %v7027_v63  ;;  %v7005_v55 = vmul.f32 %v14207_v49, %v6982_v40 }
 0xe3b   : > { %v10338_v51 = vpop.eup %10337  ;;  %v6954_v2 = vadd.f32 1e-05, %v6938_v28 }
 0xe3c   : > { %v7028_v52 = vadd.f32 %v14213_v4, %v7005_v55  ;;  %v6983_v36 = vmul.f32 %v10338_v51, %v14165_v31  ;;  %v6920_v5 = vpop.xlane.xlu0 %6919 }
 0xe3d   : > { %10343 = vrsqrt.f32 %v6954_v2  ;;  %v6939_v7 = vmul.f32 0.0078125, %v6920_v5 }
 0xe3e   : > { %7044 = vst [vmem:[%s11285_s7 + $0x38] sm:$0xff] %v7028_v52  ;;  %v7006_v23 = vmul.f32 %v14207_v49, %v6983_v36 }
 0xe3f   : > { %v10340_v38 = vpop.eup %10339  ;;  %v6955_v11 = vadd.f32 1e-05, %v6939_v7 }
 0xe40   : > { %v7029_v13 = vadd.f32 %v14213_v4, %v7006_v23  ;;  %v6984_v54 = vmul.f32 %v10340_v38, %v14170_v10  ;;  %v6922_v20 = vpop.xlane.xlu1 %6921 }
 0xe41   : > { %10345 = vrsqrt.f32 %v6955_v11  ;;  %v6940_v43 = vmul.f32 0.0078125, %v6922_v20 }
 0xe42   : > { %7045 = vst [vmem:[%s11285_s7 + $0x40] sm:$0xff] %v7029_v13  ;;  %v7007_v45 = vmul.f32 %v14207_v49, %v6984_v54 }
 0xe43   : > { %v10342_v31 = vpop.eup %10341  ;;  %v6956_v37 = vadd.f32 1e-05, %v6940_v43 }
 0xe44   : > { %v7030_v1 = vadd.f32 %v14213_v4, %v7007_v45  ;;  %v6985_v56 = vmul.f32 %v10342_v31, %v14175_v15  ;;  %v6924_v19 = vpop.xlane.xlu0 %6923 }
 0xe45   : > { %10347 = vrsqrt.f32 %v6956_v37  ;;  %v6941_v39 = vmul.f32 0.0078125, %v6924_v19 }
 0xe46   : > { %7046 = vst [vmem:[%s11285_s7 + $0x48] sm:$0xff] %v7030_v1  ;;  %v7008_v10 = vmul.f32 %v14207_v49, %v6985_v56 }
 0xe47   : > { %v10344_v59 = vpop.eup %10343  ;;  %v6957_v18 = vadd.f32 1e-05, %v6941_v39 }
 0xe48   : > { %v7031_v48 = vadd.f32 %v14213_v4, %v7008_v10  ;;  %v6986_v26 = vmul.f32 %v10344_v59, %v14180_v3  ;;  %v6926_v12 = vpop.xlane.xlu1 %6925 }
 0xe49   : > { %10349 = vrsqrt.f32 %v6957_v18  ;;  %v6942_v9 = vmul.f32 0.0078125, %v6926_v12 }
 0xe4a   : > { %7047 = vst [vmem:[%s11285_s7 + $0x50] sm:$0xff] %v7031_v48  ;;  %v7009_v15 = vmul.f32 %v14207_v49, %v6986_v26 }
 0xe4b   : > { %v10346_v46 = vpop.eup %10345  ;;  %v6958_v32 = vadd.f32 1e-05, %v6942_v9 }
 0xe4c   : > { %v7032_v60 = vadd.f32 %v14213_v4, %v7009_v15  ;;  %v6987_v44 = vmul.f32 %v10346_v46, %v14185_v57 }
 0xe4d   : > { %10351 = vrsqrt.f32 %v6958_v32 }
 0xe4e   : > { %7048 = vst [vmem:[%s11285_s7 + $0x58] sm:$0xff] %v7032_v60  ;;  %v7010_v3 = vmul.f32 %v14207_v49, %v6987_v44 }
 0xe4f   : > { %v10348_v53 = vpop.eup %10347 }
 0xe50   : > { %v7033_v34 = vadd.f32 %v14213_v4, %v7010_v3  ;;  %v6988_v58 = vmul.f32 %v10348_v53, %v14190_v0 }
 0xe52   : > { %7049 = vst [vmem:[%s11285_s7 + $0x60] sm:$0xff] %v7033_v34  ;;  %v7011_v61 = vmul.f32 %v14207_v49, %v6988_v58 }
 0xe53   : > { %v10350_v42 = vpop.eup %10349 }
 0xe54   : > { %v7034_v57 = vadd.f32 %v14213_v4, %v7011_v61  ;;  %v6989_v62 = vmul.f32 %v10350_v42, %v14195_v47 }
 0xe56   : > { %7050 = vst [vmem:[%s11285_s7 + $0x68] sm:$0xff] %v7034_v57  ;;  %v7012_v33 = vmul.f32 %v14207_v49, %v6989_v62 }
 0xe57   : > { %v10352_v22 = vpop.eup %10351 }
 0xe58   : > { %v7035_v0 = vadd.f32 %v14213_v4, %v7012_v33  ;;  %v6990_v17 = vmul.f32 %v10352_v22, %v14200_v21 }
 0xe5a   : > { %7051 = vst [vmem:[%s11285_s7 + $0x70] sm:$0xff] %v7035_v0  ;;  %v7013_v50 = vmul.f32 %v14207_v49, %v6990_v17 }
 0xe5c   : > { %v7036_v47 = vadd.f32 %v14213_v4, %v7013_v50 }
 0xe5e   : > { %7052 = vst [vmem:[%s11285_s7 + $0x78] sm:$0xff] %v7036_v47 }
 0xe5f   : > { %10642 = shalt.err (!%p10639_p1)
}
 0xe60   : > { %s10643_s17 = scalar_lea.hbm %s14282_s20, 2048  ;;  %s10647_s3 = scalar_lea.hbm %s14734_s25, 8192 }
 0xe61   : > { %p10644_p0 = scmp.ne.s32.totalorder %s14282_s20, %s10643_s17  ;;  %p10648_p2 = scmp.lt.u32.totalorder %s14282_s20, %s14734_s25 }
 0xe62   : > { %p10649_p10 = scmp.lt.u32.totalorder %s10647_s3, %s10643_s17  ;;  %p10651_p13 = scmp.lt.u32.totalorder %s10643_s17, %s14282_s20 }
 0xe63   : > { %p10645_p7 = pnand %p10644_p0, %p14735_p11 }
 0xe64   : > { %p10650_p8 = por %p10649_p10, %p10648_p2 }
 0xe65   : > { %p10646_p4 = pneg %p10645_p7 }
 0xe66   : > { %p10652_p12 = por %p10651_p13, %p10650_p8 }
 0xe68   : > { %p10653_p9 = pnand %p10652_p12, %p10646_p4 }
 0xe6a   : > { %10656 = shalt.err (!%p10653_p9)
}
 0xe6b   : > { %s10794_s16 = smov 128   ;;  %s10795_s8 = smov 8  }
 0xe6c   : > { %9511 = dma.vmem_to_hbm [thread:$0]  (%p14735_p11), %s14284_s30, 2048, %s14282_s20, %s14290_s27, %s10794_s16, %s10794_s16, %s10795_s8  }
 0xe6d PF: > { %s14736_s12 = sld [smem:[#allocation27_spill]]  ;;  %p9556_p3 = scmp.ge.s32.totalorder %s10771_s2, 2 }
 0xe6e   : > { %p14737_p5 = scmp.ne.s32.totalorder %s14509_s10, 0 }
 0xe70   : > { %p9540_p6 = pnand %p9556_p3, %p14737_p5 }
 0xe73   : > { %s7084_s6 = sand.u32 1, %s14736_s12  }
 0xe74   : > { %s7085_s4 = scalar_lea.sflag [#allocation7], %s7084_s6 }
 0xe75   : > { %10726 = dma.done.wait (!%p9540_p6), %s7085_s4, 2048  }
 0xe76   : > { %10728 = vsyncadd (!%p9540_p6), %s7085_s4, 4294965248  ;;  %s40_s2 = sadd.s32 1, %s10771_s2   ;;  %s14738_s23 = sld [smem:[#allocation31_spill]] }
 0xe77   : > { %p37_p1 = scmp.ge.s32.totalorder %s40_s2, 6   ;;  %s14739_s24 = sld [smem:[#allocation32_spill]] }
 0xe78   : > { %s14740_s27 = smov %s10735_s28  ;;  %s14741_s28 = smov %s10739_s29 }
 0xe79   : > { %s14742_s29 = smov %s11165_s9  ;;  %s14743_s30 = smov %s10747_s0 }
 0xe7a   : > { %s14744_s0 = smov %s10751_s19  ;;  %s14745_s19 = smov %s11162_s13 }
 0xe7b   : > { %s14746_s1 = smov %s10763_s21  ;;  %s14747_s20 = smov %s10767_s22 }
 0xe7c   : > { %s14748_s21 = smov %s14738_s23  ;;  %39 = sbr.rel (!%p37_p1) target bundleno = 34 (0x22), region = 185 }
 0xe7d   : > { %s14749_s22 = smov %s14739_s24 }
 0xe83   :  { %7090 = vsyncpa [#allocation6], 1 }
 0xe84   :  { %7092 = vsyncpa [#allocation6 + $0x1], 1 }
 0xe85   :  { %7093 = vsyncpa [#allocation9], 1 }
 0xe86   :  { %7095 = vsyncpa [#allocation9 + $0x1], 1 }
 0xe87   :  { %7096 = vsyncpa [#allocation12], 1 }
 0xe88   :  { %7097 = vsyncpa [#allocation15], 1 }
 0xe89   :  { %7098 = vsyncpa [#allocation18], 1 }
 0xe8a   :  { %7099 = vsyncpa [#allocation7], 1 }
 0xe8b   :  { %7101 = vsyncpa [#allocation7 + $0x1], 1 }

</bundles_post_ra>
